<compile_context>
chip_gen: v5e
topology: v5e:2x2
jax: 0.10.0
libtpu: 0.0.40
codegen_flags: <defaults>
</compile_context>

<pallas_src>
import math
import jax
import jax.numpy as jnp
from jax.experimental import pallas as pl
from jax.experimental.pallas import tpu as pltpu

# ------------------------------- model sizes ---------------------------------
VOCAB   = 32   # opt.vocab_size
EMB     = 16   # opt.word_vec_size
ENC     = 16   # opt.encoder_size (per direction, bidirectional)
DEC     = 32   # opt.decoder_size
TOPIC   = 3    # opt.topic_num
BOW     = 24   # opt.bow_vocab_size
B       = 2    # batch
SRC_LEN = 10
TRG_LEN = 6
MEM     = 2 * ENC          # num_directions * encoder_size
PAD, UNK, BOS, EOS = 0, 1, 2, 3

WEIGHT_KEYS = (
    'enc_emb', 'dec_emb',
    'enc_wih', 'enc_bih', 'enc_whh_f', 'enc_bhhn_f', 'enc_whh_b', 'enc_bhhn_b',
    'prior_w', 'prior_b', 'bridge_w', 'bridge_b', 'post_w', 'post_b',
    'dec_wih', 'dec_bih', 'dec_whh', 'dec_bhhn',
    'attn_w', 'out_wh', 'out_wc', 'out_b',
)


# ------------------------------- fused kernel --------------------------------
def _seq2seq_kernel(
        # data
        src_ids_ref, trg_ids_ref, src_mask_ref, beta_ref, eps_ref,
        # embeddings
        enc_emb_ref, dec_emb_ref,
        # encoder GRU (gates fused per cell; both directions fused on the input side)
        enc_wih_ref, enc_bih_ref, enc_whh_f_ref, enc_bhhn_f_ref,
        enc_whh_b_ref, enc_bhhn_b_ref,
        # latent block
        prior_w_ref, prior_b_ref, bridge_w_ref, bridge_b_ref, post_w_ref, post_b_ref,
        # decoder GRU + attention + output
        dec_wih_ref, dec_bih_ref, dec_whh_ref, dec_bhhn_ref,
        attn_w_ref, out_wh_ref, out_wc_ref, out_b_ref,
        # outputs
        dist_ref, attn_ref, encf_ref, hfin_ref, kld_ref,
        # VMEM scratch
        mem_scr, q3_scr, h2_scr, ctx2_scr):
    f32 = jnp.float32
    src_mask = src_mask_ref[...]                                   # [B, S]

    # ---- embedding lookups as one-hot MXU matmuls (keeps the whole fwd in one kernel)
    iota_s = jax.lax.broadcasted_iota(jnp.int32, (SRC_LEN * B, VOCAB), 1)
    src_oh = jnp.where(src_ids_ref[...] == iota_s, 1.0, 0.0)       # [S*B, V]
    emb_src = jnp.dot(src_oh, enc_emb_ref[...], preferred_element_type=f32)   # [S*B, E]
    iota_t = jax.lax.broadcasted_iota(jnp.int32, (TRG_LEN * B, VOCAB), 1)
    trg_oh = jnp.where(trg_ids_ref[...] == iota_t, 1.0, 0.0)       # [T*B, V]
    emb_trg = jnp.dot(trg_oh, dec_emb_ref[...], preferred_element_type=f32)   # [T*B, E]

    # ---- encoder: input-side gate matmul hoisted over ALL timesteps & both directions
    gx_enc = (jnp.dot(emb_src, enc_wih_ref[...], preferred_element_type=f32)
              + enc_bih_ref[...])                                  # [S*B, 6*ENC]
    whh_f = enc_whh_f_ref[...]; bhhn_f = enc_bhhn_f_ref[...]
    whh_b = enc_whh_b_ref[...]; bhhn_b = enc_bhhn_b_ref[...]

    def gru_step(gx, h, whh, bhh_n, hid):
        """gx already contains W_ih x + b_ih (+ b_hh for r,z); only h-matmul is serial."""
        gh = jnp.dot(h, whh, preferred_element_type=f32)           # [B, 3*hid]
        r = jax.nn.sigmoid(gx[:, :hid] + gh[:, :hid])
        z = jax.nn.sigmoid(gx[:, hid:2 * hid] + gh[:, hid:2 * hid])
        n = jnp.tanh(gx[:, 2 * hid:] + r * (gh[:, 2 * hid:] + bhh_n))
        return (1.0 - z) * n + z * h

    h_f = jnp.zeros((B, ENC), f32)
    h_b = jnp.zeros((B, ENC), f32)
    out_f = [None] * SRC_LEN
    out_b = [None] * SRC_LEN
    for t in range(SRC_LEN):                          # forward direction
        m = src_mask[:, t:t + 1]
        h_new = gru_step(gx_enc[t * B:(t + 1) * B, :3 * ENC], h_f, whh_f, bhhn_f, ENC)
        h_f = m * h_new + (1.0 - m) * h_f             # packed-seq emulation
        out_f[t] = h_f * m
    for t in range(SRC_LEN - 1, -1, -1):              # backward direction
        m = src_mask[:, t:t + 1]
        h_new = gru_step(gx_enc[t * B:(t + 1) * B, 3 * ENC:], h_b, whh_b, bhhn_b, ENC)
        h_b = m * h_new + (1.0 - m) * h_b
        out_b[t] = h_b * m

    enc_final = jnp.concatenate([h_f, h_b], axis=-1)  # [B, MEM]
    encf_ref[...] = enc_final
    # memory bank stays in VMEM scratch (never leaves the kernel)
    for s in range(SRC_LEN):
        mem_scr[:, s, :] = jnp.concatenate([out_f[s], out_b[s]], axis=-1)   # [B, MEM]
    mem3 = mem_scr[...]                               # [B, S, MEM]

    # ---- latent: softmax(beta) -> fused prior linear; bridge; fused GMM posterior; KLD
    eps_k = 1e-8
    beta = beta_ref[...]                              # [TOPIC, BOW]
    beta = beta - jnp.max(beta, axis=-1, keepdims=True)
    eb = jnp.exp(beta)
    beta_sm = eb / jnp.sum(eb, axis=-1, keepdims=True)
    prior = (jnp.dot(beta_sm, prior_w_ref[...], preferred_element_type=f32)
             + prior_b_ref[...])                      # [TOPIC, 2*DEC]  (mu | logvar)
    prior_mu = prior[:, :DEC]
    prior_lv = prior[:, DEC:]

    dec_init = (jnp.dot(enc_final, bridge_w_ref[...], preferred_element_type=f32)
                + bridge_b_ref[...])                  # [B, DEC]  bridge='dense'
    post = (jnp.dot(dec_init, post_w_ref[...], preferred_element_type=f32)
            + post_b_ref[...])                        # [B, 2*TOPIC*DEC]
    post_mu = [post[:, i * DEC:(i + 1) * DEC] for i in range(TOPIC)]
    post_lv = [post[:, (TOPIC + i) * DEC:(TOPIC + i + 1) * DEC] for i in range(TOPIC)]

    mu_avg = sum(post_mu) / TOPIC
    lv_avg = sum(post_lv) / TOPIC
    h0 = eps_ref[...] * jnp.exp(0.5 * lv_avg) + mu_avg            # reparameterize

    # GMM KLD: reference broadcasts [T,1,B,D] vs [T,B,D] -> sum over (post_i, prior_j, B, D)
    # exp(x*0.5+e)^2 == exp(x+2e); prior rows broadcast over batch in-kernel.
    total = jnp.float32(0.0)
    for i in range(TOPIC):                  # posterior component
        q_m, q_lv = post_mu[i], post_lv[i]                         # [B, D]
        for j in range(TOPIC):              # prior component
            p_m = prior_mu[j:j + 1, :]                             # [1, D]
            p_lv = prior_lv[j:j + 1, :]
            term = ((q_lv - p_lv + 2.0 * eps_k) * 0.5
                    + (jnp.exp(p_lv + 2.0 * eps_k) + (p_m - q_m) ** 2)
                    / (2.0 * jnp.exp(q_lv + 2.0 * eps_k))
                    - 0.5)
            total = total + jnp.sum(term)
    kld_ref[...] = jnp.reshape(total / TOPIC, (1, 1))

    # ---- decoder: only the GRU h-recurrence stays serial --------------------
    gx_dec = (jnp.dot(emb_trg, dec_wih_ref[...], preferred_element_type=f32)
              + dec_bih_ref[...])                     # [T*B, 3*DEC]
    whh_d = dec_whh_ref[...]; bhhn_d = dec_bhhn_ref[...]
    h = h0
    for t in range(TRG_LEN):
        h = gru_step(gx_dec[t * B:(t + 1) * B, :], h, whh_d, bhhn_d, DEC)
        h2_scr[t * B:(t + 1) * B, :] = h              # stack h into VMEM scratch
    hfin_ref[...] = h

    # ---- attention + output projection + vocab softmax, hoisted & batched over T ----
    H2 = h2_scr[...]                                  # [T*B, DEC] time-major
    Q2 = jnp.dot(H2, attn_w_ref[...], preferred_element_type=f32)             # [T*B, MEM]
    for t in range(TRG_LEN):
        q3_scr[:, t, :] = Q2[t * B:(t + 1) * B, :]
    Q3 = q3_scr[...]                                  # [B, T, MEM]

    mask_bias = jnp.where(src_mask > 0.0, 0.0, -1e9)  # [B, S]
    scores = jnp.einsum('btm,bsm->bts', Q3, mem3,
                        preferred_element_type=f32) + mask_bias[:, None, :]   # [B, T, S]
    scores = scores - jnp.max(scores, axis=-1, keepdims=True)
    es = jnp.exp(scores)
    a3 = es / jnp.sum(es, axis=-1, keepdims=True)     # [B, T, S]
    ctx3 = jnp.einsum('bts,bsm->btm', a3, mem3, preferred_element_type=f32)   # [B, T, MEM]
    for t in range(TRG_LEN):
        ctx2_scr[t * B:(t + 1) * B, :] = ctx3[:, t, :]
    ctx2 = ctx2_scr[...]                              # [T*B, MEM]

    # split output weights -> no per-step lane concat of [h; ctx]
    logits = (jnp.dot(H2, out_wh_ref[...], preferred_element_type=f32)
              + jnp.dot(ctx2, out_wc_ref[...], preferred_element_type=f32)
              + out_b_ref[...])                       # [T*B, VOCAB]
    logits = logits - jnp.max(logits, axis=-1, keepdims=True)
    el = jnp.exp(logits)
    dist2 = el / jnp.sum(el, axis=-1, keepdims=True)  # exact softmax

    # lane-dense slab outputs (single stores); wrapper reshapes back
    dist_ref[...] = jnp.concatenate(
        [dist2[t * B:(t + 1) * B, :] for t in range(TRG_LEN)], axis=-1)       # [B, T*V]
    attn_ref[...] = jnp.concatenate(
        [a3[:, t, :] for t in range(TRG_LEN)], axis=-1)                       # [B, T*S]


# ------------------------------- pallas_call wrapper ---------------------------
def _full_spec(shape):
    return pl.BlockSpec(shape, lambda *_: (0,) * len(shape))


def pallas_seq2seq(src_ids, trg_ids, src_mask, beta, eps, p):
    b, s = src_mask.shape
    t = trg_ids.shape[0] // b
    args = (src_ids, trg_ids, src_mask, beta, eps) + tuple(p[k] for k in WEIGHT_KEYS)
    out_shapes = (
        jax.ShapeDtypeStruct((b, t * VOCAB), jnp.float32),   # dist slab
        jax.ShapeDtypeStruct((b, t * s), jnp.float32),       # attn slab
        jax.ShapeDtypeStruct((b, MEM), jnp.float32),         # encoder final state
        jax.ShapeDtypeStruct((b, DEC), jnp.float32),         # decoder final hidden
        jax.ShapeDtypeStruct((1, 1), jnp.float32),           # GMM KLD
    )
    return pl.pallas_call(
        _seq2seq_kernel,
        out_shape=out_shapes,
        grid=(1,),
        in_specs=[_full_spec(a.shape) for a in args],
        out_specs=tuple(_full_spec(o.shape) for o in out_shapes),
        scratch_shapes=[
            pltpu.VMEM((b, s, MEM), jnp.float32),            # memory bank (VMEM-resident)
            pltpu.VMEM((b, t, MEM), jnp.float32),            # attention queries [B,T,MEM]
            pltpu.VMEM((t * b, DEC), jnp.float32),           # stacked decoder h
            pltpu.VMEM((t * b, MEM), jnp.float32),           # stacked contexts
        ],
    )(*args)


# ------------------------------- parameters -----------------------------------
def init_params(key):
    ks = iter(jax.random.split(key, 64))

    def u(shape, scale):
        return jax.random.uniform(next(ks), shape, jnp.float32, -scale, scale)

    p = {}
    p['enc_emb'] = u((VOCAB, EMB), 0.1)                # init_weights(): uniform(-0.1, 0.1)
    p['dec_emb'] = u((VOCAB, EMB), 0.1)

    def gru_fused(in_dim, hid):
        """PyTorch-style per-gate init, then fuse gates (r,z,n) and fold r/z biases."""
        sc = 1.0 / math.sqrt(hid)
        wih = [u((in_dim, hid), sc) for _ in range(3)]
        whh = [u((hid, hid), sc) for _ in range(3)]
        bih = [u((hid,), sc) for _ in range(3)]
        bhh = [u((hid,), sc) for _ in range(3)]
        wih_fused = jnp.concatenate(wih, axis=1)                               # [in, 3*hid]
        whh_fused = jnp.concatenate(whh, axis=1)                               # [hid, 3*hid]
        bih_fold = jnp.concatenate([bih[0] + bhh[0], bih[1] + bhh[1], bih[2]],
                                   axis=0)[None, :]                            # [1, 3*hid]
        bhh_n = bhh[2][None, :]                                                # [1, hid]
        return wih_fused, whh_fused, bih_fold, bhh_n

    wih_f, whh_f, bih_f, bhhn_f = gru_fused(EMB, ENC)
    wih_b, whh_b, bih_b, bhhn_b = gru_fused(EMB, ENC)
    p['enc_wih'] = jnp.concatenate([wih_f, wih_b], axis=1)     # [EMB, 6*ENC]
    p['enc_bih'] = jnp.concatenate([bih_f, bih_b], axis=1)     # [1, 6*ENC]
    p['enc_whh_f'] = whh_f; p['enc_bhhn_f'] = bhhn_f
    p['enc_whh_b'] = whh_b; p['enc_bhhn_b'] = bhhn_b

    dwih, dwhh, dbih, dbhhn = gru_fused(EMB, DEC)
    p['dec_wih'] = dwih; p['dec_bih'] = dbih
    p['dec_whh'] = dwhh; p['dec_bhhn'] = dbhhn

    sb = 1.0 / math.sqrt(BOW)
    p['prior_w'] = jnp.concatenate([u((BOW, DEC), sb), u((BOW, DEC), sb)], axis=1)
    p['prior_b'] = jnp.concatenate([u((DEC,), sb), u((DEC,), sb)], axis=0)[None, :]

    sm = 1.0 / math.sqrt(MEM)
    p['bridge_w'] = u((MEM, DEC), sm)
    p['bridge_b'] = u((DEC,), sm)[None, :]

    sd = 1.0 / math.sqrt(DEC)
    p['post_w'] = jnp.concatenate([u((DEC, DEC), sd) for _ in range(2 * TOPIC)], axis=1)
    p['post_b'] = jnp.concatenate([u((DEC,), sd) for _ in range(2 * TOPIC)], axis=0)[None, :]

    p['attn_w'] = u((DEC, MEM), sd)

    so = 1.0 / math.sqrt(DEC + MEM)
    out_w = u((DEC + MEM, VOCAB), so)
    p['out_wh'] = out_w[:DEC, :]
    p['out_wc'] = out_w[DEC:, :]
    p['out_b'] = u((VOCAB,), so)[None, :]
    return p


# ------------------------------- forward --------------------------------------
def seq2seq_forward(params, src, src_lens, trg, src_oov, max_num_oov, src_mask,
                    beta, noise_key):
    del src_oov, max_num_oov, src_lens  # copy_attn=False; lengths encoded in src_mask
    batch = src.shape[0]
    src_len = src.shape[1]
    trg_len = trg.shape[1]

    # teacher forcing inputs: y_0 = BOS, y_t = trg[:, t-1]
    y_tokens = jnp.concatenate(
        [jnp.full((batch, 1), BOS, dtype=trg.dtype), trg[:, :trg_len - 1]], axis=1)
    # time-major flattened ids (row = t*B + b) so the kernel slices contiguous per-step rows
    src_ids = jnp.transpose(src, (1, 0)).reshape(src_len * batch, 1).astype(jnp.int32)
    trg_ids = jnp.transpose(y_tokens, (1, 0)).reshape(trg_len * batch, 1).astype(jnp.int32)
    eps = jax.random.normal(noise_key, (batch, DEC), jnp.float32)

    dist_slab, attn_slab, encoder_final_state, h_final, kld = pallas_seq2seq(
        src_ids, trg_ids, src_mask, beta, eps, params)

    decoder_dist_all = dist_slab.reshape(batch, trg_len, VOCAB)
    attention_dist_all = attn_slab.reshape(batch, trg_len, src_len)
    h_t_next = h_final[None]          # [dec_layers=1, B, DEC]
    kld_loss = kld[0, 0]
    coverage_all = None               # coverage_attn=False
    return (decoder_dist_all, h_t_next, attention_dist_all, encoder_final_state,
            coverage_all, kld_loss, None, None)


# ------------------------------- main ------------------------------------------
if __name__ == "__main__":
    root = jax.random.PRNGKey(0)
    kp, ks, kt, kb, kn = jax.random.split(root, 5)

    params = init_params(kp)

    src_lens = jnp.array([SRC_LEN, 7], dtype=jnp.int32)
    positions = jnp.arange(SRC_LEN)[None, :]
    src_mask = (positions < src_lens[:, None]).astype(jnp.float32)             # [B, S]
    src = jax.random.randint(ks, (B, SRC_LEN), 4, VOCAB, dtype=jnp.int32)
    src = jnp.where(src_mask > 0, src, PAD)
    trg = jax.random.randint(kt, (B, TRG_LEN), 4, VOCAB, dtype=jnp.int32)
    src_oov = src
    max_num_oov = 0
    beta = jax.random.normal(kb, (TOPIC, BOW), jnp.float32)

    fwd = jax.jit(seq2seq_forward)
    outs = fwd(params, src, src_lens, trg, src_oov, max_num_oov, src_mask, beta, kn)
    (decoder_dist_all, h_t_next, attention_dist_all, encoder_final_state,
     coverage_all, kld_loss, _, _) = outs

    jax.block_until_ready(decoder_dist_all)
    jax.block_until_ready(attention_dist_all)
    jax.block_until_ready(kld_loss)

    assert decoder_dist_all.shape == (B, TRG_LEN, VOCAB)
    assert attention_dist_all.shape == (B, TRG_LEN, SRC_LEN)
    assert h_t_next.shape == (1, B, DEC)
    assert encoder_final_state.shape == (B, MEM)
    assert coverage_all is None
    assert kld_loss.shape == ()
    # sanity: output rows are probability distributions
    assert bool(jnp.all(jnp.abs(jnp.sum(decoder_dist_all, -1) - 1.0) < 1e-3))

    print("KERNEL_OK")
</pallas_src>

<mosaic_0001>
module attributes {stable_mosaic.version = 11 : i64} {
  func.func @_seq2seq_kernel(%arg0: i32, %arg1: memref<20x1xi32, #tpu.memory_space<vmem>>, %arg2: memref<12x1xi32, #tpu.memory_space<vmem>>, %arg3: memref<2x10xf32, #tpu.memory_space<vmem>>, %arg4: memref<3x24xf32, #tpu.memory_space<vmem>>, %arg5: memref<2x32xf32, #tpu.memory_space<vmem>>, %arg6: memref<32x16xf32, #tpu.memory_space<vmem>>, %arg7: memref<32x16xf32, #tpu.memory_space<vmem>>, %arg8: memref<16x96xf32, #tpu.memory_space<vmem>>, %arg9: memref<1x96xf32, #tpu.memory_space<vmem>>, %arg10: memref<16x48xf32, #tpu.memory_space<vmem>>, %arg11: memref<1x16xf32, #tpu.memory_space<vmem>>, %arg12: memref<16x48xf32, #tpu.memory_space<vmem>>, %arg13: memref<1x16xf32, #tpu.memory_space<vmem>>, %arg14: memref<24x64xf32, #tpu.memory_space<vmem>>, %arg15: memref<1x64xf32, #tpu.memory_space<vmem>>, %arg16: memref<32x32xf32, #tpu.memory_space<vmem>>, %arg17: memref<1x32xf32, #tpu.memory_space<vmem>>, %arg18: memref<32x192xf32, #tpu.memory_space<vmem>>, %arg19: memref<1x192xf32, #tpu.memory_space<vmem>>, %arg20: memref<16x96xf32, #tpu.memory_space<vmem>>, %arg21: memref<1x96xf32, #tpu.memory_space<vmem>>, %arg22: memref<32x96xf32, #tpu.memory_space<vmem>>, %arg23: memref<1x32xf32, #tpu.memory_space<vmem>>, %arg24: memref<32x32xf32, #tpu.memory_space<vmem>>, %arg25: memref<32x32xf32, #tpu.memory_space<vmem>>, %arg26: memref<32x32xf32, #tpu.memory_space<vmem>>, %arg27: memref<1x32xf32, #tpu.memory_space<vmem>>, %arg28: memref<2x192xf32, #tpu.memory_space<vmem>>, %arg29: memref<2x60xf32, #tpu.memory_space<vmem>>, %arg30: memref<2x32xf32, #tpu.memory_space<vmem>>, %arg31: memref<2x32xf32, #tpu.memory_space<vmem>>, %arg32: memref<1x1xf32, #tpu.memory_space<vmem>>, %arg33: memref<2x10x32xf32, #tpu.memory_space<vmem>>, %arg34: memref<2x6x32xf32, #tpu.memory_space<vmem>>, %arg35: memref<12x32xf32, #tpu.memory_space<vmem>>, %arg36: memref<12x32xf32, #tpu.memory_space<vmem>>) attributes {dimension_semantics = [#tpu.dimension_semantics<arbitrary>], iteration_bounds = array<i64: 1>, scalar_prefetch = 0 : i64, scratch_operands = 4 : i64, tpu.core_type = #tpu.core_type<tc>, window_params = [{pipeline_mode = #tpu.pipeline_mode<synchronous>, transform_indices = @transform_0, window_bounds = array<i64: 20, 1>}, {pipeline_mode = #tpu.pipeline_mode<synchronous>, transform_indices = @transform_1, window_bounds = array<i64: 12, 1>}, {pipeline_mode = #tpu.pipeline_mode<synchronous>, transform_indices = @transform_2, window_bounds = array<i64: 2, 10>}, {pipeline_mode = #tpu.pipeline_mode<synchronous>, transform_indices = @transform_3, window_bounds = array<i64: 3, 24>}, {pipeline_mode = #tpu.pipeline_mode<synchronous>, transform_indices = @transform_4, window_bounds = array<i64: 2, 32>}, {pipeline_mode = #tpu.pipeline_mode<synchronous>, transform_indices = @transform_5, window_bounds = array<i64: 32, 16>}, {pipeline_mode = #tpu.pipeline_mode<synchronous>, transform_indices = @transform_6, window_bounds = array<i64: 32, 16>}, {pipeline_mode = #tpu.pipeline_mode<synchronous>, transform_indices = @transform_7, window_bounds = array<i64: 16, 96>}, {pipeline_mode = #tpu.pipeline_mode<synchronous>, transform_indices = @transform_8, window_bounds = array<i64: 1, 96>}, {pipeline_mode = #tpu.pipeline_mode<synchronous>, transform_indices = @transform_9, window_bounds = array<i64: 16, 48>}, {pipeline_mode = #tpu.pipeline_mode<synchronous>, transform_indices = @transform_10, window_bounds = array<i64: 1, 16>}, {pipeline_mode = #tpu.pipeline_mode<synchronous>, transform_indices = @transform_11, window_bounds = array<i64: 16, 48>}, {pipeline_mode = #tpu.pipeline_mode<synchronous>, transform_indices = @transform_12, window_bounds = array<i64: 1, 16>}, {pipeline_mode = #tpu.pipeline_mode<synchronous>, transform_indices = @transform_13, window_bounds = array<i64: 24, 64>}, {pipeline_mode = #tpu.pipeline_mode<synchronous>, transform_indices = @transform_14, window_bounds = array<i64: 1, 64>}, {pipeline_mode = #tpu.pipeline_mode<synchronous>, transform_indices = @transform_15, window_bounds = array<i64: 32, 32>}, {pipeline_mode = #tpu.pipeline_mode<synchronous>, transform_indices = @transform_16, window_bounds = array<i64: 1, 32>}, {pipeline_mode = #tpu.pipeline_mode<synchronous>, transform_indices = @transform_17, window_bounds = array<i64: 32, 192>}, {pipeline_mode = #tpu.pipeline_mode<synchronous>, transform_indices = @transform_18, window_bounds = array<i64: 1, 192>}, {pipeline_mode = #tpu.pipeline_mode<synchronous>, transform_indices = @transform_19, window_bounds = array<i64: 16, 96>}, {pipeline_mode = #tpu.pipeline_mode<synchronous>, transform_indices = @transform_20, window_bounds = array<i64: 1, 96>}, {pipeline_mode = #tpu.pipeline_mode<synchronous>, transform_indices = @transform_21, window_bounds = array<i64: 32, 96>}, {pipeline_mode = #tpu.pipeline_mode<synchronous>, transform_indices = @transform_22, window_bounds = array<i64: 1, 32>}, {pipeline_mode = #tpu.pipeline_mode<synchronous>, transform_indices = @transform_23, window_bounds = array<i64: 32, 32>}, {pipeline_mode = #tpu.pipeline_mode<synchronous>, transform_indices = @transform_24, window_bounds = array<i64: 32, 32>}, {pipeline_mode = #tpu.pipeline_mode<synchronous>, transform_indices = @transform_25, window_bounds = array<i64: 32, 32>}, {pipeline_mode = #tpu.pipeline_mode<synchronous>, transform_indices = @transform_26, window_bounds = array<i64: 1, 32>}, {pipeline_mode = #tpu.pipeline_mode<synchronous>, transform_indices = @transform_27, window_bounds = array<i64: 2, 192>}, {pipeline_mode = #tpu.pipeline_mode<synchronous>, transform_indices = @transform_28, window_bounds = array<i64: 2, 60>}, {pipeline_mode = #tpu.pipeline_mode<synchronous>, transform_indices = @transform_29, window_bounds = array<i64: 2, 32>}, {pipeline_mode = #tpu.pipeline_mode<synchronous>, transform_indices = @transform_30, window_bounds = array<i64: 2, 32>}, {pipeline_mode = #tpu.pipeline_mode<synchronous>, transform_indices = @transform_31, window_bounds = array<i64: 1, 1>}]} {
    %c0 = arith.constant 0 : index
    %c0_0 = arith.constant 0 : index
    %0 = vector.load %arg3[%c0, %c0_0] : memref<2x10xf32, #tpu.memory_space<vmem>>, vector<2x10xf32>
    %1 = tpu.iota {dimensions = array<i32: 1>} : vector<20x32xi32>
    %c0_1 = arith.constant 0 : index
    %c0_2 = arith.constant 0 : index
    %2 = vector.load %arg1[%c0_1, %c0_2] : memref<20x1xi32, #tpu.memory_space<vmem>>, vector<20x1xi32>
    %3 = vector.broadcast %2 : vector<20x1xi32> to vector<20x32xi32>
    %4 = arith.cmpi eq, %3, %1 : vector<20x32xi32>
    %cst = arith.constant 1.000000e+00 : f32
    %cst_3 = arith.constant 0.000000e+00 : f32
    %5 = vector.broadcast %cst : f32 to vector<20x32xf32>
    %6 = vector.broadcast %cst_3 : f32 to vector<20x32xf32>
    %7 = arith.select %4, %5, %6 : vector<20x32xi1>, vector<20x32xf32>
    %c0_4 = arith.constant 0 : index
    %c0_5 = arith.constant 0 : index
    %8 = vector.load %arg6[%c0_4, %c0_5] : memref<32x16xf32, #tpu.memory_space<vmem>>, vector<32x16xf32>
    %cst_6 = arith.constant dense<0.000000e+00> : vector<20x16xf32>
    %9 = tpu.matmul %7, %8, %cst_6 {dimension_numbers = #tpu.dot_dimension_numbers<[1], [0], [0], [1], [0, 0, 1, 1], [], []>} : vector<20x32xf32>, vector<32x16xf32>, vector<20x16xf32> -> vector<20x16xf32>
    %10 = tpu.iota {dimensions = array<i32: 1>} : vector<12x32xi32>
    %c0_7 = arith.constant 0 : index
    %c0_8 = arith.constant 0 : index
    %11 = vector.load %arg2[%c0_7, %c0_8] : memref<12x1xi32, #tpu.memory_space<vmem>>, vector<12x1xi32>
    %12 = vector.broadcast %11 : vector<12x1xi32> to vector<12x32xi32>
    %13 = arith.cmpi eq, %12, %10 : vector<12x32xi32>
    %cst_9 = arith.constant 1.000000e+00 : f32
    %cst_10 = arith.constant 0.000000e+00 : f32
    %14 = vector.broadcast %cst_9 : f32 to vector<12x32xf32>
    %15 = vector.broadcast %cst_10 : f32 to vector<12x32xf32>
    %16 = arith.select %13, %14, %15 : vector<12x32xi1>, vector<12x32xf32>
    %c0_11 = arith.constant 0 : index
    %c0_12 = arith.constant 0 : index
    %17 = vector.load %arg7[%c0_11, %c0_12] : memref<32x16xf32, #tpu.memory_space<vmem>>, vector<32x16xf32>
    %cst_13 = arith.constant dense<0.000000e+00> : vector<12x16xf32>
    %18 = tpu.matmul %16, %17, %cst_13 {dimension_numbers = #tpu.dot_dimension_numbers<[1], [0], [0], [1], [0, 0, 1, 1], [], []>} : vector<12x32xf32>, vector<32x16xf32>, vector<12x16xf32> -> vector<12x16xf32>
    %c0_14 = arith.constant 0 : index
    %c0_15 = arith.constant 0 : index
    %19 = vector.load %arg8[%c0_14, %c0_15] : memref<16x96xf32, #tpu.memory_space<vmem>>, vector<16x96xf32>
    %cst_16 = arith.constant dense<0.000000e+00> : vector<20x96xf32>
    %20 = tpu.matmul %9, %19, %cst_16 {dimension_numbers = #tpu.dot_dimension_numbers<[1], [0], [0], [1], [0, 0, 1, 1], [], []>} : vector<20x16xf32>, vector<16x96xf32>, vector<20x96xf32> -> vector<20x96xf32>
    %c0_17 = arith.constant 0 : index
    %c0_18 = arith.constant 0 : index
    %21 = vector.load %arg9[%c0_17, %c0_18] : memref<1x96xf32, #tpu.memory_space<vmem>>, vector<1x96xf32>
    %22 = vector.broadcast %21 : vector<1x96xf32> to vector<20x96xf32>
    %23 = arith.addf %20, %22 : vector<20x96xf32>
    %c0_19 = arith.constant 0 : index
    %c0_20 = arith.constant 0 : index
    %24 = vector.load %arg10[%c0_19, %c0_20] : memref<16x48xf32, #tpu.memory_space<vmem>>, vector<16x48xf32>
    %c0_21 = arith.constant 0 : index
    %c0_22 = arith.constant 0 : index
    %25 = vector.load %arg11[%c0_21, %c0_22] : memref<1x16xf32, #tpu.memory_space<vmem>>, vector<1x16xf32>
    %c0_23 = arith.constant 0 : index
    %c0_24 = arith.constant 0 : index
    %26 = vector.load %arg12[%c0_23, %c0_24] : memref<16x48xf32, #tpu.memory_space<vmem>>, vector<16x48xf32>
    %c0_25 = arith.constant 0 : index
    %c0_26 = arith.constant 0 : index
    %27 = vector.load %arg13[%c0_25, %c0_26] : memref<1x16xf32, #tpu.memory_space<vmem>>, vector<1x16xf32>
    %cst_27 = arith.constant 0.000000e+00 : f32
    %28 = vector.broadcast %cst_27 : f32 to vector<2x16xf32>
    %cst_28 = arith.constant 0.000000e+00 : f32
    %29 = vector.broadcast %cst_28 : f32 to vector<2x16xf32>
    %30 = vector.extract_strided_slice %0 {offsets = [0, 0], sizes = [2, 1], strides = [1, 1]} : vector<2x10xf32> to vector<2x1xf32>
    %31 = vector.extract_strided_slice %23 {offsets = [0, 0], sizes = [2, 48], strides = [1, 1]} : vector<20x96xf32> to vector<2x48xf32>
    %cst_29 = arith.constant dense<0.000000e+00> : vector<2x48xf32>
    %32 = tpu.matmul %28, %24, %cst_29 {dimension_numbers = #tpu.dot_dimension_numbers<[1], [0], [0], [1], [0, 0, 1, 1], [], []>} : vector<2x16xf32>, vector<16x48xf32>, vector<2x48xf32> -> vector<2x48xf32>
    %33 = vector.extract_strided_slice %31 {offsets = [0, 0], sizes = [2, 16], strides = [1, 1]} : vector<2x48xf32> to vector<2x16xf32>
    %34 = vector.extract_strided_slice %32 {offsets = [0, 0], sizes = [2, 16], strides = [1, 1]} : vector<2x48xf32> to vector<2x16xf32>
    %35 = arith.addf %33, %34 : vector<2x16xf32>
    %36 = arith.negf %35 : vector<2x16xf32>
    %37 = math.exp %36 : vector<2x16xf32>
    %cst_30 = arith.constant 1.000000e+00 : f32
    %38 = vector.broadcast %cst_30 : f32 to vector<2x16xf32>
    %39 = arith.addf %38, %37 : vector<2x16xf32>
    %40 = arith.divf %38, %39 : vector<2x16xf32>
    %41 = vector.extract_strided_slice %31 {offsets = [0, 16], sizes = [2, 16], strides = [1, 1]} : vector<2x48xf32> to vector<2x16xf32>
    %42 = vector.extract_strided_slice %32 {offsets = [0, 16], sizes = [2, 16], strides = [1, 1]} : vector<2x48xf32> to vector<2x16xf32>
    %43 = arith.addf %41, %42 : vector<2x16xf32>
    %44 = arith.negf %43 : vector<2x16xf32>
    %45 = math.exp %44 : vector<2x16xf32>
    %cst_31 = arith.constant 1.000000e+00 : f32
    %46 = vector.broadcast %cst_31 : f32 to vector<2x16xf32>
    %47 = arith.addf %46, %45 : vector<2x16xf32>
    %48 = arith.divf %46, %47 : vector<2x16xf32>
    %49 = vector.extract_strided_slice %31 {offsets = [0, 32], sizes = [2, 16], strides = [1, 1]} : vector<2x48xf32> to vector<2x16xf32>
    %50 = vector.extract_strided_slice %32 {offsets = [0, 32], sizes = [2, 16], strides = [1, 1]} : vector<2x48xf32> to vector<2x16xf32>
    %51 = vector.broadcast %25 : vector<1x16xf32> to vector<2x16xf32>
    %52 = arith.addf %50, %51 : vector<2x16xf32>
    %53 = arith.mulf %40, %52 : vector<2x16xf32>
    %54 = arith.addf %49, %53 : vector<2x16xf32>
    %55 = math.tanh %54 : vector<2x16xf32>
    %cst_32 = arith.constant 1.000000e+00 : f32
    %56 = vector.broadcast %cst_32 : f32 to vector<2x16xf32>
    %57 = arith.subf %56, %48 : vector<2x16xf32>
    %58 = arith.mulf %57, %55 : vector<2x16xf32>
    %59 = arith.mulf %48, %28 : vector<2x16xf32>
    %60 = arith.addf %58, %59 : vector<2x16xf32>
    %61 = vector.broadcast %30 : vector<2x1xf32> to vector<2x16xf32>
    %62 = arith.mulf %61, %60 : vector<2x16xf32>
    %cst_33 = arith.constant 1.000000e+00 : f32
    %63 = vector.broadcast %cst_33 : f32 to vector<2x1xf32>
    %64 = arith.subf %63, %30 : vector<2x1xf32>
    %65 = vector.broadcast %64 : vector<2x1xf32> to vector<2x16xf32>
    %66 = arith.mulf %65, %28 : vector<2x16xf32>
    %67 = arith.addf %62, %66 : vector<2x16xf32>
    %68 = vector.broadcast %30 : vector<2x1xf32> to vector<2x16xf32>
    %69 = arith.mulf %67, %68 : vector<2x16xf32>
    %70 = vector.extract_strided_slice %0 {offsets = [0, 1], sizes = [2, 1], strides = [1, 1]} : vector<2x10xf32> to vector<2x1xf32>
    %71 = vector.extract_strided_slice %23 {offsets = [2, 0], sizes = [2, 48], strides = [1, 1]} : vector<20x96xf32> to vector<2x48xf32>
    %cst_34 = arith.constant dense<0.000000e+00> : vector<2x48xf32>
    %72 = tpu.matmul %67, %24, %cst_34 {dimension_numbers = #tpu.dot_dimension_numbers<[1], [0], [0], [1], [0, 0, 1, 1], [], []>} : vector<2x16xf32>, vector<16x48xf32>, vector<2x48xf32> -> vector<2x48xf32>
    %73 = vector.extract_strided_slice %71 {offsets = [0, 0], sizes = [2, 16], strides = [1, 1]} : vector<2x48xf32> to vector<2x16xf32>
    %74 = vector.extract_strided_slice %72 {offsets = [0, 0], sizes = [2, 16], strides = [1, 1]} : vector<2x48xf32> to vector<2x16xf32>
    %75 = arith.addf %73, %74 : vector<2x16xf32>
    %76 = arith.negf %75 : vector<2x16xf32>
    %77 = math.exp %76 : vector<2x16xf32>
    %cst_35 = arith.constant 1.000000e+00 : f32
    %78 = vector.broadcast %cst_35 : f32 to vector<2x16xf32>
    %79 = arith.addf %78, %77 : vector<2x16xf32>
    %80 = arith.divf %78, %79 : vector<2x16xf32>
    %81 = vector.extract_strided_slice %71 {offsets = [0, 16], sizes = [2, 16], strides = [1, 1]} : vector<2x48xf32> to vector<2x16xf32>
    %82 = vector.extract_strided_slice %72 {offsets = [0, 16], sizes = [2, 16], strides = [1, 1]} : vector<2x48xf32> to vector<2x16xf32>
    %83 = arith.addf %81, %82 : vector<2x16xf32>
    %84 = arith.negf %83 : vector<2x16xf32>
    %85 = math.exp %84 : vector<2x16xf32>
    %cst_36 = arith.constant 1.000000e+00 : f32
    %86 = vector.broadcast %cst_36 : f32 to vector<2x16xf32>
    %87 = arith.addf %86, %85 : vector<2x16xf32>
    %88 = arith.divf %86, %87 : vector<2x16xf32>
    %89 = vector.extract_strided_slice %71 {offsets = [0, 32], sizes = [2, 16], strides = [1, 1]} : vector<2x48xf32> to vector<2x16xf32>
    %90 = vector.extract_strided_slice %72 {offsets = [0, 32], sizes = [2, 16], strides = [1, 1]} : vector<2x48xf32> to vector<2x16xf32>
    %91 = vector.broadcast %25 : vector<1x16xf32> to vector<2x16xf32>
    %92 = arith.addf %90, %91 : vector<2x16xf32>
    %93 = arith.mulf %80, %92 : vector<2x16xf32>
    %94 = arith.addf %89, %93 : vector<2x16xf32>
    %95 = math.tanh %94 : vector<2x16xf32>
    %cst_37 = arith.constant 1.000000e+00 : f32
    %96 = vector.broadcast %cst_37 : f32 to vector<2x16xf32>
    %97 = arith.subf %96, %88 : vector<2x16xf32>
    %98 = arith.mulf %97, %95 : vector<2x16xf32>
    %99 = arith.mulf %88, %67 : vector<2x16xf32>
    %100 = arith.addf %98, %99 : vector<2x16xf32>
    %101 = vector.broadcast %70 : vector<2x1xf32> to vector<2x16xf32>
    %102 = arith.mulf %101, %100 : vector<2x16xf32>
    %cst_38 = arith.constant 1.000000e+00 : f32
    %103 = vector.broadcast %cst_38 : f32 to vector<2x1xf32>
    %104 = arith.subf %103, %70 : vector<2x1xf32>
    %105 = vector.broadcast %104 : vector<2x1xf32> to vector<2x16xf32>
    %106 = arith.mulf %105, %67 : vector<2x16xf32>
    %107 = arith.addf %102, %106 : vector<2x16xf32>
    %108 = vector.broadcast %70 : vector<2x1xf32> to vector<2x16xf32>
    %109 = arith.mulf %107, %108 : vector<2x16xf32>
    %110 = vector.extract_strided_slice %0 {offsets = [0, 2], sizes = [2, 1], strides = [1, 1]} : vector<2x10xf32> to vector<2x1xf32>
    %111 = vector.extract_strided_slice %23 {offsets = [4, 0], sizes = [2, 48], strides = [1, 1]} : vector<20x96xf32> to vector<2x48xf32>
    %cst_39 = arith.constant dense<0.000000e+00> : vector<2x48xf32>
    %112 = tpu.matmul %107, %24, %cst_39 {dimension_numbers = #tpu.dot_dimension_numbers<[1], [0], [0], [1], [0, 0, 1, 1], [], []>} : vector<2x16xf32>, vector<16x48xf32>, vector<2x48xf32> -> vector<2x48xf32>
    %113 = vector.extract_strided_slice %111 {offsets = [0, 0], sizes = [2, 16], strides = [1, 1]} : vector<2x48xf32> to vector<2x16xf32>
    %114 = vector.extract_strided_slice %112 {offsets = [0, 0], sizes = [2, 16], strides = [1, 1]} : vector<2x48xf32> to vector<2x16xf32>
    %115 = arith.addf %113, %114 : vector<2x16xf32>
    %116 = arith.negf %115 : vector<2x16xf32>
    %117 = math.exp %116 : vector<2x16xf32>
    %cst_40 = arith.constant 1.000000e+00 : f32
    %118 = vector.broadcast %cst_40 : f32 to vector<2x16xf32>
    %119 = arith.addf %118, %117 : vector<2x16xf32>
    %120 = arith.divf %118, %119 : vector<2x16xf32>
    %121 = vector.extract_strided_slice %111 {offsets = [0, 16], sizes = [2, 16], strides = [1, 1]} : vector<2x48xf32> to vector<2x16xf32>
    %122 = vector.extract_strided_slice %112 {offsets = [0, 16], sizes = [2, 16], strides = [1, 1]} : vector<2x48xf32> to vector<2x16xf32>
    %123 = arith.addf %121, %122 : vector<2x16xf32>
    %124 = arith.negf %123 : vector<2x16xf32>
    %125 = math.exp %124 : vector<2x16xf32>
    %cst_41 = arith.constant 1.000000e+00 : f32
    %126 = vector.broadcast %cst_41 : f32 to vector<2x16xf32>
    %127 = arith.addf %126, %125 : vector<2x16xf32>
    %128 = arith.divf %126, %127 : vector<2x16xf32>
    %129 = vector.extract_strided_slice %111 {offsets = [0, 32], sizes = [2, 16], strides = [1, 1]} : vector<2x48xf32> to vector<2x16xf32>
    %130 = vector.extract_strided_slice %112 {offsets = [0, 32], sizes = [2, 16], strides = [1, 1]} : vector<2x48xf32> to vector<2x16xf32>
    %131 = vector.broadcast %25 : vector<1x16xf32> to vector<2x16xf32>
    %132 = arith.addf %130, %131 : vector<2x16xf32>
    %133 = arith.mulf %120, %132 : vector<2x16xf32>
    %134 = arith.addf %129, %133 : vector<2x16xf32>
    %135 = math.tanh %134 : vector<2x16xf32>
    %cst_42 = arith.constant 1.000000e+00 : f32
    %136 = vector.broadcast %cst_42 : f32 to vector<2x16xf32>
    %137 = arith.subf %136, %128 : vector<2x16xf32>
    %138 = arith.mulf %137, %135 : vector<2x16xf32>
    %139 = arith.mulf %128, %107 : vector<2x16xf32>
    %140 = arith.addf %138, %139 : vector<2x16xf32>
    %141 = vector.broadcast %110 : vector<2x1xf32> to vector<2x16xf32>
    %142 = arith.mulf %141, %140 : vector<2x16xf32>
    %cst_43 = arith.constant 1.000000e+00 : f32
    %143 = vector.broadcast %cst_43 : f32 to vector<2x1xf32>
    %144 = arith.subf %143, %110 : vector<2x1xf32>
    %145 = vector.broadcast %144 : vector<2x1xf32> to vector<2x16xf32>
    %146 = arith.mulf %145, %107 : vector<2x16xf32>
    %147 = arith.addf %142, %146 : vector<2x16xf32>
    %148 = vector.broadcast %110 : vector<2x1xf32> to vector<2x16xf32>
    %149 = arith.mulf %147, %148 : vector<2x16xf32>
    %150 = vector.extract_strided_slice %0 {offsets = [0, 3], sizes = [2, 1], strides = [1, 1]} : vector<2x10xf32> to vector<2x1xf32>
    %151 = vector.extract_strided_slice %23 {offsets = [6, 0], sizes = [2, 48], strides = [1, 1]} : vector<20x96xf32> to vector<2x48xf32>
    %cst_44 = arith.constant dense<0.000000e+00> : vector<2x48xf32>
    %152 = tpu.matmul %147, %24, %cst_44 {dimension_numbers = #tpu.dot_dimension_numbers<[1], [0], [0], [1], [0, 0, 1, 1], [], []>} : vector<2x16xf32>, vector<16x48xf32>, vector<2x48xf32> -> vector<2x48xf32>
    %153 = vector.extract_strided_slice %151 {offsets = [0, 0], sizes = [2, 16], strides = [1, 1]} : vector<2x48xf32> to vector<2x16xf32>
    %154 = vector.extract_strided_slice %152 {offsets = [0, 0], sizes = [2, 16], strides = [1, 1]} : vector<2x48xf32> to vector<2x16xf32>
    %155 = arith.addf %153, %154 : vector<2x16xf32>
    %156 = arith.negf %155 : vector<2x16xf32>
    %157 = math.exp %156 : vector<2x16xf32>
    %cst_45 = arith.constant 1.000000e+00 : f32
    %158 = vector.broadcast %cst_45 : f32 to vector<2x16xf32>
    %159 = arith.addf %158, %157 : vector<2x16xf32>
    %160 = arith.divf %158, %159 : vector<2x16xf32>
    %161 = vector.extract_strided_slice %151 {offsets = [0, 16], sizes = [2, 16], strides = [1, 1]} : vector<2x48xf32> to vector<2x16xf32>
    %162 = vector.extract_strided_slice %152 {offsets = [0, 16], sizes = [2, 16], strides = [1, 1]} : vector<2x48xf32> to vector<2x16xf32>
    %163 = arith.addf %161, %162 : vector<2x16xf32>
    %164 = arith.negf %163 : vector<2x16xf32>
    %165 = math.exp %164 : vector<2x16xf32>
    %cst_46 = arith.constant 1.000000e+00 : f32
    %166 = vector.broadcast %cst_46 : f32 to vector<2x16xf32>
    %167 = arith.addf %166, %165 : vector<2x16xf32>
    %168 = arith.divf %166, %167 : vector<2x16xf32>
    %169 = vector.extract_strided_slice %151 {offsets = [0, 32], sizes = [2, 16], strides = [1, 1]} : vector<2x48xf32> to vector<2x16xf32>
    %170 = vector.extract_strided_slice %152 {offsets = [0, 32], sizes = [2, 16], strides = [1, 1]} : vector<2x48xf32> to vector<2x16xf32>
    %171 = vector.broadcast %25 : vector<1x16xf32> to vector<2x16xf32>
    %172 = arith.addf %170, %171 : vector<2x16xf32>
    %173 = arith.mulf %160, %172 : vector<2x16xf32>
    %174 = arith.addf %169, %173 : vector<2x16xf32>
    %175 = math.tanh %174 : vector<2x16xf32>
    %cst_47 = arith.constant 1.000000e+00 : f32
    %176 = vector.broadcast %cst_47 : f32 to vector<2x16xf32>
    %177 = arith.subf %176, %168 : vector<2x16xf32>
    %178 = arith.mulf %177, %175 : vector<2x16xf32>
    %179 = arith.mulf %168, %147 : vector<2x16xf32>
    %180 = arith.addf %178, %179 : vector<2x16xf32>
    %181 = vector.broadcast %150 : vector<2x1xf32> to vector<2x16xf32>
    %182 = arith.mulf %181, %180 : vector<2x16xf32>
    %cst_48 = arith.constant 1.000000e+00 : f32
    %183 = vector.broadcast %cst_48 : f32 to vector<2x1xf32>
    %184 = arith.subf %183, %150 : vector<2x1xf32>
    %185 = vector.broadcast %184 : vector<2x1xf32> to vector<2x16xf32>
    %186 = arith.mulf %185, %147 : vector<2x16xf32>
    %187 = arith.addf %182, %186 : vector<2x16xf32>
    %188 = vector.broadcast %150 : vector<2x1xf32> to vector<2x16xf32>
    %189 = arith.mulf %187, %188 : vector<2x16xf32>
    %190 = vector.extract_strided_slice %0 {offsets = [0, 4], sizes = [2, 1], strides = [1, 1]} : vector<2x10xf32> to vector<2x1xf32>
    %191 = vector.extract_strided_slice %23 {offsets = [8, 0], sizes = [2, 48], strides = [1, 1]} : vector<20x96xf32> to vector<2x48xf32>
    %cst_49 = arith.constant dense<0.000000e+00> : vector<2x48xf32>
    %192 = tpu.matmul %187, %24, %cst_49 {dimension_numbers = #tpu.dot_dimension_numbers<[1], [0], [0], [1], [0, 0, 1, 1], [], []>} : vector<2x16xf32>, vector<16x48xf32>, vector<2x48xf32> -> vector<2x48xf32>
    %193 = vector.extract_strided_slice %191 {offsets = [0, 0], sizes = [2, 16], strides = [1, 1]} : vector<2x48xf32> to vector<2x16xf32>
    %194 = vector.extract_strided_slice %192 {offsets = [0, 0], sizes = [2, 16], strides = [1, 1]} : vector<2x48xf32> to vector<2x16xf32>
    %195 = arith.addf %193, %194 : vector<2x16xf32>
    %196 = arith.negf %195 : vector<2x16xf32>
    %197 = math.exp %196 : vector<2x16xf32>
    %cst_50 = arith.constant 1.000000e+00 : f32
    %198 = vector.broadcast %cst_50 : f32 to vector<2x16xf32>
    %199 = arith.addf %198, %197 : vector<2x16xf32>
    %200 = arith.divf %198, %199 : vector<2x16xf32>
    %201 = vector.extract_strided_slice %191 {offsets = [0, 16], sizes = [2, 16], strides = [1, 1]} : vector<2x48xf32> to vector<2x16xf32>
    %202 = vector.extract_strided_slice %192 {offsets = [0, 16], sizes = [2, 16], strides = [1, 1]} : vector<2x48xf32> to vector<2x16xf32>
    %203 = arith.addf %201, %202 : vector<2x16xf32>
    %204 = arith.negf %203 : vector<2x16xf32>
    %205 = math.exp %204 : vector<2x16xf32>
    %cst_51 = arith.constant 1.000000e+00 : f32
    %206 = vector.broadcast %cst_51 : f32 to vector<2x16xf32>
    %207 = arith.addf %206, %205 : vector<2x16xf32>
    %208 = arith.divf %206, %207 : vector<2x16xf32>
    %209 = vector.extract_strided_slice %191 {offsets = [0, 32], sizes = [2, 16], strides = [1, 1]} : vector<2x48xf32> to vector<2x16xf32>
    %210 = vector.extract_strided_slice %192 {offsets = [0, 32], sizes = [2, 16], strides = [1, 1]} : vector<2x48xf32> to vector<2x16xf32>
    %211 = vector.broadcast %25 : vector<1x16xf32> to vector<2x16xf32>
    %212 = arith.addf %210, %211 : vector<2x16xf32>
    %213 = arith.mulf %200, %212 : vector<2x16xf32>
    %214 = arith.addf %209, %213 : vector<2x16xf32>
    %215 = math.tanh %214 : vector<2x16xf32>
    %cst_52 = arith.constant 1.000000e+00 : f32
    %216 = vector.broadcast %cst_52 : f32 to vector<2x16xf32>
    %217 = arith.subf %216, %208 : vector<2x16xf32>
    %218 = arith.mulf %217, %215 : vector<2x16xf32>
    %219 = arith.mulf %208, %187 : vector<2x16xf32>
    %220 = arith.addf %218, %219 : vector<2x16xf32>
    %221 = vector.broadcast %190 : vector<2x1xf32> to vector<2x16xf32>
    %222 = arith.mulf %221, %220 : vector<2x16xf32>
    %cst_53 = arith.constant 1.000000e+00 : f32
    %223 = vector.broadcast %cst_53 : f32 to vector<2x1xf32>
    %224 = arith.subf %223, %190 : vector<2x1xf32>
    %225 = vector.broadcast %224 : vector<2x1xf32> to vector<2x16xf32>
    %226 = arith.mulf %225, %187 : vector<2x16xf32>
    %227 = arith.addf %222, %226 : vector<2x16xf32>
    %228 = vector.broadcast %190 : vector<2x1xf32> to vector<2x16xf32>
    %229 = arith.mulf %227, %228 : vector<2x16xf32>
    %230 = vector.extract_strided_slice %0 {offsets = [0, 5], sizes = [2, 1], strides = [1, 1]} : vector<2x10xf32> to vector<2x1xf32>
    %231 = vector.extract_strided_slice %23 {offsets = [10, 0], sizes = [2, 48], strides = [1, 1]} : vector<20x96xf32> to vector<2x48xf32>
    %cst_54 = arith.constant dense<0.000000e+00> : vector<2x48xf32>
    %232 = tpu.matmul %227, %24, %cst_54 {dimension_numbers = #tpu.dot_dimension_numbers<[1], [0], [0], [1], [0, 0, 1, 1], [], []>} : vector<2x16xf32>, vector<16x48xf32>, vector<2x48xf32> -> vector<2x48xf32>
    %233 = vector.extract_strided_slice %231 {offsets = [0, 0], sizes = [2, 16], strides = [1, 1]} : vector<2x48xf32> to vector<2x16xf32>
    %234 = vector.extract_strided_slice %232 {offsets = [0, 0], sizes = [2, 16], strides = [1, 1]} : vector<2x48xf32> to vector<2x16xf32>
    %235 = arith.addf %233, %234 : vector<2x16xf32>
    %236 = arith.negf %235 : vector<2x16xf32>
    %237 = math.exp %236 : vector<2x16xf32>
    %cst_55 = arith.constant 1.000000e+00 : f32
    %238 = vector.broadcast %cst_55 : f32 to vector<2x16xf32>
    %239 = arith.addf %238, %237 : vector<2x16xf32>
    %240 = arith.divf %238, %239 : vector<2x16xf32>
    %241 = vector.extract_strided_slice %231 {offsets = [0, 16], sizes = [2, 16], strides = [1, 1]} : vector<2x48xf32> to vector<2x16xf32>
    %242 = vector.extract_strided_slice %232 {offsets = [0, 16], sizes = [2, 16], strides = [1, 1]} : vector<2x48xf32> to vector<2x16xf32>
    %243 = arith.addf %241, %242 : vector<2x16xf32>
    %244 = arith.negf %243 : vector<2x16xf32>
    %245 = math.exp %244 : vector<2x16xf32>
    %cst_56 = arith.constant 1.000000e+00 : f32
    %246 = vector.broadcast %cst_56 : f32 to vector<2x16xf32>
    %247 = arith.addf %246, %245 : vector<2x16xf32>
    %248 = arith.divf %246, %247 : vector<2x16xf32>
    %249 = vector.extract_strided_slice %231 {offsets = [0, 32], sizes = [2, 16], strides = [1, 1]} : vector<2x48xf32> to vector<2x16xf32>
    %250 = vector.extract_strided_slice %232 {offsets = [0, 32], sizes = [2, 16], strides = [1, 1]} : vector<2x48xf32> to vector<2x16xf32>
    %251 = vector.broadcast %25 : vector<1x16xf32> to vector<2x16xf32>
    %252 = arith.addf %250, %251 : vector<2x16xf32>
    %253 = arith.mulf %240, %252 : vector<2x16xf32>
    %254 = arith.addf %249, %253 : vector<2x16xf32>
    %255 = math.tanh %254 : vector<2x16xf32>
    %cst_57 = arith.constant 1.000000e+00 : f32
    %256 = vector.broadcast %cst_57 : f32 to vector<2x16xf32>
    %257 = arith.subf %256, %248 : vector<2x16xf32>
    %258 = arith.mulf %257, %255 : vector<2x16xf32>
    %259 = arith.mulf %248, %227 : vector<2x16xf32>
    %260 = arith.addf %258, %259 : vector<2x16xf32>
    %261 = vector.broadcast %230 : vector<2x1xf32> to vector<2x16xf32>
    %262 = arith.mulf %261, %260 : vector<2x16xf32>
    %cst_58 = arith.constant 1.000000e+00 : f32
    %263 = vector.broadcast %cst_58 : f32 to vector<2x1xf32>
    %264 = arith.subf %263, %230 : vector<2x1xf32>
    %265 = vector.broadcast %264 : vector<2x1xf32> to vector<2x16xf32>
    %266 = arith.mulf %265, %227 : vector<2x16xf32>
    %267 = arith.addf %262, %266 : vector<2x16xf32>
    %268 = vector.broadcast %230 : vector<2x1xf32> to vector<2x16xf32>
    %269 = arith.mulf %267, %268 : vector<2x16xf32>
    %270 = vector.extract_strided_slice %0 {offsets = [0, 6], sizes = [2, 1], strides = [1, 1]} : vector<2x10xf32> to vector<2x1xf32>
    %271 = vector.extract_strided_slice %23 {offsets = [12, 0], sizes = [2, 48], strides = [1, 1]} : vector<20x96xf32> to vector<2x48xf32>
    %cst_59 = arith.constant dense<0.000000e+00> : vector<2x48xf32>
    %272 = tpu.matmul %267, %24, %cst_59 {dimension_numbers = #tpu.dot_dimension_numbers<[1], [0], [0], [1], [0, 0, 1, 1], [], []>} : vector<2x16xf32>, vector<16x48xf32>, vector<2x48xf32> -> vector<2x48xf32>
    %273 = vector.extract_strided_slice %271 {offsets = [0, 0], sizes = [2, 16], strides = [1, 1]} : vector<2x48xf32> to vector<2x16xf32>
    %274 = vector.extract_strided_slice %272 {offsets = [0, 0], sizes = [2, 16], strides = [1, 1]} : vector<2x48xf32> to vector<2x16xf32>
    %275 = arith.addf %273, %274 : vector<2x16xf32>
    %276 = arith.negf %275 : vector<2x16xf32>
    %277 = math.exp %276 : vector<2x16xf32>
    %cst_60 = arith.constant 1.000000e+00 : f32
    %278 = vector.broadcast %cst_60 : f32 to vector<2x16xf32>
    %279 = arith.addf %278, %277 : vector<2x16xf32>
    %280 = arith.divf %278, %279 : vector<2x16xf32>
    %281 = vector.extract_strided_slice %271 {offsets = [0, 16], sizes = [2, 16], strides = [1, 1]} : vector<2x48xf32> to vector<2x16xf32>
    %282 = vector.extract_strided_slice %272 {offsets = [0, 16], sizes = [2, 16], strides = [1, 1]} : vector<2x48xf32> to vector<2x16xf32>
    %283 = arith.addf %281, %282 : vector<2x16xf32>
    %284 = arith.negf %283 : vector<2x16xf32>
    %285 = math.exp %284 : vector<2x16xf32>
    %cst_61 = arith.constant 1.000000e+00 : f32
    %286 = vector.broadcast %cst_61 : f32 to vector<2x16xf32>
    %287 = arith.addf %286, %285 : vector<2x16xf32>
    %288 = arith.divf %286, %287 : vector<2x16xf32>
    %289 = vector.extract_strided_slice %271 {offsets = [0, 32], sizes = [2, 16], strides = [1, 1]} : vector<2x48xf32> to vector<2x16xf32>
    %290 = vector.extract_strided_slice %272 {offsets = [0, 32], sizes = [2, 16], strides = [1, 1]} : vector<2x48xf32> to vector<2x16xf32>
    %291 = vector.broadcast %25 : vector<1x16xf32> to vector<2x16xf32>
    %292 = arith.addf %290, %291 : vector<2x16xf32>
    %293 = arith.mulf %280, %292 : vector<2x16xf32>
    %294 = arith.addf %289, %293 : vector<2x16xf32>
    %295 = math.tanh %294 : vector<2x16xf32>
    %cst_62 = arith.constant 1.000000e+00 : f32
    %296 = vector.broadcast %cst_62 : f32 to vector<2x16xf32>
    %297 = arith.subf %296, %288 : vector<2x16xf32>
    %298 = arith.mulf %297, %295 : vector<2x16xf32>
    %299 = arith.mulf %288, %267 : vector<2x16xf32>
    %300 = arith.addf %298, %299 : vector<2x16xf32>
    %301 = vector.broadcast %270 : vector<2x1xf32> to vector<2x16xf32>
    %302 = arith.mulf %301, %300 : vector<2x16xf32>
    %cst_63 = arith.constant 1.000000e+00 : f32
    %303 = vector.broadcast %cst_63 : f32 to vector<2x1xf32>
    %304 = arith.subf %303, %270 : vector<2x1xf32>
    %305 = vector.broadcast %304 : vector<2x1xf32> to vector<2x16xf32>
    %306 = arith.mulf %305, %267 : vector<2x16xf32>
    %307 = arith.addf %302, %306 : vector<2x16xf32>
    %308 = vector.broadcast %270 : vector<2x1xf32> to vector<2x16xf32>
    %309 = arith.mulf %307, %308 : vector<2x16xf32>
    %310 = vector.extract_strided_slice %0 {offsets = [0, 7], sizes = [2, 1], strides = [1, 1]} : vector<2x10xf32> to vector<2x1xf32>
    %311 = vector.extract_strided_slice %23 {offsets = [14, 0], sizes = [2, 48], strides = [1, 1]} : vector<20x96xf32> to vector<2x48xf32>
    %cst_64 = arith.constant dense<0.000000e+00> : vector<2x48xf32>
    %312 = tpu.matmul %307, %24, %cst_64 {dimension_numbers = #tpu.dot_dimension_numbers<[1], [0], [0], [1], [0, 0, 1, 1], [], []>} : vector<2x16xf32>, vector<16x48xf32>, vector<2x48xf32> -> vector<2x48xf32>
    %313 = vector.extract_strided_slice %311 {offsets = [0, 0], sizes = [2, 16], strides = [1, 1]} : vector<2x48xf32> to vector<2x16xf32>
    %314 = vector.extract_strided_slice %312 {offsets = [0, 0], sizes = [2, 16], strides = [1, 1]} : vector<2x48xf32> to vector<2x16xf32>
    %315 = arith.addf %313, %314 : vector<2x16xf32>
    %316 = arith.negf %315 : vector<2x16xf32>
    %317 = math.exp %316 : vector<2x16xf32>
    %cst_65 = arith.constant 1.000000e+00 : f32
    %318 = vector.broadcast %cst_65 : f32 to vector<2x16xf32>
    %319 = arith.addf %318, %317 : vector<2x16xf32>
    %320 = arith.divf %318, %319 : vector<2x16xf32>
    %321 = vector.extract_strided_slice %311 {offsets = [0, 16], sizes = [2, 16], strides = [1, 1]} : vector<2x48xf32> to vector<2x16xf32>
    %322 = vector.extract_strided_slice %312 {offsets = [0, 16], sizes = [2, 16], strides = [1, 1]} : vector<2x48xf32> to vector<2x16xf32>
    %323 = arith.addf %321, %322 : vector<2x16xf32>
    %324 = arith.negf %323 : vector<2x16xf32>
    %325 = math.exp %324 : vector<2x16xf32>
    %cst_66 = arith.constant 1.000000e+00 : f32
    %326 = vector.broadcast %cst_66 : f32 to vector<2x16xf32>
    %327 = arith.addf %326, %325 : vector<2x16xf32>
    %328 = arith.divf %326, %327 : vector<2x16xf32>
    %329 = vector.extract_strided_slice %311 {offsets = [0, 32], sizes = [2, 16], strides = [1, 1]} : vector<2x48xf32> to vector<2x16xf32>
    %330 = vector.extract_strided_slice %312 {offsets = [0, 32], sizes = [2, 16], strides = [1, 1]} : vector<2x48xf32> to vector<2x16xf32>
    %331 = vector.broadcast %25 : vector<1x16xf32> to vector<2x16xf32>
    %332 = arith.addf %330, %331 : vector<2x16xf32>
    %333 = arith.mulf %320, %332 : vector<2x16xf32>
    %334 = arith.addf %329, %333 : vector<2x16xf32>
    %335 = math.tanh %334 : vector<2x16xf32>
    %cst_67 = arith.constant 1.000000e+00 : f32
    %336 = vector.broadcast %cst_67 : f32 to vector<2x16xf32>
    %337 = arith.subf %336, %328 : vector<2x16xf32>
    %338 = arith.mulf %337, %335 : vector<2x16xf32>
    %339 = arith.mulf %328, %307 : vector<2x16xf32>
    %340 = arith.addf %338, %339 : vector<2x16xf32>
    %341 = vector.broadcast %310 : vector<2x1xf32> to vector<2x16xf32>
    %342 = arith.mulf %341, %340 : vector<2x16xf32>
    %cst_68 = arith.constant 1.000000e+00 : f32
    %343 = vector.broadcast %cst_68 : f32 to vector<2x1xf32>
    %344 = arith.subf %343, %310 : vector<2x1xf32>
    %345 = vector.broadcast %344 : vector<2x1xf32> to vector<2x16xf32>
    %346 = arith.mulf %345, %307 : vector<2x16xf32>
    %347 = arith.addf %342, %346 : vector<2x16xf32>
    %348 = vector.broadcast %310 : vector<2x1xf32> to vector<2x16xf32>
    %349 = arith.mulf %347, %348 : vector<2x16xf32>
    %350 = vector.extract_strided_slice %0 {offsets = [0, 8], sizes = [2, 1], strides = [1, 1]} : vector<2x10xf32> to vector<2x1xf32>
    %351 = vector.extract_strided_slice %23 {offsets = [16, 0], sizes = [2, 48], strides = [1, 1]} : vector<20x96xf32> to vector<2x48xf32>
    %cst_69 = arith.constant dense<0.000000e+00> : vector<2x48xf32>
    %352 = tpu.matmul %347, %24, %cst_69 {dimension_numbers = #tpu.dot_dimension_numbers<[1], [0], [0], [1], [0, 0, 1, 1], [], []>} : vector<2x16xf32>, vector<16x48xf32>, vector<2x48xf32> -> vector<2x48xf32>
    %353 = vector.extract_strided_slice %351 {offsets = [0, 0], sizes = [2, 16], strides = [1, 1]} : vector<2x48xf32> to vector<2x16xf32>
    %354 = vector.extract_strided_slice %352 {offsets = [0, 0], sizes = [2, 16], strides = [1, 1]} : vector<2x48xf32> to vector<2x16xf32>
    %355 = arith.addf %353, %354 : vector<2x16xf32>
    %356 = arith.negf %355 : vector<2x16xf32>
    %357 = math.exp %356 : vector<2x16xf32>
    %cst_70 = arith.constant 1.000000e+00 : f32
    %358 = vector.broadcast %cst_70 : f32 to vector<2x16xf32>
    %359 = arith.addf %358, %357 : vector<2x16xf32>
    %360 = arith.divf %358, %359 : vector<2x16xf32>
    %361 = vector.extract_strided_slice %351 {offsets = [0, 16], sizes = [2, 16], strides = [1, 1]} : vector<2x48xf32> to vector<2x16xf32>
    %362 = vector.extract_strided_slice %352 {offsets = [0, 16], sizes = [2, 16], strides = [1, 1]} : vector<2x48xf32> to vector<2x16xf32>
    %363 = arith.addf %361, %362 : vector<2x16xf32>
    %364 = arith.negf %363 : vector<2x16xf32>
    %365 = math.exp %364 : vector<2x16xf32>
    %cst_71 = arith.constant 1.000000e+00 : f32
    %366 = vector.broadcast %cst_71 : f32 to vector<2x16xf32>
    %367 = arith.addf %366, %365 : vector<2x16xf32>
    %368 = arith.divf %366, %367 : vector<2x16xf32>
    %369 = vector.extract_strided_slice %351 {offsets = [0, 32], sizes = [2, 16], strides = [1, 1]} : vector<2x48xf32> to vector<2x16xf32>
    %370 = vector.extract_strided_slice %352 {offsets = [0, 32], sizes = [2, 16], strides = [1, 1]} : vector<2x48xf32> to vector<2x16xf32>
    %371 = vector.broadcast %25 : vector<1x16xf32> to vector<2x16xf32>
    %372 = arith.addf %370, %371 : vector<2x16xf32>
    %373 = arith.mulf %360, %372 : vector<2x16xf32>
    %374 = arith.addf %369, %373 : vector<2x16xf32>
    %375 = math.tanh %374 : vector<2x16xf32>
    %cst_72 = arith.constant 1.000000e+00 : f32
    %376 = vector.broadcast %cst_72 : f32 to vector<2x16xf32>
    %377 = arith.subf %376, %368 : vector<2x16xf32>
    %378 = arith.mulf %377, %375 : vector<2x16xf32>
    %379 = arith.mulf %368, %347 : vector<2x16xf32>
    %380 = arith.addf %378, %379 : vector<2x16xf32>
    %381 = vector.broadcast %350 : vector<2x1xf32> to vector<2x16xf32>
    %382 = arith.mulf %381, %380 : vector<2x16xf32>
    %cst_73 = arith.constant 1.000000e+00 : f32
    %383 = vector.broadcast %cst_73 : f32 to vector<2x1xf32>
    %384 = arith.subf %383, %350 : vector<2x1xf32>
    %385 = vector.broadcast %384 : vector<2x1xf32> to vector<2x16xf32>
    %386 = arith.mulf %385, %347 : vector<2x16xf32>
    %387 = arith.addf %382, %386 : vector<2x16xf32>
    %388 = vector.broadcast %350 : vector<2x1xf32> to vector<2x16xf32>
    %389 = arith.mulf %387, %388 : vector<2x16xf32>
    %390 = vector.extract_strided_slice %0 {offsets = [0, 9], sizes = [2, 1], strides = [1, 1]} : vector<2x10xf32> to vector<2x1xf32>
    %391 = vector.extract_strided_slice %23 {offsets = [18, 0], sizes = [2, 48], strides = [1, 1]} : vector<20x96xf32> to vector<2x48xf32>
    %cst_74 = arith.constant dense<0.000000e+00> : vector<2x48xf32>
    %392 = tpu.matmul %387, %24, %cst_74 {dimension_numbers = #tpu.dot_dimension_numbers<[1], [0], [0], [1], [0, 0, 1, 1], [], []>} : vector<2x16xf32>, vector<16x48xf32>, vector<2x48xf32> -> vector<2x48xf32>
    %393 = vector.extract_strided_slice %391 {offsets = [0, 0], sizes = [2, 16], strides = [1, 1]} : vector<2x48xf32> to vector<2x16xf32>
    %394 = vector.extract_strided_slice %392 {offsets = [0, 0], sizes = [2, 16], strides = [1, 1]} : vector<2x48xf32> to vector<2x16xf32>
    %395 = arith.addf %393, %394 : vector<2x16xf32>
    %396 = arith.negf %395 : vector<2x16xf32>
    %397 = math.exp %396 : vector<2x16xf32>
    %cst_75 = arith.constant 1.000000e+00 : f32
    %398 = vector.broadcast %cst_75 : f32 to vector<2x16xf32>
    %399 = arith.addf %398, %397 : vector<2x16xf32>
    %400 = arith.divf %398, %399 : vector<2x16xf32>
    %401 = vector.extract_strided_slice %391 {offsets = [0, 16], sizes = [2, 16], strides = [1, 1]} : vector<2x48xf32> to vector<2x16xf32>
    %402 = vector.extract_strided_slice %392 {offsets = [0, 16], sizes = [2, 16], strides = [1, 1]} : vector<2x48xf32> to vector<2x16xf32>
    %403 = arith.addf %401, %402 : vector<2x16xf32>
    %404 = arith.negf %403 : vector<2x16xf32>
    %405 = math.exp %404 : vector<2x16xf32>
    %cst_76 = arith.constant 1.000000e+00 : f32
    %406 = vector.broadcast %cst_76 : f32 to vector<2x16xf32>
    %407 = arith.addf %406, %405 : vector<2x16xf32>
    %408 = arith.divf %406, %407 : vector<2x16xf32>
    %409 = vector.extract_strided_slice %391 {offsets = [0, 32], sizes = [2, 16], strides = [1, 1]} : vector<2x48xf32> to vector<2x16xf32>
    %410 = vector.extract_strided_slice %392 {offsets = [0, 32], sizes = [2, 16], strides = [1, 1]} : vector<2x48xf32> to vector<2x16xf32>
    %411 = vector.broadcast %25 : vector<1x16xf32> to vector<2x16xf32>
    %412 = arith.addf %410, %411 : vector<2x16xf32>
    %413 = arith.mulf %400, %412 : vector<2x16xf32>
    %414 = arith.addf %409, %413 : vector<2x16xf32>
    %415 = math.tanh %414 : vector<2x16xf32>
    %cst_77 = arith.constant 1.000000e+00 : f32
    %416 = vector.broadcast %cst_77 : f32 to vector<2x16xf32>
    %417 = arith.subf %416, %408 : vector<2x16xf32>
    %418 = arith.mulf %417, %415 : vector<2x16xf32>
    %419 = arith.mulf %408, %387 : vector<2x16xf32>
    %420 = arith.addf %418, %419 : vector<2x16xf32>
    %421 = vector.broadcast %390 : vector<2x1xf32> to vector<2x16xf32>
    %422 = arith.mulf %421, %420 : vector<2x16xf32>
    %cst_78 = arith.constant 1.000000e+00 : f32
    %423 = vector.broadcast %cst_78 : f32 to vector<2x1xf32>
    %424 = arith.subf %423, %390 : vector<2x1xf32>
    %425 = vector.broadcast %424 : vector<2x1xf32> to vector<2x16xf32>
    %426 = arith.mulf %425, %387 : vector<2x16xf32>
    %427 = arith.addf %422, %426 : vector<2x16xf32>
    %428 = vector.broadcast %390 : vector<2x1xf32> to vector<2x16xf32>
    %429 = arith.mulf %427, %428 : vector<2x16xf32>
    %430 = vector.extract_strided_slice %0 {offsets = [0, 9], sizes = [2, 1], strides = [1, 1]} : vector<2x10xf32> to vector<2x1xf32>
    %431 = vector.extract_strided_slice %23 {offsets = [18, 48], sizes = [2, 48], strides = [1, 1]} : vector<20x96xf32> to vector<2x48xf32>
    %cst_79 = arith.constant dense<0.000000e+00> : vector<2x48xf32>
    %432 = tpu.matmul %29, %26, %cst_79 {dimension_numbers = #tpu.dot_dimension_numbers<[1], [0], [0], [1], [0, 0, 1, 1], [], []>} : vector<2x16xf32>, vector<16x48xf32>, vector<2x48xf32> -> vector<2x48xf32>
    %433 = vector.extract_strided_slice %431 {offsets = [0, 0], sizes = [2, 16], strides = [1, 1]} : vector<2x48xf32> to vector<2x16xf32>
    %434 = vector.extract_strided_slice %432 {offsets = [0, 0], sizes = [2, 16], strides = [1, 1]} : vector<2x48xf32> to vector<2x16xf32>
    %435 = arith.addf %433, %434 : vector<2x16xf32>
    %436 = arith.negf %435 : vector<2x16xf32>
    %437 = math.exp %436 : vector<2x16xf32>
    %cst_80 = arith.constant 1.000000e+00 : f32
    %438 = vector.broadcast %cst_80 : f32 to vector<2x16xf32>
    %439 = arith.addf %438, %437 : vector<2x16xf32>
    %440 = arith.divf %438, %439 : vector<2x16xf32>
    %441 = vector.extract_strided_slice %431 {offsets = [0, 16], sizes = [2, 16], strides = [1, 1]} : vector<2x48xf32> to vector<2x16xf32>
    %442 = vector.extract_strided_slice %432 {offsets = [0, 16], sizes = [2, 16], strides = [1, 1]} : vector<2x48xf32> to vector<2x16xf32>
    %443 = arith.addf %441, %442 : vector<2x16xf32>
    %444 = arith.negf %443 : vector<2x16xf32>
    %445 = math.exp %444 : vector<2x16xf32>
    %cst_81 = arith.constant 1.000000e+00 : f32
    %446 = vector.broadcast %cst_81 : f32 to vector<2x16xf32>
    %447 = arith.addf %446, %445 : vector<2x16xf32>
    %448 = arith.divf %446, %447 : vector<2x16xf32>
    %449 = vector.extract_strided_slice %431 {offsets = [0, 32], sizes = [2, 16], strides = [1, 1]} : vector<2x48xf32> to vector<2x16xf32>
    %450 = vector.extract_strided_slice %432 {offsets = [0, 32], sizes = [2, 16], strides = [1, 1]} : vector<2x48xf32> to vector<2x16xf32>
    %451 = vector.broadcast %27 : vector<1x16xf32> to vector<2x16xf32>
    %452 = arith.addf %450, %451 : vector<2x16xf32>
    %453 = arith.mulf %440, %452 : vector<2x16xf32>
    %454 = arith.addf %449, %453 : vector<2x16xf32>
    %455 = math.tanh %454 : vector<2x16xf32>
    %cst_82 = arith.constant 1.000000e+00 : f32
    %456 = vector.broadcast %cst_82 : f32 to vector<2x16xf32>
    %457 = arith.subf %456, %448 : vector<2x16xf32>
    %458 = arith.mulf %457, %455 : vector<2x16xf32>
    %459 = arith.mulf %448, %29 : vector<2x16xf32>
    %460 = arith.addf %458, %459 : vector<2x16xf32>
    %461 = vector.broadcast %430 : vector<2x1xf32> to vector<2x16xf32>
    %462 = arith.mulf %461, %460 : vector<2x16xf32>
    %cst_83 = arith.constant 1.000000e+00 : f32
    %463 = vector.broadcast %cst_83 : f32 to vector<2x1xf32>
    %464 = arith.subf %463, %430 : vector<2x1xf32>
    %465 = vector.broadcast %464 : vector<2x1xf32> to vector<2x16xf32>
    %466 = arith.mulf %465, %29 : vector<2x16xf32>
    %467 = arith.addf %462, %466 : vector<2x16xf32>
    %468 = vector.broadcast %430 : vector<2x1xf32> to vector<2x16xf32>
    %469 = arith.mulf %467, %468 : vector<2x16xf32>
    %470 = vector.extract_strided_slice %0 {offsets = [0, 8], sizes = [2, 1], strides = [1, 1]} : vector<2x10xf32> to vector<2x1xf32>
    %471 = vector.extract_strided_slice %23 {offsets = [16, 48], sizes = [2, 48], strides = [1, 1]} : vector<20x96xf32> to vector<2x48xf32>
    %cst_84 = arith.constant dense<0.000000e+00> : vector<2x48xf32>
    %472 = tpu.matmul %467, %26, %cst_84 {dimension_numbers = #tpu.dot_dimension_numbers<[1], [0], [0], [1], [0, 0, 1, 1], [], []>} : vector<2x16xf32>, vector<16x48xf32>, vector<2x48xf32> -> vector<2x48xf32>
    %473 = vector.extract_strided_slice %471 {offsets = [0, 0], sizes = [2, 16], strides = [1, 1]} : vector<2x48xf32> to vector<2x16xf32>
    %474 = vector.extract_strided_slice %472 {offsets = [0, 0], sizes = [2, 16], strides = [1, 1]} : vector<2x48xf32> to vector<2x16xf32>
    %475 = arith.addf %473, %474 : vector<2x16xf32>
    %476 = arith.negf %475 : vector<2x16xf32>
    %477 = math.exp %476 : vector<2x16xf32>
    %cst_85 = arith.constant 1.000000e+00 : f32
    %478 = vector.broadcast %cst_85 : f32 to vector<2x16xf32>
    %479 = arith.addf %478, %477 : vector<2x16xf32>
    %480 = arith.divf %478, %479 : vector<2x16xf32>
    %481 = vector.extract_strided_slice %471 {offsets = [0, 16], sizes = [2, 16], strides = [1, 1]} : vector<2x48xf32> to vector<2x16xf32>
    %482 = vector.extract_strided_slice %472 {offsets = [0, 16], sizes = [2, 16], strides = [1, 1]} : vector<2x48xf32> to vector<2x16xf32>
    %483 = arith.addf %481, %482 : vector<2x16xf32>
    %484 = arith.negf %483 : vector<2x16xf32>
    %485 = math.exp %484 : vector<2x16xf32>
    %cst_86 = arith.constant 1.000000e+00 : f32
    %486 = vector.broadcast %cst_86 : f32 to vector<2x16xf32>
    %487 = arith.addf %486, %485 : vector<2x16xf32>
    %488 = arith.divf %486, %487 : vector<2x16xf32>
    %489 = vector.extract_strided_slice %471 {offsets = [0, 32], sizes = [2, 16], strides = [1, 1]} : vector<2x48xf32> to vector<2x16xf32>
    %490 = vector.extract_strided_slice %472 {offsets = [0, 32], sizes = [2, 16], strides = [1, 1]} : vector<2x48xf32> to vector<2x16xf32>
    %491 = vector.broadcast %27 : vector<1x16xf32> to vector<2x16xf32>
    %492 = arith.addf %490, %491 : vector<2x16xf32>
    %493 = arith.mulf %480, %492 : vector<2x16xf32>
    %494 = arith.addf %489, %493 : vector<2x16xf32>
    %495 = math.tanh %494 : vector<2x16xf32>
    %cst_87 = arith.constant 1.000000e+00 : f32
    %496 = vector.broadcast %cst_87 : f32 to vector<2x16xf32>
    %497 = arith.subf %496, %488 : vector<2x16xf32>
    %498 = arith.mulf %497, %495 : vector<2x16xf32>
    %499 = arith.mulf %488, %467 : vector<2x16xf32>
    %500 = arith.addf %498, %499 : vector<2x16xf32>
    %501 = vector.broadcast %470 : vector<2x1xf32> to vector<2x16xf32>
    %502 = arith.mulf %501, %500 : vector<2x16xf32>
    %cst_88 = arith.constant 1.000000e+00 : f32
    %503 = vector.broadcast %cst_88 : f32 to vector<2x1xf32>
    %504 = arith.subf %503, %470 : vector<2x1xf32>
    %505 = vector.broadcast %504 : vector<2x1xf32> to vector<2x16xf32>
    %506 = arith.mulf %505, %467 : vector<2x16xf32>
    %507 = arith.addf %502, %506 : vector<2x16xf32>
    %508 = vector.broadcast %470 : vector<2x1xf32> to vector<2x16xf32>
    %509 = arith.mulf %507, %508 : vector<2x16xf32>
    %510 = vector.extract_strided_slice %0 {offsets = [0, 7], sizes = [2, 1], strides = [1, 1]} : vector<2x10xf32> to vector<2x1xf32>
    %511 = vector.extract_strided_slice %23 {offsets = [14, 48], sizes = [2, 48], strides = [1, 1]} : vector<20x96xf32> to vector<2x48xf32>
    %cst_89 = arith.constant dense<0.000000e+00> : vector<2x48xf32>
    %512 = tpu.matmul %507, %26, %cst_89 {dimension_numbers = #tpu.dot_dimension_numbers<[1], [0], [0], [1], [0, 0, 1, 1], [], []>} : vector<2x16xf32>, vector<16x48xf32>, vector<2x48xf32> -> vector<2x48xf32>
    %513 = vector.extract_strided_slice %511 {offsets = [0, 0], sizes = [2, 16], strides = [1, 1]} : vector<2x48xf32> to vector<2x16xf32>
    %514 = vector.extract_strided_slice %512 {offsets = [0, 0], sizes = [2, 16], strides = [1, 1]} : vector<2x48xf32> to vector<2x16xf32>
    %515 = arith.addf %513, %514 : vector<2x16xf32>
    %516 = arith.negf %515 : vector<2x16xf32>
    %517 = math.exp %516 : vector<2x16xf32>
    %cst_90 = arith.constant 1.000000e+00 : f32
    %518 = vector.broadcast %cst_90 : f32 to vector<2x16xf32>
    %519 = arith.addf %518, %517 : vector<2x16xf32>
    %520 = arith.divf %518, %519 : vector<2x16xf32>
    %521 = vector.extract_strided_slice %511 {offsets = [0, 16], sizes = [2, 16], strides = [1, 1]} : vector<2x48xf32> to vector<2x16xf32>
    %522 = vector.extract_strided_slice %512 {offsets = [0, 16], sizes = [2, 16], strides = [1, 1]} : vector<2x48xf32> to vector<2x16xf32>
    %523 = arith.addf %521, %522 : vector<2x16xf32>
    %524 = arith.negf %523 : vector<2x16xf32>
    %525 = math.exp %524 : vector<2x16xf32>
    %cst_91 = arith.constant 1.000000e+00 : f32
    %526 = vector.broadcast %cst_91 : f32 to vector<2x16xf32>
    %527 = arith.addf %526, %525 : vector<2x16xf32>
    %528 = arith.divf %526, %527 : vector<2x16xf32>
    %529 = vector.extract_strided_slice %511 {offsets = [0, 32], sizes = [2, 16], strides = [1, 1]} : vector<2x48xf32> to vector<2x16xf32>
    %530 = vector.extract_strided_slice %512 {offsets = [0, 32], sizes = [2, 16], strides = [1, 1]} : vector<2x48xf32> to vector<2x16xf32>
    %531 = vector.broadcast %27 : vector<1x16xf32> to vector<2x16xf32>
    %532 = arith.addf %530, %531 : vector<2x16xf32>
    %533 = arith.mulf %520, %532 : vector<2x16xf32>
    %534 = arith.addf %529, %533 : vector<2x16xf32>
    %535 = math.tanh %534 : vector<2x16xf32>
    %cst_92 = arith.constant 1.000000e+00 : f32
    %536 = vector.broadcast %cst_92 : f32 to vector<2x16xf32>
    %537 = arith.subf %536, %528 : vector<2x16xf32>
    %538 = arith.mulf %537, %535 : vector<2x16xf32>
    %539 = arith.mulf %528, %507 : vector<2x16xf32>
    %540 = arith.addf %538, %539 : vector<2x16xf32>
    %541 = vector.broadcast %510 : vector<2x1xf32> to vector<2x16xf32>
    %542 = arith.mulf %541, %540 : vector<2x16xf32>
    %cst_93 = arith.constant 1.000000e+00 : f32
    %543 = vector.broadcast %cst_93 : f32 to vector<2x1xf32>
    %544 = arith.subf %543, %510 : vector<2x1xf32>
    %545 = vector.broadcast %544 : vector<2x1xf32> to vector<2x16xf32>
    %546 = arith.mulf %545, %507 : vector<2x16xf32>
    %547 = arith.addf %542, %546 : vector<2x16xf32>
    %548 = vector.broadcast %510 : vector<2x1xf32> to vector<2x16xf32>
    %549 = arith.mulf %547, %548 : vector<2x16xf32>
    %550 = vector.extract_strided_slice %0 {offsets = [0, 6], sizes = [2, 1], strides = [1, 1]} : vector<2x10xf32> to vector<2x1xf32>
    %551 = vector.extract_strided_slice %23 {offsets = [12, 48], sizes = [2, 48], strides = [1, 1]} : vector<20x96xf32> to vector<2x48xf32>
    %cst_94 = arith.constant dense<0.000000e+00> : vector<2x48xf32>
    %552 = tpu.matmul %547, %26, %cst_94 {dimension_numbers = #tpu.dot_dimension_numbers<[1], [0], [0], [1], [0, 0, 1, 1], [], []>} : vector<2x16xf32>, vector<16x48xf32>, vector<2x48xf32> -> vector<2x48xf32>
    %553 = vector.extract_strided_slice %551 {offsets = [0, 0], sizes = [2, 16], strides = [1, 1]} : vector<2x48xf32> to vector<2x16xf32>
    %554 = vector.extract_strided_slice %552 {offsets = [0, 0], sizes = [2, 16], strides = [1, 1]} : vector<2x48xf32> to vector<2x16xf32>
    %555 = arith.addf %553, %554 : vector<2x16xf32>
    %556 = arith.negf %555 : vector<2x16xf32>
    %557 = math.exp %556 : vector<2x16xf32>
    %cst_95 = arith.constant 1.000000e+00 : f32
    %558 = vector.broadcast %cst_95 : f32 to vector<2x16xf32>
    %559 = arith.addf %558, %557 : vector<2x16xf32>
    %560 = arith.divf %558, %559 : vector<2x16xf32>
    %561 = vector.extract_strided_slice %551 {offsets = [0, 16], sizes = [2, 16], strides = [1, 1]} : vector<2x48xf32> to vector<2x16xf32>
    %562 = vector.extract_strided_slice %552 {offsets = [0, 16], sizes = [2, 16], strides = [1, 1]} : vector<2x48xf32> to vector<2x16xf32>
    %563 = arith.addf %561, %562 : vector<2x16xf32>
    %564 = arith.negf %563 : vector<2x16xf32>
    %565 = math.exp %564 : vector<2x16xf32>
    %cst_96 = arith.constant 1.000000e+00 : f32
    %566 = vector.broadcast %cst_96 : f32 to vector<2x16xf32>
    %567 = arith.addf %566, %565 : vector<2x16xf32>
    %568 = arith.divf %566, %567 : vector<2x16xf32>
    %569 = vector.extract_strided_slice %551 {offsets = [0, 32], sizes = [2, 16], strides = [1, 1]} : vector<2x48xf32> to vector<2x16xf32>
    %570 = vector.extract_strided_slice %552 {offsets = [0, 32], sizes = [2, 16], strides = [1, 1]} : vector<2x48xf32> to vector<2x16xf32>
    %571 = vector.broadcast %27 : vector<1x16xf32> to vector<2x16xf32>
    %572 = arith.addf %570, %571 : vector<2x16xf32>
    %573 = arith.mulf %560, %572 : vector<2x16xf32>
    %574 = arith.addf %569, %573 : vector<2x16xf32>
    %575 = math.tanh %574 : vector<2x16xf32>
    %cst_97 = arith.constant 1.000000e+00 : f32
    %576 = vector.broadcast %cst_97 : f32 to vector<2x16xf32>
    %577 = arith.subf %576, %568 : vector<2x16xf32>
    %578 = arith.mulf %577, %575 : vector<2x16xf32>
    %579 = arith.mulf %568, %547 : vector<2x16xf32>
    %580 = arith.addf %578, %579 : vector<2x16xf32>
    %581 = vector.broadcast %550 : vector<2x1xf32> to vector<2x16xf32>
    %582 = arith.mulf %581, %580 : vector<2x16xf32>
    %cst_98 = arith.constant 1.000000e+00 : f32
    %583 = vector.broadcast %cst_98 : f32 to vector<2x1xf32>
    %584 = arith.subf %583, %550 : vector<2x1xf32>
    %585 = vector.broadcast %584 : vector<2x1xf32> to vector<2x16xf32>
    %586 = arith.mulf %585, %547 : vector<2x16xf32>
    %587 = arith.addf %582, %586 : vector<2x16xf32>
    %588 = vector.broadcast %550 : vector<2x1xf32> to vector<2x16xf32>
    %589 = arith.mulf %587, %588 : vector<2x16xf32>
    %590 = vector.extract_strided_slice %0 {offsets = [0, 5], sizes = [2, 1], strides = [1, 1]} : vector<2x10xf32> to vector<2x1xf32>
    %591 = vector.extract_strided_slice %23 {offsets = [10, 48], sizes = [2, 48], strides = [1, 1]} : vector<20x96xf32> to vector<2x48xf32>
    %cst_99 = arith.constant dense<0.000000e+00> : vector<2x48xf32>
    %592 = tpu.matmul %587, %26, %cst_99 {dimension_numbers = #tpu.dot_dimension_numbers<[1], [0], [0], [1], [0, 0, 1, 1], [], []>} : vector<2x16xf32>, vector<16x48xf32>, vector<2x48xf32> -> vector<2x48xf32>
    %593 = vector.extract_strided_slice %591 {offsets = [0, 0], sizes = [2, 16], strides = [1, 1]} : vector<2x48xf32> to vector<2x16xf32>
    %594 = vector.extract_strided_slice %592 {offsets = [0, 0], sizes = [2, 16], strides = [1, 1]} : vector<2x48xf32> to vector<2x16xf32>
    %595 = arith.addf %593, %594 : vector<2x16xf32>
    %596 = arith.negf %595 : vector<2x16xf32>
    %597 = math.exp %596 : vector<2x16xf32>
    %cst_100 = arith.constant 1.000000e+00 : f32
    %598 = vector.broadcast %cst_100 : f32 to vector<2x16xf32>
    %599 = arith.addf %598, %597 : vector<2x16xf32>
    %600 = arith.divf %598, %599 : vector<2x16xf32>
    %601 = vector.extract_strided_slice %591 {offsets = [0, 16], sizes = [2, 16], strides = [1, 1]} : vector<2x48xf32> to vector<2x16xf32>
    %602 = vector.extract_strided_slice %592 {offsets = [0, 16], sizes = [2, 16], strides = [1, 1]} : vector<2x48xf32> to vector<2x16xf32>
    %603 = arith.addf %601, %602 : vector<2x16xf32>
    %604 = arith.negf %603 : vector<2x16xf32>
    %605 = math.exp %604 : vector<2x16xf32>
    %cst_101 = arith.constant 1.000000e+00 : f32
    %606 = vector.broadcast %cst_101 : f32 to vector<2x16xf32>
    %607 = arith.addf %606, %605 : vector<2x16xf32>
    %608 = arith.divf %606, %607 : vector<2x16xf32>
    %609 = vector.extract_strided_slice %591 {offsets = [0, 32], sizes = [2, 16], strides = [1, 1]} : vector<2x48xf32> to vector<2x16xf32>
    %610 = vector.extract_strided_slice %592 {offsets = [0, 32], sizes = [2, 16], strides = [1, 1]} : vector<2x48xf32> to vector<2x16xf32>
    %611 = vector.broadcast %27 : vector<1x16xf32> to vector<2x16xf32>
    %612 = arith.addf %610, %611 : vector<2x16xf32>
    %613 = arith.mulf %600, %612 : vector<2x16xf32>
    %614 = arith.addf %609, %613 : vector<2x16xf32>
    %615 = math.tanh %614 : vector<2x16xf32>
    %cst_102 = arith.constant 1.000000e+00 : f32
    %616 = vector.broadcast %cst_102 : f32 to vector<2x16xf32>
    %617 = arith.subf %616, %608 : vector<2x16xf32>
    %618 = arith.mulf %617, %615 : vector<2x16xf32>
    %619 = arith.mulf %608, %587 : vector<2x16xf32>
    %620 = arith.addf %618, %619 : vector<2x16xf32>
    %621 = vector.broadcast %590 : vector<2x1xf32> to vector<2x16xf32>
    %622 = arith.mulf %621, %620 : vector<2x16xf32>
    %cst_103 = arith.constant 1.000000e+00 : f32
    %623 = vector.broadcast %cst_103 : f32 to vector<2x1xf32>
    %624 = arith.subf %623, %590 : vector<2x1xf32>
    %625 = vector.broadcast %624 : vector<2x1xf32> to vector<2x16xf32>
    %626 = arith.mulf %625, %587 : vector<2x16xf32>
    %627 = arith.addf %622, %626 : vector<2x16xf32>
    %628 = vector.broadcast %590 : vector<2x1xf32> to vector<2x16xf32>
    %629 = arith.mulf %627, %628 : vector<2x16xf32>
    %630 = vector.extract_strided_slice %0 {offsets = [0, 4], sizes = [2, 1], strides = [1, 1]} : vector<2x10xf32> to vector<2x1xf32>
    %631 = vector.extract_strided_slice %23 {offsets = [8, 48], sizes = [2, 48], strides = [1, 1]} : vector<20x96xf32> to vector<2x48xf32>
    %cst_104 = arith.constant dense<0.000000e+00> : vector<2x48xf32>
    %632 = tpu.matmul %627, %26, %cst_104 {dimension_numbers = #tpu.dot_dimension_numbers<[1], [0], [0], [1], [0, 0, 1, 1], [], []>} : vector<2x16xf32>, vector<16x48xf32>, vector<2x48xf32> -> vector<2x48xf32>
    %633 = vector.extract_strided_slice %631 {offsets = [0, 0], sizes = [2, 16], strides = [1, 1]} : vector<2x48xf32> to vector<2x16xf32>
    %634 = vector.extract_strided_slice %632 {offsets = [0, 0], sizes = [2, 16], strides = [1, 1]} : vector<2x48xf32> to vector<2x16xf32>
    %635 = arith.addf %633, %634 : vector<2x16xf32>
    %636 = arith.negf %635 : vector<2x16xf32>
    %637 = math.exp %636 : vector<2x16xf32>
    %cst_105 = arith.constant 1.000000e+00 : f32
    %638 = vector.broadcast %cst_105 : f32 to vector<2x16xf32>
    %639 = arith.addf %638, %637 : vector<2x16xf32>
    %640 = arith.divf %638, %639 : vector<2x16xf32>
    %641 = vector.extract_strided_slice %631 {offsets = [0, 16], sizes = [2, 16], strides = [1, 1]} : vector<2x48xf32> to vector<2x16xf32>
    %642 = vector.extract_strided_slice %632 {offsets = [0, 16], sizes = [2, 16], strides = [1, 1]} : vector<2x48xf32> to vector<2x16xf32>
    %643 = arith.addf %641, %642 : vector<2x16xf32>
    %644 = arith.negf %643 : vector<2x16xf32>
    %645 = math.exp %644 : vector<2x16xf32>
    %cst_106 = arith.constant 1.000000e+00 : f32
    %646 = vector.broadcast %cst_106 : f32 to vector<2x16xf32>
    %647 = arith.addf %646, %645 : vector<2x16xf32>
    %648 = arith.divf %646, %647 : vector<2x16xf32>
    %649 = vector.extract_strided_slice %631 {offsets = [0, 32], sizes = [2, 16], strides = [1, 1]} : vector<2x48xf32> to vector<2x16xf32>
    %650 = vector.extract_strided_slice %632 {offsets = [0, 32], sizes = [2, 16], strides = [1, 1]} : vector<2x48xf32> to vector<2x16xf32>
    %651 = vector.broadcast %27 : vector<1x16xf32> to vector<2x16xf32>
    %652 = arith.addf %650, %651 : vector<2x16xf32>
    %653 = arith.mulf %640, %652 : vector<2x16xf32>
    %654 = arith.addf %649, %653 : vector<2x16xf32>
    %655 = math.tanh %654 : vector<2x16xf32>
    %cst_107 = arith.constant 1.000000e+00 : f32
    %656 = vector.broadcast %cst_107 : f32 to vector<2x16xf32>
    %657 = arith.subf %656, %648 : vector<2x16xf32>
    %658 = arith.mulf %657, %655 : vector<2x16xf32>
    %659 = arith.mulf %648, %627 : vector<2x16xf32>
    %660 = arith.addf %658, %659 : vector<2x16xf32>
    %661 = vector.broadcast %630 : vector<2x1xf32> to vector<2x16xf32>
    %662 = arith.mulf %661, %660 : vector<2x16xf32>
    %cst_108 = arith.constant 1.000000e+00 : f32
    %663 = vector.broadcast %cst_108 : f32 to vector<2x1xf32>
    %664 = arith.subf %663, %630 : vector<2x1xf32>
    %665 = vector.broadcast %664 : vector<2x1xf32> to vector<2x16xf32>
    %666 = arith.mulf %665, %627 : vector<2x16xf32>
    %667 = arith.addf %662, %666 : vector<2x16xf32>
    %668 = vector.broadcast %630 : vector<2x1xf32> to vector<2x16xf32>
    %669 = arith.mulf %667, %668 : vector<2x16xf32>
    %670 = vector.extract_strided_slice %0 {offsets = [0, 3], sizes = [2, 1], strides = [1, 1]} : vector<2x10xf32> to vector<2x1xf32>
    %671 = vector.extract_strided_slice %23 {offsets = [6, 48], sizes = [2, 48], strides = [1, 1]} : vector<20x96xf32> to vector<2x48xf32>
    %cst_109 = arith.constant dense<0.000000e+00> : vector<2x48xf32>
    %672 = tpu.matmul %667, %26, %cst_109 {dimension_numbers = #tpu.dot_dimension_numbers<[1], [0], [0], [1], [0, 0, 1, 1], [], []>} : vector<2x16xf32>, vector<16x48xf32>, vector<2x48xf32> -> vector<2x48xf32>
    %673 = vector.extract_strided_slice %671 {offsets = [0, 0], sizes = [2, 16], strides = [1, 1]} : vector<2x48xf32> to vector<2x16xf32>
    %674 = vector.extract_strided_slice %672 {offsets = [0, 0], sizes = [2, 16], strides = [1, 1]} : vector<2x48xf32> to vector<2x16xf32>
    %675 = arith.addf %673, %674 : vector<2x16xf32>
    %676 = arith.negf %675 : vector<2x16xf32>
    %677 = math.exp %676 : vector<2x16xf32>
    %cst_110 = arith.constant 1.000000e+00 : f32
    %678 = vector.broadcast %cst_110 : f32 to vector<2x16xf32>
    %679 = arith.addf %678, %677 : vector<2x16xf32>
    %680 = arith.divf %678, %679 : vector<2x16xf32>
    %681 = vector.extract_strided_slice %671 {offsets = [0, 16], sizes = [2, 16], strides = [1, 1]} : vector<2x48xf32> to vector<2x16xf32>
    %682 = vector.extract_strided_slice %672 {offsets = [0, 16], sizes = [2, 16], strides = [1, 1]} : vector<2x48xf32> to vector<2x16xf32>
    %683 = arith.addf %681, %682 : vector<2x16xf32>
    %684 = arith.negf %683 : vector<2x16xf32>
    %685 = math.exp %684 : vector<2x16xf32>
    %cst_111 = arith.constant 1.000000e+00 : f32
    %686 = vector.broadcast %cst_111 : f32 to vector<2x16xf32>
    %687 = arith.addf %686, %685 : vector<2x16xf32>
    %688 = arith.divf %686, %687 : vector<2x16xf32>
    %689 = vector.extract_strided_slice %671 {offsets = [0, 32], sizes = [2, 16], strides = [1, 1]} : vector<2x48xf32> to vector<2x16xf32>
    %690 = vector.extract_strided_slice %672 {offsets = [0, 32], sizes = [2, 16], strides = [1, 1]} : vector<2x48xf32> to vector<2x16xf32>
    %691 = vector.broadcast %27 : vector<1x16xf32> to vector<2x16xf32>
    %692 = arith.addf %690, %691 : vector<2x16xf32>
    %693 = arith.mulf %680, %692 : vector<2x16xf32>
    %694 = arith.addf %689, %693 : vector<2x16xf32>
    %695 = math.tanh %694 : vector<2x16xf32>
    %cst_112 = arith.constant 1.000000e+00 : f32
    %696 = vector.broadcast %cst_112 : f32 to vector<2x16xf32>
    %697 = arith.subf %696, %688 : vector<2x16xf32>
    %698 = arith.mulf %697, %695 : vector<2x16xf32>
    %699 = arith.mulf %688, %667 : vector<2x16xf32>
    %700 = arith.addf %698, %699 : vector<2x16xf32>
    %701 = vector.broadcast %670 : vector<2x1xf32> to vector<2x16xf32>
    %702 = arith.mulf %701, %700 : vector<2x16xf32>
    %cst_113 = arith.constant 1.000000e+00 : f32
    %703 = vector.broadcast %cst_113 : f32 to vector<2x1xf32>
    %704 = arith.subf %703, %670 : vector<2x1xf32>
    %705 = vector.broadcast %704 : vector<2x1xf32> to vector<2x16xf32>
    %706 = arith.mulf %705, %667 : vector<2x16xf32>
    %707 = arith.addf %702, %706 : vector<2x16xf32>
    %708 = vector.broadcast %670 : vector<2x1xf32> to vector<2x16xf32>
    %709 = arith.mulf %707, %708 : vector<2x16xf32>
    %710 = vector.extract_strided_slice %0 {offsets = [0, 2], sizes = [2, 1], strides = [1, 1]} : vector<2x10xf32> to vector<2x1xf32>
    %711 = vector.extract_strided_slice %23 {offsets = [4, 48], sizes = [2, 48], strides = [1, 1]} : vector<20x96xf32> to vector<2x48xf32>
    %cst_114 = arith.constant dense<0.000000e+00> : vector<2x48xf32>
    %712 = tpu.matmul %707, %26, %cst_114 {dimension_numbers = #tpu.dot_dimension_numbers<[1], [0], [0], [1], [0, 0, 1, 1], [], []>} : vector<2x16xf32>, vector<16x48xf32>, vector<2x48xf32> -> vector<2x48xf32>
    %713 = vector.extract_strided_slice %711 {offsets = [0, 0], sizes = [2, 16], strides = [1, 1]} : vector<2x48xf32> to vector<2x16xf32>
    %714 = vector.extract_strided_slice %712 {offsets = [0, 0], sizes = [2, 16], strides = [1, 1]} : vector<2x48xf32> to vector<2x16xf32>
    %715 = arith.addf %713, %714 : vector<2x16xf32>
    %716 = arith.negf %715 : vector<2x16xf32>
    %717 = math.exp %716 : vector<2x16xf32>
    %cst_115 = arith.constant 1.000000e+00 : f32
    %718 = vector.broadcast %cst_115 : f32 to vector<2x16xf32>
    %719 = arith.addf %718, %717 : vector<2x16xf32>
    %720 = arith.divf %718, %719 : vector<2x16xf32>
    %721 = vector.extract_strided_slice %711 {offsets = [0, 16], sizes = [2, 16], strides = [1, 1]} : vector<2x48xf32> to vector<2x16xf32>
    %722 = vector.extract_strided_slice %712 {offsets = [0, 16], sizes = [2, 16], strides = [1, 1]} : vector<2x48xf32> to vector<2x16xf32>
    %723 = arith.addf %721, %722 : vector<2x16xf32>
    %724 = arith.negf %723 : vector<2x16xf32>
    %725 = math.exp %724 : vector<2x16xf32>
    %cst_116 = arith.constant 1.000000e+00 : f32
    %726 = vector.broadcast %cst_116 : f32 to vector<2x16xf32>
    %727 = arith.addf %726, %725 : vector<2x16xf32>
    %728 = arith.divf %726, %727 : vector<2x16xf32>
    %729 = vector.extract_strided_slice %711 {offsets = [0, 32], sizes = [2, 16], strides = [1, 1]} : vector<2x48xf32> to vector<2x16xf32>
    %730 = vector.extract_strided_slice %712 {offsets = [0, 32], sizes = [2, 16], strides = [1, 1]} : vector<2x48xf32> to vector<2x16xf32>
    %731 = vector.broadcast %27 : vector<1x16xf32> to vector<2x16xf32>
    %732 = arith.addf %730, %731 : vector<2x16xf32>
    %733 = arith.mulf %720, %732 : vector<2x16xf32>
    %734 = arith.addf %729, %733 : vector<2x16xf32>
    %735 = math.tanh %734 : vector<2x16xf32>
    %cst_117 = arith.constant 1.000000e+00 : f32
    %736 = vector.broadcast %cst_117 : f32 to vector<2x16xf32>
    %737 = arith.subf %736, %728 : vector<2x16xf32>
    %738 = arith.mulf %737, %735 : vector<2x16xf32>
    %739 = arith.mulf %728, %707 : vector<2x16xf32>
    %740 = arith.addf %738, %739 : vector<2x16xf32>
    %741 = vector.broadcast %710 : vector<2x1xf32> to vector<2x16xf32>
    %742 = arith.mulf %741, %740 : vector<2x16xf32>
    %cst_118 = arith.constant 1.000000e+00 : f32
    %743 = vector.broadcast %cst_118 : f32 to vector<2x1xf32>
    %744 = arith.subf %743, %710 : vector<2x1xf32>
    %745 = vector.broadcast %744 : vector<2x1xf32> to vector<2x16xf32>
    %746 = arith.mulf %745, %707 : vector<2x16xf32>
    %747 = arith.addf %742, %746 : vector<2x16xf32>
    %748 = vector.broadcast %710 : vector<2x1xf32> to vector<2x16xf32>
    %749 = arith.mulf %747, %748 : vector<2x16xf32>
    %750 = vector.extract_strided_slice %0 {offsets = [0, 1], sizes = [2, 1], strides = [1, 1]} : vector<2x10xf32> to vector<2x1xf32>
    %751 = vector.extract_strided_slice %23 {offsets = [2, 48], sizes = [2, 48], strides = [1, 1]} : vector<20x96xf32> to vector<2x48xf32>
    %cst_119 = arith.constant dense<0.000000e+00> : vector<2x48xf32>
    %752 = tpu.matmul %747, %26, %cst_119 {dimension_numbers = #tpu.dot_dimension_numbers<[1], [0], [0], [1], [0, 0, 1, 1], [], []>} : vector<2x16xf32>, vector<16x48xf32>, vector<2x48xf32> -> vector<2x48xf32>
    %753 = vector.extract_strided_slice %751 {offsets = [0, 0], sizes = [2, 16], strides = [1, 1]} : vector<2x48xf32> to vector<2x16xf32>
    %754 = vector.extract_strided_slice %752 {offsets = [0, 0], sizes = [2, 16], strides = [1, 1]} : vector<2x48xf32> to vector<2x16xf32>
    %755 = arith.addf %753, %754 : vector<2x16xf32>
    %756 = arith.negf %755 : vector<2x16xf32>
    %757 = math.exp %756 : vector<2x16xf32>
    %cst_120 = arith.constant 1.000000e+00 : f32
    %758 = vector.broadcast %cst_120 : f32 to vector<2x16xf32>
    %759 = arith.addf %758, %757 : vector<2x16xf32>
    %760 = arith.divf %758, %759 : vector<2x16xf32>
    %761 = vector.extract_strided_slice %751 {offsets = [0, 16], sizes = [2, 16], strides = [1, 1]} : vector<2x48xf32> to vector<2x16xf32>
    %762 = vector.extract_strided_slice %752 {offsets = [0, 16], sizes = [2, 16], strides = [1, 1]} : vector<2x48xf32> to vector<2x16xf32>
    %763 = arith.addf %761, %762 : vector<2x16xf32>
    %764 = arith.negf %763 : vector<2x16xf32>
    %765 = math.exp %764 : vector<2x16xf32>
    %cst_121 = arith.constant 1.000000e+00 : f32
    %766 = vector.broadcast %cst_121 : f32 to vector<2x16xf32>
    %767 = arith.addf %766, %765 : vector<2x16xf32>
    %768 = arith.divf %766, %767 : vector<2x16xf32>
    %769 = vector.extract_strided_slice %751 {offsets = [0, 32], sizes = [2, 16], strides = [1, 1]} : vector<2x48xf32> to vector<2x16xf32>
    %770 = vector.extract_strided_slice %752 {offsets = [0, 32], sizes = [2, 16], strides = [1, 1]} : vector<2x48xf32> to vector<2x16xf32>
    %771 = vector.broadcast %27 : vector<1x16xf32> to vector<2x16xf32>
    %772 = arith.addf %770, %771 : vector<2x16xf32>
    %773 = arith.mulf %760, %772 : vector<2x16xf32>
    %774 = arith.addf %769, %773 : vector<2x16xf32>
    %775 = math.tanh %774 : vector<2x16xf32>
    %cst_122 = arith.constant 1.000000e+00 : f32
    %776 = vector.broadcast %cst_122 : f32 to vector<2x16xf32>
    %777 = arith.subf %776, %768 : vector<2x16xf32>
    %778 = arith.mulf %777, %775 : vector<2x16xf32>
    %779 = arith.mulf %768, %747 : vector<2x16xf32>
    %780 = arith.addf %778, %779 : vector<2x16xf32>
    %781 = vector.broadcast %750 : vector<2x1xf32> to vector<2x16xf32>
    %782 = arith.mulf %781, %780 : vector<2x16xf32>
    %cst_123 = arith.constant 1.000000e+00 : f32
    %783 = vector.broadcast %cst_123 : f32 to vector<2x1xf32>
    %784 = arith.subf %783, %750 : vector<2x1xf32>
    %785 = vector.broadcast %784 : vector<2x1xf32> to vector<2x16xf32>
    %786 = arith.mulf %785, %747 : vector<2x16xf32>
    %787 = arith.addf %782, %786 : vector<2x16xf32>
    %788 = vector.broadcast %750 : vector<2x1xf32> to vector<2x16xf32>
    %789 = arith.mulf %787, %788 : vector<2x16xf32>
    %790 = vector.extract_strided_slice %0 {offsets = [0, 0], sizes = [2, 1], strides = [1, 1]} : vector<2x10xf32> to vector<2x1xf32>
    %791 = vector.extract_strided_slice %23 {offsets = [0, 48], sizes = [2, 48], strides = [1, 1]} : vector<20x96xf32> to vector<2x48xf32>
    %cst_124 = arith.constant dense<0.000000e+00> : vector<2x48xf32>
    %792 = tpu.matmul %787, %26, %cst_124 {dimension_numbers = #tpu.dot_dimension_numbers<[1], [0], [0], [1], [0, 0, 1, 1], [], []>} : vector<2x16xf32>, vector<16x48xf32>, vector<2x48xf32> -> vector<2x48xf32>
    %793 = vector.extract_strided_slice %791 {offsets = [0, 0], sizes = [2, 16], strides = [1, 1]} : vector<2x48xf32> to vector<2x16xf32>
    %794 = vector.extract_strided_slice %792 {offsets = [0, 0], sizes = [2, 16], strides = [1, 1]} : vector<2x48xf32> to vector<2x16xf32>
    %795 = arith.addf %793, %794 : vector<2x16xf32>
    %796 = arith.negf %795 : vector<2x16xf32>
    %797 = math.exp %796 : vector<2x16xf32>
    %cst_125 = arith.constant 1.000000e+00 : f32
    %798 = vector.broadcast %cst_125 : f32 to vector<2x16xf32>
    %799 = arith.addf %798, %797 : vector<2x16xf32>
    %800 = arith.divf %798, %799 : vector<2x16xf32>
    %801 = vector.extract_strided_slice %791 {offsets = [0, 16], sizes = [2, 16], strides = [1, 1]} : vector<2x48xf32> to vector<2x16xf32>
    %802 = vector.extract_strided_slice %792 {offsets = [0, 16], sizes = [2, 16], strides = [1, 1]} : vector<2x48xf32> to vector<2x16xf32>
    %803 = arith.addf %801, %802 : vector<2x16xf32>
    %804 = arith.negf %803 : vector<2x16xf32>
    %805 = math.exp %804 : vector<2x16xf32>
    %cst_126 = arith.constant 1.000000e+00 : f32
    %806 = vector.broadcast %cst_126 : f32 to vector<2x16xf32>
    %807 = arith.addf %806, %805 : vector<2x16xf32>
    %808 = arith.divf %806, %807 : vector<2x16xf32>
    %809 = vector.extract_strided_slice %791 {offsets = [0, 32], sizes = [2, 16], strides = [1, 1]} : vector<2x48xf32> to vector<2x16xf32>
    %810 = vector.extract_strided_slice %792 {offsets = [0, 32], sizes = [2, 16], strides = [1, 1]} : vector<2x48xf32> to vector<2x16xf32>
    %811 = vector.broadcast %27 : vector<1x16xf32> to vector<2x16xf32>
    %812 = arith.addf %810, %811 : vector<2x16xf32>
    %813 = arith.mulf %800, %812 : vector<2x16xf32>
    %814 = arith.addf %809, %813 : vector<2x16xf32>
    %815 = math.tanh %814 : vector<2x16xf32>
    %cst_127 = arith.constant 1.000000e+00 : f32
    %816 = vector.broadcast %cst_127 : f32 to vector<2x16xf32>
    %817 = arith.subf %816, %808 : vector<2x16xf32>
    %818 = arith.mulf %817, %815 : vector<2x16xf32>
    %819 = arith.mulf %808, %787 : vector<2x16xf32>
    %820 = arith.addf %818, %819 : vector<2x16xf32>
    %821 = vector.broadcast %790 : vector<2x1xf32> to vector<2x16xf32>
    %822 = arith.mulf %821, %820 : vector<2x16xf32>
    %cst_128 = arith.constant 1.000000e+00 : f32
    %823 = vector.broadcast %cst_128 : f32 to vector<2x1xf32>
    %824 = arith.subf %823, %790 : vector<2x1xf32>
    %825 = vector.broadcast %824 : vector<2x1xf32> to vector<2x16xf32>
    %826 = arith.mulf %825, %787 : vector<2x16xf32>
    %827 = arith.addf %822, %826 : vector<2x16xf32>
    %828 = vector.broadcast %790 : vector<2x1xf32> to vector<2x16xf32>
    %829 = arith.mulf %827, %828 : vector<2x16xf32>
    %830 = tpu.concatenate %427, %827 in 1 : vector<2x16xf32>, vector<2x16xf32> -> vector<2x32xf32>
    %c0_129 = arith.constant 0 : index
    %c0_130 = arith.constant 0 : index
    %831 = vector.load %arg30[%c0_129, %c0_130] : memref<2x32xf32, #tpu.memory_space<vmem>>, vector<2x32xf32>
    tpu.vector_store %arg30[%c0_129, %c0_130], %830 {strides = array<i32>} : memref<2x32xf32, #tpu.memory_space<vmem>>, vector<2x32xf32>,
    %832 = tpu.concatenate %69, %829 in 1 : vector<2x16xf32>, vector<2x16xf32> -> vector<2x32xf32>
    %c0_131 = arith.constant 0 : index
    %c0_132 = arith.constant 0 : index
    %c0_133 = arith.constant 0 : index
    %833 = vector.load %arg33[%c0_131, %c0_132, %c0_133] : memref<2x10x32xf32, #tpu.memory_space<vmem>>, vector<2x1x32xf32>
    %834 = vector.shape_cast %833 : vector<2x1x32xf32> to vector<2x32xf32>
    %835 = vector.shape_cast %832 : vector<2x32xf32> to vector<2x1x32xf32>
    tpu.vector_store %arg33[%c0_131, %c0_132, %c0_133], %835 {strides = array<i32>} : memref<2x10x32xf32, #tpu.memory_space<vmem>>, vector<2x1x32xf32>,
    %836 = tpu.concatenate %109, %789 in 1 : vector<2x16xf32>, vector<2x16xf32> -> vector<2x32xf32>
    %c0_134 = arith.constant 0 : index
    %c1 = arith.constant 1 : index
    %c0_135 = arith.constant 0 : index
    %837 = vector.load %arg33[%c0_134, %c1, %c0_135] : memref<2x10x32xf32, #tpu.memory_space<vmem>>, vector<2x1x32xf32>
    %838 = vector.shape_cast %837 : vector<2x1x32xf32> to vector<2x32xf32>
    %839 = vector.shape_cast %836 : vector<2x32xf32> to vector<2x1x32xf32>
    tpu.vector_store %arg33[%c0_134, %c1, %c0_135], %839 {strides = array<i32>} : memref<2x10x32xf32, #tpu.memory_space<vmem>>, vector<2x1x32xf32>,
    %840 = tpu.concatenate %149, %749 in 1 : vector<2x16xf32>, vector<2x16xf32> -> vector<2x32xf32>
    %c0_136 = arith.constant 0 : index
    %c2 = arith.constant 2 : index
    %c0_137 = arith.constant 0 : index
    %841 = vector.load %arg33[%c0_136, %c2, %c0_137] : memref<2x10x32xf32, #tpu.memory_space<vmem>>, vector<2x1x32xf32>
    %842 = vector.shape_cast %841 : vector<2x1x32xf32> to vector<2x32xf32>
    %843 = vector.shape_cast %840 : vector<2x32xf32> to vector<2x1x32xf32>
    tpu.vector_store %arg33[%c0_136, %c2, %c0_137], %843 {strides = array<i32>} : memref<2x10x32xf32, #tpu.memory_space<vmem>>, vector<2x1x32xf32>,
    %844 = tpu.concatenate %189, %709 in 1 : vector<2x16xf32>, vector<2x16xf32> -> vector<2x32xf32>
    %c0_138 = arith.constant 0 : index
    %c3 = arith.constant 3 : index
    %c0_139 = arith.constant 0 : index
    %845 = vector.load %arg33[%c0_138, %c3, %c0_139] : memref<2x10x32xf32, #tpu.memory_space<vmem>>, vector<2x1x32xf32>
    %846 = vector.shape_cast %845 : vector<2x1x32xf32> to vector<2x32xf32>
    %847 = vector.shape_cast %844 : vector<2x32xf32> to vector<2x1x32xf32>
    tpu.vector_store %arg33[%c0_138, %c3, %c0_139], %847 {strides = array<i32>} : memref<2x10x32xf32, #tpu.memory_space<vmem>>, vector<2x1x32xf32>,
    %848 = tpu.concatenate %229, %669 in 1 : vector<2x16xf32>, vector<2x16xf32> -> vector<2x32xf32>
    %c0_140 = arith.constant 0 : index
    %c4 = arith.constant 4 : index
    %c0_141 = arith.constant 0 : index
    %849 = vector.load %arg33[%c0_140, %c4, %c0_141] : memref<2x10x32xf32, #tpu.memory_space<vmem>>, vector<2x1x32xf32>
    %850 = vector.shape_cast %849 : vector<2x1x32xf32> to vector<2x32xf32>
    %851 = vector.shape_cast %848 : vector<2x32xf32> to vector<2x1x32xf32>
    tpu.vector_store %arg33[%c0_140, %c4, %c0_141], %851 {strides = array<i32>} : memref<2x10x32xf32, #tpu.memory_space<vmem>>, vector<2x1x32xf32>,
    %852 = tpu.concatenate %269, %629 in 1 : vector<2x16xf32>, vector<2x16xf32> -> vector<2x32xf32>
    %c0_142 = arith.constant 0 : index
    %c5 = arith.constant 5 : index
    %c0_143 = arith.constant 0 : index
    %853 = vector.load %arg33[%c0_142, %c5, %c0_143] : memref<2x10x32xf32, #tpu.memory_space<vmem>>, vector<2x1x32xf32>
    %854 = vector.shape_cast %853 : vector<2x1x32xf32> to vector<2x32xf32>
    %855 = vector.shape_cast %852 : vector<2x32xf32> to vector<2x1x32xf32>
    tpu.vector_store %arg33[%c0_142, %c5, %c0_143], %855 {strides = array<i32>} : memref<2x10x32xf32, #tpu.memory_space<vmem>>, vector<2x1x32xf32>,
    %856 = tpu.concatenate %309, %589 in 1 : vector<2x16xf32>, vector<2x16xf32> -> vector<2x32xf32>
    %c0_144 = arith.constant 0 : index
    %c6 = arith.constant 6 : index
    %c0_145 = arith.constant 0 : index
    %857 = vector.load %arg33[%c0_144, %c6, %c0_145] : memref<2x10x32xf32, #tpu.memory_space<vmem>>, vector<2x1x32xf32>
    %858 = vector.shape_cast %857 : vector<2x1x32xf32> to vector<2x32xf32>
    %859 = vector.shape_cast %856 : vector<2x32xf32> to vector<2x1x32xf32>
    tpu.vector_store %arg33[%c0_144, %c6, %c0_145], %859 {strides = array<i32>} : memref<2x10x32xf32, #tpu.memory_space<vmem>>, vector<2x1x32xf32>,
    %860 = tpu.concatenate %349, %549 in 1 : vector<2x16xf32>, vector<2x16xf32> -> vector<2x32xf32>
    %c0_146 = arith.constant 0 : index
    %c7 = arith.constant 7 : index
    %c0_147 = arith.constant 0 : index
    %861 = vector.load %arg33[%c0_146, %c7, %c0_147] : memref<2x10x32xf32, #tpu.memory_space<vmem>>, vector<2x1x32xf32>
    %862 = vector.shape_cast %861 : vector<2x1x32xf32> to vector<2x32xf32>
    %863 = vector.shape_cast %860 : vector<2x32xf32> to vector<2x1x32xf32>
    tpu.vector_store %arg33[%c0_146, %c7, %c0_147], %863 {strides = array<i32>} : memref<2x10x32xf32, #tpu.memory_space<vmem>>, vector<2x1x32xf32>,
    %864 = tpu.concatenate %389, %509 in 1 : vector<2x16xf32>, vector<2x16xf32> -> vector<2x32xf32>
    %c0_148 = arith.constant 0 : index
    %c8 = arith.constant 8 : index
    %c0_149 = arith.constant 0 : index
    %865 = vector.load %arg33[%c0_148, %c8, %c0_149] : memref<2x10x32xf32, #tpu.memory_space<vmem>>, vector<2x1x32xf32>
    %866 = vector.shape_cast %865 : vector<2x1x32xf32> to vector<2x32xf32>
    %867 = vector.shape_cast %864 : vector<2x32xf32> to vector<2x1x32xf32>
    tpu.vector_store %arg33[%c0_148, %c8, %c0_149], %867 {strides = array<i32>} : memref<2x10x32xf32, #tpu.memory_space<vmem>>, vector<2x1x32xf32>,
    %868 = tpu.concatenate %429, %469 in 1 : vector<2x16xf32>, vector<2x16xf32> -> vector<2x32xf32>
    %c0_150 = arith.constant 0 : index
    %c9 = arith.constant 9 : index
    %c0_151 = arith.constant 0 : index
    %869 = vector.load %arg33[%c0_150, %c9, %c0_151] : memref<2x10x32xf32, #tpu.memory_space<vmem>>, vector<2x1x32xf32>
    %870 = vector.shape_cast %869 : vector<2x1x32xf32> to vector<2x32xf32>
    %871 = vector.shape_cast %868 : vector<2x32xf32> to vector<2x1x32xf32>
    tpu.vector_store %arg33[%c0_150, %c9, %c0_151], %871 {strides = array<i32>} : memref<2x10x32xf32, #tpu.memory_space<vmem>>, vector<2x1x32xf32>,
    %c0_152 = arith.constant 0 : index
    %c0_153 = arith.constant 0 : index
    %c0_154 = arith.constant 0 : index
    %872 = vector.load %arg33[%c0_152, %c0_153, %c0_154] : memref<2x10x32xf32, #tpu.memory_space<vmem>>, vector<2x10x32xf32>
    %c0_155 = arith.constant 0 : index
    %c0_156 = arith.constant 0 : index
    %873 = vector.load %arg4[%c0_155, %c0_156] : memref<3x24xf32, #tpu.memory_space<vmem>>, vector<3x24xf32>
    %cst_157 = arith.constant dense<0xFF800000> : vector<3xf32>
    %874 = vector.multi_reduction <maximumf>, %873, %cst_157 [1] : vector<3x24xf32> to vector<3xf32>
    %875 = vector.shape_cast %874 : vector<3xf32> to vector<3x1xf32>
    %876 = vector.broadcast %875 : vector<3x1xf32> to vector<3x24xf32>
    %877 = arith.subf %873, %876 : vector<3x24xf32>
    %878 = math.exp %877 : vector<3x24xf32>
    %cst_158 = arith.constant dense<0.000000e+00> : vector<3xf32>
    %879 = vector.multi_reduction <add>, %878, %cst_158 [1] : vector<3x24xf32> to vector<3xf32>
    %880 = vector.shape_cast %879 : vector<3xf32> to vector<3x1xf32>
    %881 = vector.broadcast %880 : vector<3x1xf32> to vector<3x24xf32>
    %882 = arith.divf %878, %881 : vector<3x24xf32>
    %c0_159 = arith.constant 0 : index
    %c0_160 = arith.constant 0 : index
    %883 = vector.load %arg14[%c0_159, %c0_160] : memref<24x64xf32, #tpu.memory_space<vmem>>, vector<24x64xf32>
    %cst_161 = arith.constant dense<0.000000e+00> : vector<3x64xf32>
    %884 = tpu.matmul %882, %883, %cst_161 {dimension_numbers = #tpu.dot_dimension_numbers<[1], [0], [0], [1], [0, 0, 1, 1], [], []>} : vector<3x24xf32>, vector<24x64xf32>, vector<3x64xf32> -> vector<3x64xf32>
    %c0_162 = arith.constant 0 : index
    %c0_163 = arith.constant 0 : index
    %885 = vector.load %arg15[%c0_162, %c0_163] : memref<1x64xf32, #tpu.memory_space<vmem>>, vector<1x64xf32>
    %886 = vector.broadcast %885 : vector<1x64xf32> to vector<3x64xf32>
    %887 = arith.addf %884, %886 : vector<3x64xf32>
    %888 = vector.extract_strided_slice %887 {offsets = [0, 0], sizes = [3, 32], strides = [1, 1]} : vector<3x64xf32> to vector<3x32xf32>
    %889 = vector.extract_strided_slice %887 {offsets = [0, 32], sizes = [3, 32], strides = [1, 1]} : vector<3x64xf32> to vector<3x32xf32>
    %c0_164 = arith.constant 0 : index
    %c0_165 = arith.constant 0 : index
    %890 = vector.load %arg16[%c0_164, %c0_165] : memref<32x32xf32, #tpu.memory_space<vmem>>, vector<32x32xf32>
    %cst_166 = arith.constant dense<0.000000e+00> : vector<2x32xf32>
    %891 = tpu.matmul %830, %890, %cst_166 {dimension_numbers = #tpu.dot_dimension_numbers<[1], [0], [0], [1], [0, 0, 1, 1], [], []>} : vector<2x32xf32>, vector<32x32xf32>, vector<2x32xf32> -> vector<2x32xf32>
    %c0_167 = arith.constant 0 : index
    %c0_168 = arith.constant 0 : index
    %892 = vector.load %arg17[%c0_167, %c0_168] : memref<1x32xf32, #tpu.memory_space<vmem>>, vector<1x32xf32>
    %893 = vector.broadcast %892 : vector<1x32xf32> to vector<2x32xf32>
    %894 = arith.addf %891, %893 : vector<2x32xf32>
    %c0_169 = arith.constant 0 : index
    %c0_170 = arith.constant 0 : index
    %895 = vector.load %arg18[%c0_169, %c0_170] : memref<32x192xf32, #tpu.memory_space<vmem>>, vector<32x192xf32>
    %cst_171 = arith.constant dense<0.000000e+00> : vector<2x192xf32>
    %896 = tpu.matmul %894, %895, %cst_171 {dimension_numbers = #tpu.dot_dimension_numbers<[1], [0], [0], [1], [0, 0, 1, 1], [], []>} : vector<2x32xf32>, vector<32x192xf32>, vector<2x192xf32> -> vector<2x192xf32>
    %c0_172 = arith.constant 0 : index
    %c0_173 = arith.constant 0 : index
    %897 = vector.load %arg19[%c0_172, %c0_173] : memref<1x192xf32, #tpu.memory_space<vmem>>, vector<1x192xf32>
    %898 = vector.broadcast %897 : vector<1x192xf32> to vector<2x192xf32>
    %899 = arith.addf %896, %898 : vector<2x192xf32>
    %900 = vector.extract_strided_slice %899 {offsets = [0, 0], sizes = [2, 32], strides = [1, 1]} : vector<2x192xf32> to vector<2x32xf32>
    %901 = vector.extract_strided_slice %899 {offsets = [0, 32], sizes = [2, 32], strides = [1, 1]} : vector<2x192xf32> to vector<2x32xf32>
    %902 = vector.extract_strided_slice %899 {offsets = [0, 64], sizes = [2, 32], strides = [1, 1]} : vector<2x192xf32> to vector<2x32xf32>
    %903 = vector.extract_strided_slice %899 {offsets = [0, 96], sizes = [2, 32], strides = [1, 1]} : vector<2x192xf32> to vector<2x32xf32>
    %904 = vector.extract_strided_slice %899 {offsets = [0, 128], sizes = [2, 32], strides = [1, 1]} : vector<2x192xf32> to vector<2x32xf32>
    %905 = vector.extract_strided_slice %899 {offsets = [0, 160], sizes = [2, 32], strides = [1, 1]} : vector<2x192xf32> to vector<2x32xf32>
    %cst_174 = arith.constant 0.000000e+00 : f32
    %906 = vector.broadcast %cst_174 : f32 to vector<2x32xf32>
    %907 = arith.addf %906, %900 : vector<2x32xf32>
    %908 = arith.addf %907, %901 : vector<2x32xf32>
    %909 = arith.addf %908, %902 : vector<2x32xf32>
    %cst_175 = arith.constant 3.000000e+00 : f32
    %910 = vector.broadcast %cst_175 : f32 to vector<2x32xf32>
    %911 = arith.divf %909, %910 : vector<2x32xf32>
    %cst_176 = arith.constant 0.000000e+00 : f32
    %912 = vector.broadcast %cst_176 : f32 to vector<2x32xf32>
    %913 = arith.addf %912, %903 : vector<2x32xf32>
    %914 = arith.addf %913, %904 : vector<2x32xf32>
    %915 = arith.addf %914, %905 : vector<2x32xf32>
    %cst_177 = arith.constant 3.000000e+00 : f32
    %916 = vector.broadcast %cst_177 : f32 to vector<2x32xf32>
    %917 = arith.divf %915, %916 : vector<2x32xf32>
    %c0_178 = arith.constant 0 : index
    %c0_179 = arith.constant 0 : index
    %918 = vector.load %arg5[%c0_178, %c0_179] : memref<2x32xf32, #tpu.memory_space<vmem>>, vector<2x32xf32>
    %cst_180 = arith.constant 5.000000e-01 : f32
    %919 = vector.broadcast %cst_180 : f32 to vector<2x32xf32>
    %920 = arith.mulf %919, %917 : vector<2x32xf32>
    %921 = math.exp %920 : vector<2x32xf32>
    %922 = arith.mulf %918, %921 : vector<2x32xf32>
    %923 = arith.addf %922, %911 : vector<2x32xf32>
    %924 = vector.extract_strided_slice %888 {offsets = [0, 0], sizes = [1, 32], strides = [1, 1]} : vector<3x32xf32> to vector<1x32xf32>
    %925 = vector.extract_strided_slice %889 {offsets = [0, 0], sizes = [1, 32], strides = [1, 1]} : vector<3x32xf32> to vector<1x32xf32>
    %926 = vector.broadcast %925 : vector<1x32xf32> to vector<2x32xf32>
    %927 = arith.subf %903, %926 : vector<2x32xf32>
    %cst_181 = arith.constant 2.000000e-08 : f32
    %928 = vector.broadcast %cst_181 : f32 to vector<2x32xf32>
    %929 = arith.addf %927, %928 : vector<2x32xf32>
    %cst_182 = arith.constant 5.000000e-01 : f32
    %930 = vector.broadcast %cst_182 : f32 to vector<2x32xf32>
    %931 = arith.mulf %929, %930 : vector<2x32xf32>
    %cst_183 = arith.constant 2.000000e-08 : f32
    %932 = vector.broadcast %cst_183 : f32 to vector<1x32xf32>
    %933 = arith.addf %925, %932 : vector<1x32xf32>
    %934 = math.exp %933 : vector<1x32xf32>
    %935 = vector.broadcast %924 : vector<1x32xf32> to vector<2x32xf32>
    %936 = arith.subf %935, %900 : vector<2x32xf32>
    %937 = arith.mulf %936, %936 : vector<2x32xf32>
    %938 = vector.broadcast %934 : vector<1x32xf32> to vector<2x32xf32>
    %939 = arith.addf %938, %937 : vector<2x32xf32>
    %cst_184 = arith.constant 2.000000e-08 : f32
    %940 = vector.broadcast %cst_184 : f32 to vector<2x32xf32>
    %941 = arith.addf %903, %940 : vector<2x32xf32>
    %942 = math.exp %941 : vector<2x32xf32>
    %cst_185 = arith.constant 2.000000e+00 : f32
    %943 = vector.broadcast %cst_185 : f32 to vector<2x32xf32>
    %944 = arith.mulf %943, %942 : vector<2x32xf32>
    %945 = arith.divf %939, %944 : vector<2x32xf32>
    %946 = arith.addf %931, %945 : vector<2x32xf32>
    %cst_186 = arith.constant 5.000000e-01 : f32
    %947 = vector.broadcast %cst_186 : f32 to vector<2x32xf32>
    %948 = arith.subf %946, %947 : vector<2x32xf32>
    %949 = vector.shape_cast %948 : vector<2x32xf32> to vector<1x2x32xf32>
    %cst_187 = arith.constant dense<0.000000e+00> : vector<1xf32>
    %950 = vector.multi_reduction <add>, %949, %cst_187 [1, 2] : vector<1x2x32xf32> to vector<1xf32>
    %951 = vector.shape_cast %950 : vector<1xf32> to vector<1x1x1xf32>
    %952 = vector.extract %951[0, 0, 0] : f32 from vector<1x1x1xf32>
    %cst_188 = arith.constant 0.000000e+00 : f32
    %953 = arith.addf %cst_188, %952 : f32
    %954 = vector.extract_strided_slice %888 {offsets = [1, 0], sizes = [1, 32], strides = [1, 1]} : vector<3x32xf32> to vector<1x32xf32>
    %955 = vector.extract_strided_slice %889 {offsets = [1, 0], sizes = [1, 32], strides = [1, 1]} : vector<3x32xf32> to vector<1x32xf32>
    %956 = vector.broadcast %955 : vector<1x32xf32> to vector<2x32xf32>
    %957 = arith.subf %903, %956 : vector<2x32xf32>
    %cst_189 = arith.constant 2.000000e-08 : f32
    %958 = vector.broadcast %cst_189 : f32 to vector<2x32xf32>
    %959 = arith.addf %957, %958 : vector<2x32xf32>
    %cst_190 = arith.constant 5.000000e-01 : f32
    %960 = vector.broadcast %cst_190 : f32 to vector<2x32xf32>
    %961 = arith.mulf %959, %960 : vector<2x32xf32>
    %cst_191 = arith.constant 2.000000e-08 : f32
    %962 = vector.broadcast %cst_191 : f32 to vector<1x32xf32>
    %963 = arith.addf %955, %962 : vector<1x32xf32>
    %964 = math.exp %963 : vector<1x32xf32>
    %965 = vector.broadcast %954 : vector<1x32xf32> to vector<2x32xf32>
    %966 = arith.subf %965, %900 : vector<2x32xf32>
    %967 = arith.mulf %966, %966 : vector<2x32xf32>
    %968 = vector.broadcast %964 : vector<1x32xf32> to vector<2x32xf32>
    %969 = arith.addf %968, %967 : vector<2x32xf32>
    %cst_192 = arith.constant 2.000000e-08 : f32
    %970 = vector.broadcast %cst_192 : f32 to vector<2x32xf32>
    %971 = arith.addf %903, %970 : vector<2x32xf32>
    %972 = math.exp %971 : vector<2x32xf32>
    %cst_193 = arith.constant 2.000000e+00 : f32
    %973 = vector.broadcast %cst_193 : f32 to vector<2x32xf32>
    %974 = arith.mulf %973, %972 : vector<2x32xf32>
    %975 = arith.divf %969, %974 : vector<2x32xf32>
    %976 = arith.addf %961, %975 : vector<2x32xf32>
    %cst_194 = arith.constant 5.000000e-01 : f32
    %977 = vector.broadcast %cst_194 : f32 to vector<2x32xf32>
    %978 = arith.subf %976, %977 : vector<2x32xf32>
    %979 = vector.shape_cast %978 : vector<2x32xf32> to vector<1x2x32xf32>
    %cst_195 = arith.constant dense<0.000000e+00> : vector<1xf32>
    %980 = vector.multi_reduction <add>, %979, %cst_195 [1, 2] : vector<1x2x32xf32> to vector<1xf32>
    %981 = vector.shape_cast %980 : vector<1xf32> to vector<1x1x1xf32>
    %982 = vector.extract %981[0, 0, 0] : f32 from vector<1x1x1xf32>
    %983 = arith.addf %953, %982 : f32
    %984 = vector.extract_strided_slice %888 {offsets = [2, 0], sizes = [1, 32], strides = [1, 1]} : vector<3x32xf32> to vector<1x32xf32>
    %985 = vector.extract_strided_slice %889 {offsets = [2, 0], sizes = [1, 32], strides = [1, 1]} : vector<3x32xf32> to vector<1x32xf32>
    %986 = vector.broadcast %985 : vector<1x32xf32> to vector<2x32xf32>
    %987 = arith.subf %903, %986 : vector<2x32xf32>
    %cst_196 = arith.constant 2.000000e-08 : f32
    %988 = vector.broadcast %cst_196 : f32 to vector<2x32xf32>
    %989 = arith.addf %987, %988 : vector<2x32xf32>
    %cst_197 = arith.constant 5.000000e-01 : f32
    %990 = vector.broadcast %cst_197 : f32 to vector<2x32xf32>
    %991 = arith.mulf %989, %990 : vector<2x32xf32>
    %cst_198 = arith.constant 2.000000e-08 : f32
    %992 = vector.broadcast %cst_198 : f32 to vector<1x32xf32>
    %993 = arith.addf %985, %992 : vector<1x32xf32>
    %994 = math.exp %993 : vector<1x32xf32>
    %995 = vector.broadcast %984 : vector<1x32xf32> to vector<2x32xf32>
    %996 = arith.subf %995, %900 : vector<2x32xf32>
    %997 = arith.mulf %996, %996 : vector<2x32xf32>
    %998 = vector.broadcast %994 : vector<1x32xf32> to vector<2x32xf32>
    %999 = arith.addf %998, %997 : vector<2x32xf32>
    %cst_199 = arith.constant 2.000000e-08 : f32
    %1000 = vector.broadcast %cst_199 : f32 to vector<2x32xf32>
    %1001 = arith.addf %903, %1000 : vector<2x32xf32>
    %1002 = math.exp %1001 : vector<2x32xf32>
    %cst_200 = arith.constant 2.000000e+00 : f32
    %1003 = vector.broadcast %cst_200 : f32 to vector<2x32xf32>
    %1004 = arith.mulf %1003, %1002 : vector<2x32xf32>
    %1005 = arith.divf %999, %1004 : vector<2x32xf32>
    %1006 = arith.addf %991, %1005 : vector<2x32xf32>
    %cst_201 = arith.constant 5.000000e-01 : f32
    %1007 = vector.broadcast %cst_201 : f32 to vector<2x32xf32>
    %1008 = arith.subf %1006, %1007 : vector<2x32xf32>
    %1009 = vector.shape_cast %1008 : vector<2x32xf32> to vector<1x2x32xf32>
    %cst_202 = arith.constant dense<0.000000e+00> : vector<1xf32>
    %1010 = vector.multi_reduction <add>, %1009, %cst_202 [1, 2] : vector<1x2x32xf32> to vector<1xf32>
    %1011 = vector.shape_cast %1010 : vector<1xf32> to vector<1x1x1xf32>
    %1012 = vector.extract %1011[0, 0, 0] : f32 from vector<1x1x1xf32>
    %1013 = arith.addf %983, %1012 : f32
    %1014 = vector.extract_strided_slice %888 {offsets = [0, 0], sizes = [1, 32], strides = [1, 1]} : vector<3x32xf32> to vector<1x32xf32>
    %1015 = vector.extract_strided_slice %889 {offsets = [0, 0], sizes = [1, 32], strides = [1, 1]} : vector<3x32xf32> to vector<1x32xf32>
    %1016 = vector.broadcast %1015 : vector<1x32xf32> to vector<2x32xf32>
    %1017 = arith.subf %904, %1016 : vector<2x32xf32>
    %cst_203 = arith.constant 2.000000e-08 : f32
    %1018 = vector.broadcast %cst_203 : f32 to vector<2x32xf32>
    %1019 = arith.addf %1017, %1018 : vector<2x32xf32>
    %cst_204 = arith.constant 5.000000e-01 : f32
    %1020 = vector.broadcast %cst_204 : f32 to vector<2x32xf32>
    %1021 = arith.mulf %1019, %1020 : vector<2x32xf32>
    %cst_205 = arith.constant 2.000000e-08 : f32
    %1022 = vector.broadcast %cst_205 : f32 to vector<1x32xf32>
    %1023 = arith.addf %1015, %1022 : vector<1x32xf32>
    %1024 = math.exp %1023 : vector<1x32xf32>
    %1025 = vector.broadcast %1014 : vector<1x32xf32> to vector<2x32xf32>
    %1026 = arith.subf %1025, %901 : vector<2x32xf32>
    %1027 = arith.mulf %1026, %1026 : vector<2x32xf32>
    %1028 = vector.broadcast %1024 : vector<1x32xf32> to vector<2x32xf32>
    %1029 = arith.addf %1028, %1027 : vector<2x32xf32>
    %cst_206 = arith.constant 2.000000e-08 : f32
    %1030 = vector.broadcast %cst_206 : f32 to vector<2x32xf32>
    %1031 = arith.addf %904, %1030 : vector<2x32xf32>
    %1032 = math.exp %1031 : vector<2x32xf32>
    %cst_207 = arith.constant 2.000000e+00 : f32
    %1033 = vector.broadcast %cst_207 : f32 to vector<2x32xf32>
    %1034 = arith.mulf %1033, %1032 : vector<2x32xf32>
    %1035 = arith.divf %1029, %1034 : vector<2x32xf32>
    %1036 = arith.addf %1021, %1035 : vector<2x32xf32>
    %cst_208 = arith.constant 5.000000e-01 : f32
    %1037 = vector.broadcast %cst_208 : f32 to vector<2x32xf32>
    %1038 = arith.subf %1036, %1037 : vector<2x32xf32>
    %1039 = vector.shape_cast %1038 : vector<2x32xf32> to vector<1x2x32xf32>
    %cst_209 = arith.constant dense<0.000000e+00> : vector<1xf32>
    %1040 = vector.multi_reduction <add>, %1039, %cst_209 [1, 2] : vector<1x2x32xf32> to vector<1xf32>
    %1041 = vector.shape_cast %1040 : vector<1xf32> to vector<1x1x1xf32>
    %1042 = vector.extract %1041[0, 0, 0] : f32 from vector<1x1x1xf32>
    %1043 = arith.addf %1013, %1042 : f32
    %1044 = vector.extract_strided_slice %888 {offsets = [1, 0], sizes = [1, 32], strides = [1, 1]} : vector<3x32xf32> to vector<1x32xf32>
    %1045 = vector.extract_strided_slice %889 {offsets = [1, 0], sizes = [1, 32], strides = [1, 1]} : vector<3x32xf32> to vector<1x32xf32>
    %1046 = vector.broadcast %1045 : vector<1x32xf32> to vector<2x32xf32>
    %1047 = arith.subf %904, %1046 : vector<2x32xf32>
    %cst_210 = arith.constant 2.000000e-08 : f32
    %1048 = vector.broadcast %cst_210 : f32 to vector<2x32xf32>
    %1049 = arith.addf %1047, %1048 : vector<2x32xf32>
    %cst_211 = arith.constant 5.000000e-01 : f32
    %1050 = vector.broadcast %cst_211 : f32 to vector<2x32xf32>
    %1051 = arith.mulf %1049, %1050 : vector<2x32xf32>
    %cst_212 = arith.constant 2.000000e-08 : f32
    %1052 = vector.broadcast %cst_212 : f32 to vector<1x32xf32>
    %1053 = arith.addf %1045, %1052 : vector<1x32xf32>
    %1054 = math.exp %1053 : vector<1x32xf32>
    %1055 = vector.broadcast %1044 : vector<1x32xf32> to vector<2x32xf32>
    %1056 = arith.subf %1055, %901 : vector<2x32xf32>
    %1057 = arith.mulf %1056, %1056 : vector<2x32xf32>
    %1058 = vector.broadcast %1054 : vector<1x32xf32> to vector<2x32xf32>
    %1059 = arith.addf %1058, %1057 : vector<2x32xf32>
    %cst_213 = arith.constant 2.000000e-08 : f32
    %1060 = vector.broadcast %cst_213 : f32 to vector<2x32xf32>
    %1061 = arith.addf %904, %1060 : vector<2x32xf32>
    %1062 = math.exp %1061 : vector<2x32xf32>
    %cst_214 = arith.constant 2.000000e+00 : f32
    %1063 = vector.broadcast %cst_214 : f32 to vector<2x32xf32>
    %1064 = arith.mulf %1063, %1062 : vector<2x32xf32>
    %1065 = arith.divf %1059, %1064 : vector<2x32xf32>
    %1066 = arith.addf %1051, %1065 : vector<2x32xf32>
    %cst_215 = arith.constant 5.000000e-01 : f32
    %1067 = vector.broadcast %cst_215 : f32 to vector<2x32xf32>
    %1068 = arith.subf %1066, %1067 : vector<2x32xf32>
    %1069 = vector.shape_cast %1068 : vector<2x32xf32> to vector<1x2x32xf32>
    %cst_216 = arith.constant dense<0.000000e+00> : vector<1xf32>
    %1070 = vector.multi_reduction <add>, %1069, %cst_216 [1, 2] : vector<1x2x32xf32> to vector<1xf32>
    %1071 = vector.shape_cast %1070 : vector<1xf32> to vector<1x1x1xf32>
    %1072 = vector.extract %1071[0, 0, 0] : f32 from vector<1x1x1xf32>
    %1073 = arith.addf %1043, %1072 : f32
    %1074 = vector.extract_strided_slice %888 {offsets = [2, 0], sizes = [1, 32], strides = [1, 1]} : vector<3x32xf32> to vector<1x32xf32>
    %1075 = vector.extract_strided_slice %889 {offsets = [2, 0], sizes = [1, 32], strides = [1, 1]} : vector<3x32xf32> to vector<1x32xf32>
    %1076 = vector.broadcast %1075 : vector<1x32xf32> to vector<2x32xf32>
    %1077 = arith.subf %904, %1076 : vector<2x32xf32>
    %cst_217 = arith.constant 2.000000e-08 : f32
    %1078 = vector.broadcast %cst_217 : f32 to vector<2x32xf32>
    %1079 = arith.addf %1077, %1078 : vector<2x32xf32>
    %cst_218 = arith.constant 5.000000e-01 : f32
    %1080 = vector.broadcast %cst_218 : f32 to vector<2x32xf32>
    %1081 = arith.mulf %1079, %1080 : vector<2x32xf32>
    %cst_219 = arith.constant 2.000000e-08 : f32
    %1082 = vector.broadcast %cst_219 : f32 to vector<1x32xf32>
    %1083 = arith.addf %1075, %1082 : vector<1x32xf32>
    %1084 = math.exp %1083 : vector<1x32xf32>
    %1085 = vector.broadcast %1074 : vector<1x32xf32> to vector<2x32xf32>
    %1086 = arith.subf %1085, %901 : vector<2x32xf32>
    %1087 = arith.mulf %1086, %1086 : vector<2x32xf32>
    %1088 = vector.broadcast %1084 : vector<1x32xf32> to vector<2x32xf32>
    %1089 = arith.addf %1088, %1087 : vector<2x32xf32>
    %cst_220 = arith.constant 2.000000e-08 : f32
    %1090 = vector.broadcast %cst_220 : f32 to vector<2x32xf32>
    %1091 = arith.addf %904, %1090 : vector<2x32xf32>
    %1092 = math.exp %1091 : vector<2x32xf32>
    %cst_221 = arith.constant 2.000000e+00 : f32
    %1093 = vector.broadcast %cst_221 : f32 to vector<2x32xf32>
    %1094 = arith.mulf %1093, %1092 : vector<2x32xf32>
    %1095 = arith.divf %1089, %1094 : vector<2x32xf32>
    %1096 = arith.addf %1081, %1095 : vector<2x32xf32>
    %cst_222 = arith.constant 5.000000e-01 : f32
    %1097 = vector.broadcast %cst_222 : f32 to vector<2x32xf32>
    %1098 = arith.subf %1096, %1097 : vector<2x32xf32>
    %1099 = vector.shape_cast %1098 : vector<2x32xf32> to vector<1x2x32xf32>
    %cst_223 = arith.constant dense<0.000000e+00> : vector<1xf32>
    %1100 = vector.multi_reduction <add>, %1099, %cst_223 [1, 2] : vector<1x2x32xf32> to vector<1xf32>
    %1101 = vector.shape_cast %1100 : vector<1xf32> to vector<1x1x1xf32>
    %1102 = vector.extract %1101[0, 0, 0] : f32 from vector<1x1x1xf32>
    %1103 = arith.addf %1073, %1102 : f32
    %1104 = vector.extract_strided_slice %888 {offsets = [0, 0], sizes = [1, 32], strides = [1, 1]} : vector<3x32xf32> to vector<1x32xf32>
    %1105 = vector.extract_strided_slice %889 {offsets = [0, 0], sizes = [1, 32], strides = [1, 1]} : vector<3x32xf32> to vector<1x32xf32>
    %1106 = vector.broadcast %1105 : vector<1x32xf32> to vector<2x32xf32>
    %1107 = arith.subf %905, %1106 : vector<2x32xf32>
    %cst_224 = arith.constant 2.000000e-08 : f32
    %1108 = vector.broadcast %cst_224 : f32 to vector<2x32xf32>
    %1109 = arith.addf %1107, %1108 : vector<2x32xf32>
    %cst_225 = arith.constant 5.000000e-01 : f32
    %1110 = vector.broadcast %cst_225 : f32 to vector<2x32xf32>
    %1111 = arith.mulf %1109, %1110 : vector<2x32xf32>
    %cst_226 = arith.constant 2.000000e-08 : f32
    %1112 = vector.broadcast %cst_226 : f32 to vector<1x32xf32>
    %1113 = arith.addf %1105, %1112 : vector<1x32xf32>
    %1114 = math.exp %1113 : vector<1x32xf32>
    %1115 = vector.broadcast %1104 : vector<1x32xf32> to vector<2x32xf32>
    %1116 = arith.subf %1115, %902 : vector<2x32xf32>
    %1117 = arith.mulf %1116, %1116 : vector<2x32xf32>
    %1118 = vector.broadcast %1114 : vector<1x32xf32> to vector<2x32xf32>
    %1119 = arith.addf %1118, %1117 : vector<2x32xf32>
    %cst_227 = arith.constant 2.000000e-08 : f32
    %1120 = vector.broadcast %cst_227 : f32 to vector<2x32xf32>
    %1121 = arith.addf %905, %1120 : vector<2x32xf32>
    %1122 = math.exp %1121 : vector<2x32xf32>
    %cst_228 = arith.constant 2.000000e+00 : f32
    %1123 = vector.broadcast %cst_228 : f32 to vector<2x32xf32>
    %1124 = arith.mulf %1123, %1122 : vector<2x32xf32>
    %1125 = arith.divf %1119, %1124 : vector<2x32xf32>
    %1126 = arith.addf %1111, %1125 : vector<2x32xf32>
    %cst_229 = arith.constant 5.000000e-01 : f32
    %1127 = vector.broadcast %cst_229 : f32 to vector<2x32xf32>
    %1128 = arith.subf %1126, %1127 : vector<2x32xf32>
    %1129 = vector.shape_cast %1128 : vector<2x32xf32> to vector<1x2x32xf32>
    %cst_230 = arith.constant dense<0.000000e+00> : vector<1xf32>
    %1130 = vector.multi_reduction <add>, %1129, %cst_230 [1, 2] : vector<1x2x32xf32> to vector<1xf32>
    %1131 = vector.shape_cast %1130 : vector<1xf32> to vector<1x1x1xf32>
    %1132 = vector.extract %1131[0, 0, 0] : f32 from vector<1x1x1xf32>
    %1133 = arith.addf %1103, %1132 : f32
    %1134 = vector.extract_strided_slice %888 {offsets = [1, 0], sizes = [1, 32], strides = [1, 1]} : vector<3x32xf32> to vector<1x32xf32>
    %1135 = vector.extract_strided_slice %889 {offsets = [1, 0], sizes = [1, 32], strides = [1, 1]} : vector<3x32xf32> to vector<1x32xf32>
    %1136 = vector.broadcast %1135 : vector<1x32xf32> to vector<2x32xf32>
    %1137 = arith.subf %905, %1136 : vector<2x32xf32>
    %cst_231 = arith.constant 2.000000e-08 : f32
    %1138 = vector.broadcast %cst_231 : f32 to vector<2x32xf32>
    %1139 = arith.addf %1137, %1138 : vector<2x32xf32>
    %cst_232 = arith.constant 5.000000e-01 : f32
    %1140 = vector.broadcast %cst_232 : f32 to vector<2x32xf32>
    %1141 = arith.mulf %1139, %1140 : vector<2x32xf32>
    %cst_233 = arith.constant 2.000000e-08 : f32
    %1142 = vector.broadcast %cst_233 : f32 to vector<1x32xf32>
    %1143 = arith.addf %1135, %1142 : vector<1x32xf32>
    %1144 = math.exp %1143 : vector<1x32xf32>
    %1145 = vector.broadcast %1134 : vector<1x32xf32> to vector<2x32xf32>
    %1146 = arith.subf %1145, %902 : vector<2x32xf32>
    %1147 = arith.mulf %1146, %1146 : vector<2x32xf32>
    %1148 = vector.broadcast %1144 : vector<1x32xf32> to vector<2x32xf32>
    %1149 = arith.addf %1148, %1147 : vector<2x32xf32>
    %cst_234 = arith.constant 2.000000e-08 : f32
    %1150 = vector.broadcast %cst_234 : f32 to vector<2x32xf32>
    %1151 = arith.addf %905, %1150 : vector<2x32xf32>
    %1152 = math.exp %1151 : vector<2x32xf32>
    %cst_235 = arith.constant 2.000000e+00 : f32
    %1153 = vector.broadcast %cst_235 : f32 to vector<2x32xf32>
    %1154 = arith.mulf %1153, %1152 : vector<2x32xf32>
    %1155 = arith.divf %1149, %1154 : vector<2x32xf32>
    %1156 = arith.addf %1141, %1155 : vector<2x32xf32>
    %cst_236 = arith.constant 5.000000e-01 : f32
    %1157 = vector.broadcast %cst_236 : f32 to vector<2x32xf32>
    %1158 = arith.subf %1156, %1157 : vector<2x32xf32>
    %1159 = vector.shape_cast %1158 : vector<2x32xf32> to vector<1x2x32xf32>
    %cst_237 = arith.constant dense<0.000000e+00> : vector<1xf32>
    %1160 = vector.multi_reduction <add>, %1159, %cst_237 [1, 2] : vector<1x2x32xf32> to vector<1xf32>
    %1161 = vector.shape_cast %1160 : vector<1xf32> to vector<1x1x1xf32>
    %1162 = vector.extract %1161[0, 0, 0] : f32 from vector<1x1x1xf32>
    %1163 = arith.addf %1133, %1162 : f32
    %1164 = vector.extract_strided_slice %888 {offsets = [2, 0], sizes = [1, 32], strides = [1, 1]} : vector<3x32xf32> to vector<1x32xf32>
    %1165 = vector.extract_strided_slice %889 {offsets = [2, 0], sizes = [1, 32], strides = [1, 1]} : vector<3x32xf32> to vector<1x32xf32>
    %1166 = vector.broadcast %1165 : vector<1x32xf32> to vector<2x32xf32>
    %1167 = arith.subf %905, %1166 : vector<2x32xf32>
    %cst_238 = arith.constant 2.000000e-08 : f32
    %1168 = vector.broadcast %cst_238 : f32 to vector<2x32xf32>
    %1169 = arith.addf %1167, %1168 : vector<2x32xf32>
    %cst_239 = arith.constant 5.000000e-01 : f32
    %1170 = vector.broadcast %cst_239 : f32 to vector<2x32xf32>
    %1171 = arith.mulf %1169, %1170 : vector<2x32xf32>
    %cst_240 = arith.constant 2.000000e-08 : f32
    %1172 = vector.broadcast %cst_240 : f32 to vector<1x32xf32>
    %1173 = arith.addf %1165, %1172 : vector<1x32xf32>
    %1174 = math.exp %1173 : vector<1x32xf32>
    %1175 = vector.broadcast %1164 : vector<1x32xf32> to vector<2x32xf32>
    %1176 = arith.subf %1175, %902 : vector<2x32xf32>
    %1177 = arith.mulf %1176, %1176 : vector<2x32xf32>
    %1178 = vector.broadcast %1174 : vector<1x32xf32> to vector<2x32xf32>
    %1179 = arith.addf %1178, %1177 : vector<2x32xf32>
    %cst_241 = arith.constant 2.000000e-08 : f32
    %1180 = vector.broadcast %cst_241 : f32 to vector<2x32xf32>
    %1181 = arith.addf %905, %1180 : vector<2x32xf32>
    %1182 = math.exp %1181 : vector<2x32xf32>
    %cst_242 = arith.constant 2.000000e+00 : f32
    %1183 = vector.broadcast %cst_242 : f32 to vector<2x32xf32>
    %1184 = arith.mulf %1183, %1182 : vector<2x32xf32>
    %1185 = arith.divf %1179, %1184 : vector<2x32xf32>
    %1186 = arith.addf %1171, %1185 : vector<2x32xf32>
    %cst_243 = arith.constant 5.000000e-01 : f32
    %1187 = vector.broadcast %cst_243 : f32 to vector<2x32xf32>
    %1188 = arith.subf %1186, %1187 : vector<2x32xf32>
    %1189 = vector.shape_cast %1188 : vector<2x32xf32> to vector<1x2x32xf32>
    %cst_244 = arith.constant dense<0.000000e+00> : vector<1xf32>
    %1190 = vector.multi_reduction <add>, %1189, %cst_244 [1, 2] : vector<1x2x32xf32> to vector<1xf32>
    %1191 = vector.shape_cast %1190 : vector<1xf32> to vector<1x1x1xf32>
    %1192 = vector.extract %1191[0, 0, 0] : f32 from vector<1x1x1xf32>
    %1193 = arith.addf %1163, %1192 : f32
    %cst_245 = arith.constant 3.000000e+00 : f32
    %1194 = arith.divf %1193, %cst_245 : f32
    %1195 = vector.broadcast %1194 : f32 to vector<1x1xf32>
    %c0_246 = arith.constant 0 : index
    %c0_247 = arith.constant 0 : index
    %1196 = vector.load %arg32[%c0_246, %c0_247] : memref<1x1xf32, #tpu.memory_space<vmem>>, vector<1x1xf32>
    tpu.vector_store %arg32[%c0_246, %c0_247], %1195 {strides = array<i32>} : memref<1x1xf32, #tpu.memory_space<vmem>>, vector<1x1xf32>,
    %c0_248 = arith.constant 0 : index
    %c0_249 = arith.constant 0 : index
    %1197 = vector.load %arg20[%c0_248, %c0_249] : memref<16x96xf32, #tpu.memory_space<vmem>>, vector<16x96xf32>
    %cst_250 = arith.constant dense<0.000000e+00> : vector<12x96xf32>
    %1198 = tpu.matmul %18, %1197, %cst_250 {dimension_numbers = #tpu.dot_dimension_numbers<[1], [0], [0], [1], [0, 0, 1, 1], [], []>} : vector<12x16xf32>, vector<16x96xf32>, vector<12x96xf32> -> vector<12x96xf32>
    %c0_251 = arith.constant 0 : index
    %c0_252 = arith.constant 0 : index
    %1199 = vector.load %arg21[%c0_251, %c0_252] : memref<1x96xf32, #tpu.memory_space<vmem>>, vector<1x96xf32>
    %1200 = vector.broadcast %1199 : vector<1x96xf32> to vector<12x96xf32>
    %1201 = arith.addf %1198, %1200 : vector<12x96xf32>
    %c0_253 = arith.constant 0 : index
    %c0_254 = arith.constant 0 : index
    %1202 = vector.load %arg22[%c0_253, %c0_254] : memref<32x96xf32, #tpu.memory_space<vmem>>, vector<32x96xf32>
    %c0_255 = arith.constant 0 : index
    %c0_256 = arith.constant 0 : index
    %1203 = vector.load %arg23[%c0_255, %c0_256] : memref<1x32xf32, #tpu.memory_space<vmem>>, vector<1x32xf32>
    %1204 = vector.extract_strided_slice %1201 {offsets = [0, 0], sizes = [2, 96], strides = [1, 1]} : vector<12x96xf32> to vector<2x96xf32>
    %cst_257 = arith.constant dense<0.000000e+00> : vector<2x96xf32>
    %1205 = tpu.matmul %923, %1202, %cst_257 {dimension_numbers = #tpu.dot_dimension_numbers<[1], [0], [0], [1], [0, 0, 1, 1], [], []>} : vector<2x32xf32>, vector<32x96xf32>, vector<2x96xf32> -> vector<2x96xf32>
    %1206 = vector.extract_strided_slice %1204 {offsets = [0, 0], sizes = [2, 32], strides = [1, 1]} : vector<2x96xf32> to vector<2x32xf32>
    %1207 = vector.extract_strided_slice %1205 {offsets = [0, 0], sizes = [2, 32], strides = [1, 1]} : vector<2x96xf32> to vector<2x32xf32>
    %1208 = arith.addf %1206, %1207 : vector<2x32xf32>
    %1209 = arith.negf %1208 : vector<2x32xf32>
    %1210 = math.exp %1209 : vector<2x32xf32>
    %cst_258 = arith.constant 1.000000e+00 : f32
    %1211 = vector.broadcast %cst_258 : f32 to vector<2x32xf32>
    %1212 = arith.addf %1211, %1210 : vector<2x32xf32>
    %1213 = arith.divf %1211, %1212 : vector<2x32xf32>
    %1214 = vector.extract_strided_slice %1204 {offsets = [0, 32], sizes = [2, 32], strides = [1, 1]} : vector<2x96xf32> to vector<2x32xf32>
    %1215 = vector.extract_strided_slice %1205 {offsets = [0, 32], sizes = [2, 32], strides = [1, 1]} : vector<2x96xf32> to vector<2x32xf32>
    %1216 = arith.addf %1214, %1215 : vector<2x32xf32>
    %1217 = arith.negf %1216 : vector<2x32xf32>
    %1218 = math.exp %1217 : vector<2x32xf32>
    %cst_259 = arith.constant 1.000000e+00 : f32
    %1219 = vector.broadcast %cst_259 : f32 to vector<2x32xf32>
    %1220 = arith.addf %1219, %1218 : vector<2x32xf32>
    %1221 = arith.divf %1219, %1220 : vector<2x32xf32>
    %1222 = vector.extract_strided_slice %1204 {offsets = [0, 64], sizes = [2, 32], strides = [1, 1]} : vector<2x96xf32> to vector<2x32xf32>
    %1223 = vector.extract_strided_slice %1205 {offsets = [0, 64], sizes = [2, 32], strides = [1, 1]} : vector<2x96xf32> to vector<2x32xf32>
    %1224 = vector.broadcast %1203 : vector<1x32xf32> to vector<2x32xf32>
    %1225 = arith.addf %1223, %1224 : vector<2x32xf32>
    %1226 = arith.mulf %1213, %1225 : vector<2x32xf32>
    %1227 = arith.addf %1222, %1226 : vector<2x32xf32>
    %1228 = math.tanh %1227 : vector<2x32xf32>
    %cst_260 = arith.constant 1.000000e+00 : f32
    %1229 = vector.broadcast %cst_260 : f32 to vector<2x32xf32>
    %1230 = arith.subf %1229, %1221 : vector<2x32xf32>
    %1231 = arith.mulf %1230, %1228 : vector<2x32xf32>
    %1232 = arith.mulf %1221, %923 : vector<2x32xf32>
    %1233 = arith.addf %1231, %1232 : vector<2x32xf32>
    %c0_261 = arith.constant 0 : index
    %c0_262 = arith.constant 0 : index
    %1234 = vector.load %arg35[%c0_261, %c0_262] : memref<12x32xf32, #tpu.memory_space<vmem>>, vector<2x32xf32>
    tpu.vector_store %arg35[%c0_261, %c0_262], %1233 {strides = array<i32>} : memref<12x32xf32, #tpu.memory_space<vmem>>, vector<2x32xf32>,
    %1235 = vector.extract_strided_slice %1201 {offsets = [2, 0], sizes = [2, 96], strides = [1, 1]} : vector<12x96xf32> to vector<2x96xf32>
    %cst_263 = arith.constant dense<0.000000e+00> : vector<2x96xf32>
    %1236 = tpu.matmul %1233, %1202, %cst_263 {dimension_numbers = #tpu.dot_dimension_numbers<[1], [0], [0], [1], [0, 0, 1, 1], [], []>} : vector<2x32xf32>, vector<32x96xf32>, vector<2x96xf32> -> vector<2x96xf32>
    %1237 = vector.extract_strided_slice %1235 {offsets = [0, 0], sizes = [2, 32], strides = [1, 1]} : vector<2x96xf32> to vector<2x32xf32>
    %1238 = vector.extract_strided_slice %1236 {offsets = [0, 0], sizes = [2, 32], strides = [1, 1]} : vector<2x96xf32> to vector<2x32xf32>
    %1239 = arith.addf %1237, %1238 : vector<2x32xf32>
    %1240 = arith.negf %1239 : vector<2x32xf32>
    %1241 = math.exp %1240 : vector<2x32xf32>
    %cst_264 = arith.constant 1.000000e+00 : f32
    %1242 = vector.broadcast %cst_264 : f32 to vector<2x32xf32>
    %1243 = arith.addf %1242, %1241 : vector<2x32xf32>
    %1244 = arith.divf %1242, %1243 : vector<2x32xf32>
    %1245 = vector.extract_strided_slice %1235 {offsets = [0, 32], sizes = [2, 32], strides = [1, 1]} : vector<2x96xf32> to vector<2x32xf32>
    %1246 = vector.extract_strided_slice %1236 {offsets = [0, 32], sizes = [2, 32], strides = [1, 1]} : vector<2x96xf32> to vector<2x32xf32>
    %1247 = arith.addf %1245, %1246 : vector<2x32xf32>
    %1248 = arith.negf %1247 : vector<2x32xf32>
    %1249 = math.exp %1248 : vector<2x32xf32>
    %cst_265 = arith.constant 1.000000e+00 : f32
    %1250 = vector.broadcast %cst_265 : f32 to vector<2x32xf32>
    %1251 = arith.addf %1250, %1249 : vector<2x32xf32>
    %1252 = arith.divf %1250, %1251 : vector<2x32xf32>
    %1253 = vector.extract_strided_slice %1235 {offsets = [0, 64], sizes = [2, 32], strides = [1, 1]} : vector<2x96xf32> to vector<2x32xf32>
    %1254 = vector.extract_strided_slice %1236 {offsets = [0, 64], sizes = [2, 32], strides = [1, 1]} : vector<2x96xf32> to vector<2x32xf32>
    %1255 = vector.broadcast %1203 : vector<1x32xf32> to vector<2x32xf32>
    %1256 = arith.addf %1254, %1255 : vector<2x32xf32>
    %1257 = arith.mulf %1244, %1256 : vector<2x32xf32>
    %1258 = arith.addf %1253, %1257 : vector<2x32xf32>
    %1259 = math.tanh %1258 : vector<2x32xf32>
    %cst_266 = arith.constant 1.000000e+00 : f32
    %1260 = vector.broadcast %cst_266 : f32 to vector<2x32xf32>
    %1261 = arith.subf %1260, %1252 : vector<2x32xf32>
    %1262 = arith.mulf %1261, %1259 : vector<2x32xf32>
    %1263 = arith.mulf %1252, %1233 : vector<2x32xf32>
    %1264 = arith.addf %1262, %1263 : vector<2x32xf32>
    %c2_267 = arith.constant 2 : index
    %c0_268 = arith.constant 0 : index
    %1265 = vector.load %arg35[%c2_267, %c0_268] : memref<12x32xf32, #tpu.memory_space<vmem>>, vector<2x32xf32>
    tpu.vector_store %arg35[%c2_267, %c0_268], %1264 {strides = array<i32>} : memref<12x32xf32, #tpu.memory_space<vmem>>, vector<2x32xf32>,
    %1266 = vector.extract_strided_slice %1201 {offsets = [4, 0], sizes = [2, 96], strides = [1, 1]} : vector<12x96xf32> to vector<2x96xf32>
    %cst_269 = arith.constant dense<0.000000e+00> : vector<2x96xf32>
    %1267 = tpu.matmul %1264, %1202, %cst_269 {dimension_numbers = #tpu.dot_dimension_numbers<[1], [0], [0], [1], [0, 0, 1, 1], [], []>} : vector<2x32xf32>, vector<32x96xf32>, vector<2x96xf32> -> vector<2x96xf32>
    %1268 = vector.extract_strided_slice %1266 {offsets = [0, 0], sizes = [2, 32], strides = [1, 1]} : vector<2x96xf32> to vector<2x32xf32>
    %1269 = vector.extract_strided_slice %1267 {offsets = [0, 0], sizes = [2, 32], strides = [1, 1]} : vector<2x96xf32> to vector<2x32xf32>
    %1270 = arith.addf %1268, %1269 : vector<2x32xf32>
    %1271 = arith.negf %1270 : vector<2x32xf32>
    %1272 = math.exp %1271 : vector<2x32xf32>
    %cst_270 = arith.constant 1.000000e+00 : f32
    %1273 = vector.broadcast %cst_270 : f32 to vector<2x32xf32>
    %1274 = arith.addf %1273, %1272 : vector<2x32xf32>
    %1275 = arith.divf %1273, %1274 : vector<2x32xf32>
    %1276 = vector.extract_strided_slice %1266 {offsets = [0, 32], sizes = [2, 32], strides = [1, 1]} : vector<2x96xf32> to vector<2x32xf32>
    %1277 = vector.extract_strided_slice %1267 {offsets = [0, 32], sizes = [2, 32], strides = [1, 1]} : vector<2x96xf32> to vector<2x32xf32>
    %1278 = arith.addf %1276, %1277 : vector<2x32xf32>
    %1279 = arith.negf %1278 : vector<2x32xf32>
    %1280 = math.exp %1279 : vector<2x32xf32>
    %cst_271 = arith.constant 1.000000e+00 : f32
    %1281 = vector.broadcast %cst_271 : f32 to vector<2x32xf32>
    %1282 = arith.addf %1281, %1280 : vector<2x32xf32>
    %1283 = arith.divf %1281, %1282 : vector<2x32xf32>
    %1284 = vector.extract_strided_slice %1266 {offsets = [0, 64], sizes = [2, 32], strides = [1, 1]} : vector<2x96xf32> to vector<2x32xf32>
    %1285 = vector.extract_strided_slice %1267 {offsets = [0, 64], sizes = [2, 32], strides = [1, 1]} : vector<2x96xf32> to vector<2x32xf32>
    %1286 = vector.broadcast %1203 : vector<1x32xf32> to vector<2x32xf32>
    %1287 = arith.addf %1285, %1286 : vector<2x32xf32>
    %1288 = arith.mulf %1275, %1287 : vector<2x32xf32>
    %1289 = arith.addf %1284, %1288 : vector<2x32xf32>
    %1290 = math.tanh %1289 : vector<2x32xf32>
    %cst_272 = arith.constant 1.000000e+00 : f32
    %1291 = vector.broadcast %cst_272 : f32 to vector<2x32xf32>
    %1292 = arith.subf %1291, %1283 : vector<2x32xf32>
    %1293 = arith.mulf %1292, %1290 : vector<2x32xf32>
    %1294 = arith.mulf %1283, %1264 : vector<2x32xf32>
    %1295 = arith.addf %1293, %1294 : vector<2x32xf32>
    %c4_273 = arith.constant 4 : index
    %c0_274 = arith.constant 0 : index
    %1296 = vector.load %arg35[%c4_273, %c0_274] : memref<12x32xf32, #tpu.memory_space<vmem>>, vector<2x32xf32>
    tpu.vector_store %arg35[%c4_273, %c0_274], %1295 {strides = array<i32>} : memref<12x32xf32, #tpu.memory_space<vmem>>, vector<2x32xf32>,
    %1297 = vector.extract_strided_slice %1201 {offsets = [6, 0], sizes = [2, 96], strides = [1, 1]} : vector<12x96xf32> to vector<2x96xf32>
    %cst_275 = arith.constant dense<0.000000e+00> : vector<2x96xf32>
    %1298 = tpu.matmul %1295, %1202, %cst_275 {dimension_numbers = #tpu.dot_dimension_numbers<[1], [0], [0], [1], [0, 0, 1, 1], [], []>} : vector<2x32xf32>, vector<32x96xf32>, vector<2x96xf32> -> vector<2x96xf32>
    %1299 = vector.extract_strided_slice %1297 {offsets = [0, 0], sizes = [2, 32], strides = [1, 1]} : vector<2x96xf32> to vector<2x32xf32>
    %1300 = vector.extract_strided_slice %1298 {offsets = [0, 0], sizes = [2, 32], strides = [1, 1]} : vector<2x96xf32> to vector<2x32xf32>
    %1301 = arith.addf %1299, %1300 : vector<2x32xf32>
    %1302 = arith.negf %1301 : vector<2x32xf32>
    %1303 = math.exp %1302 : vector<2x32xf32>
    %cst_276 = arith.constant 1.000000e+00 : f32
    %1304 = vector.broadcast %cst_276 : f32 to vector<2x32xf32>
    %1305 = arith.addf %1304, %1303 : vector<2x32xf32>
    %1306 = arith.divf %1304, %1305 : vector<2x32xf32>
    %1307 = vector.extract_strided_slice %1297 {offsets = [0, 32], sizes = [2, 32], strides = [1, 1]} : vector<2x96xf32> to vector<2x32xf32>
    %1308 = vector.extract_strided_slice %1298 {offsets = [0, 32], sizes = [2, 32], strides = [1, 1]} : vector<2x96xf32> to vector<2x32xf32>
    %1309 = arith.addf %1307, %1308 : vector<2x32xf32>
    %1310 = arith.negf %1309 : vector<2x32xf32>
    %1311 = math.exp %1310 : vector<2x32xf32>
    %cst_277 = arith.constant 1.000000e+00 : f32
    %1312 = vector.broadcast %cst_277 : f32 to vector<2x32xf32>
    %1313 = arith.addf %1312, %1311 : vector<2x32xf32>
    %1314 = arith.divf %1312, %1313 : vector<2x32xf32>
    %1315 = vector.extract_strided_slice %1297 {offsets = [0, 64], sizes = [2, 32], strides = [1, 1]} : vector<2x96xf32> to vector<2x32xf32>
    %1316 = vector.extract_strided_slice %1298 {offsets = [0, 64], sizes = [2, 32], strides = [1, 1]} : vector<2x96xf32> to vector<2x32xf32>
    %1317 = vector.broadcast %1203 : vector<1x32xf32> to vector<2x32xf32>
    %1318 = arith.addf %1316, %1317 : vector<2x32xf32>
    %1319 = arith.mulf %1306, %1318 : vector<2x32xf32>
    %1320 = arith.addf %1315, %1319 : vector<2x32xf32>
    %1321 = math.tanh %1320 : vector<2x32xf32>
    %cst_278 = arith.constant 1.000000e+00 : f32
    %1322 = vector.broadcast %cst_278 : f32 to vector<2x32xf32>
    %1323 = arith.subf %1322, %1314 : vector<2x32xf32>
    %1324 = arith.mulf %1323, %1321 : vector<2x32xf32>
    %1325 = arith.mulf %1314, %1295 : vector<2x32xf32>
    %1326 = arith.addf %1324, %1325 : vector<2x32xf32>
    %c6_279 = arith.constant 6 : index
    %c0_280 = arith.constant 0 : index
    %1327 = vector.load %arg35[%c6_279, %c0_280] : memref<12x32xf32, #tpu.memory_space<vmem>>, vector<2x32xf32>
    tpu.vector_store %arg35[%c6_279, %c0_280], %1326 {strides = array<i32>} : memref<12x32xf32, #tpu.memory_space<vmem>>, vector<2x32xf32>,
    %1328 = vector.extract_strided_slice %1201 {offsets = [8, 0], sizes = [2, 96], strides = [1, 1]} : vector<12x96xf32> to vector<2x96xf32>
    %cst_281 = arith.constant dense<0.000000e+00> : vector<2x96xf32>
    %1329 = tpu.matmul %1326, %1202, %cst_281 {dimension_numbers = #tpu.dot_dimension_numbers<[1], [0], [0], [1], [0, 0, 1, 1], [], []>} : vector<2x32xf32>, vector<32x96xf32>, vector<2x96xf32> -> vector<2x96xf32>
    %1330 = vector.extract_strided_slice %1328 {offsets = [0, 0], sizes = [2, 32], strides = [1, 1]} : vector<2x96xf32> to vector<2x32xf32>
    %1331 = vector.extract_strided_slice %1329 {offsets = [0, 0], sizes = [2, 32], strides = [1, 1]} : vector<2x96xf32> to vector<2x32xf32>
    %1332 = arith.addf %1330, %1331 : vector<2x32xf32>
    %1333 = arith.negf %1332 : vector<2x32xf32>
    %1334 = math.exp %1333 : vector<2x32xf32>
    %cst_282 = arith.constant 1.000000e+00 : f32
    %1335 = vector.broadcast %cst_282 : f32 to vector<2x32xf32>
    %1336 = arith.addf %1335, %1334 : vector<2x32xf32>
    %1337 = arith.divf %1335, %1336 : vector<2x32xf32>
    %1338 = vector.extract_strided_slice %1328 {offsets = [0, 32], sizes = [2, 32], strides = [1, 1]} : vector<2x96xf32> to vector<2x32xf32>
    %1339 = vector.extract_strided_slice %1329 {offsets = [0, 32], sizes = [2, 32], strides = [1, 1]} : vector<2x96xf32> to vector<2x32xf32>
    %1340 = arith.addf %1338, %1339 : vector<2x32xf32>
    %1341 = arith.negf %1340 : vector<2x32xf32>
    %1342 = math.exp %1341 : vector<2x32xf32>
    %cst_283 = arith.constant 1.000000e+00 : f32
    %1343 = vector.broadcast %cst_283 : f32 to vector<2x32xf32>
    %1344 = arith.addf %1343, %1342 : vector<2x32xf32>
    %1345 = arith.divf %1343, %1344 : vector<2x32xf32>
    %1346 = vector.extract_strided_slice %1328 {offsets = [0, 64], sizes = [2, 32], strides = [1, 1]} : vector<2x96xf32> to vector<2x32xf32>
    %1347 = vector.extract_strided_slice %1329 {offsets = [0, 64], sizes = [2, 32], strides = [1, 1]} : vector<2x96xf32> to vector<2x32xf32>
    %1348 = vector.broadcast %1203 : vector<1x32xf32> to vector<2x32xf32>
    %1349 = arith.addf %1347, %1348 : vector<2x32xf32>
    %1350 = arith.mulf %1337, %1349 : vector<2x32xf32>
    %1351 = arith.addf %1346, %1350 : vector<2x32xf32>
    %1352 = math.tanh %1351 : vector<2x32xf32>
    %cst_284 = arith.constant 1.000000e+00 : f32
    %1353 = vector.broadcast %cst_284 : f32 to vector<2x32xf32>
    %1354 = arith.subf %1353, %1345 : vector<2x32xf32>
    %1355 = arith.mulf %1354, %1352 : vector<2x32xf32>
    %1356 = arith.mulf %1345, %1326 : vector<2x32xf32>
    %1357 = arith.addf %1355, %1356 : vector<2x32xf32>
    %c8_285 = arith.constant 8 : index
    %c0_286 = arith.constant 0 : index
    %1358 = vector.load %arg35[%c8_285, %c0_286] : memref<12x32xf32, #tpu.memory_space<vmem>>, vector<2x32xf32>
    tpu.vector_store %arg35[%c8_285, %c0_286], %1357 {strides = array<i32>} : memref<12x32xf32, #tpu.memory_space<vmem>>, vector<2x32xf32>,
    %1359 = vector.extract_strided_slice %1201 {offsets = [10, 0], sizes = [2, 96], strides = [1, 1]} : vector<12x96xf32> to vector<2x96xf32>
    %cst_287 = arith.constant dense<0.000000e+00> : vector<2x96xf32>
    %1360 = tpu.matmul %1357, %1202, %cst_287 {dimension_numbers = #tpu.dot_dimension_numbers<[1], [0], [0], [1], [0, 0, 1, 1], [], []>} : vector<2x32xf32>, vector<32x96xf32>, vector<2x96xf32> -> vector<2x96xf32>
    %1361 = vector.extract_strided_slice %1359 {offsets = [0, 0], sizes = [2, 32], strides = [1, 1]} : vector<2x96xf32> to vector<2x32xf32>
    %1362 = vector.extract_strided_slice %1360 {offsets = [0, 0], sizes = [2, 32], strides = [1, 1]} : vector<2x96xf32> to vector<2x32xf32>
    %1363 = arith.addf %1361, %1362 : vector<2x32xf32>
    %1364 = arith.negf %1363 : vector<2x32xf32>
    %1365 = math.exp %1364 : vector<2x32xf32>
    %cst_288 = arith.constant 1.000000e+00 : f32
    %1366 = vector.broadcast %cst_288 : f32 to vector<2x32xf32>
    %1367 = arith.addf %1366, %1365 : vector<2x32xf32>
    %1368 = arith.divf %1366, %1367 : vector<2x32xf32>
    %1369 = vector.extract_strided_slice %1359 {offsets = [0, 32], sizes = [2, 32], strides = [1, 1]} : vector<2x96xf32> to vector<2x32xf32>
    %1370 = vector.extract_strided_slice %1360 {offsets = [0, 32], sizes = [2, 32], strides = [1, 1]} : vector<2x96xf32> to vector<2x32xf32>
    %1371 = arith.addf %1369, %1370 : vector<2x32xf32>
    %1372 = arith.negf %1371 : vector<2x32xf32>
    %1373 = math.exp %1372 : vector<2x32xf32>
    %cst_289 = arith.constant 1.000000e+00 : f32
    %1374 = vector.broadcast %cst_289 : f32 to vector<2x32xf32>
    %1375 = arith.addf %1374, %1373 : vector<2x32xf32>
    %1376 = arith.divf %1374, %1375 : vector<2x32xf32>
    %1377 = vector.extract_strided_slice %1359 {offsets = [0, 64], sizes = [2, 32], strides = [1, 1]} : vector<2x96xf32> to vector<2x32xf32>
    %1378 = vector.extract_strided_slice %1360 {offsets = [0, 64], sizes = [2, 32], strides = [1, 1]} : vector<2x96xf32> to vector<2x32xf32>
    %1379 = vector.broadcast %1203 : vector<1x32xf32> to vector<2x32xf32>
    %1380 = arith.addf %1378, %1379 : vector<2x32xf32>
    %1381 = arith.mulf %1368, %1380 : vector<2x32xf32>
    %1382 = arith.addf %1377, %1381 : vector<2x32xf32>
    %1383 = math.tanh %1382 : vector<2x32xf32>
    %cst_290 = arith.constant 1.000000e+00 : f32
    %1384 = vector.broadcast %cst_290 : f32 to vector<2x32xf32>
    %1385 = arith.subf %1384, %1376 : vector<2x32xf32>
    %1386 = arith.mulf %1385, %1383 : vector<2x32xf32>
    %1387 = arith.mulf %1376, %1357 : vector<2x32xf32>
    %1388 = arith.addf %1386, %1387 : vector<2x32xf32>
    %c10 = arith.constant 10 : index
    %c0_291 = arith.constant 0 : index
    %1389 = vector.load %arg35[%c10, %c0_291] : memref<12x32xf32, #tpu.memory_space<vmem>>, vector<2x32xf32>
    tpu.vector_store %arg35[%c10, %c0_291], %1388 {strides = array<i32>} : memref<12x32xf32, #tpu.memory_space<vmem>>, vector<2x32xf32>,
    %c0_292 = arith.constant 0 : index
    %c0_293 = arith.constant 0 : index
    %1390 = vector.load %arg31[%c0_292, %c0_293] : memref<2x32xf32, #tpu.memory_space<vmem>>, vector<2x32xf32>
    tpu.vector_store %arg31[%c0_292, %c0_293], %1388 {strides = array<i32>} : memref<2x32xf32, #tpu.memory_space<vmem>>, vector<2x32xf32>,
    %c0_294 = arith.constant 0 : index
    %c0_295 = arith.constant 0 : index
    %1391 = vector.load %arg35[%c0_294, %c0_295] : memref<12x32xf32, #tpu.memory_space<vmem>>, vector<12x32xf32>
    %c0_296 = arith.constant 0 : index
    %c0_297 = arith.constant 0 : index
    %1392 = vector.load %arg24[%c0_296, %c0_297] : memref<32x32xf32, #tpu.memory_space<vmem>>, vector<32x32xf32>
    %cst_298 = arith.constant dense<0.000000e+00> : vector<12x32xf32>
    %1393 = tpu.matmul %1391, %1392, %cst_298 {dimension_numbers = #tpu.dot_dimension_numbers<[1], [0], [0], [1], [0, 0, 1, 1], [], []>} : vector<12x32xf32>, vector<32x32xf32>, vector<12x32xf32> -> vector<12x32xf32>
    %1394 = vector.extract_strided_slice %1393 {offsets = [0, 0], sizes = [2, 32], strides = [1, 1]} : vector<12x32xf32> to vector<2x32xf32>
    %c0_299 = arith.constant 0 : index
    %c0_300 = arith.constant 0 : index
    %c0_301 = arith.constant 0 : index
    %1395 = vector.load %arg34[%c0_299, %c0_300, %c0_301] : memref<2x6x32xf32, #tpu.memory_space<vmem>>, vector<2x1x32xf32>
    %1396 = vector.shape_cast %1395 : vector<2x1x32xf32> to vector<2x32xf32>
    %1397 = vector.shape_cast %1394 : vector<2x32xf32> to vector<2x1x32xf32>
    tpu.vector_store %arg34[%c0_299, %c0_300, %c0_301], %1397 {strides = array<i32>} : memref<2x6x32xf32, #tpu.memory_space<vmem>>, vector<2x1x32xf32>,
    %1398 = vector.extract_strided_slice %1393 {offsets = [2, 0], sizes = [2, 32], strides = [1, 1]} : vector<12x32xf32> to vector<2x32xf32>
    %c0_302 = arith.constant 0 : index
    %c1_303 = arith.constant 1 : index
    %c0_304 = arith.constant 0 : index
    %1399 = vector.load %arg34[%c0_302, %c1_303, %c0_304] : memref<2x6x32xf32, #tpu.memory_space<vmem>>, vector<2x1x32xf32>
    %1400 = vector.shape_cast %1399 : vector<2x1x32xf32> to vector<2x32xf32>
    %1401 = vector.shape_cast %1398 : vector<2x32xf32> to vector<2x1x32xf32>
    tpu.vector_store %arg34[%c0_302, %c1_303, %c0_304], %1401 {strides = array<i32>} : memref<2x6x32xf32, #tpu.memory_space<vmem>>, vector<2x1x32xf32>,
    %1402 = vector.extract_strided_slice %1393 {offsets = [4, 0], sizes = [2, 32], strides = [1, 1]} : vector<12x32xf32> to vector<2x32xf32>
    %c0_305 = arith.constant 0 : index
    %c2_306 = arith.constant 2 : index
    %c0_307 = arith.constant 0 : index
    %1403 = vector.load %arg34[%c0_305, %c2_306, %c0_307] : memref<2x6x32xf32, #tpu.memory_space<vmem>>, vector<2x1x32xf32>
    %1404 = vector.shape_cast %1403 : vector<2x1x32xf32> to vector<2x32xf32>
    %1405 = vector.shape_cast %1402 : vector<2x32xf32> to vector<2x1x32xf32>
    tpu.vector_store %arg34[%c0_305, %c2_306, %c0_307], %1405 {strides = array<i32>} : memref<2x6x32xf32, #tpu.memory_space<vmem>>, vector<2x1x32xf32>,
    %1406 = vector.extract_strided_slice %1393 {offsets = [6, 0], sizes = [2, 32], strides = [1, 1]} : vector<12x32xf32> to vector<2x32xf32>
    %c0_308 = arith.constant 0 : index
    %c3_309 = arith.constant 3 : index
    %c0_310 = arith.constant 0 : index
    %1407 = vector.load %arg34[%c0_308, %c3_309, %c0_310] : memref<2x6x32xf32, #tpu.memory_space<vmem>>, vector<2x1x32xf32>
    %1408 = vector.shape_cast %1407 : vector<2x1x32xf32> to vector<2x32xf32>
    %1409 = vector.shape_cast %1406 : vector<2x32xf32> to vector<2x1x32xf32>
    tpu.vector_store %arg34[%c0_308, %c3_309, %c0_310], %1409 {strides = array<i32>} : memref<2x6x32xf32, #tpu.memory_space<vmem>>, vector<2x1x32xf32>,
    %1410 = vector.extract_strided_slice %1393 {offsets = [8, 0], sizes = [2, 32], strides = [1, 1]} : vector<12x32xf32> to vector<2x32xf32>
    %c0_311 = arith.constant 0 : index
    %c4_312 = arith.constant 4 : index
    %c0_313 = arith.constant 0 : index
    %1411 = vector.load %arg34[%c0_311, %c4_312, %c0_313] : memref<2x6x32xf32, #tpu.memory_space<vmem>>, vector<2x1x32xf32>
    %1412 = vector.shape_cast %1411 : vector<2x1x32xf32> to vector<2x32xf32>
    %1413 = vector.shape_cast %1410 : vector<2x32xf32> to vector<2x1x32xf32>
    tpu.vector_store %arg34[%c0_311, %c4_312, %c0_313], %1413 {strides = array<i32>} : memref<2x6x32xf32, #tpu.memory_space<vmem>>, vector<2x1x32xf32>,
    %1414 = vector.extract_strided_slice %1393 {offsets = [10, 0], sizes = [2, 32], strides = [1, 1]} : vector<12x32xf32> to vector<2x32xf32>
    %c0_314 = arith.constant 0 : index
    %c5_315 = arith.constant 5 : index
    %c0_316 = arith.constant 0 : index
    %1415 = vector.load %arg34[%c0_314, %c5_315, %c0_316] : memref<2x6x32xf32, #tpu.memory_space<vmem>>, vector<2x1x32xf32>
    %1416 = vector.shape_cast %1415 : vector<2x1x32xf32> to vector<2x32xf32>
    %1417 = vector.shape_cast %1414 : vector<2x32xf32> to vector<2x1x32xf32>
    tpu.vector_store %arg34[%c0_314, %c5_315, %c0_316], %1417 {strides = array<i32>} : memref<2x6x32xf32, #tpu.memory_space<vmem>>, vector<2x1x32xf32>,
    %c0_317 = arith.constant 0 : index
    %c0_318 = arith.constant 0 : index
    %c0_319 = arith.constant 0 : index
    %1418 = vector.load %arg34[%c0_317, %c0_318, %c0_319] : memref<2x6x32xf32, #tpu.memory_space<vmem>>, vector<2x6x32xf32>
    %cst_320 = arith.constant 0.000000e+00 : f32
    %1419 = vector.broadcast %cst_320 : f32 to vector<2x10xf32>
    %1420 = arith.cmpf ogt, %0, %1419 : vector<2x10xf32>
    %cst_321 = arith.constant 0.000000e+00 : f32
    %cst_322 = arith.constant -1.000000e+09 : f32
    %1421 = vector.broadcast %cst_321 : f32 to vector<2x10xf32>
    %1422 = vector.broadcast %cst_322 : f32 to vector<2x10xf32>
    %1423 = arith.select %1420, %1421, %1422 : vector<2x10xi1>, vector<2x10xf32>
    "tpu.trace_start"() <{level = 10 : i32, message = "btm,bsm->bts"}> : () -> ()
    %cst_323 = arith.constant dense<0.000000e+00> : vector<2x6x10xf32>
    %1424 = tpu.matmul %1418, %872, %cst_323 {dimension_numbers = #tpu.dot_dimension_numbers<[2], [2], [1], [1], [0, 0, 0, 1, 1, 1], [0], [0]>} : vector<2x6x32xf32>, vector<2x10x32xf32>, vector<2x6x10xf32> -> vector<2x6x10xf32>
    "tpu.trace_stop"() : () -> ()
    %1425 = vector.shape_cast %1423 : vector<2x10xf32> to vector<2x1x10xf32>
    %1426 = vector.broadcast %1425 : vector<2x1x10xf32> to vector<2x6x10xf32>
    %1427 = arith.addf %1424, %1426 : vector<2x6x10xf32>
    %cst_324 = arith.constant dense<0xFF800000> : vector<2x6xf32>
    %1428 = vector.multi_reduction <maximumf>, %1427, %cst_324 [2] : vector<2x6x10xf32> to vector<2x6xf32>
    %1429 = vector.shape_cast %1428 : vector<2x6xf32> to vector<2x6x1xf32>
    %1430 = vector.broadcast %1429 : vector<2x6x1xf32> to vector<2x6x10xf32>
    %1431 = arith.subf %1427, %1430 : vector<2x6x10xf32>
    %1432 = math.exp %1431 : vector<2x6x10xf32>
    %cst_325 = arith.constant dense<0.000000e+00> : vector<2x6xf32>
    %1433 = vector.multi_reduction <add>, %1432, %cst_325 [2] : vector<2x6x10xf32> to vector<2x6xf32>
    %1434 = vector.shape_cast %1433 : vector<2x6xf32> to vector<2x6x1xf32>
    %1435 = vector.broadcast %1434 : vector<2x6x1xf32> to vector<2x6x10xf32>
    %1436 = arith.divf %1432, %1435 : vector<2x6x10xf32>
    "tpu.trace_start"() <{level = 10 : i32, message = "bts,bsm->btm"}> : () -> ()
    %cst_326 = arith.constant dense<0.000000e+00> : vector<2x6x32xf32>
    %1437 = tpu.matmul %1436, %872, %cst_326 {dimension_numbers = #tpu.dot_dimension_numbers<[2], [1], [1], [2], [0, 0, 0, 1, 1, 2], [0], [0]>} : vector<2x6x10xf32>, vector<2x10x32xf32>, vector<2x6x32xf32> -> vector<2x6x32xf32>
    "tpu.trace_stop"() : () -> ()
    %1438 = vector.extract_strided_slice %1437 {offsets = [0, 0, 0], sizes = [2, 1, 32], strides = [1, 1, 1]} : vector<2x6x32xf32> to vector<2x1x32xf32>
    %1439 = vector.shape_cast %1438 : vector<2x1x32xf32> to vector<2x32xf32>
    %c0_327 = arith.constant 0 : index
    %c0_328 = arith.constant 0 : index
    %1440 = vector.load %arg36[%c0_327, %c0_328] : memref<12x32xf32, #tpu.memory_space<vmem>>, vector<2x32xf32>
    tpu.vector_store %arg36[%c0_327, %c0_328], %1439 {strides = array<i32>} : memref<12x32xf32, #tpu.memory_space<vmem>>, vector<2x32xf32>,
    %1441 = vector.extract_strided_slice %1437 {offsets = [0, 1, 0], sizes = [2, 1, 32], strides = [1, 1, 1]} : vector<2x6x32xf32> to vector<2x1x32xf32>
    %1442 = vector.shape_cast %1441 : vector<2x1x32xf32> to vector<2x32xf32>
    %c2_329 = arith.constant 2 : index
    %c0_330 = arith.constant 0 : index
    %1443 = vector.load %arg36[%c2_329, %c0_330] : memref<12x32xf32, #tpu.memory_space<vmem>>, vector<2x32xf32>
    tpu.vector_store %arg36[%c2_329, %c0_330], %1442 {strides = array<i32>} : memref<12x32xf32, #tpu.memory_space<vmem>>, vector<2x32xf32>,
    %1444 = vector.extract_strided_slice %1437 {offsets = [0, 2, 0], sizes = [2, 1, 32], strides = [1, 1, 1]} : vector<2x6x32xf32> to vector<2x1x32xf32>
    %1445 = vector.shape_cast %1444 : vector<2x1x32xf32> to vector<2x32xf32>
    %c4_331 = arith.constant 4 : index
    %c0_332 = arith.constant 0 : index
    %1446 = vector.load %arg36[%c4_331, %c0_332] : memref<12x32xf32, #tpu.memory_space<vmem>>, vector<2x32xf32>
    tpu.vector_store %arg36[%c4_331, %c0_332], %1445 {strides = array<i32>} : memref<12x32xf32, #tpu.memory_space<vmem>>, vector<2x32xf32>,
    %1447 = vector.extract_strided_slice %1437 {offsets = [0, 3, 0], sizes = [2, 1, 32], strides = [1, 1, 1]} : vector<2x6x32xf32> to vector<2x1x32xf32>
    %1448 = vector.shape_cast %1447 : vector<2x1x32xf32> to vector<2x32xf32>
    %c6_333 = arith.constant 6 : index
    %c0_334 = arith.constant 0 : index
    %1449 = vector.load %arg36[%c6_333, %c0_334] : memref<12x32xf32, #tpu.memory_space<vmem>>, vector<2x32xf32>
    tpu.vector_store %arg36[%c6_333, %c0_334], %1448 {strides = array<i32>} : memref<12x32xf32, #tpu.memory_space<vmem>>, vector<2x32xf32>,
    %1450 = vector.extract_strided_slice %1437 {offsets = [0, 4, 0], sizes = [2, 1, 32], strides = [1, 1, 1]} : vector<2x6x32xf32> to vector<2x1x32xf32>
    %1451 = vector.shape_cast %1450 : vector<2x1x32xf32> to vector<2x32xf32>
    %c8_335 = arith.constant 8 : index
    %c0_336 = arith.constant 0 : index
    %1452 = vector.load %arg36[%c8_335, %c0_336] : memref<12x32xf32, #tpu.memory_space<vmem>>, vector<2x32xf32>
    tpu.vector_store %arg36[%c8_335, %c0_336], %1451 {strides = array<i32>} : memref<12x32xf32, #tpu.memory_space<vmem>>, vector<2x32xf32>,
    %1453 = vector.extract_strided_slice %1437 {offsets = [0, 5, 0], sizes = [2, 1, 32], strides = [1, 1, 1]} : vector<2x6x32xf32> to vector<2x1x32xf32>
    %1454 = vector.shape_cast %1453 : vector<2x1x32xf32> to vector<2x32xf32>
    %c10_337 = arith.constant 10 : index
    %c0_338 = arith.constant 0 : index
    %1455 = vector.load %arg36[%c10_337, %c0_338] : memref<12x32xf32, #tpu.memory_space<vmem>>, vector<2x32xf32>
    tpu.vector_store %arg36[%c10_337, %c0_338], %1454 {strides = array<i32>} : memref<12x32xf32, #tpu.memory_space<vmem>>, vector<2x32xf32>,
    %c0_339 = arith.constant 0 : index
    %c0_340 = arith.constant 0 : index
    %1456 = vector.load %arg36[%c0_339, %c0_340] : memref<12x32xf32, #tpu.memory_space<vmem>>, vector<12x32xf32>
    %c0_341 = arith.constant 0 : index
    %c0_342 = arith.constant 0 : index
    %1457 = vector.load %arg25[%c0_341, %c0_342] : memref<32x32xf32, #tpu.memory_space<vmem>>, vector<32x32xf32>
    %cst_343 = arith.constant dense<0.000000e+00> : vector<12x32xf32>
    %1458 = tpu.matmul %1391, %1457, %cst_343 {dimension_numbers = #tpu.dot_dimension_numbers<[1], [0], [0], [1], [0, 0, 1, 1], [], []>} : vector<12x32xf32>, vector<32x32xf32>, vector<12x32xf32> -> vector<12x32xf32>
    %c0_344 = arith.constant 0 : index
    %c0_345 = arith.constant 0 : index
    %1459 = vector.load %arg26[%c0_344, %c0_345] : memref<32x32xf32, #tpu.memory_space<vmem>>, vector<32x32xf32>
    %cst_346 = arith.constant dense<0.000000e+00> : vector<12x32xf32>
    %1460 = tpu.matmul %1456, %1459, %cst_346 {dimension_numbers = #tpu.dot_dimension_numbers<[1], [0], [0], [1], [0, 0, 1, 1], [], []>} : vector<12x32xf32>, vector<32x32xf32>, vector<12x32xf32> -> vector<12x32xf32>
    %1461 = arith.addf %1458, %1460 : vector<12x32xf32>
    %c0_347 = arith.constant 0 : index
    %c0_348 = arith.constant 0 : index
    %1462 = vector.load %arg27[%c0_347, %c0_348] : memref<1x32xf32, #tpu.memory_space<vmem>>, vector<1x32xf32>
    %1463 = vector.broadcast %1462 : vector<1x32xf32> to vector<12x32xf32>
    %1464 = arith.addf %1461, %1463 : vector<12x32xf32>
    %cst_349 = arith.constant dense<0xFF800000> : vector<12xf32>
    %1465 = vector.multi_reduction <maximumf>, %1464, %cst_349 [1] : vector<12x32xf32> to vector<12xf32>
    %1466 = vector.shape_cast %1465 : vector<12xf32> to vector<12x1xf32>
    %1467 = vector.broadcast %1466 : vector<12x1xf32> to vector<12x32xf32>
    %1468 = arith.subf %1464, %1467 : vector<12x32xf32>
    %1469 = math.exp %1468 : vector<12x32xf32>
    %cst_350 = arith.constant dense<0.000000e+00> : vector<12xf32>
    %1470 = vector.multi_reduction <add>, %1469, %cst_350 [1] : vector<12x32xf32> to vector<12xf32>
    %1471 = vector.shape_cast %1470 : vector<12xf32> to vector<12x1xf32>
    %1472 = vector.broadcast %1471 : vector<12x1xf32> to vector<12x32xf32>
    %1473 = arith.divf %1469, %1472 : vector<12x32xf32>
    %1474 = vector.extract_strided_slice %1473 {offsets = [0, 0], sizes = [2, 32], strides = [1, 1]} : vector<12x32xf32> to vector<2x32xf32>
    %1475 = vector.extract_strided_slice %1473 {offsets = [2, 0], sizes = [2, 32], strides = [1, 1]} : vector<12x32xf32> to vector<2x32xf32>
    %1476 = vector.extract_strided_slice %1473 {offsets = [4, 0], sizes = [2, 32], strides = [1, 1]} : vector<12x32xf32> to vector<2x32xf32>
    %1477 = vector.extract_strided_slice %1473 {offsets = [6, 0], sizes = [2, 32], strides = [1, 1]} : vector<12x32xf32> to vector<2x32xf32>
    %1478 = vector.extract_strided_slice %1473 {offsets = [8, 0], sizes = [2, 32], strides = [1, 1]} : vector<12x32xf32> to vector<2x32xf32>
    %1479 = vector.extract_strided_slice %1473 {offsets = [10, 0], sizes = [2, 32], strides = [1, 1]} : vector<12x32xf32> to vector<2x32xf32>
    %1480 = tpu.concatenate %1474, %1475, %1476, %1477, %1478, %1479 in 1 : vector<2x32xf32>, vector<2x32xf32>, vector<2x32xf32>, vector<2x32xf32>, vector<2x32xf32>, vector<2x32xf32> -> vector<2x192xf32>
    %c0_351 = arith.constant 0 : index
    %c0_352 = arith.constant 0 : index
    %1481 = vector.load %arg28[%c0_351, %c0_352] : memref<2x192xf32, #tpu.memory_space<vmem>>, vector<2x192xf32>
    tpu.vector_store %arg28[%c0_351, %c0_352], %1480 {strides = array<i32>} : memref<2x192xf32, #tpu.memory_space<vmem>>, vector<2x192xf32>,
    %1482 = vector.extract_strided_slice %1436 {offsets = [0, 0, 0], sizes = [2, 1, 10], strides = [1, 1, 1]} : vector<2x6x10xf32> to vector<2x1x10xf32>
    %1483 = vector.shape_cast %1482 : vector<2x1x10xf32> to vector<2x10xf32>
    %1484 = vector.extract_strided_slice %1436 {offsets = [0, 1, 0], sizes = [2, 1, 10], strides = [1, 1, 1]} : vector<2x6x10xf32> to vector<2x1x10xf32>
    %1485 = vector.shape_cast %1484 : vector<2x1x10xf32> to vector<2x10xf32>
    %1486 = vector.extract_strided_slice %1436 {offsets = [0, 2, 0], sizes = [2, 1, 10], strides = [1, 1, 1]} : vector<2x6x10xf32> to vector<2x1x10xf32>
    %1487 = vector.shape_cast %1486 : vector<2x1x10xf32> to vector<2x10xf32>
    %1488 = vector.extract_strided_slice %1436 {offsets = [0, 3, 0], sizes = [2, 1, 10], strides = [1, 1, 1]} : vector<2x6x10xf32> to vector<2x1x10xf32>
    %1489 = vector.shape_cast %1488 : vector<2x1x10xf32> to vector<2x10xf32>
    %1490 = vector.extract_strided_slice %1436 {offsets = [0, 4, 0], sizes = [2, 1, 10], strides = [1, 1, 1]} : vector<2x6x10xf32> to vector<2x1x10xf32>
    %1491 = vector.shape_cast %1490 : vector<2x1x10xf32> to vector<2x10xf32>
    %1492 = vector.extract_strided_slice %1436 {offsets = [0, 5, 0], sizes = [2, 1, 10], strides = [1, 1, 1]} : vector<2x6x10xf32> to vector<2x1x10xf32>
    %1493 = vector.shape_cast %1492 : vector<2x1x10xf32> to vector<2x10xf32>
    %1494 = tpu.concatenate %1483, %1485, %1487, %1489, %1491, %1493 in 1 : vector<2x10xf32>, vector<2x10xf32>, vector<2x10xf32>, vector<2x10xf32>, vector<2x10xf32>, vector<2x10xf32> -> vector<2x60xf32>
    %c0_353 = arith.constant 0 : index
    %c0_354 = arith.constant 0 : index
    %1495 = vector.load %arg29[%c0_353, %c0_354] : memref<2x60xf32, #tpu.memory_space<vmem>>, vector<2x60xf32>
    tpu.vector_store %arg29[%c0_353, %c0_354], %1494 {strides = array<i32>} : memref<2x60xf32, #tpu.memory_space<vmem>>, vector<2x60xf32>,
    return
  }
  func.func @transform_0(%arg0: i32) -> (i32, i32) {
    %c0_i32 = arith.constant 0 : i32
    %c0_i32_0 = arith.constant 0 : i32
    %c0_i32_1 = arith.constant 0 : i32
    return %c0_i32, %c0_i32_0 : i32, i32
  }
  func.func @transform_1(%arg0: i32) -> (i32, i32) {
    %c0_i32 = arith.constant 0 : i32
    %c0_i32_0 = arith.constant 0 : i32
    %c0_i32_1 = arith.constant 0 : i32
    return %c0_i32, %c0_i32_0 : i32, i32
  }
  func.func @transform_2(%arg0: i32) -> (i32, i32) {
    %c0_i32 = arith.constant 0 : i32
    %c0_i32_0 = arith.constant 0 : i32
    %c0_i32_1 = arith.constant 0 : i32
    return %c0_i32, %c0_i32_0 : i32, i32
  }
  func.func @transform_3(%arg0: i32) -> (i32, i32) {
    %c0_i32 = arith.constant 0 : i32
    %c0_i32_0 = arith.constant 0 : i32
    %c0_i32_1 = arith.constant 0 : i32
    return %c0_i32, %c0_i32_0 : i32, i32
  }
  func.func @transform_4(%arg0: i32) -> (i32, i32) {
    %c0_i32 = arith.constant 0 : i32
    %c0_i32_0 = arith.constant 0 : i32
    %c0_i32_1 = arith.constant 0 : i32
    return %c0_i32, %c0_i32_0 : i32, i32
  }
  func.func @transform_5(%arg0: i32) -> (i32, i32) {
    %c0_i32 = arith.constant 0 : i32
    %c0_i32_0 = arith.constant 0 : i32
    %c0_i32_1 = arith.constant 0 : i32
    return %c0_i32, %c0_i32_0 : i32, i32
  }
  func.func @transform_6(%arg0: i32) -> (i32, i32) {
    %c0_i32 = arith.constant 0 : i32
    %c0_i32_0 = arith.constant 0 : i32
    %c0_i32_1 = arith.constant 0 : i32
    return %c0_i32, %c0_i32_0 : i32, i32
  }
  func.func @transform_7(%arg0: i32) -> (i32, i32) {
    %c0_i32 = arith.constant 0 : i32
    %c0_i32_0 = arith.constant 0 : i32
    %c0_i32_1 = arith.constant 0 : i32
    return %c0_i32, %c0_i32_0 : i32, i32
  }
  func.func @transform_8(%arg0: i32) -> (i32, i32) {
    %c0_i32 = arith.constant 0 : i32
    %c0_i32_0 = arith.constant 0 : i32
    %c0_i32_1 = arith.constant 0 : i32
    return %c0_i32, %c0_i32_0 : i32, i32
  }
  func.func @transform_9(%arg0: i32) -> (i32, i32) {
    %c0_i32 = arith.constant 0 : i32
    %c0_i32_0 = arith.constant 0 : i32
    %c0_i32_1 = arith.constant 0 : i32
    return %c0_i32, %c0_i32_0 : i32, i32
  }
  func.func @transform_10(%arg0: i32) -> (i32, i32) {
    %c0_i32 = arith.constant 0 : i32
    %c0_i32_0 = arith.constant 0 : i32
    %c0_i32_1 = arith.constant 0 : i32
    return %c0_i32, %c0_i32_0 : i32, i32
  }
  func.func @transform_11(%arg0: i32) -> (i32, i32) {
    %c0_i32 = arith.constant 0 : i32
    %c0_i32_0 = arith.constant 0 : i32
    %c0_i32_1 = arith.constant 0 : i32
    return %c0_i32, %c0_i32_0 : i32, i32
  }
  func.func @transform_12(%arg0: i32) -> (i32, i32) {
    %c0_i32 = arith.constant 0 : i32
    %c0_i32_0 = arith.constant 0 : i32
    %c0_i32_1 = arith.constant 0 : i32
    return %c0_i32, %c0_i32_0 : i32, i32
  }
  func.func @transform_13(%arg0: i32) -> (i32, i32) {
    %c0_i32 = arith.constant 0 : i32
    %c0_i32_0 = arith.constant 0 : i32
    %c0_i32_1 = arith.constant 0 : i32
    return %c0_i32, %c0_i32_0 : i32, i32
  }
  func.func @transform_14(%arg0: i32) -> (i32, i32) {
    %c0_i32 = arith.constant 0 : i32
    %c0_i32_0 = arith.constant 0 : i32
    %c0_i32_1 = arith.constant 0 : i32
    return %c0_i32, %c0_i32_0 : i32, i32
  }
  func.func @transform_15(%arg0: i32) -> (i32, i32) {
    %c0_i32 = arith.constant 0 : i32
    %c0_i32_0 = arith.constant 0 : i32
    %c0_i32_1 = arith.constant 0 : i32
    return %c0_i32, %c0_i32_0 : i32, i32
  }
  func.func @transform_16(%arg0: i32) -> (i32, i32) {
    %c0_i32 = arith.constant 0 : i32
    %c0_i32_0 = arith.constant 0 : i32
    %c0_i32_1 = arith.constant 0 : i32
    return %c0_i32, %c0_i32_0 : i32, i32
  }
  func.func @transform_17(%arg0: i32) -> (i32, i32) {
    %c0_i32 = arith.constant 0 : i32
    %c0_i32_0 = arith.constant 0 : i32
    %c0_i32_1 = arith.constant 0 : i32
    return %c0_i32, %c0_i32_0 : i32, i32
  }
  func.func @transform_18(%arg0: i32) -> (i32, i32) {
    %c0_i32 = arith.constant 0 : i32
    %c0_i32_0 = arith.constant 0 : i32
    %c0_i32_1 = arith.constant 0 : i32
    return %c0_i32, %c0_i32_0 : i32, i32
  }
  func.func @transform_19(%arg0: i32) -> (i32, i32) {
    %c0_i32 = arith.constant 0 : i32
    %c0_i32_0 = arith.constant 0 : i32
    %c0_i32_1 = arith.constant 0 : i32
    return %c0_i32, %c0_i32_0 : i32, i32
  }
  func.func @transform_20(%arg0: i32) -> (i32, i32) {
    %c0_i32 = arith.constant 0 : i32
    %c0_i32_0 = arith.constant 0 : i32
    %c0_i32_1 = arith.constant 0 : i32
    return %c0_i32, %c0_i32_0 : i32, i32
  }
  func.func @transform_21(%arg0: i32) -> (i32, i32) {
    %c0_i32 = arith.constant 0 : i32
    %c0_i32_0 = arith.constant 0 : i32
    %c0_i32_1 = arith.constant 0 : i32
    return %c0_i32, %c0_i32_0 : i32, i32
  }
  func.func @transform_22(%arg0: i32) -> (i32, i32) {
    %c0_i32 = arith.constant 0 : i32
    %c0_i32_0 = arith.constant 0 : i32
    %c0_i32_1 = arith.constant 0 : i32
    return %c0_i32, %c0_i32_0 : i32, i32
  }
  func.func @transform_23(%arg0: i32) -> (i32, i32) {
    %c0_i32 = arith.constant 0 : i32
    %c0_i32_0 = arith.constant 0 : i32
    %c0_i32_1 = arith.constant 0 : i32
    return %c0_i32, %c0_i32_0 : i32, i32
  }
  func.func @transform_24(%arg0: i32) -> (i32, i32) {
    %c0_i32 = arith.constant 0 : i32
    %c0_i32_0 = arith.constant 0 : i32
    %c0_i32_1 = arith.constant 0 : i32
    return %c0_i32, %c0_i32_0 : i32, i32
  }
  func.func @transform_25(%arg0: i32) -> (i32, i32) {
    %c0_i32 = arith.constant 0 : i32
    %c0_i32_0 = arith.constant 0 : i32
    %c0_i32_1 = arith.constant 0 : i32
    return %c0_i32, %c0_i32_0 : i32, i32
  }
  func.func @transform_26(%arg0: i32) -> (i32, i32) {
    %c0_i32 = arith.constant 0 : i32
    %c0_i32_0 = arith.constant 0 : i32
    %c0_i32_1 = arith.constant 0 : i32
    return %c0_i32, %c0_i32_0 : i32, i32
  }
  func.func @transform_27(%arg0: i32) -> (i32, i32) {
    %c0_i32 = arith.constant 0 : i32
    %c0_i32_0 = arith.constant 0 : i32
    %c0_i32_1 = arith.constant 0 : i32
    return %c0_i32, %c0_i32_0 : i32, i32
  }
  func.func @transform_28(%arg0: i32) -> (i32, i32) {
    %c0_i32 = arith.constant 0 : i32
    %c0_i32_0 = arith.constant 0 : i32
    %c0_i32_1 = arith.constant 0 : i32
    return %c0_i32, %c0_i32_0 : i32, i32
  }
  func.func @transform_29(%arg0: i32) -> (i32, i32) {
    %c0_i32 = arith.constant 0 : i32
    %c0_i32_0 = arith.constant 0 : i32
    %c0_i32_1 = arith.constant 0 : i32
    return %c0_i32, %c0_i32_0 : i32, i32
  }
  func.func @transform_30(%arg0: i32) -> (i32, i32) {
    %c0_i32 = arith.constant 0 : i32
    %c0_i32_0 = arith.constant 0 : i32
    %c0_i32_1 = arith.constant 0 : i32
    return %c0_i32, %c0_i32_0 : i32, i32
  }
  func.func @transform_31(%arg0: i32) -> (i32, i32) {
    %c0_i32 = arith.constant 0 : i32
    %c0_i32_0 = arith.constant 0 : i32
    %c0_i32_1 = arith.constant 0 : i32
    return %c0_i32, %c0_i32_0 : i32, i32
  }
}

</mosaic_0001>

<bundles_post_ra>
// kernel: seq2seq_forward.1
= control target key start
LH: loop header
LB: loop body
LE: loop exit
PB: predicated region body
PF: predicated region fallthrough
CT: control target
= control target key end

     0   :  { %s4610_s6 = smov 1   ;;  %s4611_s10 = smov 2   ;;  %s5910_s0 = inlined_call_operand.smem [shape: u32[32], index: -1, kind: input, shape index: {}] }
   0x1   :  { %s4690_s5 = sld [smem:[%s5910_s0]]   ;;  %s4612_s14 = smov 3  }
   0x2   :  { %s4695_s9 = sld [smem:[%s5910_s0 + %s4610_s6]]   ;;  %s4613_s18 = smov 4  }
   0x3   :  { %s4700_s13 = sld [smem:[%s5910_s0 + %s4611_s10]]   ;;  %s4614_s22 = smov 5  }
   0x4   :  { %s4705_s17 = sld [smem:[%s5910_s0 + %s4612_s14]]   ;;  %s4615_s26 = smov 6  }
   0x5   :  { %s4710_s21 = sld [smem:[%s5910_s0 + %s4613_s18]]   ;;  %s4616_s30 = smov 7  }
   0x6   :  { %s4715_s25 = sld [smem:[%s5910_s0 + %s4614_s22]]   ;;  %s4617_s4 = smov 8  }
   0x7   :  { %s4720_s29 = sld [smem:[%s5910_s0 + %s4615_s26]]   ;;  %s4618_s10 = smov 9  }
   0x8   :  { %5918 = sst [smem:[#allocation36_spill]] %s4695_s9  ;;  %s4619_s15 = smov 10  }
   0x9   :  { %s4725_s3 = sld [smem:[%s5910_s0 + %s4616_s30]]   ;;  %s4620_s20 = smov 11  }
   0xa   :  { %5919 = sst [smem:[#allocation37_spill]] %s4705_s17  ;;  %s4621_s26 = smov 12  }
   0xb   :  { %5920 = sst [smem:[#allocation38_spill]] %s4710_s21  ;;  %s4622_s1 = smov 13  }
   0xc   :  { %s4730_s8 = sld [smem:[%s5910_s0 + %s4617_s4]]   ;;  %s4623_s7 = smov 14  }
   0xd   :  { %5921 = sst [smem:[#allocation39_spill]] %s4720_s29  ;;  %s4625_s22 = smov 16  }
   0xe   :  { %s4735_s14 = sld [smem:[%s5910_s0 + %s4618_s10]]   ;;  %s4626_s28 = smov 17  }
   0xf   :  { %s4740_s19 = sld [smem:[%s5910_s0 + %s4619_s15]]   ;;  %s4624_s15 = smov 15  }
  0x10   :  { %s4745_s24 = sld [smem:[%s5910_s0 + %s4620_s20]]  }
  0x11   :  { %s4750_s30 = sld [smem:[%s5910_s0 + %s4621_s26]]  }
  0x12   :  { %5922 = sst [smem:[#allocation40_spill]] %s4730_s8 }
  0x13   :  { %s4755_s6 = sld [smem:[%s5910_s0 + %s4622_s1]]  }
  0x14   :  { %s4760_s12 = sld [smem:[%s5910_s0 + %s4623_s7]]   ;;  %s4627_s7 = smov 18  }
  0x15   :  { %s4765_s20 = sld [smem:[%s5910_s0 + %s4624_s15]]   ;;  %s4628_s15 = smov 19  }
  0x16   :  { %s4770_s27 = sld [smem:[%s5910_s0 + %s4625_s22]]   ;;  %s4629_s22 = smov 20  }
  0x17   :  { %s4775_s4 = sld [smem:[%s5910_s0 + %s4626_s28]]   ;;  %s4630_s28 = smov 21  }
  0x18   :  { %s4780_s21 = sld [smem:[%s5910_s0 + %s4627_s7]]   ;;  %s4631_s7 = smov 22  }
  0x19   :  { %s4785_s17 = sld [smem:[%s5910_s0 + %s4628_s15]]   ;;  %s4632_s15 = smov 23  }
  0x1a   :  { %s4800_s29 = sld [smem:[%s5910_s0 + %s4631_s7]]   ;;  %s4635_s7 = smov 26  }
  0x1b   :  { %5923 = sst [smem:[#allocation41_spill]] %s4765_s20 }
  0x1c   :  { %s4790_s20 = sld [smem:[%s5910_s0 + %s4629_s22]]   ;;  %s4633_s22 = smov 24  }
  0x1d   :  { %5924 = sst [smem:[#allocation42_spill]] %s4775_s4 }
  0x1e   :  { %s4795_s4 = sld [smem:[%s5910_s0 + %s4630_s28]]   ;;  %s4634_s28 = smov 25  }
  0x1f   :  { %5925 = sst [smem:[#allocation43_spill]] %s4785_s17 }
  0x20   :  { %5928 = sst [smem:[#allocation46_spill]] %s4800_s29 }
  0x21   :  { %s4805_s17 = sld [smem:[%s5910_s0 + %s4632_s15]]   ;;  %s4636_s15 = smov 27  }
  0x22   :  { %5926 = sst [smem:[#allocation44_spill]] %s4790_s20 }
  0x23   :  { %s4810_s20 = sld [smem:[%s5910_s0 + %s4633_s22]]   ;;  %s4637_s22 = smov 28  }
  0x24   :  { %5927 = sst [smem:[#allocation45_spill]] %s4795_s4 }
  0x25   :  { %s4815_s4 = sld [smem:[%s5910_s0 + %s4634_s28]]   ;;  %s4638_s28 = smov 29  }
  0x26   :  { %s4820_s29 = sld [smem:[%s5910_s0 + %s4635_s7]]   ;;  %s4639_s7 = smov 30  }
  0x27   :  { %5929 = sst [smem:[#allocation47_spill]] %s4805_s17 }
  0x28   :  { %s4825_s17 = sld [smem:[%s5910_s0 + %s4636_s15]]   ;;  %s4640_s15 = smov 31  }
  0x29   :  { %s4830_s9 = sld [smem:[%s5910_s0 + %s4637_s22]]  }
  0x2a   :  { %s4835_s8 = sld [smem:[%s5910_s0 + %s4638_s28]]  }
  0x2c   :  { %5930 = sst [smem:[#allocation48_spill]] %s4820_s29 }
  0x2d   :  { %s4840_s29 = sld [smem:[%s5910_s0 + %s4639_s7]]  }
  0x2e   :  { %5931 = sst [smem:[#allocation49_spill]] %s4825_s17 }
  0x2f   :  { %s4845_s17 = sld [smem:[%s5910_s0 + %s4640_s15]]  }
  0x30   :  { %69 = vsyncpa [#allocation7], 0 }
  0x31   :  { %70 = vsyncpa [#allocation10], 0 }
  0x32   :  { %71 = vsyncpa [#allocation13], 0 }
  0x33   :  { %72 = vsyncpa [#allocation16], 0 }
  0x34   :  { %73 = vsyncpa [#allocation19], 0 }
  0x35   :  { %74 = vsyncpa [#allocation22], 0 }
  0x36   :  { %75 = vsyncpa [#allocation8], 0  ;;  %s108_s22 = sshll.u32 %s4735_s14, 4  ;;  %s109_s22 = int_to_ptr.hbm [resolvable:$true] %s108_s22 }
  0x37   :  { %76 = vsyncpa [#allocation26], 0  ;;  %s4641_s23 = smov [#allocation9]   ;;  %s132_s28 = sshll.u32 %s4745_s24, 4  ;;  %s133_s28 = int_to_ptr.hbm [resolvable:$true] %s132_s28 }
  0x38   :  { %s110_s26 = sshll.u32 %s4641_s23, 4  ;;  %s4258_s0 = sshra.s32 %s109_s22, 4  ;;  %s111_s26 = int_to_ptr.vmem [resolvable:$true] %s110_s26  ;;  %s4259_s0 = int_to_ptr.hbm [resolvable:$true] %s4258_s0 }
  0x39   :  { %s4260_s1 = scalar_lea.hbm %s4259_s0, 16  ;;  %s4262_s2 = scalar_lea.hbm %s4735_s14, 16 }
  0x3a   :  { %p4261_p0 = scmp.ne.s32.totalorder %s4259_s0, %s4260_s1  ;;  %p4263_p1 = scmp.lt.s32.totalorder %s4259_s0, %s4735_s14 }
  0x3b   :  { %p4264_p2 = scmp.lt.s32.totalorder %s4262_s2, %s4260_s1 }
  0x3d   :  { %p4265_p3 = por %p4264_p2, %p4263_p1 }
  0x3f   :  { %p4266_p4 = pnand %p4265_p3, %p4261_p0 }
  0x41   :  { %4269 = shalt.err (!%p4266_p4)
}
  0x42   :  { %s4642_s7 = smov 128   ;;  %s4643_s10 = smov 8  }
  0x43   :  { %116 = dma.hbm_to_vmem [thread:$0]  %s109_s22, 256, %s111_s26, [#allocation10], %s4642_s7, %s4642_s7, %s4643_s10  }
  0x44   :  { %s4644_s11 = smov [#allocation12]   ;;  %s156_s16 = sshll.u32 %s4755_s6, 4  ;;  %s4855_s16 = int_to_ptr.hbm [resolvable:$true] %s156_s16 }
  0x45   :  { %s134_s15 = sshll.u32 %s4644_s11, 4  ;;  %s4282_s14 = sshra.s32 %s133_s28, 4  ;;  %s135_s15 = int_to_ptr.vmem [resolvable:$true] %s134_s15  ;;  %s4283_s14 = int_to_ptr.hbm [resolvable:$true] %s4282_s14 }
  0x46   :  { %s4284_s18 = scalar_lea.hbm %s4283_s14, 16  ;;  %s4286_s23 = scalar_lea.hbm %s4745_s24, 16 }
  0x47   :  { %p4285_p5 = scmp.ne.s32.totalorder %s4283_s14, %s4284_s18  ;;  %p4287_p6 = scmp.lt.s32.totalorder %s4283_s14, %s4745_s24 }
  0x48   :  { %p4288_p7 = scmp.lt.s32.totalorder %s4286_s23, %s4284_s18 }
  0x4a   :  { %p4289_p8 = por %p4288_p7, %p4287_p6 }
  0x4c   :  { %p4290_p9 = pnand %p4289_p8, %p4285_p5 }
  0x4e   :  { %4293 = shalt.err (!%p4290_p9)
}
  0x4f   :  { %140 = dma.hbm_to_vmem [thread:$0]  %s133_s28, 256, %s135_s15, [#allocation13], %s4642_s7, %s4642_s7, %s4643_s10  }
  0x50   :  { %s183_s22 = sshll.u32 %s4770_s27, 4  ;;  %s4645_s26 = smov [#allocation15]   ;;  %s184_s22 = int_to_ptr.hbm [resolvable:$true] %s183_s22 }
  0x51   :  { %s158_s0 = sshll.u32 %s4645_s26, 4  ;;  %s4306_s1 = sshra.s32 %s4855_s16, 4  ;;  %s159_s0 = int_to_ptr.vmem [resolvable:$true] %s158_s0  ;;  %s4307_s1 = int_to_ptr.hbm [resolvable:$true] %s4306_s1 }
  0x52   :  { %s4308_s24 = scalar_lea.hbm %s4307_s1, 24  ;;  %s4310_s2 = scalar_lea.hbm %s4755_s6, 24 }
  0x53   :  { %p4309_p10 = scmp.ne.s32.totalorder %s4307_s1, %s4308_s24  ;;  %p4311_p11 = scmp.lt.s32.totalorder %s4307_s1, %s4755_s6 }
  0x54   :  { %p4312_p12 = scmp.lt.s32.totalorder %s4310_s2, %s4308_s24 }
  0x56   :  { %p4313_p13 = por %p4312_p12, %p4311_p11 }
  0x58   :  { %p4314_p0 = pnand %p4313_p13, %p4309_p10 }
  0x5a   :  { %4317 = shalt.err (!%p4314_p0)
}
  0x5b   :  { %164 = dma.hbm_to_vmem [thread:$0]  %s4855_s16, 384, %s159_s0, [#allocation16], %s4642_s7, %s4642_s7, %s4643_s10  }
  0x5c   :  { %s4646_s28 = smov [#allocation18]   ;;  %s216_s15 = sshll.u32 %s4810_s20, 4  ;;  %s4871_s15 = int_to_ptr.hbm [resolvable:$true] %s216_s15 }
  0x5d   :  { %s185_s11 = sshll.u32 %s4646_s28, 4  ;;  %s4330_s14 = sshra.s32 %s184_s22, 4  ;;  %s186_s11 = int_to_ptr.vmem [resolvable:$true] %s185_s11  ;;  %s4331_s14 = int_to_ptr.hbm [resolvable:$true] %s4330_s14 }
  0x5e   :  { %s4332_s6 = scalar_lea.hbm %s4331_s14, 1  ;;  %s4334_s18 = scalar_lea.hbm %s4770_s27, 1 }
  0x5f   :  { %p4333_p1 = scmp.ne.s32.totalorder %s4331_s14, %s4332_s6  ;;  %p4335_p2 = scmp.lt.s32.totalorder %s4331_s14, %s4770_s27 }
  0x60   :  { %p4336_p3 = scmp.lt.s32.totalorder %s4334_s18, %s4332_s6 }
  0x62   :  { %p4337_p4 = por %p4336_p3, %p4335_p2 }
  0x64   :  { %p4338_p5 = pnand %p4337_p4, %p4333_p1 }
  0x66   :  { %4341 = shalt.err (!%p4338_p5)
}
  0x67   :  { %188 = dma.hbm_to_vmem [thread:$0]  %s184_s22, 16, %s186_s11, [#allocation19]  }
  0x68   :  { %s86_s16 = sshll.u32 %s4700_s13, 4  ;;  %s4647_s23 = smov [#allocation21]   ;;  %s87_s16 = int_to_ptr.hbm [resolvable:$true] %s86_s16 }
  0x69   :  { %s218_s26 = sshll.u32 %s4647_s23, 4  ;;  %s4354_s0 = sshra.s32 %s4871_s15, 4  ;;  %s219_s26 = int_to_ptr.vmem [resolvable:$true] %s218_s26  ;;  %s4355_s0 = int_to_ptr.hbm [resolvable:$true] %s4354_s0 }
  0x6a   :  { %s4356_s1 = scalar_lea.hbm %s4355_s0, 32  ;;  %s4358_s24 = scalar_lea.hbm %s4810_s20, 32 }
  0x6b   :  { %p4357_p6 = scmp.ne.s32.totalorder %s4355_s0, %s4356_s1  ;;  %p4359_p7 = scmp.lt.s32.totalorder %s4355_s0, %s4810_s20 }
  0x6c   :  { %p4360_p8 = scmp.lt.s32.totalorder %s4358_s24, %s4356_s1 }
  0x6e   :  { %p4361_p9 = por %p4360_p8, %p4359_p7 }
  0x70   :  { %p4362_p10 = pnand %p4361_p9, %p4357_p6 }
  0x72   :  { %4365 = shalt.err (!%p4362_p10)
}
  0x73   :  { %224 = dma.hbm_to_vmem [thread:$0]  %s4871_s15, 512, %s219_s26, [#allocation22], %s4642_s7, %s4642_s7, %s4643_s10  }
  0x74   :  { %s4648_s27 = smov [#allocation6]   ;;  %s122_s2 = sshll.u32 %s4740_s19, 4  ;;  %s123_s2 = int_to_ptr.hbm [resolvable:$true] %s122_s2 }
  0x75   :  { %s88_s22 = sshll.u32 %s4648_s27, 4  ;;  %s4378_s28 = sshra.s32 %s87_s16, 4  ;;  %s89_s22 = int_to_ptr.vmem [resolvable:$true] %s88_s22  ;;  %s4379_s28 = int_to_ptr.hbm [resolvable:$true] %s4378_s28 }
  0x76   :  { %s4380_s20 = scalar_lea.hbm %s4379_s28, 2  ;;  %s4382_s11 = scalar_lea.hbm %s4700_s13, 2 }
  0x77   :  { %p4381_p11 = scmp.ne.s32.totalorder %s4379_s28, %s4380_s20  ;;  %p4383_p12 = scmp.lt.s32.totalorder %s4379_s28, %s4700_s13 }
  0x78   :  { %p4384_p13 = scmp.lt.s32.totalorder %s4382_s11, %s4380_s20 }
  0x7a   :  { %p4385_p0 = por %p4384_p13, %p4383_p12 }
  0x7c   :  { %p4386_p1 = pnand %p4385_p0, %p4381_p11 }
  0x7e   :  { %4389 = shalt.err (!%p4386_p1)
}
  0x7f   :  { %91 = dma.hbm_to_vmem [thread:$0]  %s87_s16, 32, %s89_s22, [#allocation7]  }
  0x80   :  { %s146_s15 = sshll.u32 %s4750_s30, 4  ;;  %s4649_s14 = smov [#allocation11]   ;;  %s147_s15 = int_to_ptr.hbm [resolvable:$true] %s146_s15 }
  0x81   :  { %s124_s6 = sshll.u32 %s4649_s14, 4  ;;  %s4402_s18 = sshra.s32 %s123_s2, 4  ;;  %s125_s6 = int_to_ptr.vmem [resolvable:$true] %s124_s6  ;;  %s4403_s18 = int_to_ptr.hbm [resolvable:$true] %s4402_s18 }
  0x82   :  { %s4404_s23 = scalar_lea.hbm %s4403_s18, 1  ;;  %s4406_s26 = scalar_lea.hbm %s4740_s19, 1 }
  0x83   :  { %p4405_p2 = scmp.ne.s32.totalorder %s4403_s18, %s4404_s23  ;;  %p4407_p3 = scmp.lt.s32.totalorder %s4403_s18, %s4740_s19 }
  0x84   :  { %p4408_p4 = scmp.lt.s32.totalorder %s4406_s26, %s4404_s23 }
  0x86   :  { %p4409_p5 = por %p4408_p4, %p4407_p3 }
  0x88   :  { %p4410_p6 = pnand %p4409_p5, %p4405_p2 }
  0x8a   :  { %4413 = shalt.err (!%p4410_p6)
}
  0x8b   :  { %127 = dma.hbm_to_vmem [thread:$0]  %s123_s2, 16, %s125_s6, [#allocation10]  }
  0x8c   :  { %s4650_s13 = smov [#allocation14]   ;;  %s170_s0 = sshll.u32 %s4760_s12, 4  ;;  %s171_s0 = int_to_ptr.hbm [resolvable:$true] %s170_s0 }
  0x8d   :  { %s148_s16 = sshll.u32 %s4650_s13, 4  ;;  %s4426_s1 = sshra.s32 %s147_s15, 4  ;;  %s149_s16 = int_to_ptr.vmem [resolvable:$true] %s148_s16  ;;  %s4427_s1 = int_to_ptr.hbm [resolvable:$true] %s4426_s1 }
  0x8e   :  { %s4428_s24 = scalar_lea.hbm %s4427_s1, 1  ;;  %s4430_s27 = scalar_lea.hbm %s4750_s30, 1 }
  0x8f   :  { %p4429_p7 = scmp.ne.s32.totalorder %s4427_s1, %s4428_s24  ;;  %p4431_p8 = scmp.lt.s32.totalorder %s4427_s1, %s4750_s30 }
  0x90   :  { %p4432_p9 = scmp.lt.s32.totalorder %s4430_s27, %s4428_s24 }
  0x92   :  { %p4433_p10 = por %p4432_p9, %p4431_p8 }
  0x94   :  { %p4434_p11 = pnand %p4433_p10, %p4429_p7 }
  0x96   :  { %4437 = shalt.err (!%p4434_p11)
}
  0x97   :  { %151 = dma.hbm_to_vmem [thread:$0]  %s147_s15, 16, %s149_s16, [#allocation13]  }
  0x98   :  { %s196_s19 = sshll.u32 %s4780_s21, 4  ;;  %s4651_s22 = smov [#allocation17]   ;;  %s197_s19 = int_to_ptr.hbm [resolvable:$true] %s196_s19 }
  0x99   :  { %s172_s2 = sshll.u32 %s4651_s22, 4  ;;  %s4450_s28 = sshra.s32 %s171_s0, 4  ;;  %s173_s2 = int_to_ptr.vmem [resolvable:$true] %s172_s2  ;;  %s4451_s28 = int_to_ptr.hbm [resolvable:$true] %s4450_s28 }
  0x9a   :  { %s4452_s20 = scalar_lea.hbm %s4451_s28, 1  ;;  %s4454_s11 = scalar_lea.hbm %s4760_s12, 1 }
  0x9b   :  { %p4453_p12 = scmp.ne.s32.totalorder %s4451_s28, %s4452_s20  ;;  %p4455_p13 = scmp.lt.s32.totalorder %s4451_s28, %s4760_s12 }
  0x9c   :  { %p4456_p0 = scmp.lt.s32.totalorder %s4454_s11, %s4452_s20 }
  0x9e   :  { %p4457_p1 = por %p4456_p0, %p4455_p13 }
  0xa0   :  { %p4458_p2 = pnand %p4457_p1, %p4453_p12 }
  0xa2   :  { %4461 = shalt.err (!%p4458_p2)
}
  0xa3   :  { %175 = dma.hbm_to_vmem [thread:$0]  %s171_s0, 16, %s173_s2, [#allocation16]  }
  0xa4   :  { %s4652_s30 = smov [#allocation20]   ;;  %s229_s14 = sshll.u32 %s4815_s4, 4  ;;  %s230_s14 = int_to_ptr.hbm [resolvable:$true] %s229_s14 }
  0xa5   :  { %s198_s15 = sshll.u32 %s4652_s30, 4  ;;  %s4474_s6 = sshra.s32 %s197_s19, 4  ;;  %s199_s15 = int_to_ptr.vmem [resolvable:$true] %s198_s15  ;;  %s4475_s6 = int_to_ptr.hbm [resolvable:$true] %s4474_s6 }
  0xa6   :  { %s4476_s18 = scalar_lea.hbm %s4475_s6, 2  ;;  %s4478_s23 = scalar_lea.hbm %s4780_s21, 2 }
  0xa7   :  { %p4477_p3 = scmp.ne.s32.totalorder %s4475_s6, %s4476_s18  ;;  %p4479_p4 = scmp.lt.s32.totalorder %s4475_s6, %s4780_s21 }
  0xa8   :  { %p4480_p5 = scmp.lt.s32.totalorder %s4478_s23, %s4476_s18 }
  0xaa   :  { %p4481_p6 = por %p4480_p5, %p4479_p4 }
  0xac   :  { %p4482_p7 = pnand %p4481_p6, %p4477_p3 }
  0xae   :  { %4485 = shalt.err (!%p4482_p7)
}
  0xaf   :  { %201 = dma.hbm_to_vmem [thread:$0]  %s197_s19, 32, %s199_s15, [#allocation19]  }
  0xb0   :  { %s4653_s12 = smov [#allocation23]   ;;  %s4498_s13 = sshra.s32 %s230_s14, 4  ;;  %s4499_s13 = int_to_ptr.hbm [resolvable:$true] %s4498_s13 }
  0xb1   :  { %s231_s26 = sshll.u32 %s4653_s12, 4  ;;  %s4500_s16 = scalar_lea.hbm %s4499_s13, 32  ;;  %s232_s26 = int_to_ptr.vmem [resolvable:$true] %s231_s26 }
  0xb2   :  { %p4501_p8 = scmp.ne.s32.totalorder %s4499_s13, %s4500_s16  ;;  %s4502_s0 = scalar_lea.hbm %s4815_s4, 32 }
  0xb3   :  { %p4503_p9 = scmp.lt.s32.totalorder %s4499_s13, %s4815_s4  ;;  %p4504_p10 = scmp.lt.s32.totalorder %s4502_s0, %s4500_s16 }
  0xb5   :  { %p4505_p11 = por %p4504_p10, %p4503_p9 }
  0xb7   :  { %p4506_p12 = pnand %p4505_p11, %p4501_p8 }
  0xb9   :  { %4509 = shalt.err (!%p4506_p12)
}
  0xba   :  { %237 = dma.hbm_to_vmem [thread:$0]  %s230_s14, 512, %s232_s26, [#allocation22], %s4642_s7, %s4642_s7, %s4643_s10  }
  0xbb   :  { %4594 = dma.done.wait [#allocation7], 32  }
  0xbc   :  { %4595 = vsyncadd [#allocation7], 4294967264 }
  0xbd   :  { %4596 = dma.done.wait [#allocation10], 272  }
  0xbe   :  { %4597 = vsyncadd [#allocation10], 4294967024 }
  0xbf   :  { %4598 = dma.done.wait [#allocation13], 272  }
  0xc0   :  { %4599 = vsyncadd [#allocation13], 4294967024 }
  0xc1   :  { %4600 = dma.done.wait [#allocation16], 400  }
  0xc2   :  { %4601 = vsyncadd [#allocation16], 4294966896 }
  0xc3   :  { %4602 = dma.done.wait [#allocation19], 48  }
  0xc4   :  { %4603 = vsyncadd [#allocation19], 4294967248 }
  0xc5   :  { %4604 = dma.done.wait [#allocation22], 1024  }
  0xc6   :  { %4605 = vsyncadd [#allocation22], 4294966272  ;;  %v4654_v0 = vmov 0   ;;  %v287_v1 = vld [vmem:[%s4690_s5] sm:$0xff]  ;;  %v308_v2 = vld [vmem:[%s4715_s25 + $0x18] sm:$0xff]  ;;  %s4655_s21 = smov 32   ;;  %v285_v13 = vlaneseq }
  0xc7   :  { %4032 = vset.pattern.permute.xlu0 %v4654_v0  ;;  %4033 = vset.pattern.permute.xlu2 %v4654_v0  ;;  %v307_v3 = vld [vmem:[%s4715_s25 + $0x10] sm:$0xff]  ;;  %v306_v4 = vld [vmem:[%s4715_s25 + $0x8] sm:$0xff]  ;;  %v4910_v6 = vld [vmem:[#allocation6] sm:$0x3]  ;;  %v4656_v12 = vmov 0.0   ;;  %vm309_vm0 = vcmask 261120  }
  0xc8   :  { %291 = vperm.xlu0 %4032, %v287_v1   ;;  %331 = vmatpush.msra.mxu0 %v308_v2  ;;  %v4055_v5 = vld [vmem:[#allocation11] ss:$0 sm:$0xff]  ;;  %v4913_v7 = vsub.f32 1.0, %v4910_v6  ;;  %v305_v8 = vld [vmem:[%s4715_s25] sm:$0xff]  ;;  %v4929_v14 = vand.u32 127, %v285_v13  ;;  %s5932_s25 = sld [smem:[#allocation40_spill]] }
  0xc9   :  { %v4917_v9 = vld [vmem:[#allocation9 + $0x8] sm:$0xff]  ;;  %v4919_v10 = vld [vmem:[#allocation9] sm:$0xff]  ;;  %s4657_s4 = smov 96   ;;  %vm396_vm2 = vcmask 130048   ;;  %v4659_v55 = vmov 1   ;;  %s4661_s7 = smov 16  }
  0xca   :  { %332 = vmatpush.msra.mxu0 %v307_v3  ;;  %v391_v11 = vld [vmem:[%s4725_s3 + $0x8] sm:$0xff]  ;;  %455 = vmatpush.msra.mxu3 %v4917_v9  ;;  %v390_v17 = vld [vmem:[%s4725_s3] sm:$0xff]  ;;  %s4658_s3 = smov 112   ;;  %s5933_s10 = sld [smem:[#allocation36_spill]] }
  0xcb   :  { %420 = vmatpush.msra.mxu2 %v391_v11  ;;  %s5934_s1 = sld [smem:[#allocation39_spill]]  ;;  %s4668_s24 = smov 64  }
  0xcc   :  { %333 = vmatpush.msra.mxu0 %v306_v4  ;;  %456 = vmatpush.msra.mxu3 %v4919_v10  ;;  %s5935_s27 = sld [smem:[#allocation41_spill]]  ;;  %s4671_s22 = smov 80  }
  0xcd   :  { %457 = vmatmul.f32.vlgmr.msra.gmra.mxu3 %v4656_v12  ;;  %421 = vmatpush.msra.mxu2 %v390_v17  ;;  %s5936_s19 = sld [smem:[#allocation42_spill]]  ;;  %s4674_s18 = smov 10  }
  0xce   :  { %334 = vmatpush.msra.mxu0 %v305_v8  ;;  %540 = vmatpush.msrb.mxu3 %v4917_v9  ;;  %v4945_v22 = vld [vmem:[%s5932_s25] ss:$0 sm:$0xff]  ;;  %s5937_s2 = sld [smem:[#allocation37_spill]]  ;;  %s4675_s23 = smov 20  }
  0xcf   :  { %806 = vmatpush.msrb.mxu2 %v4917_v9  ;;  %s5938_s28 = sld [smem:[#allocation43_spill]]  ;;  %s3781_s12 = sshll.u32 %s4840_s29, 4  ;;  %s3782_s12 = int_to_ptr.hbm [resolvable:$true] %s3781_s12 }
  0xd0   :  { %483 = vrot.lane.b32.xlu0 %v4055_v5, %s4655_s21  ;;  %541 = vmatpush.msrb.mxu3 %v4919_v10  ;;  %s5939_s20 = sld [smem:[#allocation45_spill]]  ;;  %s4676_s26 = smov [#allocation25]  }
  0xd1   :  { %807 = vmatpush.msrb.mxu2 %v4919_v10  ;;  %s5940_s11 = sld [smem:[#allocation46_spill]]  ;;  %s3779_s13 = sshll.u32 %s4676_s26, 4  ;;  %s3780_s13 = int_to_ptr.vmem [resolvable:$true] %s3779_s13 }
  0xd2   :  { %630 = vmatpush.msra.mxu3 %v4917_v9  ;;  %s5941_s30 = sld [smem:[#allocation38_spill]]  ;;  %s4534_s16 = sshra.s32 %s3782_s12, 4  ;;  %s4535_s16 = int_to_ptr.hbm [resolvable:$true] %s4534_s16 }
  0xd3   :  { %s5942_s15 = sld [smem:[#allocation44_spill]]  ;;  %s4536_s0 = scalar_lea.hbm %s4535_s16, 2 }
  0xd4   :  { %631 = vmatpush.msra.mxu3 %v4919_v10  ;;  %s5943_s14 = sld [smem:[#allocation47_spill]]  ;;  %p4537_p13 = scmp.ne.s32.totalorder %s4535_s16, %s4536_s0 }
  0xd5   :  { %s5944_s6 = sld [smem:[#allocation48_spill]]  ;;  %s4538_s25 = scalar_lea.hbm %s4840_s29, 2 }
  0xd6   :  { %p4539_p0 = scmp.lt.s32.totalorder %s4535_s16, %s4840_s29  ;;  %p4540_p1 = scmp.lt.s32.totalorder %s4538_s25, %s4536_s0 }
  0xd8   :  { %515 = vperm.xlu0 %4032, %v4913_v7   ;;  %p4541_p2 = por %p4540_p1, %p4539_p0 }
  0xda   :  { %p4542_p3 = pnand %p4541_p2, %p4537_p13 }
  0xe0   :  { %4035 = vset.pattern.permute.xlu0 %v4659_v55 }
 0x13a   :  { %v292_v15 = vpop.permute.xlu0 %291 }
 0x13b   :  { %vm299_vm1 = vcmp.eq.s32.totalorder %v292_v15, %v4929_v14 }
 0x13c   :  { %v302_v16 = vsel %vm299_vm1, 1.0, %v4656_v12 }
 0x13d   :  { %3851 = vmatmul.msk.f32.vlgmr.msra.gmra.mxu0 %vm309_vm0, %v302_v16 }
 0x142   :  { %v4937_v18 = vpop.permute.xlu0 %483 }
 0x14a   :  { %v4955_v48 = vpop.permute.xlu0 %515 }
 0x14b   :  { %v518_v51 = vmul.f32 0.0, %v4955_v48 }
 0x150   :  { %v458_v19 = vpop.f32.mrf.mxu3 }
 0x151   :  { %v486_v20 = vadd.f32 %v4937_v18, %v458_v19 }
 0x153   :  { %488 = vrot.lane.b32.xlu1 %v486_v20, %s4657_s4 }
 0x1ba   :  { %v336_v21 = vpop.f32.mrf.mxu0 }
 0x1bb   :  { %3856 = vmatmul.msk.f32.vlgmr.msra.gmra.mxu2 %vm396_vm2, %v336_v21 }
 0x1bc   :  { %980 = vmatpush.msra.mxu2 %v4917_v9 }
 0x1be   :  { %981 = vmatpush.msra.mxu2 %v4919_v10 }
 0x1c5   :  { %v489_v37 = vpop.permute.xlu1 %488 }
 0x23e   :  { %v423_v23 = vpop.f32.mrf.mxu2 }
 0x23f   :  { %v4948_v24 = vadd.f32 %v4945_v22, %v423_v23 }
 0x241   :  { %v461_v25 = vadd.f32 %v458_v19, %v4948_v24 }
 0x243   :  { %v3859_v26 = vmul.f32 -1.442695, %v461_v25 }
 0x245   :  { %4063 = vpow2.f32 %v3859_v26 }
 0x24b   :  { %v4064_v27 = vpop.eup %4063 }
 0x24c   :  { %v465_v28 = vadd.f32 1.0, %v4064_v27 }
 0x24e   :  { %4065 = vrcp.f32 %v465_v28  ;;  %v477_v32 = vand.u32 2147483648, %v465_v28  ;;  %v475_v34 = vand.u32 2147483647, %v465_v28  ;;  %vm471_vm4 = vweird.f32 %v465_v28 }
 0x250   :  { %v478_v36 = vor.u32 1.1754944e-38, %v477_v32  ;;  %vm476_vm6 = vcmp.eq.f32.partialorder %v475_v34, 8.507059e+37 }
 0x254   :  { %v4066_v29 = vpop.eup %4065 }
 0x255   :  { %v467_v30 = vmul.f32 %v4066_v29, %v465_v28  ;;  %vm472_vm3 = vweird.f32 %v4066_v29 }
 0x256   :  { %vm473_vm5 = vmor %vm471_vm4, %vm472_vm3 }
 0x257   :  { %v468_v31 = vsub.f32 1.0, %v467_v30 }
 0x259   :  { %v469_v33 = vmul.f32 %v4066_v29, %v468_v31 }
 0x25b   :  { %v470_v35 = vadd.f32 %v4066_v29, %v469_v33 }
 0x25d   :  { %v474_v38 = vsel %vm473_vm5, %v4066_v29, %v470_v35 }
 0x25e   :  { %v479_v39 = vsel %vm476_vm6, %v478_v36, %v474_v38 }
 0x25f   :  { %v491_v40 = vmul.f32 %v489_v37, %v479_v39  ;;  %v498_v45 = vsub.f32 1.0, %v479_v39  ;;  %v504_v47 = vmul.f32 0.0, %v479_v39  ;;  %v4660_v39 = vmov 2  }
 0x260   :  { %4037 = vset.pattern.permute.xlu1 %v4660_v39 }
 0x261   :  { %493 = vrot.lane.b32.xlu1 %v491_v40, %s4655_s21 }
 0x2d3   :  { %v494_v41 = vpop.permute.xlu1 %493 }
 0x2d4   :  { %v496_v42 = vadd.f32 %v494_v41, %v4948_v24 }
 0x2d6   :  { %4067 = vtanh.f32 %v496_v42 }
 0x2dc   :  { %v4068_v43 = vpop.eup %4067 }
 0x2dd   :  { %500 = vrot.lane.b32.xlu2 %v4068_v43, %s4658_s3 }
 0x2e5   :  { %508 = vperm.xlu2 %4033, %v4910_v6  }
 0x2ed   :  { %4034 = vset.pattern.permute.xlu2 %v4659_v55 }
 0x337   :  { %v501_v44 = vpop.permute.xlu2 %500 }
 0x338   :  { %v503_v46 = vmul.f32 %v501_v44, %v498_v45 }
 0x33a   :  { %v505_v49 = vadd.f32 %v504_v47, %v503_v46 }
 0x33f   :  { %v4957_v50 = vpop.permute.xlu2 %508 }
 0x340   :  { %v511_v52 = vmul.f32 %v4957_v50, %v505_v49 }
 0x342   :  { %v4961_v53 = vadd.f32 %v518_v51, %v511_v52 }
 0x344   :  { %522 = vrot.lane.b32.xlu1 %v4961_v53, %s4658_s3  ;;  %v588_v28 = vrot.slane %v4961_v53, 6 }
 0x3b6   :  { %v523_v54 = vpop.permute.xlu1 %522 }
 0x3b7   :  { %3860 = vmatmul.msk.f32.vlgmr.msrb.gmra.mxu3 %vm396_vm2, %v523_v54 }
 0x3b8   :  { %718 = vmatpush.msrb.mxu3 %v4917_v9 }
 0x3ba   :  { %719 = vmatpush.msrb.mxu3 %v4919_v10 }
 0x43a   :  { %v543_v56 = vpop.f32.mrf.mxu3 }
 0x43b   :  { %v569_v57 = vadd.f32 %v543_v56, %v4937_v18  ;;  %v547_v59 = vrot.slane %v543_v56, 6 }
 0x43d   :  { %v571_v58 = vrot.slane %v569_v57, 6  ;;  %v549_v60 = vadd.f32 %v547_v59, %v4948_v24 }
 0x43f   :  { %572 = vrot.lane.b32.xlu2 %v571_v58, %s4657_s4  ;;  %v3861_v61 = vmul.f32 -1.442695, %v549_v60 }
 0x441   :  { %4069 = vpow2.f32 %v3861_v61 }
 0x447   :  { %603 = vperm.xlu2 %4034, %v4913_v7   ;;  %v4070_v62 = vpop.eup %4069 }
 0x448   :  { %v553_v63 = vadd.f32 1.0, %v4070_v62 }
 0x44a   :  { %4071 = vrcp.f32 %v553_v63  ;;  %v565_v8 = vand.u32 2147483648, %v553_v63  ;;  %vm559_vm8 = vweird.f32 %v553_v63  ;;  %v563_v11 = vand.u32 2147483647, %v553_v63 }
 0x44c   :  { %v566_v15 = vor.u32 1.1754944e-38, %v565_v8  ;;  %vm564_vm10 = vcmp.eq.f32.partialorder %v563_v11, 8.507059e+37 }
 0x44f   :  { %4036 = vset.pattern.permute.xlu2 %v4660_v39 }
 0x450   :  { %v4072_v1 = vpop.eup %4071 }
 0x451   :  { %v555_v2 = vmul.f32 %v4072_v1, %v553_v63  ;;  %vm560_vm7 = vweird.f32 %v4072_v1 }
 0x452   :  { %vm561_vm9 = vmor %vm559_vm8, %vm560_vm7 }
 0x453   :  { %v556_v3 = vsub.f32 1.0, %v555_v2 }
 0x455   :  { %v557_v4 = vmul.f32 %v4072_v1, %v556_v3 }
 0x457   :  { %v558_v5 = vadd.f32 %v4072_v1, %v557_v4  ;;  %v289_v4 = vld [vmem:[%s4690_s5 + $0x10] sm:$0xf] }
 0x459   :  { %v562_v13 = vsel %vm561_vm9, %v4072_v1, %v558_v5 }
 0x45a   :  { %v567_v17 = vsel %vm564_vm10, %v566_v15, %v562_v13 }
 0x45b   :  { %v582_v27 = vsub.f32 1.0, %v567_v17  ;;  %v590_v31 = vmul.f32 %v588_v28, %v567_v17 }
 0x499   :  { %v573_v16 = vpop.permute.xlu2 %572 }
 0x49a   :  { %v575_v19 = vmul.f32 %v573_v16, %v567_v17 }
 0x49c   :  { %577 = vrot.lane.b32.xlu0 %v575_v19, %s4655_s21  ;;  %v4662_v19 = vmov 3  }
 0x4a1   :  { %v4973_v20 = vpop.permute.xlu2 %603 }
 0x4a2   :  { %v606_v21 = vmul.f32 %v4973_v20, %v4961_v53 }
 0x4a4   :  { %608 = vrot.lane.b32.xlu2 %v606_v21, %s4658_s3  ;;  %593 = vperm.xlu0 %4035, %v4910_v6  }
 0x4ac   :  { %4046 = vset.pattern.permute.xlu0 %v4654_v0 }
 0x4fe   :  { %v609_v37 = vpop.permute.xlu2 %608 }
 0x50e   :  { %v578_v23 = vpop.permute.xlu0 %577 }
 0x50f   :  { %v580_v25 = vadd.f32 %v578_v23, %v4948_v24 }
 0x511   :  { %4073 = vtanh.f32 %v580_v25 }
 0x516   :  { %v4984_v34 = vpop.permute.xlu0 %593 }
 0x517   :  { %v4074_v26 = vpop.eup %4073 }
 0x518   :  { %584 = vrot.lane.b32.xlu1 %v4074_v26, %s4658_s3 }
 0x58a   :  { %v585_v29 = vpop.permute.xlu1 %584 }
 0x58b   :  { %v587_v30 = vmul.f32 %v585_v29, %v582_v27 }
 0x58d   :  { %v591_v32 = vadd.f32 %v590_v31, %v587_v30  ;;  %v288_v30 = vld [vmem:[%s4690_s5 + $0x8] sm:$0xff]  ;;  %s4665_s5 = smov 48  }
 0x58f   :  { %v597_v33 = vrot.slane %v591_v32, 2 }
 0x591   :  { %598 = vrot.lane.b32.xlu1 %v597_v33, %s4658_s3 }
 0x603   :  { %v599_v35 = vpop.permute.xlu1 %598 }
 0x604   :  { %v601_v36 = vmul.f32 %v599_v35, %v4984_v34 }
 0x606   :  { %v4987_v38 = vadd.f32 %v609_v37, %v601_v36 }
 0x608   :  { %3862 = vmatmul.msk.f32.vlgmr.msra.gmra.mxu3 %vm396_vm2, %v4987_v38  ;;  %v678_v43 = vrot.slane %v4987_v38, 4 }
 0x609   :  { %890 = vmatpush.msra.mxu3 %v4917_v9 }
 0x60b   :  { %891 = vmatpush.msra.mxu3 %v4919_v10 }
 0x68b   :  { %v633_v40 = vpop.f32.mrf.mxu3 }
 0x68c   :  { %v659_v41 = vadd.f32 %v633_v40, %v4937_v18  ;;  %v637_v44 = vrot.slane %v633_v40, 4 }
 0x68e   :  { %v661_v42 = vrot.slane %v659_v41, 4  ;;  %v639_v45 = vadd.f32 %v637_v44, %v4948_v24 }
 0x690   :  { %662 = vrot.lane.b32.xlu1 %v661_v42, %s4657_s4  ;;  %v3863_v46 = vmul.f32 -1.442695, %v639_v45 }
 0x692   :  { %4075 = vpow2.f32 %v3863_v46 }
 0x698   :  { %679 = vrot.lane.b32.xlu1 %v678_v43, %s4661_s7  ;;  %v4076_v47 = vpop.eup %4075 }
 0x699   :  { %v643_v49 = vadd.f32 1.0, %v4076_v47 }
 0x69b   :  { %4077 = vrcp.f32 %v643_v49  ;;  %v655_v57 = vand.u32 2147483648, %v643_v49  ;;  %vm649_vm12 = vweird.f32 %v643_v49  ;;  %v653_v58 = vand.u32 2147483647, %v643_v49 }
 0x69d   :  { %v656_v60 = vor.u32 1.1754944e-38, %v655_v57  ;;  %vm654_vm14 = vcmp.eq.f32.partialorder %v653_v58, 8.507059e+37 }
 0x6a0   :  { %695 = vperm.xlu1 %4037, %v4913_v7  }
 0x6a1   :  { %v4078_v51 = vpop.eup %4077 }
 0x6a2   :  { %v645_v52 = vmul.f32 %v4078_v51, %v643_v49  ;;  %vm650_vm11 = vweird.f32 %v4078_v51 }
 0x6a3   :  { %vm651_vm13 = vmor %vm649_vm12, %vm650_vm11 }
 0x6a4   :  { %v646_v54 = vsub.f32 1.0, %v645_v52 }
 0x6a6   :  { %v647_v55 = vmul.f32 %v4078_v51, %v646_v54 }
 0x6a8   :  { %4039 = vset.pattern.permute.xlu1 %v4654_v0  ;;  %v648_v56 = vadd.f32 %v4078_v51, %v647_v55 }
 0x6a9   :  { %297 = vperm.xlu1 %4039, %v289_v4  }
 0x6aa   :  { %v652_v59 = vsel %vm651_vm13, %v4078_v51, %v648_v56 }
 0x6ab   :  { %v657_v62 = vsel %vm654_vm14, %v656_v60, %v652_v59 }
 0x6ac   :  { %v672_v8 = vsub.f32 1.0, %v657_v62 }
 0x6b1   :  { %4041 = vset.pattern.permute.xlu1 %v4662_v19 }
 0x702   :  { %v663_v61 = vpop.permute.xlu1 %662 }
 0x703   :  { %v665_v63 = vmul.f32 %v663_v61, %v657_v62 }
 0x705   :  { %667 = vrot.lane.b32.xlu2 %v665_v63, %s4655_s21 }
 0x70a   :  { %v680_v5 = vpop.permute.xlu1 %679 }
 0x70b   :  { %v682_v13 = vmul.f32 %v680_v5, %v657_v62 }
 0x70d   :  { %685 = vperm.xlu2 %4036, %v4910_v6  }
 0x712   :  { %v5007_v21 = vpop.permute.xlu1 %695 }
 0x713   :  { %v698_v26 = vmul.f32 %v5007_v21, %v4987_v38 }
 0x715   :  { %4038 = vset.pattern.permute.xlu2 %v4654_v0 }
 0x716   :  { %294 = vperm.xlu2 %4038, %v288_v30  }
 0x71b   :  { %v298_v58 = vpop.permute.xlu1 %297 }
 0x71c   :  { %vm301_vm6 = vcmp.eq.s32.totalorder %v298_v58, %v4929_v14 }
 0x71d   :  { %v304_v59 = vsel %vm301_vm6, 1.0, %v4656_v12 }
 0x71e   :  { %4040 = vset.pattern.permute.xlu2 %v4662_v19 }
 0x75f   :  { %v668_v1 = vpop.permute.xlu2 %667 }
 0x760   :  { %v670_v2 = vadd.f32 %v668_v1, %v4948_v24  ;;  %v4663_v1 = vmov 4  }
 0x762   :  { %4079 = vtanh.f32 %v670_v2 }
 0x767   :  { %v5009_v23 = vpop.permute.xlu2 %685 }
 0x768   :  { %v4080_v3 = vpop.eup %4079 }
 0x769   :  { %674 = vrot.lane.b32.xlu0 %v4080_v3, %s4658_s3 }
 0x770   :  { %v295_v41 = vpop.permute.xlu2 %294 }
 0x771   :  { %vm300_vm15 = vcmp.eq.s32.totalorder %v295_v41, %v4929_v14 }
 0x772   :  { %v303_v42 = vsel %vm300_vm15, 1.0, %v4656_v12 }
 0x773   :  { %3852 = vmatmul.msk.f32.gmra.mxu0 %vm309_vm0, %v303_v42 }
 0x77b   :  { %3853 = vmatmul.msk.f32.gmra.mxu0 %vm309_vm0, %v304_v59 }
 0x7db   :  { %v675_v11 = vpop.permute.xlu0 %674 }
 0x7dc   :  { %v677_v15 = vmul.f32 %v675_v11, %v672_v8 }
 0x7de   :  { %v683_v16 = vadd.f32 %v682_v13, %v677_v15 }
 0x7e0   :  { %v689_v17 = vrot.slane %v683_v16, 4 }
 0x7e2   :  { %690 = vrot.lane.b32.xlu0 %v689_v17, %s4658_s3 }
 0x7f0   :  { %v339_v62 = vpop.f32.mrf.mxu0 }
 0x7f1   :  { %3857 = vmatmul.msk.f32.gmra.mxu2 %vm396_vm2, %v339_v62 }
 0x7f8   :  { %v342_v2 = vpop.f32.mrf.mxu0 }
 0x7f9   :  { %3858 = vmatmul.msk.f32.gmra.mxu2 %vm396_vm2, %v342_v2 }
 0x854   :  { %v691_v25 = vpop.permute.xlu0 %690 }
 0x855   :  { %v693_v27 = vmul.f32 %v691_v25, %v5009_v23 }
 0x857   :  { %v5014_v28 = vadd.f32 %v698_v26, %v693_v27 }
 0x859   :  { %3864 = vmatmul.msk.f32.vlgmr.msrb.gmra.mxu3 %vm396_vm2, %v5014_v28  ;;  %v766_v29 = vrot.slane %v5014_v28, 2 }
 0x85a   :  { %1240 = vmatpush.msrb.mxu3 %v4917_v9 }
 0x85b   :  { %767 = vrot.lane.b32.xlu1 %v766_v29, %s4661_s7 }
 0x85c   :  { %1241 = vmatpush.msrb.mxu3 %v4919_v10 }
 0x863   :  { %783 = vperm.xlu1 %4041, %v4913_v7  }
 0x86b   :  { %4042 = vset.pattern.permute.xlu1 %v4663_v1 }
 0x86c   :  { %861 = vperm.xlu1 %4042, %v4913_v7  }
 0x874   :  { %856 = vperm.xlu1 %4042, %v4910_v6   ;;  %v426_v29 = vpop.f32.mrf.mxu2 }
 0x87c   :  { %v5055_v30 = vpop.f32.mrf.mxu2 }
 0x8cd   :  { %v768_v4 = vpop.permute.xlu1 %767 }
 0x8d5   :  { %v5042_v16 = vpop.permute.xlu1 %783 }
 0x8d6   :  { %v786_v25 = vmul.f32 %v5042_v16, %v5014_v28 }
 0x8dc   :  { %v721_v31 = vpop.f32.mrf.mxu3 }
 0x8dd   :  { %v747_v32 = vadd.f32 %v721_v31, %v4937_v18  ;;  %v725_v35 = vrot.slane %v721_v31, 2 }
 0x8df   :  { %v749_v33 = vrot.slane %v747_v32, 2  ;;  %v727_v36 = vadd.f32 %v725_v35, %v4948_v24 }
 0x8e1   :  { %750 = vrot.lane.b32.xlu0 %v749_v33, %s4657_s4  ;;  %v3865_v37 = vmul.f32 -1.442695, %v727_v36  ;;  %v5060_v33 = vadd.f32 %v4945_v22, %v426_v29 }
 0x8e3   :  { %4081 = vpow2.f32 %v3865_v37 }
 0x8e9   :  { %v4082_v39 = vpop.eup %4081 }
 0x8ea   :  { %v731_v40 = vadd.f32 1.0, %v4082_v39 }
 0x8ec   :  { %4083 = vrcp.f32 %v731_v40  ;;  %v743_v49 = vand.u32 2147483648, %v731_v40  ;;  %vm737_vm3 = vweird.f32 %v731_v40  ;;  %v741_v51 = vand.u32 2147483647, %v731_v40 }
 0x8ee   :  { %v744_v54 = vor.u32 1.1754944e-38, %v743_v49  ;;  %vm742_vm5 = vcmp.eq.f32.partialorder %v741_v51, 8.507059e+37 }
 0x8f2   :  { %v4084_v43 = vpop.eup %4083 }
 0x8f3   :  { %v733_v44 = vmul.f32 %v4084_v43, %v731_v40  ;;  %vm738_vm1 = vweird.f32 %v4084_v43 }
 0x8f4   :  { %vm739_vm4 = vmor %vm737_vm3, %vm738_vm1 }
 0x8f5   :  { %v734_v45 = vsub.f32 1.0, %v733_v44 }
 0x8f7   :  { %v735_v46 = vmul.f32 %v4084_v43, %v734_v45 }
 0x8f9   :  { %v736_v47 = vadd.f32 %v4084_v43, %v735_v46 }
 0x8fb   :  { %v740_v52 = vsel %vm739_vm4, %v4084_v43, %v736_v47 }
 0x8fc   :  { %v745_v56 = vsel %vm742_vm5, %v744_v54, %v740_v52 }
 0x8fd   :  { %v760_v3 = vsub.f32 1.0, %v745_v56  ;;  %v770_v8 = vmul.f32 %v768_v4, %v745_v56 }
 0x953   :  { %v751_v55 = vpop.permute.xlu0 %750 }
 0x954   :  { %v753_v57 = vmul.f32 %v751_v55, %v745_v56 }
 0x956   :  { %755 = vrot.lane.b32.xlu2 %v753_v57, %s4655_s21  ;;  %v5068_v57 = vpop.permute.xlu1 %861 }
 0x95e   :  { %773 = vperm.xlu2 %4040, %v4910_v6   ;;  %v5073_v2 = vpop.permute.xlu1 %856 }
 0x9b0   :  { %v756_v60 = vpop.permute.xlu2 %755 }
 0x9b1   :  { %v758_v61 = vadd.f32 %v756_v60, %v4948_v24 }
 0x9b3   :  { %4085 = vtanh.f32 %v758_v61 }
 0x9b8   :  { %v5044_v17 = vpop.permute.xlu2 %773 }
 0x9b9   :  { %v4086_v63 = vpop.eup %4085 }
 0x9ba   :  { %762 = vrot.lane.b32.xlu0 %v4086_v63, %s4658_s3 }
 0xa2c   :  { %v763_v5 = vpop.permute.xlu0 %762 }
 0xa2d   :  { %v765_v11 = vmul.f32 %v763_v5, %v760_v3 }
 0xa2f   :  { %v771_v13 = vadd.f32 %v770_v8, %v765_v11  ;;  %v4664_v11 = vmov 5  }
 0xa30   :  { %4043 = vset.pattern.permute.xlu1 %v4664_v11  ;;  %4044 = vset.pattern.permute.xlu2 %v4664_v11 }
 0xa31   :  { %v777_v15 = vrot.slane %v771_v13, 6 }
 0xa33   :  { %778 = vrot.lane.b32.xlu0 %v777_v15, %s4658_s3 }
 0xaa5   :  { %v779_v19 = vpop.permute.xlu0 %778 }
 0xaa6   :  { %v781_v26 = vmul.f32 %v779_v19, %v5044_v17 }
 0xaa8   :  { %v5049_v27 = vadd.f32 %v786_v25, %v781_v26 }
 0xaaa   :  { %3866 = vmatmul.msk.f32.vlgmr.msrb.gmra.mxu2 %vm396_vm2, %v5049_v27  ;;  %v864_v58 = vmul.f32 %v5068_v57, %v5049_v27 }
 0xaab   :  { %1156 = vmatpush.msrb.mxu2 %v4917_v9 }
 0xaad   :  { %1157 = vmatpush.msrb.mxu2 %v4919_v10 }
 0xb2d   :  { %v809_v31 = vpop.f32.mrf.mxu2 }
 0xb2e   :  { %v832_v32 = vadd.f32 %v809_v31, %v4937_v18  ;;  %v812_v35 = vadd.f32 %v809_v31, %v5060_v33 }
 0xb30   :  { %834 = vrot.lane.b32.xlu2 %v832_v32, %s4657_s4  ;;  %v3867_v36 = vmul.f32 -1.442695, %v812_v35 }
 0xb32   :  { %4087 = vpow2.f32 %v3867_v36 }
 0xb38   :  { %v4088_v37 = vpop.eup %4087 }
 0xb39   :  { %v816_v39 = vadd.f32 1.0, %v4088_v37 }
 0xb3b   :  { %4089 = vrcp.f32 %v816_v39  ;;  %v828_v44 = vand.u32 2147483648, %v816_v39  ;;  %vm822_vm8 = vweird.f32 %v816_v39  ;;  %v826_v45 = vand.u32 2147483647, %v816_v39 }
 0xb3d   :  { %v829_v47 = vor.u32 1.1754944e-38, %v828_v44  ;;  %vm827_vm10 = vcmp.eq.f32.partialorder %v826_v45, 8.507059e+37 }
 0xb41   :  { %v4090_v40 = vpop.eup %4089 }
 0xb42   :  { %v818_v10 = vmul.f32 %v4090_v40, %v816_v39  ;;  %vm823_vm7 = vweird.f32 %v4090_v40 }
 0xb43   :  { %vm824_vm9 = vmor %vm822_vm8, %vm823_vm7 }
 0xb44   :  { %v819_v41 = vsub.f32 1.0, %v818_v10 }
 0xb46   :  { %v820_v42 = vmul.f32 %v4090_v40, %v819_v41 }
 0xb48   :  { %v821_v43 = vadd.f32 %v4090_v40, %v820_v42 }
 0xb4a   :  { %v825_v46 = vsel %vm824_vm9, %v4090_v40, %v821_v43 }
 0xb4b   :  { %v830_v51 = vsel %vm827_vm10, %v829_v47, %v825_v46 }
 0xb4c   :  { %v844_v60 = vsub.f32 1.0, %v830_v51 }
 0xb8a   :  { %v835_v49 = vpop.permute.xlu2 %834 }
 0xb8b   :  { %v837_v52 = vmul.f32 %v835_v49, %v830_v51 }
 0xb8d   :  { %839 = vrot.lane.b32.xlu0 %v837_v52, %s4655_s21  ;;  %v5095_v52 = vld [vmem:[#allocation12] sm:$0xff] }
 0xb95   :  { %850 = vrot.lane.b32.xlu0 %v5049_v27, %s4661_s7 }
 0xbff   :  { %v840_v54 = vpop.permute.xlu0 %839 }
 0xc00   :  { %v842_v55 = vadd.f32 %v840_v54, %v5060_v33  ;;  %v4057_v54 = vld [vmem:[#allocation14] ss:$0 sm:$0xff] }
 0xc02   :  { %4091 = vtanh.f32 %v842_v55 }
 0xc07   :  { %v851_v59 = vpop.permute.xlu0 %850 }
 0xc08   :  { %v4092_v56 = vpop.eup %4091  ;;  %v853_v62 = vmul.f32 %v851_v59, %v830_v51  ;;  %v5093_v51 = vld [vmem:[#allocation12 + $0x8] sm:$0xff] }
 0xc09   :  { %846 = vrot.lane.b32.xlu2 %v4092_v56, %s4658_s3  ;;  %1327 = vmatpush.msrb.mxu0 %v5093_v51 }
 0xc0b   :  { %1328 = vmatpush.msrb.mxu0 %v5095_v52 }
 0xc0c   :  { %1329 = vmatmul.f32.vlgmr.msrb.gmra.mxu0 %v4656_v12 }
 0xc0d   :  { %1656 = vmatpush.msra.mxu0 %v5093_v51 }
 0xc0f   :  { %1657 = vmatpush.msra.mxu0 %v5095_v52 }
 0xc11   :  { %866 = vrot.lane.b32.xlu2 %v864_v58, %s4661_s7  ;;  %1984 = vmatpush.msrb.mxu0 %v5093_v51 }
 0xc13   :  { %1985 = vmatpush.msrb.mxu0 %v5095_v52 }
 0xc63   :  { %v847_v61 = vpop.permute.xlu2 %846 }
 0xc64   :  { %v849_v63 = vmul.f32 %v847_v61, %v844_v60 }
 0xc66   :  { %v854_v1 = vadd.f32 %v853_v62, %v849_v63 }
 0xc68   :  { %v859_v3 = vmul.f32 %v5073_v2, %v854_v1 }
 0xc6b   :  { %v867_v4 = vpop.permute.xlu2 %866 }
 0xc6c   :  { %v5076_v5 = vadd.f32 %v867_v4, %v859_v3 }
 0xc6e   :  { %872 = vrot.lane.b32.xlu0 %v5076_v5, %s4658_s3  ;;  %v938_v1 = vrot.slane %v5076_v5, 6 }
 0xc89   :  { %v1330_v59 = vpop.f32.mrf.mxu0 }
 0xce0   :  { %v873_v8 = vpop.permute.xlu0 %872 }
 0xce1   :  { %3868 = vmatmul.msk.f32.vlgmr.msra.gmra.mxu3 %vm396_vm2, %v873_v8 }
 0xce2   :  { %1574 = vmatpush.msra.mxu3 %v5093_v51 }
 0xce4   :  { %1575 = vmatpush.msra.mxu3 %v5095_v52 }
 0xd64   :  { %v893_v13 = vpop.f32.mrf.mxu3 }
 0xd65   :  { %v919_v15 = vadd.f32 %v893_v13, %v4937_v18  ;;  %v897_v25 = vrot.slane %v893_v13, 6 }
 0xd67   :  { %v921_v19 = vrot.slane %v919_v15, 6  ;;  %v899_v26 = vadd.f32 %v897_v25, %v5060_v33  ;;  %v1334_v15 = vrot.slane %v1330_v59, 6 }
 0xd69   :  { %922 = vrot.lane.b32.xlu1 %v921_v19, %s4657_s4  ;;  %v3869_v29 = vmul.f32 -1.442695, %v899_v26 }
 0xd6b   :  { %4093 = vpow2.f32 %v3869_v29 }
 0xd71   :  { %953 = vperm.xlu1 %4043, %v4913_v7   ;;  %v4094_v31 = vpop.eup %4093 }
 0xd72   :  { %v903_v32 = vadd.f32 1.0, %v4094_v31 }
 0xd74   :  { %4095 = vrcp.f32 %v903_v32  ;;  %v915_v10 = vand.u32 2147483648, %v903_v32  ;;  %vm909_vm12 = vweird.f32 %v903_v32  ;;  %v913_v41 = vand.u32 2147483647, %v903_v32 }
 0xd76   :  { %v916_v43 = vor.u32 1.1754944e-38, %v915_v10  ;;  %vm914_vm14 = vcmp.eq.f32.partialorder %v913_v41, 8.507059e+37 }
 0xd7a   :  { %v4096_v35 = vpop.eup %4095 }
 0xd7b   :  { %v905_v36 = vmul.f32 %v4096_v35, %v903_v32  ;;  %vm910_vm11 = vweird.f32 %v4096_v35  ;;  %v5127_v32 = vadd.f32 %v4945_v22, %v5055_v30 }
 0xd7c   :  { %vm911_vm13 = vmor %vm909_vm12, %vm910_vm11 }
 0xd7d   :  { %v906_v37 = vsub.f32 1.0, %v905_v36 }
 0xd7f   :  { %v907_v39 = vmul.f32 %v4096_v35, %v906_v37 }
 0xd81   :  { %v908_v40 = vadd.f32 %v4096_v35, %v907_v39 }
 0xd83   :  { %v912_v42 = vsel %vm911_vm13, %v4096_v35, %v908_v40 }
 0xd84   :  { %v917_v45 = vsel %vm914_vm14, %v916_v43, %v912_v42 }
 0xd85   :  { %v932_v63 = vsub.f32 1.0, %v917_v45  ;;  %v940_v8 = vmul.f32 %v938_v1, %v917_v45 }
 0xddb   :  { %v923_v44 = vpop.permute.xlu1 %922 }
 0xddc   :  { %v925_v46 = vmul.f32 %v923_v44, %v917_v45 }
 0xdde   :  { %927 = vrot.lane.b32.xlu2 %v925_v46, %s4655_s21 }
 0xde3   :  { %v5086_v47 = vpop.permute.xlu1 %953 }
 0xde4   :  { %v956_v49 = vmul.f32 %v5086_v47, %v5076_v5 }
 0xde6   :  { %958 = vrot.lane.b32.xlu1 %v956_v49, %s4658_s3  ;;  %943 = vperm.xlu2 %4044, %v4910_v6  }
 0xdee   :  { %4045 = vset.pattern.permute.xlu2 %v4654_v0 }
 0xdef   :  { %1360 = vrot.lane.b32.xlu2 %v4057_v54, %s4655_s21 }
 0xe38   :  { %v928_v0 = vpop.permute.xlu2 %927 }
 0xe39   :  { %v930_v55 = vadd.f32 %v928_v0, %v5060_v33 }
 0xe3b   :  { %4097 = vtanh.f32 %v930_v55 }
 0xe40   :  { %v5109_v58 = vpop.permute.xlu2 %943 }
 0xe41   :  { %v4098_v56 = vpop.eup %4097 }
 0xe42   :  { %934 = vrot.lane.b32.xlu0 %v4098_v56, %s4658_s3 }
 0xe49   :  { %v5111_v60 = vpop.permute.xlu2 %1360 }
 0xe4a   :  { %v1363_v61 = vadd.f32 %v5111_v60, %v1330_v59 }
 0xe4c   :  { %v1365_v62 = vrot.slane %v1363_v61, 6 }
 0xe4e   :  { %1366 = vrot.lane.b32.xlu2 %v1365_v62, %s4661_s7 }
 0xe58   :  { %v959_v26 = vpop.permute.xlu1 %958 }
 0xea8   :  { %v1367_v54 = vpop.permute.xlu2 %1366 }
 0xeb4   :  { %v935_v3 = vpop.permute.xlu0 %934 }
 0xeb5   :  { %v937_v4 = vmul.f32 %v935_v3, %v932_v63 }
 0xeb7   :  { %v941_v11 = vadd.f32 %v940_v8, %v937_v4 }
 0xeb9   :  { %v947_v13 = vrot.slane %v941_v11, 2  ;;  %v4666_v11 = vmov 6  }
 0xeba   :  { %4047 = vset.pattern.permute.xlu1 %v4666_v11  ;;  %v358_v11 = vld [vmem:[%s5934_s1 + $0x8] sm:$0xff] }
 0xebb   :  { %948 = vrot.lane.b32.xlu0 %v947_v13, %s4658_s3 }
 0xec3   :  { %1335 = vrot.lane.b32.xlu0 %v1334_v15, %s4665_s5 }
 0xf2d   :  { %v949_v19 = vpop.permute.xlu0 %948 }
 0xf2e   :  { %v951_v25 = vmul.f32 %v949_v19, %v5109_v58 }
 0xf30   :  { %v5119_v29 = vadd.f32 %v959_v26, %v951_v25 }
 0xf32   :  { %3870 = vmatmul.msk.f32.vlgmr.msra.gmra.mxu2 %vm396_vm2, %v5119_v29 }
 0xf33   :  { %1490 = vmatpush.msra.mxu2 %v5093_v51 }
 0xf35   :  { %1491 = vmatpush.msra.mxu2 %v5095_v52  ;;  %v1336_v31 = vpop.permute.xlu0 %1335 }
 0xf36   :  { %v1338_v35 = vadd.f32 %v1336_v31, %v5127_v32 }
 0xf38   :  { %v3878_v36 = vmul.f32 -1.442695, %v1338_v35 }
 0xf3a   :  { %4099 = vpow2.f32 %v3878_v36 }
 0xf40   :  { %v4100_v37 = vpop.eup %4099 }
 0xf41   :  { %v1342_v39 = vadd.f32 1.0, %v4100_v37 }
 0xf43   :  { %4101 = vrcp.f32 %v1342_v39  ;;  %v1354_v46 = vand.u32 2147483648, %v1342_v39  ;;  %vm1348_vm1 = vweird.f32 %v1342_v39  ;;  %v1352_v22 = vand.u32 2147483647, %v1342_v39 }
 0xf45   :  { %v1355_v0 = vor.u32 1.1754944e-38, %v1354_v46  ;;  %vm1353_vm4 = vcmp.eq.f32.partialorder %v1352_v22, 8.507059e+37  ;;  %v4667_v46 = vmov 9  }
 0xf49   :  { %v4102_v40 = vpop.eup %4101 }
 0xf4a   :  { %v1344_v10 = vmul.f32 %v4102_v40, %v1342_v39  ;;  %vm1349_vm15 = vweird.f32 %v4102_v40 }
 0xf4b   :  { %vm1350_vm3 = vmor %vm1348_vm1, %vm1349_vm15 }
 0xf4c   :  { %v1345_v41 = vsub.f32 1.0, %v1344_v10  ;;  %v1028_v10 = vrot.slane %v5119_v29, 4 }
 0xf4e   :  { %v1346_v42 = vmul.f32 %v4102_v40, %v1345_v41 }
 0xf50   :  { %v1347_v44 = vadd.f32 %v4102_v40, %v1346_v42 }
 0xf52   :  { %v1351_v49 = vsel %vm1350_vm3, %v4102_v40, %v1347_v44 }
 0xf53   :  { %v1356_v55 = vsel %vm1353_vm4, %v1355_v0, %v1351_v49 }
 0xf54   :  { %v1369_v56 = vmul.f32 %v1367_v54, %v1356_v55  ;;  %v1376_v22 = vsub.f32 1.0, %v1356_v55  ;;  %v1382_v49 = vmul.f32 0.0, %v1356_v55 }
 0xfb5   :  { %v983_v43 = vpop.f32.mrf.mxu2 }
 0xfb6   :  { %v1009_v45 = vadd.f32 %v983_v43, %v4937_v18  ;;  %v987_v59 = vrot.slane %v983_v43, 4  ;;  %v346_v43 = vld [vmem:[%s5933_s10 + $0x8] sm:$0xf] }
 0xfb8   :  { %v1011_v30 = vrot.slane %v1009_v45, 4  ;;  %v989_v61 = vadd.f32 %v987_v59, %v5060_v33 }
 0xfba   :  { %1012 = vrot.lane.b32.xlu1 %v1011_v30, %s4657_s4  ;;  %v3871_v62 = vmul.f32 -1.442695, %v989_v61 }
 0xfbc   :  { %4103 = vpow2.f32 %v3871_v62 }
 0xfc2   :  { %1371 = vrot.lane.b32.xlu1 %v1369_v56, %s4655_s21  ;;  %v4104_v63 = vpop.eup %4103 }
 0xfc3   :  { %v993_v1 = vadd.f32 1.0, %v4104_v63 }
 0xfc5   :  { %4105 = vrcp.f32 %v993_v1  ;;  %v1005_v19 = vand.u32 2147483648, %v993_v1  ;;  %vm999_vm6 = vweird.f32 %v993_v1  ;;  %v1003_v25 = vand.u32 2147483647, %v993_v1 }
 0xfc7   :  { %v1006_v31 = vor.u32 1.1754944e-38, %v1005_v19  ;;  %vm1004_vm8 = vcmp.eq.f32.partialorder %v1003_v25, 8.507059e+37  ;;  %v5158_v25 = vld [vmem:[#allocation6] sm:$0x3] }
 0xfcb   :  { %v4106_v3 = vpop.eup %4105 }
 0xfcc   :  { %v995_v4 = vmul.f32 %v4106_v3, %v993_v1  ;;  %vm1000_vm5 = vweird.f32 %v4106_v3 }
 0xfcd   :  { %vm1001_vm7 = vmor %vm999_vm6, %vm1000_vm5 }
 0xfce   :  { %v996_v8 = vsub.f32 1.0, %v995_v4  ;;  %v360_v4 = vld [vmem:[%s5934_s1 + $0x18] sm:$0xff] }
 0xfcf   :  { %379 = vmatpush.msra.mxu1 %v360_v4 }
 0xfd0   :  { %v997_v13 = vmul.f32 %v4106_v3, %v996_v8  ;;  %v359_v8 = vld [vmem:[%s5934_s1 + $0x10] sm:$0xff] }
 0xfd1   :  { %380 = vmatpush.msra.mxu1 %v359_v8 }
 0xfd2   :  { %v998_v15 = vadd.f32 %v4106_v3, %v997_v13 }
 0xfd3   :  { %381 = vmatpush.msra.mxu1 %v358_v11 }
 0xfd4   :  { %v1002_v26 = vsel %vm1001_vm7, %v4106_v3, %v998_v15  ;;  %v357_v15 = vld [vmem:[%s5934_s1] sm:$0xff] }
 0xfd5   :  { %v1007_v36 = vsel %vm1004_vm8, %v1006_v31, %v1002_v26  ;;  %382 = vmatpush.msra.mxu1 %v357_v15  ;;  %v4256_v31 = vld [vmem:[#allocation9] sm:$0xff] }
 0xfd6   :  { %v1022_v61 = vsub.f32 1.0, %v1007_v36 }
 0xfd7   :  { %1068 = vmatpush.msrb.mxu1 %v4917_v9 }
 0xfd9   :  { %1069 = vmatpush.msrb.mxu1 %v4256_v31 }
0x102c   :  { %v1013_v35 = vpop.permute.xlu1 %1012 }
0x102d   :  { %v1015_v37 = vmul.f32 %v1013_v35, %v1007_v36 }
0x102f   :  { %1017 = vrot.lane.b32.xlu0 %v1015_v37, %s4655_s21 }
0x1034   :  { %v1372_v39 = vpop.permute.xlu1 %1371 }
0x1035   :  { %v1374_v40 = vadd.f32 %v1372_v39, %v5127_v32 }
0x1037   :  { %4107 = vtanh.f32 %v1374_v40  ;;  %1029 = vrot.lane.b32.xlu0 %v1028_v10, %s4661_s7 }
0x103d   :  { %v4108_v41 = vpop.eup %4107 }
0x103e   :  { %1378 = vrot.lane.b32.xlu1 %v4108_v41, %s4658_s3 }
0x103f   :  { %351 = vperm.xlu0 %4046, %v346_v43  }
0x1046   :  { %1035 = vperm.xlu1 %4047, %v4910_v6   ;;  %v345_v6 = vld [vmem:[%s5933_s10] sm:$0xff] }
0x1047   :  { %4049 = vset.pattern.permute.xlu0 %v4667_v46 }
0x1048   :  { %1303 = vperm.xlu0 %4049, %v4913_v7  }
0x104e   :  { %1045 = vperm.xlu1 %4047, %v4913_v7  }
0x10a1   :  { %v1018_v42 = vpop.permute.xlu0 %1017 }
0x10a2   :  { %v1020_v44 = vadd.f32 %v1018_v42, %v5060_v33 }
0x10a4   :  { %4109 = vtanh.f32 %v1020_v44 }
0x10a9   :  { %v1030_v59 = vpop.permute.xlu0 %1029 }
0x10aa   :  { %v4110_v45 = vpop.eup %4109  ;;  %v1032_v63 = vmul.f32 %v1030_v59, %v1007_v36 }
0x10ab   :  { %1024 = vrot.lane.b32.xlu2 %v4110_v45, %s4658_s3 }
0x10b0   :  { %v1379_v30 = vpop.permute.xlu1 %1378 }
0x10b1   :  { %v1381_v0 = vmul.f32 %v1379_v30, %v1376_v22  ;;  %v352_v26 = vpop.permute.xlu0 %351  ;;  %v4669_v22 = vmov 8  }
0x10b2   :  { %vm354_vm10 = vcmp.eq.s32.totalorder %v352_v26, %v4929_v14  ;;  %4051 = vset.pattern.permute.xlu1 %v4669_v22 }
0x10b3   :  { %v1383_v54 = vadd.f32 %v1382_v49, %v1381_v0  ;;  %348 = vperm.xlu2 %4045, %v345_v6   ;;  %v356_v35 = vsel %vm354_vm10, 1.0, %v4656_v12 }
0x10b5   :  { %v1385_v56 = vrot.slane %v1383_v54, 2 }
0x10b7   :  { %1386 = vrot.lane.b32.xlu1 %v1385_v56, %s4668_s24 }
0x10b8   :  { %v5166_v36 = vpop.permute.xlu1 %1035 }
0x10bb   :  { %4048 = vset.pattern.permute.xlu2 %v4667_v46 }
0x10c0   :  { %v5168_v9 = vpop.permute.xlu1 %1045 }
0x10c1   :  { %v1048_v39 = vmul.f32 %v5168_v9, %v5119_v29 }
0x1105   :  { %v1025_v62 = vpop.permute.xlu2 %1024 }
0x1106   :  { %v1027_v1 = vmul.f32 %v1025_v62, %v1022_v61 }
0x1108   :  { %v1033_v3 = vadd.f32 %v1032_v63, %v1027_v1 }
0x110a   :  { %v1039_v55 = vrot.slane %v1033_v3, 4 }
0x110c   :  { %1040 = vrot.lane.b32.xlu2 %v1039_v55, %s4658_s3 }
0x110d   :  { %v349_v13 = vpop.permute.xlu2 %348 }
0x110e   :  { %vm353_vm9 = vcmp.eq.s32.totalorder %v349_v13, %v4929_v14  ;;  %v5175_v14 = vpop.permute.xlu0 %1303 }
0x110f   :  { %v355_v19 = vsel %vm353_vm9, 1.0, %v4656_v12  ;;  %v1390_v12 = vmul.f32 0.0, %v5175_v14 }
0x1110   :  { %3854 = vmatmul.msk.f32.vlgmr.msra.gmra.mxu1 %vm309_vm0, %v355_v19 }
0x1111   :  { %1410 = vmatpush.msra.mxu1 %v5093_v51 }
0x1113   :  { %1411 = vmatpush.msra.mxu1 %v5095_v52 }
0x1114   :  { %1293 = vperm.xlu2 %4048, %v5158_v25  }
0x1118   :  { %3855 = vmatmul.msk.f32.gmra.mxu1 %vm309_vm0, %v356_v35 }
0x111c   :  { %4050 = vset.pattern.permute.xlu2 %v4669_v22 }
0x1129   :  { %v1387_v41 = vpop.permute.xlu1 %1386 }
0x1166   :  { %v1041_v37 = vpop.permute.xlu2 %1040 }
0x1167   :  { %v1043_v40 = vmul.f32 %v1041_v37, %v5166_v36 }
0x1169   :  { %v5173_v10 = vadd.f32 %v1048_v39, %v1043_v40 }
0x116b   :  { %3872 = vmatmul.msk.f32.vlgmr.msrb.gmra.mxu1 %vm396_vm2, %v5173_v10 }
0x116c   :  { %1738 = vmatpush.msrb.mxu1 %v5093_v51 }
0x116e   :  { %v5181_v42 = vpop.permute.xlu2 %1293  ;;  %1739 = vmatpush.msrb.mxu1 %v5095_v52 }
0x116f   :  { %v1389_v43 = vmul.f32 %v1387_v41, %v5181_v42 }
0x1171   :  { %v5185_v44 = vadd.f32 %v1390_v12, %v1389_v43 }
0x1173   :  { %3879 = vmatmul.msk.f32.vlgmr.msra.gmra.mxu1 %vm396_vm2, %v5185_v44 }
0x1174   :  { %2066 = vmatpush.msra.mxu1 %v5093_v51 }
0x1176   :  { %2067 = vmatpush.msra.mxu1 %v5095_v52 }
0x118d   :  { %v5191_v45 = vpop.f32.mrf.mxu1 }
0x1195   :  { %v5193_v30 = vpop.f32.mrf.mxu1 }
0x11e8   :  { %v1071_v6 = vpop.f32.mrf.mxu1 }
0x11e9   :  { %v1097_v49 = vadd.f32 %v1071_v6, %v4937_v18  ;;  %v1075_v59 = vrot.slane %v1071_v6, 2 }
0x11eb   :  { %v1099_v0 = vrot.slane %v1097_v49, 2  ;;  %v1077_v61 = vadd.f32 %v1075_v59, %v5060_v33 }
0x11ed   :  { %1100 = vrot.lane.b32.xlu1 %v1099_v0, %s4657_s4  ;;  %v3873_v62 = vmul.f32 -1.442695, %v1077_v61 }
0x11ef   :  { %4111 = vpow2.f32 %v3873_v62 }
0x11f0   :  { %v1413_v54 = vpop.f32.mrf.mxu1 }
0x11f1   :  { %1417 = vrot.lane.b32.xlu2 %v1413_v54, %s4665_s5  ;;  %v1440_v56 = vadd.f32 %v1413_v54, %v5111_v60 }
0x11f5   :  { %v4112_v63 = vpop.eup %4111 }
0x11f6   :  { %v1081_v1 = vadd.f32 1.0, %v4112_v63 }
0x11f8   :  { %4113 = vrcp.f32 %v1081_v1  ;;  %v1093_v35 = vand.u32 2147483648, %v1081_v1  ;;  %vm1087_vm12 = vweird.f32 %v1081_v1  ;;  %v1091_v37 = vand.u32 2147483647, %v1081_v1 }
0x11f9   :  { %1442 = vrot.lane.b32.xlu2 %v1440_v56, %s4661_s7 }
0x11fa   :  { %v1094_v40 = vor.u32 1.1754944e-38, %v1093_v35  ;;  %vm1092_vm14 = vcmp.eq.f32.partialorder %v1091_v37, 8.507059e+37 }
0x11fe   :  { %v4114_v3 = vpop.eup %4113 }
0x11ff   :  { %v1083_v55 = vmul.f32 %v4114_v3, %v1081_v1  ;;  %vm1088_vm11 = vweird.f32 %v4114_v3 }
0x1200   :  { %vm1089_vm13 = vmor %vm1087_vm12, %vm1088_vm11 }
0x1201   :  { %1211 = vperm.xlu2 %4050, %v4913_v7   ;;  %v1084_v13 = vsub.f32 1.0, %v1083_v55 }
0x1203   :  { %v1085_v15 = vmul.f32 %v4114_v3, %v1084_v13 }
0x1205   :  { %v1086_v31 = vadd.f32 %v4114_v3, %v1085_v15 }
0x1207   :  { %v1090_v39 = vsel %vm1089_vm13, %v4114_v3, %v1086_v31 }
0x1208   :  { %v1095_v43 = vsel %vm1092_vm14, %v1094_v40, %v1090_v39 }
0x1209   :  { %v1110_v39 = vsub.f32 1.0, %v1095_v43 }
0x124b   :  { %v1418_v4 = vpop.permute.xlu2 %1417 }
0x124c   :  { %v1420_v8 = vadd.f32 %v1418_v4, %v5127_v32  ;;  %v1116_v4 = vrot.slane %v5173_v10, 2 }
0x124e   :  { %v3880_v11 = vmul.f32 -1.442695, %v1420_v8  ;;  %v4670_v8 = vmov 7  }
0x124f   :  { %4053 = vset.pattern.permute.xlu2 %v4670_v8  ;;  %4052 = vset.pattern.permute.xlu0 %v4670_v8 }
0x1250   :  { %4115 = vpow2.f32 %v3880_v11 }
0x1253   :  { %v1443_v1 = vpop.permute.xlu2 %1442 }
0x1256   :  { %v4116_v19 = vpop.eup %4115 }
0x1257   :  { %v1424_v26 = vadd.f32 1.0, %v4116_v19 }
0x1259   :  { %4117 = vrcp.f32 %v1424_v26  ;;  %v1436_v0 = vand.u32 2147483648, %v1424_v26  ;;  %v1434_v56 = vand.u32 2147483647, %v1424_v26  ;;  %vm1430_vm1 = vweird.f32 %v1424_v26 }
0x125b   :  { %v1437_v61 = vor.u32 1.1754944e-38, %v1436_v0  ;;  %vm1435_vm4 = vcmp.eq.f32.partialorder %v1434_v56, 8.507059e+37  ;;  %v5214_v31 = vpop.permute.xlu2 %1211 }
0x125c   :  { %v1464_v35 = vmul.f32 %v5185_v44, %v5214_v31 }
0x125f   :  { %v4118_v12 = vpop.eup %4117  ;;  %v1101_v41 = vpop.permute.xlu1 %1100 }
0x1260   :  { %v1426_v22 = vmul.f32 %v4118_v12, %v1424_v26  ;;  %v1103_v6 = vmul.f32 %v1101_v41, %v1095_v43  ;;  %vm1431_vm15 = vweird.f32 %v4118_v12 }
0x1261   :  { %vm1432_vm3 = vmor %vm1430_vm1, %vm1431_vm15 }
0x1262   :  { %v1427_v49 = vsub.f32 1.0, %v1426_v22  ;;  %1105 = vrot.lane.b32.xlu0 %v1103_v6, %s4655_s21 }
0x1264   :  { %v1428_v54 = vmul.f32 %v4118_v12, %v1427_v49 }
0x1266   :  { %v1429_v59 = vadd.f32 %v4118_v12, %v1428_v54 }
0x1268   :  { %v1433_v62 = vsel %vm1432_vm3, %v4118_v12, %v1429_v59 }
0x1269   :  { %v1438_v63 = vsel %vm1435_vm4, %v1437_v61, %v1433_v62 }
0x126a   :  { %v1445_v3 = vmul.f32 %v1443_v1, %v1438_v63  ;;  %v1452_v0 = vsub.f32 1.0, %v1438_v63 }
0x126c   :  { %1447 = vrot.lane.b32.xlu1 %v1445_v3, %s4655_s21 }
0x1274   :  { %1117 = vrot.lane.b32.xlu1 %v1116_v4, %s4661_s7 }
0x127c   :  { %1206 = vperm.xlu1 %4051, %v5158_v25  }
0x12d4   :  { %v1106_v55 = vpop.permute.xlu0 %1105 }
0x12d5   :  { %v1108_v11 = vadd.f32 %v1106_v55, %v5060_v33 }
0x12d7   :  { %4119 = vtanh.f32 %v1108_v11 }
0x12dd   :  { %v4120_v13 = vpop.eup %4119 }
0x12de   :  { %v1448_v15 = vpop.permute.xlu1 %1447  ;;  %1112 = vrot.lane.b32.xlu0 %v4120_v13, %s4658_s3 }
0x12df   :  { %v1450_v19 = vadd.f32 %v1448_v15, %v5127_v32 }
0x12e1   :  { %4121 = vtanh.f32 %v1450_v19 }
0x12e6   :  { %1458 = vrot.lane.b32.xlu0 %v5185_v44, %s4668_s24  ;;  %v1118_v37 = vpop.permute.xlu1 %1117 }
0x12e7   :  { %v4122_v26 = vpop.eup %4121  ;;  %v1120_v12 = vmul.f32 %v1118_v37, %v1095_v43 }
0x12e8   :  { %1454 = vrot.lane.b32.xlu2 %v4122_v26, %s4658_s3 }
0x12ee   :  { %1123 = vperm.xlu0 %4052, %v5158_v25   ;;  %v5223_v59 = vpop.permute.xlu1 %1206 }
0x12f0   :  { %1466 = vrot.lane.b32.xlu2 %v1464_v35, %s4668_s24 }
0x12f6   :  { %4054 = vset.pattern.permute.xlu0 %v4667_v46 }
0x12f8   :  { %1133 = vperm.xlu2 %4053, %v4913_v7  }
0x1342   :  { %v1455_v6 = vpop.permute.xlu2 %1454 }
0x1343   :  { %v1457_v56 = vmul.f32 %v1455_v6, %v1452_v0 }
0x134a   :  { %v1467_v7 = vpop.permute.xlu2 %1466 }
0x1350   :  { %v1113_v40 = vpop.permute.xlu0 %1112 }
0x1351   :  { %v1115_v41 = vmul.f32 %v1113_v40, %v1110_v39 }
0x1352   :  { %v5230_v43 = vpop.permute.xlu2 %1133 }
0x1353   :  { %v1121_v22 = vadd.f32 %v1120_v12, %v1115_v41  ;;  %v1136_v4 = vmul.f32 %v5230_v43, %v5173_v10 }
0x1355   :  { %v1127_v49 = vrot.slane %v1121_v22, 6 }
0x1357   :  { %1128 = vrot.lane.b32.xlu1 %v1127_v49, %s4658_s3 }
0x1358   :  { %v1459_v54 = vpop.permute.xlu0 %1458 }
0x1359   :  { %v1461_v25 = vmul.f32 %v1459_v54, %v1438_v63 }
0x135b   :  { %v1462_v61 = vadd.f32 %v1461_v25, %v1457_v56 }
0x135d   :  { %v1463_v46 = vmul.f32 %v1462_v61, %v5223_v59 }
0x135f   :  { %v5226_v62 = vadd.f32 %v1467_v7, %v1463_v46 }
0x1360   :  { %v5232_v1 = vpop.permute.xlu0 %1123 }
0x1361   :  { %1472 = vrot.lane.b32.xlu1 %v5226_v62, %s4668_s24 }
0x13c9   :  { %v1129_v3 = vpop.permute.xlu1 %1128 }
0x13ca   :  { %v1131_v63 = vmul.f32 %v1129_v3, %v5232_v1 }
0x13cc   :  { %v5237_v8 = vadd.f32 %v1136_v4, %v1131_v63 }
0x13ce   :  { %3874 = vmatmul.msk.f32.vlgmr.msrb.gmra.mxu2 %vm396_vm2, %v5237_v8 }
0x13cf   :  { %1818 = vmatpush.msrb.mxu2 %v5093_v51 }
0x13d1   :  { %1819 = vmatpush.msrb.mxu2 %v5095_v52 }
0x13d3   :  { %v1473_v55 = vpop.permute.xlu1 %1472 }
0x13d6   :  { %3881 = vmatmul.msk.f32.vlgmr.msra.gmra.mxu2 %vm396_vm2, %v1473_v55 }
0x1451   :  { %v1159_v11 = vpop.f32.mrf.mxu2 }
0x1452   :  { %v1182_v13 = vadd.f32 %v1159_v11, %v4937_v18  ;;  %v1162_v37 = vadd.f32 %v1159_v11, %v5127_v32 }
0x1454   :  { %1184 = vrot.lane.b32.xlu0 %v1182_v13, %s4657_s4  ;;  %v3875_v39 = vmul.f32 -1.442695, %v1162_v37 }
0x1456   :  { %4123 = vpow2.f32 %v3875_v39 }
0x1459   :  { %v1493_v15 = vpop.f32.mrf.mxu2 }
0x145a   :  { %v1497_v19 = vrot.slane %v1493_v15, 2  ;;  %v1521_v26 = vadd.f32 %v1493_v15, %v5111_v60 }
0x145c   :  { %v1523_v35 = vrot.slane %v1521_v26, 2  ;;  %1498 = vrot.lane.b32.xlu2 %v1497_v19, %s4665_s5  ;;  %v4124_v40 = vpop.eup %4123 }
0x145d   :  { %v1166_v12 = vadd.f32 1.0, %v4124_v40 }
0x145e   :  { %1524 = vrot.lane.b32.xlu1 %v1523_v35, %s4661_s7 }
0x145f   :  { %4125 = vrcp.f32 %v1166_v12  ;;  %v1178_v61 = vand.u32 2147483648, %v1166_v12  ;;  %vm1172_vm6 = vweird.f32 %v1166_v12  ;;  %v1176_v7 = vand.u32 2147483647, %v1166_v12 }
0x1461   :  { %v1179_v63 = vor.u32 1.1754944e-38, %v1178_v61  ;;  %vm1177_vm8 = vcmp.eq.f32.partialorder %v1176_v7, 8.507059e+37 }
0x1465   :  { %v4126_v41 = vpop.eup %4125 }
0x1466   :  { %v1168_v22 = vmul.f32 %v4126_v41, %v1166_v12  ;;  %vm1173_vm5 = vweird.f32 %v4126_v41 }
0x1467   :  { %vm1174_vm7 = vmor %vm1172_vm6, %vm1173_vm5 }
0x1468   :  { %v1169_v0 = vsub.f32 1.0, %v1168_v22  ;;  %v1540_v22 = vrot.slane %v5226_v62, 2 }
0x146a   :  { %v1170_v56 = vmul.f32 %v4126_v41, %v1169_v0 }
0x146c   :  { %v1171_v25 = vadd.f32 %v4126_v41, %v1170_v56  ;;  %v1214_v56 = vmul.f32 %v5214_v31, %v5237_v8 }
0x146e   :  { %v1175_v4 = vsel %vm1174_vm7, %v4126_v41, %v1171_v25 }
0x146f   :  { %v1180_v11 = vsel %vm1177_vm8, %v1179_v63, %v1175_v4  ;;  %v1550_v63 = vmul.f32 %v5226_v62, %v5230_v43 }
0x14b6   :  { %v1499_v6 = vpop.permute.xlu2 %1498 }
0x14b7   :  { %v1501_v49 = vadd.f32 %v1499_v6, %v5060_v33 }
0x14b9   :  { %v3882_v54 = vmul.f32 -1.442695, %v1501_v49 }
0x14bb   :  { %4127 = vpow2.f32 %v3882_v54 }
0x14c1   :  { %v4128_v46 = vpop.eup %4127 }
0x14c2   :  { %v1505_v3 = vadd.f32 1.0, %v4128_v46 }
0x14c4   :  { %4129 = vrcp.f32 %v1505_v3  ;;  %v1517_v35 = vand.u32 2147483648, %v1505_v3  ;;  %v1515_v39 = vand.u32 2147483647, %v1505_v3  ;;  %vm1511_vm10 = vweird.f32 %v1505_v3 }
0x14c6   :  { %v1185_v55 = vpop.permute.xlu0 %1184  ;;  %v1518_v12 = vor.u32 1.1754944e-38, %v1517_v35  ;;  %vm1516_vm12 = vcmp.eq.f32.partialorder %v1515_v39, 8.507059e+37 }
0x14c7   :  { %v1187_v13 = vmul.f32 %v1185_v55, %v1180_v11  ;;  %v1194_v55 = vsub.f32 1.0, %v1180_v11 }
0x14c9   :  { %1189 = vrot.lane.b32.xlu2 %v1187_v13, %s4655_s21 }
0x14ca   :  { %v4130_v15 = vpop.eup %4129 }
0x14cb   :  { %v1507_v19 = vmul.f32 %v4130_v15, %v1505_v3  ;;  %vm1512_vm9 = vweird.f32 %v4130_v15 }
0x14cc   :  { %vm1513_vm11 = vmor %vm1511_vm10, %vm1512_vm9 }
0x14cd   :  { %v1508_v26 = vsub.f32 1.0, %v1507_v19 }
0x14cf   :  { %v1509_v37 = vmul.f32 %v4130_v15, %v1508_v26 }
0x14d0   :  { %v1525_v6 = vpop.permute.xlu1 %1524 }
0x14d1   :  { %v1510_v40 = vadd.f32 %v4130_v15, %v1509_v37  ;;  %1200 = vrot.lane.b32.xlu2 %v5237_v8, %s4661_s7 }
0x14d3   :  { %v1514_v41 = vsel %vm1513_vm11, %v4130_v15, %v1510_v40 }
0x14d4   :  { %v1519_v49 = vsel %vm1516_vm12, %v1518_v12, %v1514_v41 }
0x14d5   :  { %v1527_v0 = vmul.f32 %v1525_v6, %v1519_v49  ;;  %v1542_v54 = vmul.f32 %v1540_v22, %v1519_v49  ;;  %v1534_v40 = vsub.f32 1.0, %v1519_v49 }
0x14d7   :  { %1529 = vrot.lane.b32.xlu0 %v1527_v0, %s4655_s21 }
0x14df   :  { %1216 = vrot.lane.b32.xlu0 %v1214_v56, %s4661_s7 }
0x1523   :  { %v1190_v25 = vpop.permute.xlu2 %1189 }
0x1524   :  { %v1192_v61 = vadd.f32 %v1190_v25, %v5127_v32 }
0x1526   :  { %4131 = vtanh.f32 %v1192_v61 }
0x152b   :  { %v1201_v31 = vpop.permute.xlu2 %1200 }
0x152c   :  { %v4132_v46 = vpop.eup %4131  ;;  %v1203_v15 = vmul.f32 %v1201_v31, %v1180_v11 }
0x152d   :  { %1196 = vrot.lane.b32.xlu1 %v4132_v46, %s4658_s3 }
0x1549   :  { %v1530_v7 = vpop.permute.xlu0 %1529 }
0x154a   :  { %v1532_v3 = vadd.f32 %v1530_v7, %v5060_v33 }
0x154c   :  { %4133 = vtanh.f32 %v1532_v3 }
0x1551   :  { %v1217_v37 = vpop.permute.xlu0 %1216 }
0x1552   :  { %v4134_v4 = vpop.eup %4133 }
0x1553   :  { %1536 = vrot.lane.b32.xlu1 %v4134_v4, %s4658_s3 }
0x155b   :  { %1552 = vrot.lane.b32.xlu1 %v1550_v63, %s4668_s24 }
0x159f   :  { %v1197_v13 = vpop.permute.xlu1 %1196 }
0x15a0   :  { %v1199_v19 = vmul.f32 %v1197_v13, %v1194_v55 }
0x15a2   :  { %v1204_v26 = vadd.f32 %v1203_v15, %v1199_v19 }
0x15a4   :  { %v1209_v35 = vmul.f32 %v5223_v59, %v1204_v26 }
0x15a6   :  { %v5267_v39 = vadd.f32 %v1217_v37, %v1209_v35 }
0x15a8   :  { %1222 = vrot.lane.b32.xlu2 %v5267_v39, %s4658_s3 }
0x15c5   :  { %v1537_v12 = vpop.permute.xlu1 %1536 }
0x15c6   :  { %v1539_v41 = vmul.f32 %v1537_v12, %v1534_v40 }
0x15c8   :  { %v1543_v43 = vadd.f32 %v1542_v54, %v1539_v41 }
0x15ca   :  { %v1545_v22 = vrot.slane %v1543_v43, 6 }
0x15cc   :  { %1546 = vrot.lane.b32.xlu0 %v1545_v22, %s4668_s24 }
0x15cd   :  { %v1553_v56 = vpop.permute.xlu1 %1552 }
0x1602   :  { %v1223_v6 = vpop.permute.xlu2 %1222 }
0x1603   :  { %3876 = vmatmul.msk.f32.vlgmr.msrb.gmra.mxu3 %vm396_vm2, %v1223_v6 }
0x1604   :  { %1902 = vmatpush.msrb.mxu3 %v5093_v51 }
0x1606   :  { %1903 = vmatpush.msrb.mxu3 %v5095_v52 }
0x163e   :  { %v1547_v11 = vpop.permute.xlu0 %1546 }
0x163f   :  { %v1549_v0 = vmul.f32 %v1547_v11, %v5232_v1 }
0x1641   :  { %v5276_v25 = vadd.f32 %v1553_v56, %v1549_v0 }
0x1643   :  { %3883 = vmatmul.msk.f32.vlgmr.msra.gmra.mxu3 %vm396_vm2, %v5276_v25  ;;  %v1624_v51 = vrot.slane %v5276_v25, 4 }
0x1686   :  { %v5280_v49 = vpop.f32.mrf.mxu3 }
0x16c6   :  { %v1577_v54 = vpop.f32.mrf.mxu3 }
0x16c7   :  { %v1581_v61 = vrot.slane %v1577_v54, 4  ;;  %v1605_v46 = vadd.f32 %v1577_v54, %v5111_v60 }
0x16c9   :  { %v1607_v7 = vrot.slane %v1605_v46, 4  ;;  %1582 = vrot.lane.b32.xlu2 %v1581_v61, %s4665_s5 }
0x16cb   :  { %1608 = vrot.lane.b32.xlu0 %v1607_v7, %s4661_s7 }
0x16d3   :  { %1625 = vrot.lane.b32.xlu0 %v1624_v51, %s4668_s24 }
0x1723   :  { %v1583_v52 = vpop.permute.xlu2 %1582 }
0x1724   :  { %v1585_v3 = vadd.f32 %v1583_v52, %v5060_v33 }
0x1726   :  { %v3884_v4 = vmul.f32 -1.442695, %v1585_v3 }
0x1728   :  { %4135 = vpow2.f32 %v3884_v4  ;;  %v1636_v4 = vmul.f32 %v5276_v25, %v5168_v9 }
0x172e   :  { %v4136_v63 = vpop.eup %4135 }
0x172f   :  { %v1589_v31 = vadd.f32 1.0, %v4136_v63 }
0x1731   :  { %4137 = vrcp.f32 %v1589_v31  ;;  %v1601_v19 = vand.u32 2147483648, %v1589_v31  ;;  %v1599_v35 = vand.u32 2147483647, %v1589_v31  ;;  %vm1595_vm14 = vweird.f32 %v1589_v31 }
0x1733   :  { %v1602_v40 = vor.u32 1.1754944e-38, %v1601_v19  ;;  %vm1600_vm1 = vcmp.eq.f32.partialorder %v1599_v35, 8.507059e+37 }
0x1737   :  { %v4138_v55 = vpop.eup %4137 }
0x1738   :  { %v1591_v13 = vmul.f32 %v4138_v55, %v1589_v31  ;;  %vm1596_vm13 = vweird.f32 %v4138_v55 }
0x1739   :  { %vm1597_vm15 = vmor %vm1595_vm14, %vm1596_vm13 }
0x173a   :  { %v1592_v15 = vsub.f32 1.0, %v1591_v13 }
0x173c   :  { %v1593_v26 = vmul.f32 %v4138_v55, %v1592_v15 }
0x173d   :  { %v1609_v41 = vpop.permute.xlu0 %1608 }
0x173e   :  { %v1594_v37 = vadd.f32 %v4138_v55, %v1593_v26 }
0x1740   :  { %v1598_v12 = vsel %vm1597_vm15, %v4138_v55, %v1594_v37 }
0x1741   :  { %v1603_v43 = vsel %vm1600_vm1, %v1602_v40, %v1598_v12 }
0x1742   :  { %v1611_v22 = vmul.f32 %v1609_v41, %v1603_v43  ;;  %v1618_v54 = vsub.f32 1.0, %v1603_v43 }
0x1744   :  { %1613 = vrot.lane.b32.xlu1 %v1611_v22, %s4655_s21 }
0x1745   :  { %v1626_v56 = vpop.permute.xlu0 %1625 }
0x1746   :  { %v1628_v46 = vmul.f32 %v1626_v56, %v1603_v43 }
0x17b6   :  { %v1614_v6 = vpop.permute.xlu1 %1613 }
0x17b7   :  { %v1616_v11 = vadd.f32 %v1614_v6, %v5060_v33 }
0x17b9   :  { %4139 = vtanh.f32 %v1616_v11 }
0x17bf   :  { %v4140_v0 = vpop.eup %4139 }
0x17c0   :  { %1620 = vrot.lane.b32.xlu2 %v4140_v0, %s4658_s3 }
0x181a   :  { %v1621_v61 = vpop.permute.xlu2 %1620 }
0x181b   :  { %v1623_v7 = vmul.f32 %v1621_v61, %v1618_v54 }
0x181d   :  { %v1629_v51 = vadd.f32 %v1628_v46, %v1623_v7 }
0x181f   :  { %v1631_v52 = vrot.slane %v1629_v51, 4 }
0x1821   :  { %1632 = vrot.lane.b32.xlu1 %v1631_v52, %s4668_s24 }
0x1893   :  { %v1633_v3 = vpop.permute.xlu1 %1632 }
0x1894   :  { %v1635_v63 = vmul.f32 %v1633_v3, %v5166_v36 }
0x1896   :  { %v5295_v31 = vadd.f32 %v1636_v4, %v1635_v63 }
0x1898   :  { %3885 = vmatmul.msk.f32.vlgmr.msra.gmra.mxu0 %vm396_vm2, %v5295_v31  ;;  %v1706_v26 = vrot.slane %v5295_v31, 6 }
0x1915   :  { %v1659_v55 = vpop.f32.mrf.mxu0 }
0x1916   :  { %v1663_v13 = vrot.slane %v1659_v55, 6  ;;  %v1687_v15 = vadd.f32 %v1659_v55, %v5111_v60 }
0x1918   :  { %v1689_v19 = vrot.slane %v1687_v15, 6  ;;  %1664 = vrot.lane.b32.xlu2 %v1663_v13, %s4665_s5 }
0x191a   :  { %1690 = vrot.lane.b32.xlu0 %v1689_v19, %s4661_s7 }
0x1922   :  { %1707 = vrot.lane.b32.xlu0 %v1706_v26, %s4668_s24 }
0x1972   :  { %v1665_v9 = vpop.permute.xlu2 %1664 }
0x1973   :  { %v1667_v35 = vadd.f32 %v1665_v9, %v5060_v33 }
0x1975   :  { %v3886_v37 = vmul.f32 -1.442695, %v1667_v35 }
0x1977   :  { %4141 = vpow2.f32 %v3886_v37  ;;  %v1718_v37 = vmul.f32 %v5295_v31, %v5086_v47 }
0x197d   :  { %v4142_v40 = vpop.eup %4141 }
0x197e   :  { %v1671_v12 = vadd.f32 1.0, %v4142_v40 }
0x1980   :  { %4143 = vrcp.f32 %v1671_v12  ;;  %v1683_v6 = vand.u32 2147483648, %v1671_v12  ;;  %v1681_v0 = vand.u32 2147483647, %v1671_v12  ;;  %vm1677_vm4 = vweird.f32 %v1671_v12 }
0x1982   :  { %v1684_v54 = vor.u32 1.1754944e-38, %v1683_v6  ;;  %vm1682_vm6 = vcmp.eq.f32.partialorder %v1681_v0, 8.507059e+37 }
0x1986   :  { %v4144_v41 = vpop.eup %4143 }
0x1987   :  { %v1673_v43 = vmul.f32 %v4144_v41, %v1671_v12  ;;  %vm1678_vm3 = vweird.f32 %v4144_v41 }
0x1988   :  { %vm1679_vm5 = vmor %vm1677_vm4, %vm1678_vm3 }
0x1989   :  { %v1674_v22 = vsub.f32 1.0, %v1673_v43 }
0x198b   :  { %v1675_v11 = vmul.f32 %v4144_v41, %v1674_v22 }
0x198c   :  { %v1691_v46 = vpop.permute.xlu0 %1690 }
0x198d   :  { %v1676_v56 = vadd.f32 %v4144_v41, %v1675_v11 }
0x198f   :  { %v1680_v61 = vsel %vm1679_vm5, %v4144_v41, %v1676_v56 }
0x1990   :  { %v1685_v7 = vsel %vm1682_vm6, %v1684_v54, %v1680_v61 }
0x1991   :  { %v1693_v51 = vmul.f32 %v1691_v46, %v1685_v7  ;;  %v1700_v55 = vsub.f32 1.0, %v1685_v7 }
0x1993   :  { %1695 = vrot.lane.b32.xlu1 %v1693_v51, %s4655_s21 }
0x1994   :  { %v1708_v63 = vpop.permute.xlu0 %1707 }
0x1995   :  { %v1710_v15 = vmul.f32 %v1708_v63, %v1685_v7 }
0x1a05   :  { %v1696_v52 = vpop.permute.xlu1 %1695 }
0x1a06   :  { %v1698_v3 = vadd.f32 %v1696_v52, %v5060_v33 }
0x1a08   :  { %4145 = vtanh.f32 %v1698_v3 }
0x1a0e   :  { %v4146_v4 = vpop.eup %4145 }
0x1a0f   :  { %1702 = vrot.lane.b32.xlu2 %v4146_v4, %s4658_s3 }
0x1a69   :  { %v1703_v13 = vpop.permute.xlu2 %1702 }
0x1a6a   :  { %v1705_v19 = vmul.f32 %v1703_v13, %v1700_v55 }
0x1a6c   :  { %v1711_v26 = vadd.f32 %v1710_v15, %v1705_v19 }
0x1a6e   :  { %v1713_v9 = vrot.slane %v1711_v26, 2 }
0x1a70   :  { %1714 = vrot.lane.b32.xlu1 %v1713_v9, %s4668_s24 }
0x1ae2   :  { %v1715_v35 = vpop.permute.xlu1 %1714 }
0x1ae3   :  { %v1717_v40 = vmul.f32 %v1715_v35, %v5109_v58 }
0x1ae5   :  { %v5312_v12 = vadd.f32 %v1718_v37, %v1717_v40 }
0x1ae7   :  { %3887 = vmatmul.msk.f32.vlgmr.msrb.gmra.mxu1 %vm396_vm2, %v5312_v12  ;;  %v1792_v15 = vmul.f32 %v5312_v12, %v5068_v57 }
0x1b64   :  { %v1741_v41 = vpop.f32.mrf.mxu1 }
0x1b65   :  { %v1768_v43 = vadd.f32 %v1741_v41, %v5111_v60  ;;  %1745 = vrot.lane.b32.xlu2 %v1741_v41, %s4665_s5 }
0x1b67   :  { %1770 = vrot.lane.b32.xlu0 %v1768_v43, %s4661_s7 }
0x1b6f   :  { %1786 = vrot.lane.b32.xlu0 %v5312_v12, %s4668_s24 }
0x1bbf   :  { %v1746_v22 = vpop.permute.xlu2 %1745 }
0x1bc0   :  { %v1748_v47 = vadd.f32 %v1746_v22, %v5060_v33 }
0x1bc2   :  { %v3888_v6 = vmul.f32 -1.442695, %v1748_v47 }
0x1bc4   :  { %4147 = vpow2.f32 %v3888_v6 }
0x1bca   :  { %v4148_v11 = vpop.eup %4147 }
0x1bcb   :  { %v1752_v0 = vadd.f32 1.0, %v4148_v11 }
0x1bcd   :  { %4149 = vrcp.f32 %v1752_v0  ;;  %v1764_v46 = vand.u32 2147483648, %v1752_v0  ;;  %v1762_v51 = vand.u32 2147483647, %v1752_v0  ;;  %vm1758_vm8 = vweird.f32 %v1752_v0 }
0x1bcf   :  { %v1765_v3 = vor.u32 1.1754944e-38, %v1764_v46  ;;  %vm1763_vm10 = vcmp.eq.f32.partialorder %v1762_v51, 8.507059e+37 }
0x1bd3   :  { %v4150_v56 = vpop.eup %4149 }
0x1bd4   :  { %v1754_v54 = vmul.f32 %v4150_v56, %v1752_v0  ;;  %vm1759_vm7 = vweird.f32 %v4150_v56 }
0x1bd5   :  { %vm1760_vm9 = vmor %vm1758_vm8, %vm1759_vm7 }
0x1bd6   :  { %v1755_v61 = vsub.f32 1.0, %v1754_v54 }
0x1bd8   :  { %v1756_v7 = vmul.f32 %v4150_v56, %v1755_v61 }
0x1bd9   :  { %v1771_v55 = vpop.permute.xlu0 %1770 }
0x1bda   :  { %v1757_v52 = vadd.f32 %v4150_v56, %v1756_v7 }
0x1bdc   :  { %v1761_v4 = vsel %vm1760_vm9, %v4150_v56, %v1757_v52 }
0x1bdd   :  { %v1766_v63 = vsel %vm1763_vm10, %v1765_v3, %v1761_v4 }
0x1bde   :  { %v1773_v13 = vmul.f32 %v1771_v55, %v1766_v63  ;;  %v1780_v37 = vsub.f32 1.0, %v1766_v63 }
0x1be0   :  { %1775 = vrot.lane.b32.xlu1 %v1773_v13, %s4655_s21 }
0x1be1   :  { %v1787_v35 = vpop.permute.xlu0 %1786 }
0x1be2   :  { %v1789_v41 = vmul.f32 %v1787_v35, %v1766_v63 }
0x1be8   :  { %1794 = vrot.lane.b32.xlu1 %v1792_v15, %s4668_s24 }
0x1c52   :  { %v1776_v19 = vpop.permute.xlu1 %1775 }
0x1c53   :  { %v1778_v26 = vadd.f32 %v1776_v19, %v5060_v33 }
0x1c55   :  { %4151 = vtanh.f32 %v1778_v26 }
0x1c5a   :  { %v1795_v6 = vpop.permute.xlu1 %1794 }
0x1c5b   :  { %v4152_v9 = vpop.eup %4151 }
0x1c5c   :  { %1782 = vrot.lane.b32.xlu2 %v4152_v9, %s4658_s3 }
0x1cb6   :  { %v1783_v40 = vpop.permute.xlu2 %1782 }
0x1cb7   :  { %v1785_v43 = vmul.f32 %v1783_v40, %v1780_v37 }
0x1cb9   :  { %v1790_v22 = vadd.f32 %v1789_v41, %v1785_v43 }
0x1cbb   :  { %v1791_v47 = vmul.f32 %v1790_v22, %v5073_v2 }
0x1cbd   :  { %v5329_v11 = vadd.f32 %v1795_v6, %v1791_v47 }
0x1cbf   :  { %1800 = vrot.lane.b32.xlu2 %v5329_v11, %s4668_s24  ;;  %v1868_v35 = vrot.slane %v5329_v11, 2  ;;  %v1878_v22 = vmul.f32 %v5329_v11, %v5042_v16 }
0x1d19   :  { %v1801_v57 = vpop.permute.xlu2 %1800 }
0x1d1a   :  { %3889 = vmatmul.msk.f32.vlgmr.msrb.gmra.mxu2 %vm396_vm2, %v1801_v57 }
0x1d9d   :  { %v1821_v33 = vpop.f32.mrf.mxu2 }
0x1d9e   :  { %v1825_v0 = vrot.slane %v1821_v33, 2  ;;  %v1849_v56 = vadd.f32 %v1821_v33, %v5111_v60 }
0x1da0   :  { %v1851_v54 = vrot.slane %v1849_v56, 2  ;;  %1826 = vrot.lane.b32.xlu0 %v1825_v0, %s4665_s5 }
0x1da2   :  { %1852 = vrot.lane.b32.xlu1 %v1851_v54, %s4661_s7 }
0x1e12   :  { %v1827_v61 = vpop.permute.xlu0 %1826 }
0x1e13   :  { %v1829_v46 = vadd.f32 %v1827_v61, %v4948_v24 }
0x1e14   :  { %v1853_v37 = vpop.permute.xlu1 %1852 }
0x1e15   :  { %v3890_v7 = vmul.f32 -1.442695, %v1829_v46 }
0x1e17   :  { %4153 = vpow2.f32 %v3890_v7 }
0x1e1d   :  { %v4154_v51 = vpop.eup %4153 }
0x1e1e   :  { %v1833_v52 = vadd.f32 1.0, %v4154_v51 }
0x1e20   :  { %4155 = vrcp.f32 %v1833_v52  ;;  %v1845_v55 = vand.u32 2147483648, %v1833_v52  ;;  %v1843_v15 = vand.u32 2147483647, %v1833_v52  ;;  %vm1839_vm12 = vweird.f32 %v1833_v52 }
0x1e22   :  { %v1846_v26 = vor.u32 1.1754944e-38, %v1845_v55  ;;  %vm1844_vm14 = vcmp.eq.f32.partialorder %v1843_v15, 8.507059e+37 }
0x1e26   :  { %v4156_v3 = vpop.eup %4155 }
0x1e27   :  { %v1835_v4 = vmul.f32 %v4156_v3, %v1833_v52  ;;  %vm1840_vm11 = vweird.f32 %v4156_v3 }
0x1e28   :  { %vm1841_vm13 = vmor %vm1839_vm12, %vm1840_vm11 }
0x1e29   :  { %v1836_v63 = vsub.f32 1.0, %v1835_v4 }
0x1e2b   :  { %v1837_v13 = vmul.f32 %v4156_v3, %v1836_v63 }
0x1e2d   :  { %v1838_v19 = vadd.f32 %v4156_v3, %v1837_v13 }
0x1e2f   :  { %v1842_v9 = vsel %vm1841_vm13, %v4156_v3, %v1838_v19 }
0x1e30   :  { %v1847_v40 = vsel %vm1844_vm14, %v1846_v26, %v1842_v9 }
0x1e31   :  { %v1855_v41 = vmul.f32 %v1853_v37, %v1847_v40  ;;  %v1870_v43 = vmul.f32 %v1868_v35, %v1847_v40  ;;  %v1862_v33 = vsub.f32 1.0, %v1847_v40 }
0x1e33   :  { %1857 = vrot.lane.b32.xlu2 %v1855_v41, %s4655_s21 }
0x1e3b   :  { %1880 = vrot.lane.b32.xlu2 %v1878_v22, %s4668_s24 }
0x1e8d   :  { %v1858_v47 = vpop.permute.xlu2 %1857 }
0x1e8e   :  { %v1860_v6 = vadd.f32 %v1858_v47, %v4948_v24 }
0x1e90   :  { %4157 = vtanh.f32 %v1860_v6 }
0x1e95   :  { %v1881_v16 = vpop.permute.xlu2 %1880 }
0x1e96   :  { %v4158_v57 = vpop.eup %4157 }
0x1e97   :  { %1864 = vrot.lane.b32.xlu0 %v4158_v57, %s4658_s3 }
0x1f09   :  { %v1865_v0 = vpop.permute.xlu0 %1864 }
0x1f0a   :  { %v1867_v56 = vmul.f32 %v1865_v0, %v1862_v33 }
0x1f0c   :  { %v1871_v54 = vadd.f32 %v1870_v43, %v1867_v56 }
0x1f0e   :  { %v1873_v61 = vrot.slane %v1871_v54, 6 }
0x1f10   :  { %1874 = vrot.lane.b32.xlu1 %v1873_v61, %s4668_s24 }
0x1f82   :  { %v1875_v46 = vpop.permute.xlu1 %1874 }
0x1f83   :  { %v1877_v7 = vmul.f32 %v1875_v46, %v5044_v17 }
0x1f85   :  { %v5347_v51 = vadd.f32 %v1881_v16, %v1877_v7 }
0x1f87   :  { %3891 = vmatmul.msk.f32.vlgmr.msrb.gmra.mxu3 %vm396_vm2, %v5347_v51  ;;  %v1952_v55 = vrot.slane %v5347_v51, 4 }
0x200a   :  { %v1905_v52 = vpop.f32.mrf.mxu3 }
0x200b   :  { %v1909_v3 = vrot.slane %v1905_v52, 4  ;;  %v1933_v4 = vadd.f32 %v1905_v52, %v5111_v60 }
0x200d   :  { %v1935_v63 = vrot.slane %v1933_v4, 4  ;;  %1910 = vrot.lane.b32.xlu0 %v1909_v3, %s4665_s5 }
0x200f   :  { %1936 = vrot.lane.b32.xlu1 %v1935_v63, %s4661_s7 }
0x2017   :  { %1953 = vrot.lane.b32.xlu1 %v1952_v55, %s4668_s24 }
0x207f   :  { %v1911_v13 = vpop.permute.xlu0 %1910 }
0x2080   :  { %v1913_v15 = vadd.f32 %v1911_v13, %v4948_v24 }
0x2081   :  { %v1937_v33 = vpop.permute.xlu1 %1936 }
0x2082   :  { %v3892_v19 = vmul.f32 -1.442695, %v1913_v15  ;;  %v1964_v15 = vmul.f32 %v5347_v51, %v5007_v21  ;;  %v1269_v21 = vadd.f32 %v5280_v49, %v4937_v18 }
0x2084   :  { %4159 = vpow2.f32 %v3892_v19 }
0x2089   :  { %v1954_v16 = vpop.permute.xlu1 %1953 }
0x208a   :  { %v4160_v26 = vpop.eup %4159 }
0x208b   :  { %v1917_v9 = vadd.f32 1.0, %v4160_v26 }
0x208d   :  { %4161 = vrcp.f32 %v1917_v9  ;;  %v1929_v41 = vand.u32 2147483648, %v1917_v9  ;;  %v1927_v22 = vand.u32 2147483647, %v1917_v9  ;;  %vm1923_vm1 = vweird.f32 %v1917_v9 }
0x208f   :  { %v1930_v6 = vor.u32 1.1754944e-38, %v1929_v41  ;;  %vm1928_vm4 = vcmp.eq.f32.partialorder %v1927_v22, 8.507059e+37 }
0x2093   :  { %v4162_v35 = vpop.eup %4161 }
0x2094   :  { %v1919_v37 = vmul.f32 %v4162_v35, %v1917_v9  ;;  %vm1924_vm15 = vweird.f32 %v4162_v35 }
0x2095   :  { %vm1925_vm3 = vmor %vm1923_vm1, %vm1924_vm15 }
0x2096   :  { %v1920_v40 = vsub.f32 1.0, %v1919_v37 }
0x2098   :  { %v1921_v43 = vmul.f32 %v4162_v35, %v1920_v40 }
0x209a   :  { %v1922_v47 = vadd.f32 %v4162_v35, %v1921_v43  ;;  %v1271_v43 = vrot.slane %v1269_v21, 6 }
0x209c   :  { %v1926_v57 = vsel %vm1925_vm3, %v4162_v35, %v1922_v47  ;;  %vm2132_vm3 = vcmask 254976  }
0x209d   :  { %v1931_v0 = vsel %vm1928_vm4, %v1930_v6, %v1926_v57  ;;  %vm2252_vm4 = vcmask 190464  }
0x209e   :  { %v1939_v56 = vmul.f32 %v1937_v33, %v1931_v0  ;;  %v1946_v7 = vsub.f32 1.0, %v1931_v0  ;;  %v1956_v3 = vmul.f32 %v1954_v16, %v1931_v0 }
0x20a0   :  { %1941 = vrot.lane.b32.xlu2 %v1939_v56, %s4655_s21 }
0x20fa   :  { %v1942_v54 = vpop.permute.xlu2 %1941 }
0x20fb   :  { %v1944_v61 = vadd.f32 %v1942_v54, %v4948_v24 }
0x20fd   :  { %4163 = vtanh.f32 %v1944_v61 }
0x2103   :  { %v4164_v46 = vpop.eup %4163 }
0x2104   :  { %1948 = vrot.lane.b32.xlu0 %v4164_v46, %s4658_s3 }
0x2176   :  { %v1949_v52 = vpop.permute.xlu0 %1948 }
0x2177   :  { %v1951_v4 = vmul.f32 %v1949_v52, %v1946_v7 }
0x2179   :  { %v1957_v63 = vadd.f32 %v1956_v3, %v1951_v4 }
0x217b   :  { %v1959_v55 = vrot.slane %v1957_v63, 4 }
0x217d   :  { %1960 = vrot.lane.b32.xlu2 %v1959_v55, %s4668_s24 }
0x21d7   :  { %v1961_v13 = vpop.permute.xlu2 %1960 }
0x21d8   :  { %v1963_v19 = vmul.f32 %v1961_v13, %v5009_v23 }
0x21da   :  { %v5364_v26 = vadd.f32 %v1964_v15, %v1963_v19 }
0x21dc   :  { %3893 = vmatmul.msk.f32.vlgmr.msrb.gmra.mxu0 %vm396_vm2, %v5364_v26  ;;  %v2034_v41 = vrot.slane %v5364_v26, 6 }
0x2259   :  { %v1987_v9 = vpop.f32.mrf.mxu0 }
0x225a   :  { %v1991_v35 = vrot.slane %v1987_v9, 6  ;;  %v2015_v37 = vadd.f32 %v1987_v9, %v5111_v60 }
0x225c   :  { %v2017_v40 = vrot.slane %v2015_v37, 6  ;;  %1992 = vrot.lane.b32.xlu0 %v1991_v35, %s4665_s5 }
0x225e   :  { %2018 = vrot.lane.b32.xlu1 %v2017_v40, %s4661_s7 }
0x2266   :  { %2035 = vrot.lane.b32.xlu1 %v2034_v41, %s4668_s24 }
0x226e   :  { %1272 = vrot.lane.b32.xlu1 %v1271_v43, %s4657_s4 }
0x22ce   :  { %v1993_v22 = vpop.permute.xlu0 %1992 }
0x22cf   :  { %v1995_v47 = vadd.f32 %v1993_v22, %v4948_v24  ;;  %v2046_v22 = vmul.f32 %v5364_v26, %v4973_v20 }
0x22d0   :  { %v2019_v3 = vpop.permute.xlu1 %2018 }
0x22d1   :  { %v3894_v6 = vmul.f32 -1.442695, %v1995_v47 }
0x22d3   :  { %4165 = vpow2.f32 %v3894_v6 }
0x22d8   :  { %v2036_v9 = vpop.permute.xlu1 %2035 }
0x22d9   :  { %v4166_v57 = vpop.eup %4165 }
0x22da   :  { %v1999_v33 = vadd.f32 1.0, %v4166_v57  ;;  %v1247_v57 = vrot.slane %v5280_v49, 6 }
0x22dc   :  { %4167 = vrcp.f32 %v1999_v33  ;;  %v2011_v61 = vand.u32 2147483648, %v1999_v33  ;;  %v2009_v7 = vand.u32 2147483647, %v1999_v33  ;;  %vm2005_vm6 = vweird.f32 %v1999_v33 }
0x22de   :  { %v2012_v18 = vor.u32 1.1754944e-38, %v2011_v61  ;;  %vm2010_vm8 = vcmp.eq.f32.partialorder %v2009_v7, 8.507059e+37 }
0x22e2   :  { %v4168_v0 = vpop.eup %4167 }
0x22e3   :  { %v2001_v56 = vmul.f32 %v4168_v0, %v1999_v33  ;;  %vm2006_vm5 = vweird.f32 %v4168_v0  ;;  %v1249_v33 = vadd.f32 %v1247_v57, %v5127_v32 }
0x22e4   :  { %vm2007_vm7 = vmor %vm2005_vm6, %vm2006_vm5 }
0x22e5   :  { %v2002_v54 = vsub.f32 1.0, %v2001_v56 }
0x22e7   :  { %v2003_v46 = vmul.f32 %v4168_v0, %v2002_v54 }
0x22e9   :  { %v2004_v16 = vadd.f32 %v4168_v0, %v2003_v46 }
0x22eb   :  { %v2008_v52 = vsel %vm2007_vm7, %v4168_v0, %v2004_v16  ;;  %v3877_v0 = vmul.f32 -1.442695, %v1249_v33 }
0x22ec   :  { %v2013_v4 = vsel %vm2010_vm8, %v2012_v18, %v2008_v52 }
0x22ed   :  { %v2021_v63 = vmul.f32 %v2019_v3, %v2013_v4  ;;  %v2028_v19 = vsub.f32 1.0, %v2013_v4  ;;  %v2038_v37 = vmul.f32 %v2036_v9, %v2013_v4 }
0x22ef   :  { %2023 = vrot.lane.b32.xlu2 %v2021_v63, %s4655_s21  ;;  %v1273_v63 = vpop.permute.xlu1 %1272 }
0x2349   :  { %v2024_v55 = vpop.permute.xlu2 %2023 }
0x234a   :  { %v2026_v13 = vadd.f32 %v2024_v55, %v4948_v24 }
0x234c   :  { %4169 = vtanh.f32 %v2026_v13 }
0x234d   :  { %4171 = vpow2.f32 %v3877_v0 }
0x2352   :  { %v4170_v15 = vpop.eup %4169 }
0x2353   :  { %2030 = vrot.lane.b32.xlu0 %v4170_v15, %s4658_s3  ;;  %v4172_v56 = vpop.eup %4171 }
0x2354   :  { %v1253_v54 = vadd.f32 1.0, %v4172_v56 }
0x2356   :  { %4173 = vrcp.f32 %v1253_v54  ;;  %v1265_v18 = vand.u32 2147483648, %v1253_v54  ;;  %vm1259_vm10 = vweird.f32 %v1253_v54  ;;  %v1263_v3 = vand.u32 2147483647, %v1253_v54 }
0x2358   :  { %v1266_v55 = vor.u32 1.1754944e-38, %v1265_v18  ;;  %vm1264_vm12 = vcmp.eq.f32.partialorder %v1263_v3, 8.507059e+37 }
0x235c   :  { %v4174_v61 = vpop.eup %4173 }
0x235d   :  { %v1255_v46 = vmul.f32 %v4174_v61, %v1253_v54  ;;  %vm1260_vm9 = vweird.f32 %v4174_v61 }
0x235e   :  { %vm1261_vm11 = vmor %vm1259_vm10, %vm1260_vm9  ;;  %vm2284_vm10 = vcmask 195584  }
0x235f   :  { %v1256_v7 = vsub.f32 1.0, %v1255_v46 }
0x2361   :  { %v1257_v20 = vmul.f32 %v4174_v61, %v1256_v7 }
0x2363   :  { %v1258_v16 = vadd.f32 %v4174_v61, %v1257_v20 }
0x2365   :  { %v1262_v49 = vsel %vm1261_vm11, %v4174_v61, %v1258_v16 }
0x2366   :  { %v1267_v13 = vsel %vm1264_vm12, %v1266_v55, %v1262_v49  ;;  %v1288_v49 = vrot.slane %v5267_v39, 6 }
0x2367   :  { %v1275_v15 = vmul.f32 %v1273_v63, %v1267_v13  ;;  %v1282_v3 = vsub.f32 1.0, %v1267_v13 }
0x2368   :  { %v1290_v55 = vmul.f32 %v1288_v49, %v1267_v13  ;;  %v4058_v49 = vld [vmem:[#allocation18] ss:$0 sm:$0xff] }
0x23c5   :  { %v2031_v35 = vpop.permute.xlu0 %2030 }
0x23c6   :  { %v2033_v40 = vmul.f32 %v2031_v35, %v2028_v19 }
0x23c8   :  { %v2039_v41 = vadd.f32 %v2038_v37, %v2033_v40 }
0x23ca   :  { %v2041_v21 = vrot.slane %v2039_v41, 2 }
0x23cc   :  { %2042 = vrot.lane.b32.xlu2 %v2041_v21, %s4668_s24 }
0x2426   :  { %v2043_v43 = vpop.permute.xlu2 %2042 }
0x2427   :  { %v2045_v47 = vmul.f32 %v2043_v43, %v4984_v34 }
0x2429   :  { %v5384_v6 = vadd.f32 %v2046_v22, %v2045_v47 }
0x242b   :  { %3895 = vmatmul.msk.f32.vlgmr.msra.gmra.mxu1 %vm396_vm2, %v5384_v6  ;;  %v2120_v57 = vmul.f32 %v5384_v6, %v4955_v48  ;;  %v1306_v48 = vmul.f32 %v5175_v14, %v5267_v39 }
0x24a8   :  { %v2069_v52 = vpop.f32.mrf.mxu1 }
0x24a9   :  { %v2096_v4 = vadd.f32 %v2069_v52, %v5111_v60  ;;  %2073 = vrot.lane.b32.xlu0 %v2069_v52, %s4665_s5 }
0x24ab   :  { %2098 = vrot.lane.b32.xlu2 %v2096_v4, %s4661_s7 }
0x24b1   :  { %1277 = vrot.lane.b32.xlu0 %v1275_v15, %s4655_s21 }
0x2505   :  { %v2099_v46 = vpop.permute.xlu2 %2098 }
0x251b   :  { %v2074_v19 = vpop.permute.xlu0 %2073 }
0x251c   :  { %v2076_v9 = vadd.f32 %v2074_v19, %v4948_v24  ;;  %v2311_v19 = vld [vmem:[%s5935_s27 + $0x18] sm:$0xff] }
0x251d   :  { %2331 = vmatpush.msra.mxu3 %v2311_v19 }
0x251e   :  { %v3896_v35 = vmul.f32 -1.442695, %v2076_v9  ;;  %v2310_v9 = vld [vmem:[%s5935_s27 + $0x10] sm:$0xff] }
0x251f   :  { %2332 = vmatpush.msra.mxu3 %v2310_v9 }
0x2520   :  { %4175 = vpow2.f32 %v3896_v35  ;;  %v2309_v35 = vld [vmem:[%s5935_s27 + $0x8] sm:$0xff] }
0x2521   :  { %2333 = vmatpush.msra.mxu3 %v2309_v35 }
0x2523   :  { %v1278_v37 = vpop.permute.xlu0 %1277 }
0x2524   :  { %v1280_v60 = vadd.f32 %v1278_v37, %v5127_v32 }
0x2526   :  { %v4176_v40 = vpop.eup %4175  ;;  %4177 = vtanh.f32 %v1280_v60 }
0x2527   :  { %v2080_v41 = vadd.f32 1.0, %v4176_v40 }
0x2529   :  { %4179 = vrcp.f32 %v2080_v41  ;;  %v2092_v33 = vand.u32 2147483648, %v2080_v41  ;;  %v2090_v56 = vand.u32 2147483647, %v2080_v41  ;;  %vm2086_vm14 = vweird.f32 %v2080_v41 }
0x252b   :  { %v2093_v54 = vor.u32 1.1754944e-38, %v2092_v33  ;;  %vm2091_vm1 = vcmp.eq.f32.partialorder %v2090_v56, 8.507059e+37  ;;  %v2345_v33 = vld [vmem:[%s5936_s19 + $0x30] sm:$0xff]  ;;  %v2343_v56 = vld [vmem:[%s5936_s19 + $0x20] sm:$0xff] }
0x252c   :  { %v4178_v21 = vpop.eup %4177  ;;  %2368 = vmatpush.msra.mxu0 %v2345_v33 }
0x252d   :  { %1284 = vrot.lane.b32.xlu2 %v4178_v21, %s4658_s3 }
0x252e   :  { %2369 = vmatpush.msra.mxu0 %v2343_v56 }
0x252f   :  { %v4180_v43 = vpop.eup %4179 }
0x2530   :  { %v2082_v22 = vmul.f32 %v4180_v43, %v2080_v41  ;;  %vm2087_vm13 = vweird.f32 %v4180_v43 }
0x2531   :  { %vm2088_vm15 = vmor %vm2086_vm14, %vm2087_vm13 }
0x2532   :  { %v2083_v47 = vsub.f32 1.0, %v2082_v22 }
0x2534   :  { %v2084_v0 = vmul.f32 %v4180_v43, %v2083_v47 }
0x2535   :  { %2122 = vrot.lane.b32.xlu2 %v2120_v57, %s4668_s24  ;;  %v2346_v57 = vld [vmem:[%s5936_s19 + $0x38] sm:$0xff] }
0x2536   :  { %v2085_v32 = vadd.f32 %v4180_v43, %v2084_v0  ;;  %v2344_v0 = vld [vmem:[%s5936_s19 + $0x28] sm:$0xff]  ;;  %2388 = vmatpush.msrb.mxu1 %v2346_v57 }
0x2538   :  { %v2089_v61 = vsel %vm2088_vm15, %v4180_v43, %v2085_v32  ;;  %v2342_v32 = vld [vmem:[%s5936_s19 + $0x18] sm:$0xff]  ;;  %2389 = vmatpush.msrb.mxu1 %v2344_v0 }
0x2539   :  { %v2094_v7 = vsel %vm2091_vm1, %v2093_v54, %v2089_v61 }
0x253a   :  { %v2101_v20 = vmul.f32 %v2099_v46, %v2094_v7  ;;  %v2108_v13 = vsub.f32 1.0, %v2094_v7  ;;  %2390 = vmatpush.msrb.mxu1 %v2342_v32 }
0x253c   :  { %2103 = vrot.lane.b32.xlu1 %v2101_v20, %s4655_s21 }
0x2544   :  { %2114 = vrot.lane.b32.xlu1 %v5384_v6, %s4668_s24 }
0x254c   :  { %1308 = vrot.lane.b32.xlu1 %v1306_v48, %s4658_s3 }
0x2587   :  { %v1285_v52 = vpop.permute.xlu2 %1284 }
0x2588   :  { %v1287_v4 = vmul.f32 %v1285_v52, %v1282_v3  ;;  %v2339_v52 = vld [vmem:[%s5936_s19] sm:$0xff] }
0x2589   :  { %v2251_v3 = vld [vmem:[%s5937_s2] sm:$0x7] }
0x258a   :  { %v1291_v15 = vadd.f32 %v1290_v55, %v1287_v4  ;;  %v2253_v4 = vsel %vm2252_vm4, %v2251_v3, -inf }
0x258c   :  { %v1297_v14 = vrot.slane %v1291_v15, 2  ;;  %v2347_v15 = vld [vmem:[#allocation20] sm:$0x3] }
0x258d   :  { %v2349_v35 = vperm.slane %v2347_v15, 0 }
0x258f   :  { %v2123_v22 = vpop.permute.xlu2 %2122 }
0x25ae   :  { %v2104_v16 = vpop.permute.xlu1 %2103 }
0x25af   :  { %v2106_v18 = vadd.f32 %v2104_v16, %v4948_v24  ;;  %v2308_v24 = vld [vmem:[%s5935_s27] sm:$0xff]  ;;  %v2341_v16 = vld [vmem:[%s5936_s19 + $0x10] sm:$0xff] }
0x25b0   :  { %2334 = vmatpush.msra.mxu3 %v2308_v24  ;;  %2370 = vmatpush.msra.mxu0 %v2341_v16 }
0x25b1   :  { %4181 = vtanh.f32 %v2106_v18  ;;  %v2340_v18 = vld [vmem:[%s5936_s19 + $0x8] sm:$0xff] }
0x25b2   :  { %2391 = vmatpush.msrb.mxu1 %v2340_v18  ;;  %2371 = vmatpush.msra.mxu0 %v2339_v52 }
0x25b6   :  { %v2115_v37 = vpop.permute.xlu1 %2114 }
0x25b7   :  { %v4182_v63 = vpop.eup %4181  ;;  %v2117_v40 = vmul.f32 %v2115_v37, %v2094_v7 }
0x25b8   :  { %2110 = vrot.lane.b32.xlu0 %v4182_v63, %s4658_s3 }
0x25be   :  { %v1309_v46 = vpop.permute.xlu1 %1308 }
0x25c0   :  { %1298 = vrot.lane.b32.xlu0 %v1297_v14, %s4658_s3  ;;  %v2350_v14 = vperm.slane %v2347_v15, 1 }
0x25ea   :  { %2254 = vmax.xlane.f32.xlu0 %v2253_v4  ;;  %v2278_v4 = vld [vmem:[#allocation15 + $0x8] sm:$0xff] }
0x262a   :  { %v2111_v60 = vpop.permute.xlu0 %2110 }
0x262b   :  { %v2113_v41 = vmul.f32 %v2111_v60, %v2108_v13 }
0x262d   :  { %v2118_v21 = vadd.f32 %v2117_v40, %v2113_v41 }
0x262f   :  { %v2119_v43 = vmul.f32 %v2118_v21, %v4957_v50 }
0x2631   :  { %v5415_v47 = vadd.f32 %v2123_v22, %v2119_v43  ;;  %v4672_v43 = vmov 3.0  }
0x2632   :  { %v1299_v54 = vpop.permute.xlu0 %1298 }
0x2633   :  { %2128 = vrot.lane.b32.xlu2 %v5415_v47, %s4671_s22  ;;  %v1301_v61 = vmul.f32 %v1299_v54, %v5181_v42 }
0x2635   :  { %v5425_v7 = vadd.f32 %v1309_v46, %v1301_v61 }
0x265d   :  { %v2255_v13 = vpop.xlane.xlu0 %2254 }
0x265e   :  { %v2256_v60 = vsub.f32 %v2251_v3, %v2255_v13  ;;  %v2279_v3 = vld [vmem:[#allocation15 + $0x10] sm:$0xff] }
0x265f   :  { %2301 = vmatpush.msra.mxu2 %v2279_v3 }
0x2660   :  { %v2257_v40 = vmul.f32 1.442695, %v2256_v60 }
0x2661   :  { %2302 = vmatpush.msra.mxu2 %v2278_v4 }
0x2662   :  { %4183 = vpow2.f32 %v2257_v40 }
0x2663   :  { %4185 = vrcp.f32 %v4672_v43 }
0x2668   :  { %v4184_v41 = vpop.eup %4183 }
0x2669   :  { %v2259_v21 = vsel %vm2252_vm4, %v4184_v41, 0.0  ;;  %v4186_v22 = vpop.eup %4185 }
0x266a   :  { %v2407_v57 = vmul.f32 3.0, %v4186_v22  ;;  %vm2411_vm5 = vweird.f32 %v4186_v22 }
0x266c   :  { %v2408_v33 = vsub.f32 1.0, %v2407_v57 }
0x266e   :  { %v2409_v0 = vmul.f32 %v4186_v22, %v2408_v33 }
0x2670   :  { %v2410_v56 = vadd.f32 %v4186_v22, %v2409_v0 }
0x268d   :  { %v2129_v20 = vpop.permute.xlu2 %2128 }
0x268e   :  { %v2131_v48 = vsel %vm396_vm2, %v5425_v7, %v2129_v20  ;;  %v5452_v20 = vsel %vm2411_vm5, %v4186_v22, %v2410_v56  ;;  %v2834_v56 = vld [vmem:[%s5939_s20 + $0x8] sm:$0xff] }
0x268f   :  { %3898 = vmatmul.msk.f32.vlgmr.msra.gmra.mxu3 %vm309_vm0, %v2131_v48  ;;  %2133 = vst.msk [vmem:[#allocation24] sm:$0x3] %vm2132_vm3, %v2131_v48 }
0x2712   :  { %v2336_v63 = vpop.f32.mrf.mxu3 }
0x2713   :  { %v2337_v55 = vadd.f32 %v4058_v49, %v2336_v63  ;;  %v2277_v49 = vld [vmem:[#allocation15] sm:$0xff]  ;;  %v2799_v63 = vld [vmem:[%s5938_s28 + $0x8] sm:$0xff] }
0x2714   :  { %2303 = vmatpush.msra.mxu2 %v2277_v49 }
0x2715   :  { %3899 = vmatmul.msk.f32.vlgmr.msra.gmra.mxu0 %vm309_vm0, %v2337_v55  ;;  %3900 = vmatmul.msk.f32.vlgmr.msrb.gmra.mxu1 %vm309_vm0, %v2337_v55  ;;  %v2798_v55 = vld [vmem:[%s5938_s28] sm:$0xff] }
0x2716   :  { %2824 = vmatpush.msrb.mxu2 %v2799_v63 }
0x2718   :  { %2825 = vmatpush.msrb.mxu2 %v2798_v55  ;;  %v5486_v55 = vld [vmem:[%s5942_s15] ss:$0 sm:$0xff] }
0x2792   :  { %v2393_v19 = vpop.f32.mrf.mxu1  ;;  %v2373_v24 = vpop.f32.mrf.mxu0 }
0x2793   :  { %v5438_v9 = vadd.f32 %v2393_v19, %v2350_v14  ;;  %v5444_v37 = vadd.f32 %v2373_v24, %v2349_v35  ;;  %v2836_v14 = vld [vmem:[%s5939_s20 + $0x18] sm:$0xff]  ;;  %v2835_v19 = vld [vmem:[%s5939_s20 + $0x10] sm:$0xff] }
0x2794   :  { %2853 = vmatpush.msrb.mxu3 %v2836_v14  ;;  %2928 = vmatpush.msrb.mxu0 %v2836_v14 }
0x2795   :  { %2419 = vrot.lane.b32.xlu2 %v5438_v9, %s4668_s24  ;;  %2415 = vrot.lane.b32.xlu1 %v5438_v9, %s4657_s4 }
0x2796   :  { %3005 = vmatpush.msra.mxu1 %v2836_v14  ;;  %2854 = vmatpush.msrb.mxu3 %v2835_v19 }
0x2797   :  { %2929 = vmatpush.msrb.mxu0 %v2835_v19 }
0x2798   :  { %3006 = vmatpush.msra.mxu1 %v2835_v19  ;;  %2855 = vmatpush.msrb.mxu3 %v2834_v56 }
0x2799   :  { %2930 = vmatpush.msrb.mxu0 %v2834_v56 }
0x279a   :  { %3007 = vmatpush.msra.mxu1 %v2834_v56 }
0x279d   :  { %2398 = vrot.lane.b32.xlu2 %v5444_v37, %s4657_s4 }
0x27a5   :  { %2402 = vrot.lane.b32.xlu2 %v5444_v37, %s4668_s24 }
0x27bf   :  { %2260 = vadd.xlane.f32.xlu1 %v2259_v21 }
0x27ef   :  { %v2420_v61 = vpop.permute.xlu2 %2419 }
0x2807   :  { %v2416_v32 = vpop.permute.xlu1 %2415 }
0x2808   :  { %v2418_v54 = vadd.f32 %v2416_v32, %v5444_v37  ;;  %v2833_v32 = vld [vmem:[%s5939_s20] sm:$0xff] }
0x2809   :  { %2856 = vmatpush.msrb.mxu3 %v2833_v32  ;;  %2931 = vmatpush.msrb.mxu0 %v2833_v32 }
0x280a   :  { %v2422_v46 = vadd.f32 %v2420_v61, %v2418_v54  ;;  %v4059_v54 = vld [vmem:[%s5940_s11] ss:$0 sm:$0xff]  ;;  %3008 = vmatpush.msra.mxu1 %v2833_v32 }
0x280b   :  { %3082 = vmatpush.msra.mxu3 %v2836_v14  ;;  %3159 = vmatpush.msra.mxu0 %v2836_v14 }
0x280c   :  { %v2423_v48 = vmul.f32 %v2422_v46, %v5452_v20  ;;  %3227 = vmatpush.msrb.mxu1 %v2836_v14  ;;  %v2424_v46 = vld [vmem:[%s5941_s30] sm:$0x3] }
0x280d   :  { %3083 = vmatpush.msra.mxu3 %v2835_v19  ;;  %3160 = vmatpush.msra.mxu0 %v2835_v19 }
0x280e   :  { %v2425_v16 = vmul.f32 0.5, %v2423_v48  ;;  %3228 = vmatpush.msrb.mxu1 %v2835_v19 }
0x280f   :  { %3084 = vmatpush.msra.mxu3 %v2834_v56  ;;  %3161 = vmatpush.msra.mxu0 %v2834_v56 }
0x2810   :  { %v2426_v18 = vmul.f32 1.442695, %v2425_v16  ;;  %3229 = vmatpush.msrb.mxu1 %v2834_v56 }
0x2811   :  { %3085 = vmatpush.msra.mxu3 %v2833_v32  ;;  %3162 = vmatpush.msra.mxu0 %v2833_v32 }
0x2812   :  { %4187 = vpow2.f32 %v2426_v18  ;;  %3230 = vmatpush.msrb.mxu1 %v2833_v32 }
0x2818   :  { %v4188_v52 = vpop.eup %4187 }
0x2819   :  { %2429 = vrot.lane.b32.xlu2 %v4188_v52, %s4655_s21 }
0x2821   :  { %2883 = vrot.lane.b32.xlu2 %v4059_v54, %s4668_s24 }
0x2832   :  { %v2261_v15 = vpop.xlane.xlu1 %2260 }
0x2833   :  { %4189 = vrcp.f32 %v2261_v15  ;;  %v2273_v13 = vand.u32 2147483648, %v2261_v15  ;;  %vm2267_vm6 = vweird.f32 %v2261_v15  ;;  %v2271_v40 = vand.u32 2147483647, %v2261_v15 }
0x2835   :  { %v2274_v43 = vor.u32 1.1754944e-38, %v2273_v13  ;;  %vm2272_vm9 = vcmp.eq.f32.partialorder %v2271_v40, 8.507059e+37 }
0x2839   :  { %v4190_v35 = vpop.eup %4189 }
0x283a   :  { %v2263_v24 = vmul.f32 %v4190_v35, %v2261_v15  ;;  %vm2268_vm7 = vweird.f32 %v4190_v35 }
0x283b   :  { %vm2269_vm8 = vmor %vm2267_vm6, %vm2268_vm7 }
0x283c   :  { %v2264_v60 = vsub.f32 1.0, %v2263_v24 }
0x283e   :  { %v2265_v21 = vmul.f32 %v4190_v35, %v2264_v60 }
0x2840   :  { %v2266_v22 = vadd.f32 %v4190_v35, %v2265_v21 }
0x2842   :  { %v2270_v57 = vsel %vm2269_vm8, %v4190_v35, %v2266_v22 }
0x2843   :  { %v2275_v33 = vsel %vm2272_vm9, %v2274_v43, %v2270_v57 }
0x2844   :  { %v2276_v0 = vmul.f32 %v4184_v41, %v2275_v33 }
0x2846   :  { %3897 = vmatmul.msk.f32.vlgmr.msra.gmra.mxu2 %vm2284_vm10, %v2276_v0 }
0x284e   :  { %3910 = vmatmul.msk.f32.vlgmr.msrb.gmra.mxu2 %vm396_vm2, %v5191_v45  ;;  %v5468_v45 = vpop.permute.xlu2 %2398 }
0x284f   :  { %v2401_v41 = vadd.f32 %v5468_v45, %v5444_v37 }
0x2856   :  { %3911 = vmatmul.msk.f32.gmra.mxu2 %vm396_vm2, %v5193_v30  ;;  %v5470_v30 = vpop.permute.xlu2 %2402 }
0x2857   :  { %v2405_v61 = vadd.f32 %v5470_v30, %v2401_v41 }
0x2859   :  { %v2413_v16 = vmul.f32 %v5452_v20, %v2405_v61 }
0x2873   :  { %v2430_v48 = vpop.permute.xlu2 %2429 }
0x2874   :  { %v2432_v18 = vmul.f32 %v2430_v48, %v2424_v46 }
0x2876   :  { %v2433_v52 = vadd.f32 %v2432_v18, %v2413_v16 }
0x2878   :  { %3912 = vmatmul.msk.f32.vlgmr.msrb.gmra.mxu3 %vm309_vm0, %v2433_v52  ;;  %2904 = vrot.lane.b32.xlu1 %v2433_v52, %s4655_s21 }
0x287b   :  { %v5479_v3 = vpop.permute.xlu2 %2883 }
0x28c9   :  { %v5483_v63 = vpop.f32.mrf.mxu2 }
0x28d1   :  { %v2827_v15 = vpop.f32.mrf.mxu2 }
0x28d2   :  { %v5489_v14 = vadd.f32 %v5486_v55, %v2827_v15 }
0x28ea   :  { %v2905_v18 = vpop.permute.xlu1 %2904 }
0x28fb   :  { %v2858_v4 = vpop.f32.mrf.mxu3 }
0x28fc   :  { %v2886_v49 = vadd.f32 %v5479_v3, %v2858_v4  ;;  %v2861_v19 = vadd.f32 %v2858_v4, %v5489_v14 }
0x28fe   :  { %2888 = vrot.lane.b32.xlu2 %v2886_v49, %s4668_s24  ;;  %v3913_v35 = vmul.f32 -1.442695, %v2861_v19 }
0x2900   :  { %4191 = vpow2.f32 %v3913_v35 }
0x2906   :  { %v4192_v24 = vpop.eup %4191 }
0x2907   :  { %v2865_v13 = vadd.f32 1.0, %v4192_v24 }
0x2909   :  { %4193 = vrcp.f32 %v2865_v13  ;;  %v2877_v57 = vand.u32 2147483648, %v2865_v13  ;;  %vm2871_vm12 = vweird.f32 %v2865_v13  ;;  %v2875_v33 = vand.u32 2147483647, %v2865_v13 }
0x290b   :  { %v2878_v56 = vor.u32 1.1754944e-38, %v2877_v57  ;;  %vm2876_vm14 = vcmp.eq.f32.partialorder %v2875_v33, 8.507059e+37 }
0x290f   :  { %v4194_v60 = vpop.eup %4193 }
0x2910   :  { %v2867_v40 = vmul.f32 %v4194_v60, %v2865_v13  ;;  %vm2872_vm11 = vweird.f32 %v4194_v60 }
0x2911   :  { %vm2873_vm13 = vmor %vm2871_vm12, %vm2872_vm11 }
0x2912   :  { %v2868_v21 = vsub.f32 1.0, %v2867_v40 }
0x2914   :  { %v2869_v43 = vmul.f32 %v4194_v60, %v2868_v21 }
0x2916   :  { %v2870_v22 = vadd.f32 %v4194_v60, %v2869_v43 }
0x2918   :  { %v2874_v0 = vsel %vm2873_vm13, %v4194_v60, %v2870_v22 }
0x2919   :  { %v2879_v54 = vsel %vm2876_vm14, %v2878_v56, %v2874_v0 }
0x291a   :  { %v2898_v16 = vsub.f32 1.0, %v2879_v54  ;;  %v2907_v49 = vmul.f32 %v2905_v18, %v2879_v54 }
0x2958   :  { %v2889_v32 = vpop.permute.xlu2 %2888 }
0x2959   :  { %v2891_v41 = vmul.f32 %v2889_v32, %v2879_v54 }
0x295b   :  { %2893 = vrot.lane.b32.xlu0 %v2891_v41, %s4668_s24 }
0x29cd   :  { %v2894_v61 = vpop.permute.xlu0 %2893 }
0x29ce   :  { %v2896_v46 = vadd.f32 %v2894_v61, %v5489_v14 }
0x29d0   :  { %4195 = vtanh.f32 %v2896_v46 }
0x29d6   :  { %v4196_v48 = vpop.eup %4195 }
0x29d7   :  { %2900 = vrot.lane.b32.xlu2 %v4196_v48, %s4657_s4 }
0x2a31   :  { %v2901_v52 = vpop.permute.xlu2 %2900 }
0x2a32   :  { %v2903_v4 = vmul.f32 %v2901_v52, %v2898_v16 }
0x2a34   :  { %v2908_v15 = vadd.f32 %v2907_v49, %v2903_v4 }
0x2a36   :  { %2910 = vrot.lane.b32.xlu2 %v2908_v15, %s4657_s4 }
0x2a90   :  { %v2911_v19 = vpop.permute.xlu2 %2910 }
0x2a91   :  { %2913 = vst.msk [vmem:[#allocation4] sm:$0x3] %vm2132_vm3, %v2911_v19  ;;  %3914 = vmatmul.msk.f32.vlgmr.msrb.gmra.mxu0 %vm309_vm0, %v2911_v19  ;;  %v2978_v19 = vrot.slane %v2908_v15, 6 }
0x2b0e   :  { %v2933_v35 = vpop.f32.mrf.mxu0 }
0x2b0f   :  { %v2959_v24 = vadd.f32 %v2933_v35, %v5479_v3  ;;  %v2937_v60 = vrot.slane %v2933_v35, 6 }
0x2b11   :  { %v2961_v13 = vrot.slane %v2959_v24, 6  ;;  %v2939_v40 = vadd.f32 %v2937_v60, %v5489_v14 }
0x2b13   :  { %2962 = vrot.lane.b32.xlu0 %v2961_v13, %s4668_s24  ;;  %v3915_v21 = vmul.f32 -1.442695, %v2939_v40 }
0x2b15   :  { %4197 = vpow2.f32 %v3915_v21 }
0x2b1b   :  { %v4198_v43 = vpop.eup %4197 }
0x2b1c   :  { %v2943_v22 = vadd.f32 1.0, %v4198_v43 }
0x2b1e   :  { %4199 = vrcp.f32 %v2943_v22  ;;  %v2955_v54 = vand.u32 2147483648, %v2943_v22  ;;  %vm2949_vm1 = vweird.f32 %v2943_v22  ;;  %v2953_v41 = vand.u32 2147483647, %v2943_v22 }
0x2b20   :  { %v2956_v46 = vor.u32 1.1754944e-38, %v2955_v54  ;;  %vm2954_vm5 = vcmp.eq.f32.partialorder %v2953_v41, 8.507059e+37 }
0x2b24   :  { %v4200_v57 = vpop.eup %4199 }
0x2b25   :  { %v2945_v33 = vmul.f32 %v4200_v57, %v2943_v22  ;;  %vm2950_vm15 = vweird.f32 %v4200_v57 }
0x2b26   :  { %vm2951_vm4 = vmor %vm2949_vm1, %vm2950_vm15 }
0x2b27   :  { %v2946_v0 = vsub.f32 1.0, %v2945_v33 }
0x2b29   :  { %v2947_v56 = vmul.f32 %v4200_v57, %v2946_v0 }
0x2b2b   :  { %v2948_v32 = vadd.f32 %v4200_v57, %v2947_v56 }
0x2b2d   :  { %v2952_v61 = vsel %vm2951_vm4, %v4200_v57, %v2948_v32 }
0x2b2e   :  { %v2957_v16 = vsel %vm2954_vm5, %v2956_v46, %v2952_v61 }
0x2b2f   :  { %v2972_v35 = vsub.f32 1.0, %v2957_v16  ;;  %v2980_v60 = vmul.f32 %v2978_v19, %v2957_v16 }
0x2b85   :  { %v2963_v48 = vpop.permute.xlu0 %2962 }
0x2b86   :  { %v2965_v18 = vmul.f32 %v2963_v48, %v2957_v16 }
0x2b88   :  { %2967 = vrot.lane.b32.xlu2 %v2965_v18, %s4668_s24 }
0x2be2   :  { %v2968_v52 = vpop.permute.xlu2 %2967 }
0x2be3   :  { %v2970_v4 = vadd.f32 %v2968_v52, %v5489_v14 }
0x2be5   :  { %4201 = vtanh.f32 %v2970_v4 }
0x2beb   :  { %v4202_v49 = vpop.eup %4201 }
0x2bec   :  { %2974 = vrot.lane.b32.xlu0 %v4202_v49, %s4657_s4 }
0x2c5e   :  { %v2975_v24 = vpop.permute.xlu0 %2974 }
0x2c5f   :  { %v2977_v13 = vmul.f32 %v2975_v24, %v2972_v35 }
0x2c61   :  { %v5504_v40 = vadd.f32 %v2980_v60, %v2977_v13 }
0x2c63   :  { %v2988_v21 = vrot.slane %v5504_v40, 2 }
0x2c65   :  { %2989 = vrot.lane.b32.xlu2 %v2988_v21, %s4657_s4 }
0x2cbf   :  { %v2990_v43 = vpop.permute.xlu2 %2989 }
0x2cc0   :  { %3916 = vmatmul.msk.f32.vlgmr.msra.gmra.mxu1 %vm309_vm0, %v2990_v43 }
0x2d3d   :  { %v3010_v22 = vpop.f32.mrf.mxu1 }
0x2d3e   :  { %v3036_v57 = vadd.f32 %v3010_v22, %v5479_v3  ;;  %v3014_v15 = vrot.slane %v3010_v22, 4  ;;  %v3055_v22 = vrot.slane %v5504_v40, 6 }
0x2d40   :  { %v3038_v33 = vrot.slane %v3036_v57, 4  ;;  %v3016_v0 = vadd.f32 %v3014_v15, %v5489_v14 }
0x2d42   :  { %3039 = vrot.lane.b32.xlu1 %v3038_v33, %s4668_s24  ;;  %v3917_v56 = vmul.f32 -1.442695, %v3016_v0 }
0x2d44   :  { %4203 = vpow2.f32 %v3917_v56 }
0x2d4a   :  { %v4204_v32 = vpop.eup %4203 }
0x2d4b   :  { %v3020_v54 = vadd.f32 1.0, %v4204_v32 }
0x2d4d   :  { %4205 = vrcp.f32 %v3020_v54  ;;  %v3032_v18 = vand.u32 2147483648, %v3020_v54  ;;  %vm3026_vm7 = vweird.f32 %v3020_v54  ;;  %v3030_v52 = vand.u32 2147483647, %v3020_v54 }
0x2d4f   :  { %v3033_v49 = vor.u32 1.1754944e-38, %v3032_v18  ;;  %vm3031_vm9 = vcmp.eq.f32.partialorder %v3030_v52, 8.507059e+37 }
0x2d53   :  { %v4206_v41 = vpop.eup %4205 }
0x2d54   :  { %v3022_v61 = vmul.f32 %v4206_v41, %v3020_v54  ;;  %vm3027_vm6 = vweird.f32 %v4206_v41 }
0x2d55   :  { %vm3028_vm8 = vmor %vm3026_vm7, %vm3027_vm6 }
0x2d56   :  { %v3023_v46 = vsub.f32 1.0, %v3022_v61 }
0x2d58   :  { %v3024_v48 = vmul.f32 %v4206_v41, %v3023_v46 }
0x2d5a   :  { %v3025_v16 = vadd.f32 %v4206_v41, %v3024_v48 }
0x2d5c   :  { %v3029_v4 = vsel %vm3028_vm8, %v4206_v41, %v3025_v16 }
0x2d5d   :  { %v3034_v35 = vsel %vm3031_vm9, %v3033_v49, %v3029_v4  ;;  %vm2986_vm9 = vcmask 257026  }
0x2d5e   :  { %v3049_v43 = vsub.f32 1.0, %v3034_v35  ;;  %v3057_v33 = vmul.f32 %v3055_v22, %v3034_v35 }
0x2db4   :  { %v3040_v19 = vpop.permute.xlu1 %3039 }
0x2db5   :  { %v3042_v24 = vmul.f32 %v3040_v19, %v3034_v35 }
0x2db7   :  { %3044 = vrot.lane.b32.xlu0 %v3042_v24, %s4668_s24 }
0x2e29   :  { %v3045_v13 = vpop.permute.xlu0 %3044 }
0x2e2a   :  { %v3047_v60 = vadd.f32 %v3045_v13, %v5489_v14 }
0x2e2c   :  { %4207 = vtanh.f32 %v3047_v60 }
0x2e32   :  { %v4208_v21 = vpop.eup %4207 }
0x2e33   :  { %3051 = vrot.lane.b32.xlu2 %v4208_v21, %s4657_s4 }
0x2e8d   :  { %v3052_v57 = vpop.permute.xlu2 %3051 }
0x2e8e   :  { %v3054_v15 = vmul.f32 %v3052_v57, %v3049_v43 }
0x2e90   :  { %v5516_v0 = vadd.f32 %v3057_v33, %v3054_v15 }
0x2e92   :  { %v3065_v56 = vrot.slane %v5516_v0, 4 }
0x2e94   :  { %3066 = vrot.lane.b32.xlu1 %v3065_v56, %s4657_s4 }
0x2f06   :  { %v3067_v32 = vpop.permute.xlu1 %3066 }
0x2f07   :  { %3918 = vmatmul.msk.f32.vlgmr.msra.gmra.mxu3 %vm309_vm0, %v3067_v32 }
0x2f8a   :  { %v3087_v54 = vpop.f32.mrf.mxu3 }
0x2f8b   :  { %v3113_v41 = vadd.f32 %v3087_v54, %v5479_v3  ;;  %v3091_v46 = vrot.slane %v3087_v54, 2 }
0x2f8d   :  { %v3115_v61 = vrot.slane %v3113_v41, 2  ;;  %v3093_v48 = vadd.f32 %v3091_v46, %v5489_v14  ;;  %v3132_v41 = vrot.slane %v5516_v0, 6 }
0x2f8f   :  { %3116 = vrot.lane.b32.xlu0 %v3115_v61, %s4668_s24  ;;  %v3919_v16 = vmul.f32 -1.442695, %v3093_v48 }
0x2f91   :  { %4209 = vpow2.f32 %v3919_v16 }
0x2f97   :  { %v4210_v18 = vpop.eup %4209 }
0x2f98   :  { %v3097_v52 = vadd.f32 1.0, %v4210_v18 }
0x2f9a   :  { %4211 = vrcp.f32 %v3097_v52  ;;  %v3109_v13 = vand.u32 2147483648, %v3097_v52  ;;  %vm3103_vm11 = vweird.f32 %v3097_v52  ;;  %v3107_v60 = vand.u32 2147483647, %v3097_v52 }
0x2f9c   :  { %v3110_v43 = vor.u32 1.1754944e-38, %v3109_v13  ;;  %vm3108_vm13 = vcmp.eq.f32.partialorder %v3107_v60, 8.507059e+37 }
0x2fa0   :  { %v4212_v4 = vpop.eup %4211 }
0x2fa1   :  { %v3099_v49 = vmul.f32 %v4212_v4, %v3097_v52  ;;  %vm3104_vm10 = vweird.f32 %v4212_v4 }
0x2fa2   :  { %vm3105_vm12 = vmor %vm3103_vm11, %vm3104_vm10  ;;  %vm3063_vm10 = vcmask 259076   ;;  %vm2146_vm11 = vcmask 253952  }
0x2fa3   :  { %v3100_v19 = vsub.f32 1.0, %v3099_v49  ;;  %v2830_v49 = vpop.f32.mrf.mxu2 }
0x2fa5   :  { %v3101_v35 = vmul.f32 %v4212_v4, %v3100_v19  ;;  %v5536_v19 = vadd.f32 %v5486_v55, %v2830_v49 }
0x2fa7   :  { %v3102_v24 = vadd.f32 %v4212_v4, %v3101_v35 }
0x2fa9   :  { %v3106_v21 = vsel %vm3105_vm12, %v4212_v4, %v3102_v24  ;;  %vm3140_vm12 = vcmask 261126  }
0x2faa   :  { %v3111_v57 = vsel %vm3108_vm13, %v3110_v43, %v3106_v21  ;;  %vm3489_vm13 = vcmask 1041408  }
0x2fab   :  { %v3126_v54 = vsub.f32 1.0, %v3111_v57  ;;  %v3134_v46 = vmul.f32 %v3132_v41, %v3111_v57 }
0x3001   :  { %v3117_v22 = vpop.permute.xlu0 %3116 }
0x3002   :  { %v3119_v33 = vmul.f32 %v3117_v22, %v3111_v57 }
0x3004   :  { %3121 = vrot.lane.b32.xlu2 %v3119_v33, %s4668_s24 }
0x305e   :  { %v3122_v15 = vpop.permute.xlu2 %3121 }
0x305f   :  { %v3124_v56 = vadd.f32 %v3122_v15, %v5489_v14 }
0x3061   :  { %4213 = vtanh.f32 %v3124_v56 }
0x3067   :  { %v4214_v32 = vpop.eup %4213 }
0x3068   :  { %3128 = vrot.lane.b32.xlu1 %v4214_v32, %s4657_s4 }
0x30da   :  { %v3129_v61 = vpop.permute.xlu1 %3128 }
0x30db   :  { %v3131_v48 = vmul.f32 %v3129_v61, %v3126_v54 }
0x30dd   :  { %v5528_v16 = vadd.f32 %v3134_v46, %v3131_v48 }
0x30df   :  { %v3142_v18 = vrot.slane %v5528_v16, 6 }
0x30e1   :  { %3143 = vrot.lane.b32.xlu0 %v3142_v18, %s4657_s4 }
0x3153   :  { %v3144_v52 = vpop.permute.xlu0 %3143 }
0x3154   :  { %3920 = vmatmul.msk.f32.vlgmr.msra.gmra.mxu0 %vm309_vm0, %v3144_v52 }
0x31d1   :  { %v3164_v14 = vpop.f32.mrf.mxu0 }
0x31d2   :  { %v3187_v4 = vadd.f32 %v3164_v14, %v5479_v3  ;;  %v3167_v35 = vadd.f32 %v3164_v14, %v5536_v19 }
0x31d4   :  { %3189 = vrot.lane.b32.xlu2 %v3187_v4, %s4668_s24  ;;  %v3921_v24 = vmul.f32 -1.442695, %v3167_v35 }
0x31d6   :  { %4215 = vpow2.f32 %v3921_v24 }
0x31dc   :  { %v4216_v13 = vpop.eup %4215 }
0x31dd   :  { %v3171_v60 = vadd.f32 1.0, %v4216_v13 }
0x31df   :  { %4217 = vrcp.f32 %v3171_v60  ;;  %v3183_v15 = vand.u32 2147483648, %v3171_v60  ;;  %vm3177_vm15 = vweird.f32 %v3171_v60  ;;  %v3181_v56 = vand.u32 2147483647, %v3171_v60 }
0x31e1   :  { %v3184_v55 = vor.u32 1.1754944e-38, %v3183_v15  ;;  %vm3182_vm4 = vcmp.eq.f32.partialorder %v3181_v56, 8.507059e+37 }
0x31e5   :  { %v4218_v21 = vpop.eup %4217 }
0x31e6   :  { %v3173_v43 = vmul.f32 %v4218_v21, %v3171_v60  ;;  %vm3178_vm14 = vweird.f32 %v4218_v21 }
0x31e7   :  { %vm3179_vm1 = vmor %vm3177_vm15, %vm3178_vm14  ;;  %vm3436_vm14 = vcmask 78848  }
0x31e8   :  { %v3174_v22 = vsub.f32 1.0, %v3173_v43 }
0x31ea   :  { %v3175_v57 = vmul.f32 %v4218_v21, %v3174_v22 }
0x31ec   :  { %v3176_v33 = vadd.f32 %v4218_v21, %v3175_v57 }
0x31ee   :  { %v3180_v32 = vsel %vm3179_vm1, %v4218_v21, %v3176_v33 }
0x31ef   :  { %v3185_v41 = vsel %vm3182_vm4, %v3184_v55, %v3180_v32 }
0x31f0   :  { %v3199_v14 = vsub.f32 1.0, %v3185_v41  ;;  %v3206_v49 = vmul.f32 %v3185_v41, %v3142_v18 }
0x322e   :  { %v3190_v54 = vpop.permute.xlu2 %3189 }
0x322f   :  { %v3192_v61 = vmul.f32 %v3190_v54, %v3185_v41 }
0x3231   :  { %3194 = vrot.lane.b32.xlu1 %v3192_v61, %s4668_s24 }
0x32a3   :  { %v3195_v46 = vpop.permute.xlu1 %3194 }
0x32a4   :  { %v3197_v48 = vadd.f32 %v3195_v46, %v5536_v19 }
0x32a6   :  { %4219 = vtanh.f32 %v3197_v48 }
0x32ac   :  { %v4220_v52 = vpop.eup %4219 }
0x32ad   :  { %3201 = vrot.lane.b32.xlu0 %v4220_v52, %s4657_s4 }
0x331f   :  { %v3202_v4 = vpop.permute.xlu0 %3201 }
0x3320   :  { %v3204_v35 = vmul.f32 %v3202_v4, %v3199_v14 }
0x3322   :  { %v5542_v24 = vadd.f32 %v3206_v49, %v3204_v35  ;;  %v1220_v49 = vmul.f32 %v5267_v39, %v5223_v59  ;;  %v520_v35 = vmul.f32 %v4961_v53, %v4957_v50  ;;  %v1556_v39 = vmul.f32 %v5276_v25, %v5232_v1 }
0x3323   :  { %v1470_v25 = vmul.f32 %v5226_v62, %v5223_v59  ;;  %v1720_v62 = vmul.f32 %v5312_v12, %v5109_v58 }
0x3324   :  { %3209 = vrot.lane.b32.xlu2 %v5542_v24, %s4657_s4 }
0x337e   :  { %v3210_v13 = vpop.permute.xlu2 %3209 }
0x337f   :  { %3212 = vst.msk [vmem:[#allocation4 + $0x8] sm:$0x3] %vm2132_vm3, %v3210_v13  ;;  %3922 = vmatmul.msk.f32.vlgmr.msrb.gmra.mxu1 %vm309_vm0, %v3210_v13  ;;  %v1966_v13 = vmul.f32 %v5364_v26, %v5009_v23 }
0x33fc   :  { %v3232_v60 = vpop.f32.mrf.mxu1 }
0x33fd   :  { %v3258_v21 = vadd.f32 %v3232_v60, %v5479_v3  ;;  %v3236_v18 = vrot.slane %v3232_v60, 6  ;;  %v1798_v60 = vmul.f32 %v5329_v11, %v5073_v2 }
0x33ff   :  { %v3260_v43 = vrot.slane %v3258_v21, 6  ;;  %v3238_v22 = vadd.f32 %v3236_v18, %v5536_v19  ;;  %v2126_v18 = vmul.f32 %v5415_v47, %v4957_v50  ;;  %v1138_v50 = vmul.f32 %v5237_v8, %v5232_v1 }
0x3400   :  { %v3277_v1 = vrot.slane %v5542_v24, 6 }
0x3401   :  { %3261 = vrot.lane.b32.xlu1 %v3260_v43, %s4668_s24  ;;  %v3923_v57 = vmul.f32 -1.442695, %v3238_v22 }
0x3403   :  { %4221 = vpow2.f32 %v3923_v57 }
0x3409   :  { %2983 = vrot.lane.b32.xlu1 %v5504_v40, %s4657_s4  ;;  %v4222_v33 = vpop.eup %4221 }
0x340a   :  { %v3242_v15 = vadd.f32 1.0, %v4222_v33 }
0x340c   :  { %4223 = vrcp.f32 %v3242_v15  ;;  %v3254_v3 = vand.u32 2147483648, %v3242_v15  ;;  %vm3248_vm6 = vweird.f32 %v3242_v15  ;;  %v3252_v61 = vand.u32 2147483647, %v3242_v15 }
0x340e   :  { %v3255_v40 = vor.u32 1.1754944e-38, %v3254_v3  ;;  %vm3253_vm8 = vcmp.eq.f32.partialorder %v3252_v61, 8.507059e+37  ;;  %v1392_v61 = vmul.f32 %v5185_v44, %v5181_v42 }
0x3412   :  { %v4224_v56 = vpop.eup %4223 }
0x3413   :  { %v3244_v32 = vmul.f32 %v4224_v56, %v3242_v15  ;;  %vm3249_vm5 = vweird.f32 %v4224_v56  ;;  %v3292_v15 = vld [vmem:[%s5943_s14 + $0x18] sm:$0xff] }
0x3414   :  { %vm3250_vm7 = vmor %vm3248_vm6, %vm3249_vm5  ;;  %3311 = vmatpush.msra.mxu2 %v3292_v15  ;;  %vm3485_vm6 = vcmask 80896  }
0x3415   :  { %v3245_v55 = vsub.f32 1.0, %v3244_v32  ;;  %v3289_v32 = vld [vmem:[%s5943_s14] sm:$0xff] }
0x3417   :  { %v3246_v54 = vmul.f32 %v4224_v56, %v3245_v55 }
0x3419   :  { %v3247_v41 = vadd.f32 %v4224_v56, %v3246_v54 }
0x341b   :  { %v3251_v46 = vsel %vm3250_vm7, %v4224_v56, %v3247_v41  ;;  %v3290_v56 = vld [vmem:[%s5943_s14 + $0x8] sm:$0xff] }
0x341c   :  { %v3256_v52 = vsel %vm3253_vm8, %v3255_v40, %v3251_v46 }
0x341d   :  { %v3271_v8 = vsub.f32 1.0, %v3256_v52  ;;  %v3279_v54 = vmul.f32 %v3277_v1, %v3256_v52 }
0x3473   :  { %v3262_v48 = vpop.permute.xlu1 %3261 }
0x3474   :  { %v3264_v14 = vmul.f32 %v3262_v48, %v3256_v52  ;;  %v2048_v52 = vmul.f32 %v5384_v6, %v4984_v34  ;;  %v788_v6 = vmul.f32 %v5049_v27, %v5044_v17 }
0x3476   :  { %3266 = vrot.lane.b32.xlu0 %v3264_v14, %s4668_s24 }
0x347b   :  { %v2984_v4 = vpop.permute.xlu1 %2983 }
0x347c   :  { %2987 = vst.msk [vmem:[#allocation4] sm:$0xc] %vm2986_vm9, %v2984_v4 }
0x347e   :  { %3060 = vrot.lane.b32.xlu0 %v5516_v0, %s4657_s4 }
0x3486   :  { %2224 = vrot.lane.b32.xlu0 %v1220_v49, %s4658_s3  ;;  %v870_v49 = vmul.f32 %v5076_v5, %v5073_v2  ;;  %v962_v2 = vmul.f32 %v5119_v29, %v5109_v58 }
0x348e   :  { %2135 = vrot.lane.b32.xlu0 %v520_v35, %s4658_s3 }
0x3496   :  { %2160 = vrot.lane.b32.xlu0 %v1966_v13, %s4661_s7 }
0x349e   :  { %2184 = vrot.lane.b32.xlu0 %v1798_v60, %s4671_s22 }
0x34a6   :  { %2214 = vrot.lane.b32.xlu0 %v1556_v39, %s4661_s7  ;;  %v1638_v39 = vmul.f32 %v5295_v31, %v5166_v36  ;;  %v1312_v31 = vmul.f32 %v5425_v7, %v5181_v42 }
0x34e8   :  { %v3267_v0 = vpop.permute.xlu0 %3266 }
0x34e9   :  { %v3269_v53 = vadd.f32 %v3267_v0, %v5536_v19  ;;  %v700_v19 = vmul.f32 %v5014_v28, %v5009_v23  ;;  %v1884_v23 = vmul.f32 %v5347_v51, %v5044_v17  ;;  %v3291_v51 = vld [vmem:[%s5943_s14 + $0x10] sm:$0xff] }
0x34ea   :  { %3312 = vmatpush.msra.mxu2 %v3291_v51 }
0x34eb   :  { %4225 = vtanh.f32 %v3269_v53 }
0x34ec   :  { %3313 = vmatpush.msra.mxu2 %v3290_v56 }
0x34ee   :  { %3314 = vmatpush.msra.mxu2 %v3289_v32 }
0x34f0   :  { %v3061_v21 = vpop.permute.xlu0 %3060 }
0x34f1   :  { %v4226_v43 = vpop.eup %4225  ;;  %3064 = vst.msk [vmem:[#allocation4] sm:$0x30] %vm3063_vm10, %v3061_v21 }
0x34f2   :  { %3273 = vrot.lane.b32.xlu2 %v4226_v43, %s4657_s4  ;;  %v612_v43 = vmul.f32 %v4987_v38, %v4984_v34 }
0x34f8   :  { %v2225_v26 = vpop.permute.xlu0 %2224 }
0x34fa   :  { %3137 = vrot.lane.b32.xlu2 %v5528_v16, %s4657_s4 }
0x3500   :  { %v2136_v11 = vpop.permute.xlu0 %2135 }
0x3502   :  { %2228 = vrot.lane.b32.xlu2 %v1470_v25, %s4671_s22 }
0x3508   :  { %v2161_v22 = vpop.permute.xlu0 %2160 }
0x3509   :  { %v2163_v57 = vsel %vm396_vm2, %v700_v19, %v2161_v22 }
0x350a   :  { %v2165_v33 = vrot.slane %v2163_v57, 1  ;;  %2167 = vst.msk [vmem:[#allocation2 + $0x2] sm:$0x1] %vm2146_vm11, %v2163_v57  ;;  %2139 = vrot.lane.b32.xlu2 %v2126_v18, %s4671_s22  ;;  %v1050_v57 = vmul.f32 %v5173_v10, %v5166_v36 }
0x350c   :  { %2168 = vst.msk [vmem:[#allocation2 + $0x12] sm:$0x1] %vm2146_vm11, %v2165_v33 }
0x3510   :  { %v5588_v59 = vpop.permute.xlu0 %2184 }
0x3512   :  { %2170 = vrot.lane.b32.xlu2 %v1884_v23, %s4661_s7 }
0x3518   :  { %v2215_v28 = vpop.permute.xlu0 %2214 }
0x3519   :  { %v2217_v47 = vsel %vm396_vm2, %v1138_v50, %v2215_v28 }
0x351a   :  { %v2219_v16 = vrot.slane %v2217_v47, 1  ;;  %2221 = vst.msk [vmem:[#allocation2 + $0x7] sm:$0x1] %vm2146_vm11, %v2217_v47  ;;  %2194 = vrot.lane.b32.xlu2 %v1720_v62, %s4661_s7 }
0x351c   :  { %2222 = vst.msk [vmem:[#allocation2 + $0x17] sm:$0x1] %vm2146_vm11, %v2219_v16 }
0x354c   :  { %v3274_v12 = vpop.permute.xlu2 %3273 }
0x354d   :  { %v3276_v55 = vmul.f32 %v3274_v12, %v3271_v8 }
0x354f   :  { %v3280_v41 = vadd.f32 %v3279_v54, %v3276_v55  ;;  %v4257_v55 = vld [vmem:[#allocation6] sm:$0x3]  ;;  %v4673_v54 = vmov -1e+09  }
0x3551   :  { %3282 = vrot.lane.b32.xlu1 %v3280_v41, %s4657_s4 }
0x3554   :  { %v3138_v3 = vpop.permute.xlu2 %3137 }
0x3555   :  { %3141 = vst.msk [vmem:[#allocation4] sm:$0xc0] %vm3140_vm12, %v3138_v3 }
0x3559   :  { %2238 = vrot.lane.b32.xlu1 %v1392_v61, %s4661_s7 }
0x355c   :  { %v2229_v46 = vpop.permute.xlu2 %2228  ;;  %v5610_v40 = vld [vmem:[#allocation4] sm:$0xff] }
0x355d   :  { %v2231_v24 = vsel %vm396_vm2, %v2225_v26, %v2229_v46  ;;  %3924 = vmatmul.msk.f32.vlgmr.msra.gmra.mxu2 %vm309_vm0, %v5610_v40 }
0x355e   :  { %v2233_v48 = vrot.slane %v2231_v24, 1  ;;  %2235 = vst.msk [vmem:[#allocation2 + $0x8] sm:$0x1] %vm2146_vm11, %v2231_v24 }
0x3560   :  { %2236 = vst.msk [vmem:[#allocation2 + $0x18] sm:$0x1] %vm2146_vm11, %v2233_v48 }
0x3561   :  { %2150 = vrot.lane.b32.xlu1 %v2048_v52, %s4661_s7 }
0x3564   :  { %v2140_v44 = vpop.permute.xlu2 %2139 }
0x3565   :  { %v2142_v14 = vsel %vm396_vm2, %v2136_v11, %v2140_v44 }
0x3566   :  { %v2144_v4 = vrot.slane %v2142_v14, 1  ;;  %2147 = vst.msk [vmem:[#allocation2] sm:$0x1] %vm2146_vm11, %v2142_v14 }
0x3568   :  { %2148 = vst.msk [vmem:[#allocation2 + $0x10] sm:$0x1] %vm2146_vm11, %v2144_v4 }
0x3569   :  { %2180 = vrot.lane.b32.xlu1 %v870_v49, %s4658_s3  ;;  %v4060_v49 = vld [vmem:[#allocation17] ss:$0 sm:$0xff] }
0x356c   :  { %v2171_v35 = vpop.permute.xlu2 %2170 }
0x356d   :  { %v2173_v13 = vsel %vm396_vm2, %v788_v6, %v2171_v35  ;;  %v5687_v6 = vadd.f32 %v4060_v49, %v5483_v63 }
0x356e   :  { %v2175_v60 = vrot.slane %v2173_v13, 1  ;;  %2177 = vst.msk [vmem:[#allocation2 + $0x3] sm:$0x1] %vm2146_vm11, %v2173_v13 }
0x356f   :  { %v5690_v35 = vperm.slane %v5687_v6, 0 }
0x3570   :  { %2178 = vst.msk [vmem:[#allocation2 + $0x13] sm:$0x1] %vm2146_vm11, %v2175_v60 }
0x3571   :  { %2204 = vrot.lane.b32.xlu1 %v1638_v39, %s4661_s7 }
0x3574   :  { %v2195_v5 = vpop.permute.xlu2 %2194 }
0x3575   :  { %v2197_v0 = vsel %vm396_vm2, %v962_v2, %v2195_v5 }
0x3576   :  { %v2199_v17 = vrot.slane %v2197_v0, 1  ;;  %2201 = vst.msk [vmem:[#allocation2 + $0x5] sm:$0x1] %vm2146_vm11, %v2197_v0 }
0x3578   :  { %2202 = vst.msk [vmem:[#allocation2 + $0x15] sm:$0x1] %vm2146_vm11, %v2199_v17 }
0x35c3   :  { %v3283_v27 = vpop.permute.xlu1 %3282 }
0x35c4   :  { %3285 = vst.msk [vmem:[#allocation4 + $0x8] sm:$0xc] %vm2986_vm9, %v3283_v27 }
0x35c5   :  { %3286 = vst.msk [vmem:[#allocation25 - $0x2] sm:$0xc] %vm2986_vm9, %v3283_v27 }
0x35cb   :  { %v2239_v53 = vpop.permute.xlu1 %2238  ;;  %v5643_v21 = vld [vmem:[#allocation4 + $0x8] sm:$0xf] }
0x35cc   :  { %v2241_v58 = vsel %vm396_vm2, %v1312_v31, %v2239_v53  ;;  %3925 = vmatmul.msk.f32.gmra.mxu2 %vm309_vm0, %v5643_v21  ;;  %v2453_v53 = vadd.f32 2e-08, %v5444_v37 }
0x35cd   :  { %v2243_v29 = vrot.slane %v2241_v58, 1  ;;  %2245 = vst.msk [vmem:[#allocation2 + $0x9] sm:$0x1] %vm2146_vm11, %v2241_v58  ;;  %v2445_v58 = vsub.f32 %v5690_v35, %v5444_v37 }
0x35cf   :  { %2246 = vst.msk [vmem:[#allocation2 + $0x19] sm:$0x1] %vm2146_vm11, %v2243_v29  ;;  %v2454_v29 = vmul.f32 1.442695, %v2453_v53 }
0x35d3   :  { %v2151_v26 = vpop.permute.xlu1 %2150 }
0x35d4   :  { %v2153_v42 = vsel %vm396_vm2, %v612_v43, %v2151_v26  ;;  %v2248_v7 = vld [vmem:[#allocation2 + $0x8] sm:$0x3]  ;;  %v2446_v43 = vmul.f32 %v2445_v58, %v2445_v58 }
0x35d5   :  { %v2155_v11 = vrot.slane %v2153_v42, 1  ;;  %2157 = vst.msk [vmem:[#allocation2 + $0x1] sm:$0x1] %vm2146_vm11, %v2153_v42  ;;  %3926 = vmatpush.xpose.msk.msrb.mxu3 %vm309_vm0, %v2248_v7  ;;  %3932 = vmatpush.msk.msra.mxu1 %vm3489_vm13, %v2248_v7  ;;  %v3572_v7 = vld [vmem:[#allocation21 + $0x18] sm:$0xff] }
0x35d6   :  { %v2250_v25 = vld [vmem:[#allocation2 + $0x18] sm:$0x3] }
0x35d7   :  { %2158 = vst.msk [vmem:[#allocation2 + $0x11] sm:$0x1] %vm2146_vm11, %v2155_v11  ;;  %3929 = vmatpush.xpose.msk.msrb.mxu0 %vm309_vm0, %v2250_v25  ;;  %v3571_v11 = vld [vmem:[#allocation21 + $0x10] sm:$0xff] }
0x35db   :  { %v2181_v19 = vpop.permute.xlu1 %2180 }
0x35dc   :  { %v2187_v34 = vsel %vm396_vm2, %v2181_v19, %v5588_v59  ;;  %v3570_v19 = vld [vmem:[#allocation21 + $0x8] sm:$0xff] }
0x35dd   :  { %v2189_v38 = vrot.slane %v2187_v34, 1  ;;  %2191 = vst.msk [vmem:[#allocation2 + $0x4] sm:$0x1] %vm2146_vm11, %v2187_v34  ;;  %v3569_v34 = vld [vmem:[#allocation21] sm:$0xff] }
0x35df   :  { %2192 = vst.msk [vmem:[#allocation2 + $0x14] sm:$0x1] %vm2146_vm11, %v2189_v38  ;;  %v2442_v38 = vadd.f32 2e-08, %v5687_v6 }
0x35e0   :  { %v3316_v18 = vpop.f32.mrf.mxu2 }
0x35e1   :  { %v3323_v22 = vrot.slane %v3316_v18, 1  ;;  %3325 = vst.msk [vmem:[#allocation3] sm:$0x1] %vm2146_vm11, %v3316_v18 }
0x35e2   :  { %3327 = vst [vmem:[#allocation1] sm:$0xff] %v3316_v18 }
0x35e3   :  { %3326 = vst.msk [vmem:[#allocation3 + $0x8] sm:$0x1] %vm2146_vm11, %v3323_v22  ;;  %v2205_v33 = vpop.permute.xlu1 %2204 }
0x35e4   :  { %v2207_v23 = vsel %vm396_vm2, %v1050_v57, %v2205_v33  ;;  %vm3370_vm2 = vcmp.gt.f32.partialorder %v4257_v55, 0.0  ;;  %v2443_v33 = vmul.f32 1.442695, %v2442_v38 }
0x35e5   :  { %v2209_v50 = vrot.slane %v2207_v23, 1  ;;  %2211 = vst.msk [vmem:[#allocation2 + $0x6] sm:$0x1] %vm2146_vm11, %v2207_v23  ;;  %v3371_v41 = vsel %vm3370_vm2, 0.0, %v4673_v54  ;;  %vm3540_vm2 = vcmask 1041409  }
0x35e6   :  { %v3373_v3 = vrot.slane %v3371_v41, 1  ;;  %v3374_v48 = vperm.slane %v3371_v41, 0 }
0x35e7   :  { %2212 = vst.msk [vmem:[#allocation2 + $0x16] sm:$0x1] %vm2146_vm11, %v2209_v50 }
0x35e8   :  { %v3375_v61 = vperm.slane %v3373_v3, 0 }
0x35e9   :  { %v3329_v59 = vld [vmem:[#allocation1 + $0x2] ss:$9 sm:$0xff] }
0x35ea   :  { %v3331_v28 = vld [vmem:[#allocation1 + $0x3] ss:$9 sm:$0xff]  ;;  %3334 = vst.msk [vmem:[#allocation3 + $0x1] sm:$0x1] %vm2146_vm11, %v3329_v59 }
0x35eb   :  { %3335 = vst.msk [vmem:[#allocation3 + $0x9] sm:$0x1] %vm2146_vm11, %v3331_v28 }
0x35ec   :  { %3336 = vst [vmem:[#allocation1] sm:$0xff] %v3316_v18  ;;  %v2247_v62 = vld [vmem:[#allocation2] sm:$0xff] }
0x35ed   :  { %3927 = vmatpush.xpose.msk.msrb.mxu3 %vm309_vm0, %v2247_v62  ;;  %3507 = vmatpush.msra.mxu1 %v2247_v62 }
0x35ee   :  { %v2249_v36 = vld [vmem:[#allocation2 + $0x10] sm:$0xff] }
0x35ef   :  { %3930 = vmatpush.xpose.msk.msrb.mxu0 %vm309_vm0, %v2249_v36  ;;  %3618 = vmatpush.msrb.mxu1 %v3572_v7 }
0x35f1   :  { %3934 = vmatpush.msk.msra.mxu3 %vm3489_vm13, %v2250_v25  ;;  %3619 = vmatpush.msrb.mxu1 %v3571_v11 }
0x35f3   :  { %3532 = vmatpush.msra.mxu3 %v2249_v36  ;;  %v3338_v10 = vld [vmem:[#allocation1 + $0x4] ss:$9 sm:$0xff]  ;;  %3620 = vmatpush.msrb.mxu1 %v3570_v19 }
0x35f4   :  { %v3340_v47 = vld [vmem:[#allocation1 + $0x5] ss:$9 sm:$0xff]  ;;  %3343 = vst.msk [vmem:[#allocation3 + $0x2] sm:$0x1] %vm2146_vm11, %v3338_v10 }
0x35f5   :  { %3344 = vst.msk [vmem:[#allocation3 + $0xa] sm:$0x1] %vm2146_vm11, %v3340_v47  ;;  %3621 = vmatpush.msrb.mxu1 %v3569_v34 }
0x35f6   :  { %3345 = vst [vmem:[#allocation1] sm:$0xff] %v3316_v18 }
0x35fd   :  { %v3347_v16 = vld [vmem:[#allocation1 + $0x6] ss:$9 sm:$0xff] }
0x35fe   :  { %v3349_v15 = vld [vmem:[#allocation1 + $0x7] ss:$9 sm:$0xff]  ;;  %3352 = vst.msk [vmem:[#allocation3 + $0x3] sm:$0x1] %vm2146_vm11, %v3347_v16 }
0x35ff   :  { %3353 = vst.msk [vmem:[#allocation3 + $0xb] sm:$0x1] %vm2146_vm11, %v3349_v15 }
0x364f   :  { %v3319_v51 = vpop.f32.mrf.mxu2 }
0x3650   :  { %v3355_v56 = vrot.slane %v3319_v51, 1  ;;  %3357 = vst.msk [vmem:[#allocation3 + $0x4] sm:$0x1] %vm2146_vm11, %v3319_v51 }
0x3651   :  { %3359 = vst [vmem:[#allocation1] sm:$0xff] %v3319_v51 }
0x3652   :  { %3358 = vst.msk [vmem:[#allocation3 + $0xc] sm:$0x1] %vm2146_vm11, %v3355_v56 }
0x3658   :  { %v3361_v32 = vld [vmem:[#allocation1 + $0x2] ss:$9 sm:$0xff] }
0x3659   :  { %v3363_v1 = vld [vmem:[#allocation1 + $0x3] ss:$9 sm:$0xff]  ;;  %3366 = vst.msk [vmem:[#allocation3 + $0x5] sm:$0x1] %vm2146_vm11, %v3361_v32 }
0x365a   :  { %3367 = vst.msk [vmem:[#allocation3 + $0xd] sm:$0x1] %vm2146_vm11, %v3363_v1 }
0x3660   :  { %v3368_v8 = vld [vmem:[#allocation3] sm:$0x3f] }
0x3661   :  { %3928 = vmatmul.msk.f32.vlgmr.msrb.gmra.mxu3 %vm309_vm0, %v3368_v8  ;;  %v3369_v12 = vld [vmem:[#allocation3 + $0x8] sm:$0x3f] }
0x3662   :  { %3931 = vmatmul.msk.f32.vlgmr.msrb.gmra.mxu0 %vm309_vm0, %v3369_v12 }
0x36df   :  { %v3433_v46 = vpop.f32.mrf.mxu0 }
0x36e0   :  { %v3434_v24 = vadd.f32 %v3433_v46, %v3375_v61 }
0x36e2   :  { %v3440_v52 = vsel %vm3436_vm14, %v3434_v24, -inf }
0x36e3   :  { %3441 = vmax.xlane.f32.xlu2 %v3440_v52 }
0x36e4   :  { %v3404_v44 = vpop.f32.mrf.mxu3 }
0x36e5   :  { %v3405_v14 = vadd.f32 %v3404_v44, %v3374_v48 }
0x36e7   :  { %v3437_v4 = vsel %vm3436_vm14, %v3405_v14, -inf }
0x36e8   :  { %3438 = vmax.xlane.f32.xlu1 %v3437_v4 }
0x3701   :  { %2436 = vrot.lane.b32.xlu1 %v5690_v35, %s4668_s24 }
0x3756   :  { %v3442_v13 = vpop.xlane.xlu2 %3441 }
0x3757   :  { %v3444_v60 = vsub.f32 %v3434_v24, %v3442_v13 }
0x3759   :  { %v3447_v39 = vmul.f32 1.442695, %v3444_v60 }
0x375b   :  { %4227 = vpow2.f32 %v3447_v39  ;;  %v3439_v2 = vpop.xlane.xlu1 %3438 }
0x375c   :  { %v3443_v5 = vsub.f32 %v3405_v14, %v3439_v2 }
0x375e   :  { %v3445_v0 = vmul.f32 1.442695, %v3443_v5 }
0x3760   :  { %4229 = vpow2.f32 %v3445_v0 }
0x3761   :  { %v4228_v17 = vpop.eup %4227  ;;  %4231 = vpow2.f32 %v2454_v29 }
0x3762   :  { %v3452_v27 = vsel %vm3436_vm14, %v4228_v17, 0.0 }
0x3763   :  { %3453 = vadd.xlane.f32.xlu0 %v3452_v27 }
0x3766   :  { %v5695_v63 = vpop.eup %4229 }
0x3767   :  { %v3449_v31 = vsel %vm3436_vm14, %v5695_v63, 0.0  ;;  %v4232_v26 = vpop.eup %4231 }
0x3768   :  { %3450 = vadd.xlane.f32.xlu2 %v3449_v31  ;;  %v2456_v42 = vmul.f32 2.0, %v4232_v26 }
0x3777   :  { %2449 = vrot.lane.b32.xlu0 %v2446_v43, %s4655_s21 }
0x3780   :  { %2458 = vrot.lane.b32.xlu2 %v2456_v42, %s4668_s24 }
0x37d6   :  { %v3454_v25 = vpop.xlane.xlu0 %3453 }
0x37d7   :  { %4233 = vrcp.f32 %v3454_v25  ;;  %v3481_v50 = vand.u32 2147483648, %v3454_v25  ;;  %v3479_v62 = vand.u32 2147483647, %v3454_v25  ;;  %vm3475_vm1 = vweird.f32 %v3454_v25 }
0x37d9   :  { %v3482_v16 = vor.u32 1.1754944e-38, %v3481_v50  ;;  %vm3480_vm5 = vcmp.eq.f32.partialorder %v3479_v62, 8.507059e+37  ;;  %v3575_v50 = vld [vmem:[#allocation23 + $0x10] sm:$0xff] }
0x37db   :  { %v3451_v18 = vpop.xlane.xlu2 %3450 }
0x37dc   :  { %4235 = vrcp.f32 %v3451_v18  ;;  %v3466_v56 = vand.u32 2147483648, %v3451_v18  ;;  %v3464_v8 = vand.u32 2147483647, %v3451_v18  ;;  %vm3460_vm8 = vweird.f32 %v3451_v18 }
0x37dd   :  { %v4234_v22 = vpop.eup %4233  ;;  %4237 = vpow2.f32 %v2443_v33 }
0x37de   :  { %v3471_v57 = vmul.f32 %v4234_v22, %v3454_v25  ;;  %vm3476_vm15 = vweird.f32 %v4234_v22  ;;  %v3467_v3 = vor.u32 1.1754944e-38, %v3466_v56  ;;  %vm3465_vm12 = vcmp.eq.f32.partialorder %v3464_v8, 8.507059e+37 }
0x37df   :  { %vm3477_vm4 = vmor %vm3475_vm1, %vm3476_vm15 }
0x37e0   :  { %v3472_v23 = vsub.f32 1.0, %v3471_v57 }
0x37e2   :  { %v4236_v59 = vpop.eup %4235  ;;  %v3473_v28 = vmul.f32 %v4234_v22, %v3472_v23  ;;  %v3576_v23 = vld [vmem:[#allocation23 + $0x18] sm:$0xff] }
0x37e3   :  { %v3456_v36 = vmul.f32 %v4236_v59, %v3451_v18  ;;  %v2459_v10 = vpop.permute.xlu2 %2458  ;;  %vm3461_vm7 = vweird.f32 %v4236_v59  ;;  %v5705_v55 = vpop.eup %4237  ;;  %v5736_v18 = vperm.slane %v5687_v6, 1  ;;  %3595 = vmatpush.msra.mxu0 %v3576_v23 }
0x37e4   :  { %v3474_v47 = vadd.f32 %v4234_v22, %v3473_v28  ;;  %4239 = vrcp.f32 %v2459_v10  ;;  %vm3462_vm11 = vmor %vm3460_vm8, %vm3461_vm7  ;;  %v2472_v48 = vand.u32 2147483648, %v2459_v10  ;;  %v5709_v52 = vperm.slane %v5705_v55, 0  ;;  %v2437_v28 = vpop.permute.xlu1 %2436 }
0x37e5   :  { %v3457_v15 = vsub.f32 1.0, %v3456_v36  ;;  %v2470_v4 = vand.u32 2147483647, %v2459_v10  ;;  %vm2466_vm15 = vweird.f32 %v2459_v10  ;;  %v2505_v57 = vsub.f32 %v5736_v18, %v5444_v37  ;;  %3596 = vmatpush.msra.mxu0 %v3575_v50 }
0x37e6   :  { %v3478_v51 = vsel %vm3477_vm4, %v4234_v22, %v3474_v47  ;;  %v2473_v42 = vor.u32 1.1754944e-38, %v2472_v48  ;;  %v2439_v62 = vsub.f32 %v5444_v37, %v2437_v28  ;;  %vm3549_vm7 = vcmask 1043459  }
0x37e7   :  { %v3483_v32 = vsel %vm3480_vm5, %v3482_v16, %v3478_v51  ;;  %v3458_v1 = vmul.f32 %v4236_v59, %v3457_v15  ;;  %vm2471_vm4 = vcmp.eq.f32.partialorder %v2470_v4, 8.507059e+37  ;;  %v2506_v33 = vmul.f32 %v2505_v57, %v2505_v57 }
0x37e8   :  { %v3484_v12 = vmul.f32 %v4228_v17, %v3483_v32  ;;  %v2440_v36 = vadd.f32 2e-08, %v2439_v62  ;;  %v5751_v16 = vperm.slane %v5687_v6, 2  ;;  %vm3544_vm5 = vcmask 1042434  }
0x37e9   :  { %v3459_v54 = vadd.f32 %v4236_v59, %v3458_v1  ;;  %v2450_v27 = vpop.permute.xlu0 %2449  ;;  %vm3553_vm8 = vcmask 1044484  }
0x37ea   :  { %v4240_v41 = vpop.eup %4239  ;;  %3935 = vmatmul.msk.f32.vlgmr.msra.gmra.mxu3 %vm3485_vm6, %v3484_v12  ;;  %v3716_v49 = vrot.slane %v3484_v12, 7  ;;  %v3725_v13 = vrot.slane %v3484_v12, 1  ;;  %v3737_v60 = vrot.slane %v3484_v12, 3  ;;  %v3731_v39 = vrot.slane %v3484_v12, 2 }
0x37eb   :  { %v3463_v61 = vsel %vm3462_vm11, %v4236_v59, %v3459_v54  ;;  %v2462_v46 = vmul.f32 %v4240_v41, %v2459_v10  ;;  %vm2467_vm14 = vweird.f32 %v4240_v41  ;;  %v2452_v19 = vadd.f32 %v2450_v27, %v5709_v52  ;;  %v3574_v59 = vld [vmem:[#allocation23 + $0x8] sm:$0xff] }
0x37ec   :  { %v3468_v24 = vsel %vm3465_vm12, %v3467_v3, %v3463_v61  ;;  %vm2468_vm1 = vmor %vm2466_vm15, %vm2467_vm14  ;;  %3597 = vmatpush.msra.mxu0 %v3574_v59  ;;  %v2441_v10 = vmul.f32 0.5, %v2440_v36  ;;  %vm3547_vm11 = vcmask 256001   ;;  %vm3558_vm12 = vcmask 1045509  }
0x37ed   :  { %v3469_v44 = vmul.f32 %v5695_v63, %v3468_v24  ;;  %v2463_v14 = vsub.f32 1.0, %v2462_v46  ;;  %v3743_v63 = vrot.slane %v3484_v12, 4  ;;  %v2543_v1 = vsub.f32 %v5751_v16, %v5444_v37 }
0x37ee   :  { %vm3562_vm14 = vcmask 1046534   ;;  %vm3556_vm15 = vcmask 258051   ;;  %v5761_v24 = vperm.slane %v5705_v55, 1  ;;  %v2632_v59 = vsub.f32 %v5736_v18, %v5468_v45 }
0x37ef   :  { %v2464_v2 = vmul.f32 %v4240_v41, %v2463_v14  ;;  %3933 = vmatmul.msk.f32.vlgmr.msra.gmra.mxu1 %vm3485_vm6, %v3469_v44  ;;  %v3719_v5 = vrot.slane %v3469_v44, 1  ;;  %v3724_v0 = vrot.slane %v3469_v44, 2  ;;  %v5714_v17 = vsel %vm3540_vm2, %v3716_v49, %v3469_v44 }
0x37f0   :  { %v3736_v31 = vrot.slane %v3469_v44, 4  ;;  %v3730_v53 = vrot.slane %v3469_v44, 3  ;;  %v3742_v58 = vrot.slane %v3469_v44, 5  ;;  %v2544_v61 = vmul.f32 %v2543_v1, %v2543_v1 }
0x37f1   :  { %v2465_v29 = vadd.f32 %v4240_v41, %v2464_v2  ;;  %v5717_v43 = vsel %vm3540_vm2, %v3484_v12, %v3719_v5  ;;  %v5720_v26 = vsel %vm3540_vm2, %v3725_v13, %v3724_v0  ;;  %v2586_v5 = vadd.f32 2e-08, %v5438_v9 }
0x37f2   :  { %v5724_v7 = vsel %vm3540_vm2, %v3737_v60, %v3736_v31  ;;  %v5727_v11 = vsel %vm3540_vm2, %v3731_v39, %v3730_v53  ;;  %v5730_v25 = vsel %vm3540_vm2, %v3743_v63, %v3742_v58  ;;  %v2663_v28 = vsub.f32 %v5751_v16, %v5468_v45 }
0x37f3   :  { %v2469_v34 = vsel %vm2468_vm1, %v4240_v41, %v2465_v29  ;;  %vm3565_vm1 = vcmask 260101   ;;  %v2587_v27 = vmul.f32 1.442695, %v2586_v5  ;;  %v2579_v29 = vsub.f32 %v5690_v35, %v5468_v45 }
0x37f4   :  { %v5733_v38 = vsel %vm2471_vm4, %v2473_v42, %v2469_v34  ;;  %v2761_v62 = vsub.f32 %v5751_v16, %v5470_v30 }
0x37f5   :  { %v2475_v22 = vmul.f32 %v5733_v38, %v2452_v19  ;;  %4241 = vpow2.f32 %v2587_v27  ;;  %v2580_v19 = vmul.f32 %v2579_v29, %v2579_v29 }
0x37f6   :  { %v2762_v36 = vmul.f32 %v2761_v62, %v2761_v62 }
0x37f7   :  { %3938 = vmatmul.msk.f32.vlgmr.msrb.gmra.mxu1 %vm309_vm0, %v5610_v40  ;;  %2477 = vrot.lane.b32.xlu0 %v2475_v22, %s4668_s24  ;;  %v3573_v40 = vld [vmem:[#allocation23] sm:$0xff]  ;;  %v2733_v22 = vsub.f32 %v5736_v18, %v5470_v30 }
0x37f8   :  { %3598 = vmatpush.msra.mxu0 %v3573_v40  ;;  %v2633_v40 = vmul.f32 %v2632_v59, %v2632_v59 }
0x37f9   :  { %v2734_v57 = vmul.f32 %v2733_v22, %v2733_v22 }
0x37fb   :  { %v4242_v42 = vpop.eup %4241 }
0x37fc   :  { %v5776_v34 = vmul.f32 2.0, %v4242_v42 }
0x37ff   :  { %3939 = vmatmul.msk.f32.gmra.mxu1 %vm309_vm0, %v5643_v21  ;;  %2509 = vrot.lane.b32.xlu0 %v2506_v33, %s4655_s21  ;;  %v5784_v33 = vperm.slane %v5705_v55, 2  ;;  %v2664_v55 = vmul.f32 %v2663_v28, %v2663_v28 }
0x3807   :  { %2499 = vrot.lane.b32.xlu0 %v5736_v18, %s4668_s24 }
0x3869   :  { %v2478_v47 = vpop.permute.xlu0 %2477 }
0x386a   :  { %v2480_v21 = vadd.f32 %v2478_v47, %v2441_v10 }
0x386c   :  { %v3901_v15 = vadd.f32 -0.5, %v2480_v21  ;;  %v3509_v32 = vpop.f32.mrf.mxu1 }
0x386d   :  { %v3534_v51 = vpop.f32.mrf.mxu3 }
0x386e   :  { %v3539_v56 = vrot.slane %v3534_v51, 7  ;;  %2483 = vrot.lane.b32.xlu1 %v3901_v15, %s4655_s21 }
0x3870   :  { %v3541_v8 = vsel %vm3540_vm2, %v3539_v56, %v3509_v32  ;;  %v3545_v12 = vsel %vm3544_vm5, %v3539_v56, %v3509_v32  ;;  %v3550_v54 = vsel %vm3549_vm7, %v3539_v56, %v3509_v32  ;;  %v3554_v6 = vsel %vm3553_vm8, %v3539_v56, %v3509_v32 }
0x3871   :  { %3543 = vst.msk [vmem:[#allocation5] sm:$0x3] %vm2132_vm3, %v3541_v8  ;;  %v3559_v41 = vsel %vm3558_vm12, %v3539_v56, %v3509_v32  ;;  %v3563_v3 = vsel %vm3562_vm14, %v3539_v56, %v3509_v32  ;;  %v2510_v46 = vpop.permute.xlu0 %2509  ;;  %vm3638_vm5 = vcmask 257024   ;;  %vm2703_vm8 = vweird.f32 %v5776_v34 }
0x3872   :  { %3548 = vst.msk [vmem:[#allocation5 + $0x1] sm:$0x6] %vm3547_vm11, %v3545_v12  ;;  %v2512_v48 = vadd.f32 %v2510_v46, %v5761_v24 }
0x3873   :  { %3552 = vst.msk [vmem:[#allocation5 + $0x2] sm:$0xc] %vm2986_vm9, %v3550_v54 }
0x3874   :  { %3557 = vst.msk [vmem:[#allocation5 + $0x3] sm:$0x18] %vm3556_vm15, %v3554_v6  ;;  %v2513_v14 = vmul.f32 %v2512_v48, %v5733_v38  ;;  %v3623_v22 = vpop.f32.mrf.mxu1 }
0x3875   :  { %3561 = vst.msk [vmem:[#allocation5 + $0x4] sm:$0x30] %vm3063_vm10, %v3559_v41 }
0x3876   :  { %3566 = vst.msk [vmem:[#allocation5 + $0x5] sm:$0x60] %vm3565_vm1, %v3563_v3  ;;  %2547 = vrot.lane.b32.xlu1 %v2544_v61, %s4655_s21  ;;  %v2691_v3 = vsub.f32 %v5690_v35, %v5470_v30 }
0x3879   :  { %v2500_v60 = vpop.permute.xlu0 %2499 }
0x387a   :  { %v2502_v39 = vsub.f32 %v5444_v37, %v2500_v60 }
0x387b   :  { %v3567_v44 = vld [vmem:[#allocation5] sm:$0xff] }
0x387c   :  { %3936 = vmatmul.msk.f32.vlgmr.msra.gmra.mxu0 %vm309_vm0, %v3567_v44  ;;  %v2503_v0 = vadd.f32 2e-08, %v2502_v39 }
0x387d   :  { %v3568_v4 = vld [vmem:[#allocation5 + $0x8] sm:$0xf] }
0x387e   :  { %2515 = vrot.lane.b32.xlu1 %v2513_v14, %s4668_s24  ;;  %v2504_v31 = vmul.f32 0.5, %v2503_v0  ;;  %v2692_v14 = vmul.f32 %v2691_v3, %v2691_v3  ;;  %v2688_v3 = vsub.f32 %v5438_v9, %v5690_v35 }
0x3884   :  { %3937 = vmatmul.msk.f32.gmra.mxu0 %vm309_vm0, %v3568_v4 }
0x38e0   :  { %v2484_v49 = vpop.permute.xlu1 %2483 }
0x38e1   :  { %v2486_v13 = vsel %vm2132_vm3, %v2484_v49, 0.0 }
0x38e2   :  { %2487 = vadd.xlane.f32.xlu2 %v2486_v13 }
0x38e8   :  { %v2548_v2 = vpop.permute.xlu1 %2547 }
0x38e9   :  { %v2550_v23 = vadd.f32 %v2548_v2, %v5784_v33 }
0x38eb   :  { %v2551_v50 = vmul.f32 %v2550_v23, %v5733_v38  ;;  %v3626_v23 = vpop.f32.mrf.mxu1 }
0x38f0   :  { %v2516_v53 = vpop.permute.xlu1 %2515 }
0x38f1   :  { %v2518_v58 = vadd.f32 %v2516_v53, %v2504_v31 }
0x38f3   :  { %v3902_v63 = vadd.f32 -0.5, %v2518_v58 }
0x38f5   :  { %2521 = vrot.lane.b32.xlu0 %v3902_v63, %s4655_s21 }
0x38fa   :  { %2582 = vrot.lane.b32.xlu2 %v2580_v19, %s4655_s21  ;;  %v3600_v19 = vpop.f32.mrf.mxu0 }
0x38fb   :  { %v3624_v59 = vadd.f32 %v3623_v22, %v3600_v19 }
0x38fd   :  { %2591 = vrot.lane.b32.xlu0 %v5776_v34, %s4655_s21 }
0x3902   :  { %2736 = vrot.lane.b32.xlu2 %v2734_v57, %s4655_s21  ;;  %v3603_v57 = vpop.f32.mrf.mxu0 }
0x3905   :  { %2537 = vrot.lane.b32.xlu0 %v5751_v16, %s4668_s24 }
0x390d   :  { %2553 = vrot.lane.b32.xlu0 %v2551_v50, %s4668_s24  ;;  %v3627_v50 = vadd.f32 %v3626_v23, %v3603_v57 }
0x3915   :  { %2635 = vrot.lane.b32.xlu0 %v2633_v40, %s4655_s21  ;;  %v4062_v40 = vld [vmem:[%s5944_s6] ss:$0 sm:$0xff] }
0x3916   :  { %v5819_v28 = vadd.f32 %v4062_v40, %v3627_v50 }
0x3918   :  { %v3639_v62 = vsel %vm3638_vm5, %v5819_v28, -inf }
0x391d   :  { %2666 = vrot.lane.b32.xlu0 %v2664_v55, %s4655_s21  ;;  %v5821_v55 = vadd.f32 %v4062_v40, %v3624_v59 }
0x3925   :  { %2764 = vrot.lane.b32.xlu0 %v2762_v36, %s4655_s21  ;;  %v3635_v36 = vsel %vm309_vm0, %v5821_v55, -inf }
0x3955   :  { %v2488_v38 = vpop.xlane.xlu2 %2487 }
0x3956   :  { %v2489_v10 = vrot.slane %v2488_v38, 4 }
0x3958   :  { %v2490_v47 = vadd.f32 %v2489_v10, %v2488_v38 }
0x395a   :  { %v2491_v21 = vrot.slane %v2490_v47, 2 }
0x395c   :  { %v2492_v15 = vadd.f32 %v2491_v21, %v2490_v47 }
0x395d   :  { %v2583_v30 = vpop.permute.xlu2 %2582 }
0x395e   :  { %v2493_v51 = vrot.slane %v2492_v15, 1  ;;  %v2585_v27 = vadd.f32 %v2583_v30, %v5709_v52 }
0x3960   :  { %v2494_v56 = vadd.f32 %v2493_v51, %v2492_v15 }
0x3962   :  { %3940 = vpush %v2494_v56 }
0x3965   :  { %v2737_v38 = vpop.permute.xlu2 %2736 }
0x3967   :  { %v2522_v32 = vpop.permute.xlu0 %2521 }
0x3968   :  { %v2524_v45 = vsel %vm2132_vm3, %v2522_v32, 0.0 }
0x3969   :  { %2525 = vadd.xlane.f32.xlu1 %v2524_v45 }
0x396f   :  { %v2592_v1 = vpop.permute.xlu0 %2591 }
0x3970   :  { %4243 = vrcp.f32 %v2592_v1  ;;  %v2605_v60 = vand.u32 2147483648, %v2592_v1  ;;  %vm2599_vm10 = vweird.f32 %v2592_v1  ;;  %v2603_v39 = vand.u32 2147483647, %v2592_v1 }
0x3971   :  { %4245 = vrcp.f32 %v5776_v34 }
0x3972   :  { %v2606_v5 = vor.u32 1.1754944e-38, %v2605_v60  ;;  %vm2604_vm4 = vcmp.eq.f32.partialorder %v2603_v39, 8.507059e+37 }
0x3976   :  { %v4244_v8 = vpop.eup %4243 }
0x3977   :  { %v2538_v12 = vpop.permute.xlu0 %2537  ;;  %v2595_v6 = vmul.f32 %v4244_v8, %v2592_v1  ;;  %vm2600_vm9 = vweird.f32 %v4244_v8  ;;  %v4246_v56 = vpop.eup %4245 }
0x3978   :  { %v2540_v54 = vsub.f32 %v5444_v37, %v2538_v12  ;;  %vm2601_vm2 = vmor %vm2599_vm10, %vm2600_vm9  ;;  %v2699_v45 = vmul.f32 %v4246_v56, %v5776_v34  ;;  %vm2704_vm7 = vweird.f32 %v4246_v56 }
0x3979   :  { %v2596_v61 = vsub.f32 1.0, %v2595_v6  ;;  %vm2705_vm11 = vmor %vm2703_vm8, %vm2704_vm7 }
0x397a   :  { %v2541_v41 = vadd.f32 2e-08, %v2540_v54  ;;  %v2700_v12 = vsub.f32 1.0, %v2699_v45 }
0x397b   :  { %v2597_v4 = vmul.f32 %v4244_v8, %v2596_v61  ;;  %v2709_v61 = vand.u32 2147483648, %v5776_v34 }
0x397c   :  { %v2542_v46 = vmul.f32 0.5, %v2541_v41  ;;  %v2701_v6 = vmul.f32 %v4246_v56, %v2700_v12 }
0x397d   :  { %v2598_v13 = vadd.f32 %v4244_v8, %v2597_v4 }
0x397e   :  { %v2702_v41 = vadd.f32 %v4246_v56, %v2701_v6 }
0x397f   :  { %v2554_v48 = vpop.permute.xlu0 %2553  ;;  %v2602_v2 = vsel %vm2601_vm2, %v4244_v8, %v2598_v13 }
0x3980   :  { %v2556_v44 = vadd.f32 %v2554_v48, %v2542_v46  ;;  %v2607_v0 = vsel %vm2604_vm4, %v2606_v5, %v2602_v2  ;;  %v2707_v46 = vand.u32 2147483647, %v5776_v34  ;;  %v2706_v48 = vsel %vm2705_vm11, %v4246_v56, %v2702_v41 }
0x3981   :  { %v2608_v31 = vmul.f32 %v2607_v0, %v2585_v27 }
0x3982   :  { %v3903_v49 = vadd.f32 -0.5, %v2556_v44  ;;  %2694 = vrot.lane.b32.xlu1 %v2692_v14, %s4655_s21  ;;  %v2689_v44 = vadd.f32 2e-08, %v2688_v3  ;;  %v2710_v14 = vor.u32 1.1754944e-38, %v2709_v61  ;;  %vm2708_vm12 = vcmp.eq.f32.partialorder %v2707_v46, 8.507059e+37 }
0x3984   :  { %2559 = vrot.lane.b32.xlu2 %v3903_v49, %s4655_s21  ;;  %v2730_v49 = vsub.f32 %v5438_v9, %v5736_v18  ;;  %v2711_v60 = vsel %vm2708_vm12, %v2710_v14, %v2706_v48  ;;  %v2690_v39 = vmul.f32 0.5, %v2689_v44 }
0x3986   :  { %v2731_v30 = vadd.f32 2e-08, %v2730_v49 }
0x3987   :  { %v2636_v37 = vpop.permute.xlu0 %2635 }
0x3988   :  { %v2638_v63 = vadd.f32 %v2636_v37, %v5761_v24 }
0x398a   :  { %2626 = vrot.lane.b32.xlu1 %v5736_v18, %s4657_s4  ;;  %v2639_v42 = vmul.f32 %v2638_v63, %v2607_v0  ;;  %v2758_v18 = vsub.f32 %v5438_v9, %v5751_v16 }
0x398c   :  { %2573 = vrot.lane.b32.xlu2 %v5690_v35, %s4657_s4  ;;  %v2739_v35 = vadd.f32 %v2737_v38, %v5761_v24 }
0x398e   :  { %v2740_v34 = vmul.f32 %v2739_v35, %v2711_v60 }
0x398f   :  { %v2667_v53 = vpop.permute.xlu0 %2666 }
0x3990   :  { %v2669_v58 = vadd.f32 %v2667_v53, %v5784_v33 }
0x3992   :  { %2610 = vrot.lane.b32.xlu1 %v2608_v31, %s4657_s4  ;;  %v2670_v29 = vmul.f32 %v2669_v58, %v2607_v0  ;;  %v2732_v58 = vmul.f32 0.5, %v2731_v30 }
0x3994   :  { %2657 = vrot.lane.b32.xlu2 %v5751_v16, %s4657_s4 }
0x3997   :  { %v2765_v31 = vpop.permute.xlu0 %2764 }
0x3998   :  { %v2767_v63 = vadd.f32 %v2765_v31, %v5784_v33 }
0x399a   :  { %2672 = vrot.lane.b32.xlu1 %v2670_v29, %s4657_s4  ;;  %v2768_v22 = vmul.f32 %v2767_v63, %v2711_v60 }
0x399c   :  { %2641 = vrot.lane.b32.xlu2 %v2639_v42, %s4657_s4  ;;  %v2759_v42 = vadd.f32 2e-08, %v2758_v18 }
0x399e   :  { %v2760_v59 = vmul.f32 0.5, %v2759_v42 }
0x39c4   :  { %3640 = vmax.xlane.f32.xlu1 %v3639_v62  ;;  %v2769_v62 = vadd.f32 %v2768_v22, %v2760_v59 }
0x39c5   :  { %3636 = vmax.xlane.f32.xlu2 %v3635_v36 }
0x39c6   :  { %v3909_v33 = vadd.f32 -0.5, %v2769_v62 }
0x39dc   :  { %v2526_v10 = vpop.xlane.xlu1 %2525 }
0x39dd   :  { %v2527_v47 = vrot.slane %v2526_v10, 4 }
0x39de   :  { %v2560_v21 = vpop.permute.xlu2 %2559 }
0x39df   :  { %v2528_v15 = vadd.f32 %v2527_v47, %v2526_v10  ;;  %v2562_v51 = vsel %vm2132_vm3, %v2560_v21, 0.0 }
0x39e0   :  { %2563 = vadd.xlane.f32.xlu0 %v2562_v51 }
0x39e1   :  { %v2529_v32 = vrot.slane %v2528_v15, 2 }
0x39e3   :  { %v2530_v1 = vadd.f32 %v2529_v32, %v2528_v15 }
0x39e5   :  { %v2531_v8 = vrot.slane %v2530_v1, 1 }
0x39e6   :  { %v2574_v37 = vpop.permute.xlu2 %2573 }
0x39e7   :  { %v2532_v54 = vadd.f32 %v2531_v8, %v2530_v1  ;;  %v2576_v0 = vsub.f32 %v5438_v9, %v2574_v37 }
0x39e9   :  { %3942 = vpush %v2532_v54  ;;  %v2577_v24 = vadd.f32 2e-08, %v2576_v0 }
0x39eb   :  { %v2578_v57 = vmul.f32 0.5, %v2577_v24 }
0x39ee   :  { %v2658_v29 = vpop.permute.xlu2 %2657 }
0x39ef   :  { %v2660_v23 = vsub.f32 %v5438_v9, %v2658_v29 }
0x39f1   :  { %v2661_v16 = vadd.f32 2e-08, %v2660_v23 }
0x39f3   :  { %v2662_v10 = vmul.f32 0.5, %v2661_v16 }
0x39f4   :  { %v2695_v4 = vpop.permute.xlu1 %2694 }
0x39f5   :  { %v2697_v13 = vadd.f32 %v2695_v4, %v5709_v52  ;;  %v2741_v52 = vadd.f32 %v2740_v34, %v2732_v58 }
0x39f6   :  { %v2642_v1 = vpop.permute.xlu2 %2641 }
0x39f7   :  { %v2712_v2 = vmul.f32 %v2711_v60, %v2697_v13  ;;  %v3908_v19 = vadd.f32 -0.5, %v2741_v52 }
0x39f9   :  { %v2713_v5 = vadd.f32 %v2712_v2, %v2690_v39 }
0x39fb   :  { %v3907_v27 = vadd.f32 -0.5, %v2713_v5 }
0x39fc   :  { %v2627_v53 = vpop.permute.xlu1 %2626 }
0x39fd   :  { %2716 = vrot.lane.b32.xlu0 %v3907_v27, %s4657_s4  ;;  %v2629_v56 = vsub.f32 %v5438_v9, %v2627_v53 }
0x39ff   :  { %v2630_v32 = vadd.f32 2e-08, %v2629_v56 }
0x3a01   :  { %v2631_v45 = vmul.f32 0.5, %v2630_v32 }
0x3a03   :  { %v2644_v8 = vadd.f32 %v2642_v1, %v2631_v45 }
0x3a04   :  { %v2611_v50 = vpop.permute.xlu1 %2610 }
0x3a05   :  { %v2613_v40 = vadd.f32 %v2611_v50, %v2578_v57  ;;  %2744 = vrot.lane.b32.xlu0 %v3908_v19, %s4657_s4  ;;  %v3905_v12 = vadd.f32 -0.5, %v2644_v8 }
0x3a07   :  { %v3904_v36 = vadd.f32 -0.5, %v2613_v40  ;;  %v2646_v54 = vsel %vm2132_vm3, %v3905_v12, 0.0 }
0x3a09   :  { %v2615_v38 = vsel %vm2132_vm3, %v3904_v36, 0.0 }
0x3a0a   :  { %2616 = vadd.xlane.f32.xlu2 %v2615_v38 }
0x3a0c   :  { %v2673_v47 = vpop.permute.xlu1 %2672 }
0x3a0d   :  { %v2675_v21 = vadd.f32 %v2673_v47, %v2662_v10  ;;  %2772 = vrot.lane.b32.xlu0 %v3909_v33, %s4657_s4 }
0x3a0f   :  { %v3906_v15 = vadd.f32 -0.5, %v2675_v21 }
0x3a11   :  { %v2677_v51 = vsel %vm2132_vm3, %v3906_v15, 0.0 }
0x3a12   :  { %2678 = vadd.xlane.f32.xlu1 %v2677_v51 }
0x3a37   :  { %2647 = vadd.xlane.f32.xlu0 %v2646_v54  ;;  %v3641_v60 = vpop.xlane.xlu1 %3640 }
0x3a38   :  { %v3637_v14 = vpop.xlane.xlu2 %3636  ;;  %v3643_v37 = vsub.f32 %v5819_v28, %v3641_v60 }
0x3a39   :  { %v3642_v4 = vsub.f32 %v5821_v55, %v3637_v14 }
0x3a3a   :  { %v3646_v2 = vmul.f32 1.442695, %v3643_v37 }
0x3a3b   :  { %v3644_v13 = vmul.f32 1.442695, %v3642_v4 }
0x3a3d   :  { %4247 = vpow2.f32 %v3644_v13 }
0x3a3e   :  { %4249 = vpow2.f32 %v3646_v2 }
0x3a43   :  { %v5855_v30 = vpop.eup %4247 }
0x3a44   :  { %v3648_v31 = vsel %vm309_vm0, %v5855_v30, 0.0  ;;  %v5860_v58 = vpop.eup %4249 }
0x3a45   :  { %v3651_v52 = vsel %vm3638_vm5, %v5860_v58, 0.0 }
0x3a53   :  { %v2564_v6 = vpop.xlane.xlu0 %2563 }
0x3a54   :  { %v2565_v41 = vrot.slane %v2564_v6, 4 }
0x3a56   :  { %v2566_v3 = vadd.f32 %v2565_v41, %v2564_v6 }
0x3a58   :  { %v2567_v61 = vrot.slane %v2566_v3, 2 }
0x3a5a   :  { %v2568_v46 = vadd.f32 %v2567_v61, %v2566_v3 }
0x3a5c   :  { %v2569_v48 = vrot.slane %v2568_v46, 1 }
0x3a5e   :  { %v2570_v44 = vadd.f32 %v2569_v48, %v2568_v46 }
0x3a60   :  { %3944 = vpush %v2570_v44 }
0x3a6f   :  { %v2717_v9 = vpop.permute.xlu0 %2716 }
0x3a70   :  { %v2719_v49 = vsel %vm2132_vm3, %v2717_v9, 0.0 }
0x3a71   :  { %2720 = vadd.xlane.f32.xlu2 %v2719_v49 }
0x3a77   :  { %v2745_v35 = vpop.permute.xlu0 %2744 }
0x3a78   :  { %v2747_v39 = vsel %vm2132_vm3, %v2745_v35, 0.0 }
0x3a79   :  { %2748 = vadd.xlane.f32.xlu1 %v2747_v39 }
0x3a7d   :  { %v2617_v5 = vpop.xlane.xlu2 %2616 }
0x3a7e   :  { %v2618_v34 = vrot.slane %v2617_v5, 4 }
0x3a7f   :  { %v2773_v55 = vpop.permute.xlu0 %2772 }
0x3a80   :  { %v2619_v0 = vadd.f32 %v2618_v34, %v2617_v5  ;;  %v2775_v27 = vsel %vm2132_vm3, %v2773_v55, 0.0 }
0x3a81   :  { %3649 = vadd.xlane.f32.xlu1 %v3648_v31  ;;  %2776 = vadd.xlane.f32.xlu2 %v2775_v27 }
0x3a82   :  { %v2620_v28 = vrot.slane %v2619_v0, 2 }
0x3a84   :  { %v2621_v53 = vadd.f32 %v2620_v28, %v2619_v0 }
0x3a85   :  { %v2679_v24 = vpop.xlane.xlu1 %2678 }
0x3a86   :  { %v2622_v18 = vrot.slane %v2621_v53, 1  ;;  %v2680_v29 = vrot.slane %v2679_v24, 4 }
0x3a88   :  { %v2623_v63 = vadd.f32 %v2622_v18, %v2621_v53  ;;  %v2681_v42 = vadd.f32 %v2680_v29, %v2679_v24 }
0x3a89   :  { %3652 = vadd.xlane.f32.xlu2 %v3651_v52 }
0x3a8a   :  { %3946 = vpush %v2623_v63  ;;  %v2682_v19 = vrot.slane %v2681_v42, 2 }
0x3a8c   :  { %v2683_v50 = vadd.f32 %v2682_v19, %v2681_v42 }
0x3a8e   :  { %v2684_v62 = vrot.slane %v2683_v50, 1 }
0x3a90   :  { %v2685_v38 = vadd.f32 %v2684_v62, %v2683_v50 }
0x3a9a   :  { %3721 = vrot.lane.b32.xlu1 %v5717_v43, %s4674_s18 }
0x3aa1   :  { %3727 = vrot.lane.b32.xlu2 %v5720_v26, %s4675_s23 }
0x3aaa   :  { %v2648_v22 = vpop.xlane.xlu0 %2647 }
0x3aab   :  { %v2649_v57 = vrot.slane %v2648_v22, 4 }
0x3aad   :  { %v2650_v23 = vadd.f32 %v2649_v57, %v2648_v22 }
0x3aaf   :  { %v2651_v59 = vrot.slane %v2650_v23, 2 }
0x3ab1   :  { %v2652_v40 = vadd.f32 %v2651_v59, %v2650_v23 }
0x3ab3   :  { %v2653_v16 = vrot.slane %v2652_v40, 1 }
0x3ab5   :  { %v2654_v36 = vadd.f32 %v2653_v16, %v2652_v40 }
0x3ab7   :  { %3948 = vpush %v2654_v36 }
0x3ab8   :  { %3950 = vpush %v2685_v38 }
0x3ae4   :  { %v2721_v43 = vpop.xlane.xlu2 %2720 }
0x3ae5   :  { %v2722_v33 = vrot.slane %v2721_v43, 4 }
0x3ae7   :  { %v2723_v10 = vadd.f32 %v2722_v33, %v2721_v43 }
0x3ae9   :  { %v2724_v47 = vrot.slane %v2723_v10, 2 }
0x3aeb   :  { %v2725_v26 = vadd.f32 %v2724_v47, %v2723_v10 }
0x3aec   :  { %v2749_v21 = vpop.xlane.xlu1 %2748 }
0x3aed   :  { %v2750_v15 = vrot.slane %v2749_v21, 4  ;;  %v2726_v51 = vrot.slane %v2725_v26, 1 }
0x3aef   :  { %v2751_v56 = vadd.f32 %v2750_v15, %v2749_v21  ;;  %v2727_v32 = vadd.f32 %v2726_v51, %v2725_v26 }
0x3af1   :  { %v2752_v45 = vrot.slane %v2751_v56, 2  ;;  %3952 = vpush %v2727_v32 }
0x3af3   :  { %v2753_v1 = vadd.f32 %v2752_v45, %v2751_v56 }
0x3af4   :  { %v3650_v8 = vpop.xlane.xlu1 %3649  ;;  %v2777_v12 = vpop.xlane.xlu2 %2776 }
0x3af5   :  { %4251 = vrcp.f32 %v3650_v8  ;;  %v2778_v54 = vrot.slane %v2777_v12, 4  ;;  %v2754_v6 = vrot.slane %v2753_v1, 1  ;;  %v3665_v49 = vand.u32 2147483648, %v3650_v8 }
0x3af6   :  { %v3663_v60 = vand.u32 2147483647, %v3650_v8  ;;  %vm3659_vm14 = vweird.f32 %v3650_v8 }
0x3af7   :  { %v2779_v41 = vadd.f32 %v2778_v54, %v2777_v12  ;;  %v2755_v3 = vadd.f32 %v2754_v6, %v2753_v1  ;;  %v3666_v2 = vor.u32 1.1754944e-38, %v3665_v49 }
0x3af8   :  { %vm3664_vm1 = vcmp.eq.f32.partialorder %v3663_v60, 8.507059e+37 }
0x3af9   :  { %v2780_v61 = vrot.slane %v2779_v41, 2  ;;  %3954 = vpush %v2755_v3 }
0x3afb   :  { %v4252_v46 = vpop.eup %4251  ;;  %v2781_v14 = vadd.f32 %v2780_v61, %v2779_v41 }
0x3afc   :  { %v3655_v48 = vmul.f32 %v4252_v46, %v3650_v8  ;;  %v3653_v44 = vpop.xlane.xlu2 %3652  ;;  %vm3660_vm3 = vweird.f32 %v4252_v46 }
0x3afd   :  { %4253 = vrcp.f32 %v3653_v44  ;;  %v2782_v9 = vrot.slane %v2781_v14, 1  ;;  %vm3661_vm15 = vmor %vm3659_vm14, %vm3660_vm3  ;;  %v3678_v31 = vand.u32 2147483647, %v3653_v44  ;;  %v3680_v28 = vand.u32 2147483648, %v3653_v44 }
0x3afe   :  { %v3656_v4 = vsub.f32 1.0, %v3655_v48  ;;  %vm3674_vm10 = vweird.f32 %v3653_v44 }
0x3aff   :  { %v2783_v37 = vadd.f32 %v2782_v9, %v2781_v14  ;;  %v3681_v24 = vor.u32 1.1754944e-38, %v3680_v28 }
0x3b00   :  { %v3657_v13 = vmul.f32 %v4252_v46, %v3656_v4 }
0x3b01   :  { %3956 = vpush %v2783_v37 }
0x3b02   :  { %v3658_v35 = vadd.f32 %v4252_v46, %v3657_v13  ;;  %3958 = vpush %v5452_v20 }
0x3b03   :  { %v4254_v39 = vpop.eup %4253 }
0x3b04   :  { %v3662_v5 = vsel %vm3661_vm15, %v4252_v46, %v3658_v35  ;;  %v3670_v34 = vmul.f32 %v4254_v39, %v3653_v44  ;;  %vm3675_vm9 = vweird.f32 %v4254_v39 }
0x3b05   :  { %v3667_v55 = vsel %vm3664_vm1, %v3666_v2, %v3662_v5  ;;  %vm5877_vm2 = vmor %vm3674_vm10, %vm3675_vm9 }
0x3b06   :  { %v5868_v0 = vmul.f32 %v5855_v30, %v3667_v55  ;;  %v3671_v27 = vsub.f32 1.0, %v3670_v34 }
0x3b08   :  { %v3672_v53 = vmul.f32 %v4254_v39, %v3671_v27  ;;  %v3693_v18 = vrot.slane %v5868_v0, 6  ;;  %v3685_v52 = vrot.slane %v5868_v0, 2  ;;  %v3689_v63 = vrot.slane %v5868_v0, 4 }
0x3b0a   :  { %v3673_v20 = vadd.f32 %v4254_v39, %v3672_v53  ;;  %3694 = vrot.lane.b32.xlu0 %v3693_v18, %s4657_s4  ;;  %3686 = vrot.lane.b32.xlu1 %v3685_v52, %s4655_s21 }
0x3b0b   :  { %3690 = vrot.lane.b32.xlu2 %v3689_v63, %s4668_s24 }
0x3b0c   :  { %4545 = shalt.err (!%p4542_p3)
}
0x3b0d   :  { %3784 = dma.vmem_to_hbm [thread:$0]  %s3780_s13, 32, %s3782_s12, [#allocation26]   ;;  %v3677_v29 = vsel %vm5877_vm2, %v4254_v39, %v3673_v20  ;;  %vm3679_vm4 = vcmp.eq.f32.partialorder %v3678_v31, 8.507059e+37 }
0x3b0e   :  { %s4677_s4 = smov [#allocation24]   ;;  %s3770_s7 = sshll.u32 %s4835_s8, 4  ;;  %v3682_v42 = vsel %vm3679_vm4, %v3681_v24, %v3677_v29  ;;  %s3771_s7 = int_to_ptr.hbm [resolvable:$true] %s3770_s7 }
0x3b0f   :  { %s3768_s3 = sshll.u32 %s4677_s4, 4  ;;  %v5888_v19 = vmul.f32 %v5860_v58, %v3682_v42  ;;  %s4558_s29 = sshra.s32 %s3771_s7, 4  ;;  %s3769_s3 = int_to_ptr.vmem [resolvable:$true] %s3768_s3  ;;  %s4559_s29 = int_to_ptr.hbm [resolvable:$true] %s4558_s29 }
0x3b10   :  { %s4560_s5 = scalar_lea.hbm %s4559_s29, 2  ;;  %s4562_s10 = scalar_lea.hbm %s4835_s8, 2 }
0x3b11   :  { %p4561_p4 = scmp.ne.s32.totalorder %s4559_s29, %s4560_s5  ;;  %p4563_p5 = scmp.lt.s32.totalorder %s4559_s29, %s4835_s8 }
0x3b12   :  { %p4564_p6 = scmp.lt.s32.totalorder %s4562_s10, %s4560_s5 }
0x3b14   :  { %p4565_p7 = por %p4564_p6, %p4563_p5 }
0x3b16   :  { %p4566_p8 = pnand %p4565_p7, %p4561_p4 }
0x3b18   :  { %4569 = shalt.err (!%p4566_p8)
}
0x3b19   :  { %3773 = dma.vmem_to_hbm [thread:$0]  %s3769_s3, 32, %s3771_s7, [#allocation8]   ;;  %v3698_v22 = vrot.slane %v5888_v19, 2  ;;  %vm2796_vm5 = vcmask 0  }
0x3b1a   :  { %s4678_s1 = smov 40   ;;  %s4679_s24 = smov 30  }
0x3b1b   :  { %3739 = vrot.lane.b32.xlu0 %v5724_v7, %s4678_s1  ;;  %3733 = vrot.lane.b32.xlu1 %v5727_v11, %s4679_s24  ;;  %s4680_s27 = smov 50   ;;  %s3941_s8 = spop %3940 }
0x3b1c   :  { %3699 = vrot.lane.b32.xlu2 %v3698_v22, %s4655_s21  ;;  %s3943_s19 = spop %3942  ;;  %s3792_s21 = sshll.u32 %s4845_s17, 4  ;;  %s3793_s21 = int_to_ptr.hbm [resolvable:$true] %s3792_s21 }
0x3b1d   :  { %s3945_s22 = spop %3944  ;;  %s2534_s2 = sadd.f32 %s3943_s19, %s3941_s8 }
0x3b1e   :  { %s3947_s28 = spop %3946  ;;  %s4681_s16 = smov [#allocation27]  }
0x3b1f   :  { %s2572_s20 = sadd.f32 %s3945_s22, %s2534_s2  ;;  %s3949_s11 = spop %3948 }
0x3b20   :  { %s3951_s14 = spop %3950  ;;  %s3790_s0 = sshll.u32 %s4681_s16, 4  ;;  %s3791_s0 = int_to_ptr.vmem [resolvable:$true] %s3790_s0 }
0x3b21   :  { %s2625_s30 = sadd.f32 %s3947_s28, %s2572_s20  ;;  %s4582_s7 = sshra.s32 %s3793_s21, 4  ;;  %s4583_s7 = int_to_ptr.hbm [resolvable:$true] %s4582_s7 }
0x3b22   :  { %s3953_s6 = spop %3952  ;;  %s4584_s29 = scalar_lea.hbm %s4583_s7, 1 }
0x3b23   :  { %s2656_s15 = sadd.f32 %s3949_s11, %s2625_s30  ;;  %p4585_p9 = scmp.ne.s32.totalorder %s4583_s7, %s4584_s29 }
0x3b24   :  { %3745 = vrot.lane.b32.xlu2 %v5730_v25, %s4680_s27  ;;  %s4586_s5 = scalar_lea.hbm %s4845_s17, 1  ;;  %p4587_p10 = scmp.lt.s32.totalorder %s4583_s7, %s4845_s17 }
0x3b25   :  { %s2687_s18 = sadd.f32 %s3951_s14, %s2656_s15  ;;  %p4588_p11 = scmp.lt.s32.totalorder %s4586_s5, %s4584_s29 }
0x3b27   :  { %s2729_s12 = sadd.f32 %s3953_s6, %s2687_s18  ;;  %p4589_p12 = por %p4588_p11, %p4587_p10 }
0x3b29   :  { %p4590_p13 = pnand %p4589_p12, %p4585_p9 }
0x3b2a   :  { %s3955_s23 = spop %3954 }
0x3b2b   :  { %s2757_s26 = sadd.f32 %s3955_s23, %s2729_s12 }
0x3b32   :  { %s3957_s13 = spop %3956 }
0x3b33   :  { %s2785_s25 = sadd.f32 %s3957_s13, %s2757_s26  ;;  %s3959_s4 = spop %3958 }
0x3b35   :  { %s2794_s3 = smul.f32 %s3959_s4, %s2785_s25 }
0x3b37   :  { %v2795_v7 = vstv %s2794_s3 }
0x3b38   :  { %2797 = vst.msk [vmem:[#allocation27] sm:$0x1] %vm2796_vm5, %v2795_v7 }
0x3b39   :  { %4593 = shalt.err (!%p4590_p13)
}
0x3b3a   :  { %3795 = dma.vmem_to_hbm [thread:$0]  %s3791_s0, 16, %s3793_s21, [#allocation26]   ;;  %v3728_v11 = vpop.permute.xlu2 %3727  ;;  %v3722_v58 = vpop.permute.xlu1 %3721  ;;  %vm3703_vm7 = vcmask 523264   ;;  %vm3713_vm8 = vcmask 519170   ;;  %vm3705_vm11 = vcmask 785408   ;;  %vm3749_vm3 = vcmask 162816  }
0x3b3b   :  { %s5947_s10 = sld [smem:[#allocation49_spill]]  ;;  %vm3714_vm12 = vmor %vm3713_vm8, %vm3489_vm13  ;;  %v3748_v43 = vsel %vm3485_vm6, %v5714_v17, %v3722_v58  ;;  %vm3751_vm14 = vcmask 244736   ;;  %vm3753_vm15 = vcmask 326656   ;;  %vm3755_vm1 = vcmask 408576  }
0x3b3c   :  { %v3750_v10 = vsel %vm3749_vm3, %v3748_v43, %v3728_v11 }
0x3b65   :  { %v3691_v25 = vpop.permute.xlu2 %3690 }
0x3b76   :  { %v3700_v57 = vpop.permute.xlu2 %3699 }
0x3b77   :  { %v3707_v23 = vsel %vm309_vm0, %v5888_v19, %v3700_v57 }
0x3b78   :  { %v3710_v62 = vrot.slane %v3707_v23, 6 }
0x3b7c   :  { %v3687_v50 = vpop.permute.xlu1 %3686  ;;  %v3695_v59 = vpop.permute.xlu0 %3694 }
0x3b7d   :  { %v3702_v40 = vsel %vm309_vm0, %v5868_v0, %v3687_v50  ;;  %vm3757_vm0 = vcmask 484352  }
0x3b7e   :  { %v3704_v16 = vsel %vm3703_vm7, %v3702_v40, %v3691_v25  ;;  %v3746_v21 = vpop.permute.xlu2 %3745 }
0x3b7f   :  { %v3706_v36 = vsel %vm3705_vm11, %v3704_v16, %v3695_v59 }
0x3b80   :  { %v3711_v38 = vsel %vm3489_vm13, %v3706_v36, %v3710_v62 }
0x3b81   :  { %3715 = vst.msk [vmem:[%s5947_s10] sm:$0xf] %vm3714_vm12, %v3711_v38 }
0x3b8d   :  { %v3734_v33 = vpop.permute.xlu1 %3733  ;;  %v3740_v47 = vpop.permute.xlu0 %3739 }
0x3b8e   :  { %v3752_v26 = vsel %vm3751_vm14, %v3750_v10, %v3734_v33 }
0x3b8f   :  { %v3754_v15 = vsel %vm3753_vm15, %v3752_v26, %v3740_v47 }
0x3b90   :  { %v3756_v51 = vsel %vm3755_vm1, %v3754_v15, %v3746_v21 }
0x3b91   :  { %3758 = vst.msk [vmem:[%s4830_s9] sm:$0x3] %vm3757_vm0, %v3756_v51 }
0x3b92   :  { %4606 = dma.done.wait [#allocation8], 32  }
0x3b93   :  { %4607 = vsyncadd [#allocation8], 4294967264 }
0x3b94   :  { %4608 = dma.done.wait [#allocation26], 48  }
0x3b95   :  { %4609 = vsyncadd [#allocation26], 4294967248 }
0x3b96   :  { %3812 = vsyncpa [#allocation7], 1 }
0x3b97   :  { %3813 = vsyncpa [#allocation10], 1 }
0x3b98   :  { %3814 = vsyncpa [#allocation13], 1 }
0x3b99   :  { %3815 = vsyncpa [#allocation16], 1 }
0x3b9a   :  { %3816 = vsyncpa [#allocation19], 1 }
0x3b9b   :  { %3817 = vsyncpa [#allocation22], 1 }
0x3b9c   :  { %3818 = vsyncpa [#allocation8], 1 }
0x3b9d   :  { %3819 = vsyncpa [#allocation26], 1 }

</bundles_post_ra>
